<compile_context>
chip_gen: v7x
topology: tpu7x:2x2x1
jax: 0.10.0
libtpu: 0.0.40
codegen_flags: <defaults>
</compile_context>

<pallas_src>
import functools

import numpy as np
import jax
import jax.numpy as jnp
from jax.experimental import pallas as pl
from jax.experimental.pallas import tpu as pltpu


# ----------------------------------------------------------------------------
# In-kernel helpers (pure value ops, traced inside the fused kernels)
# ----------------------------------------------------------------------------
def _pad_hw1(x_hwc):
    """Zero-pad a (H, W, C) value by 1 on both spatial dims using concatenates."""
    h, w, c = x_hwc.shape
    zrow = jnp.zeros((1, w, c), jnp.float32)
    xp = jnp.concatenate([zrow, x_hwc, zrow], axis=0)
    zcol = jnp.zeros((h + 2, 1, c), jnp.float32)
    return jnp.concatenate([zcol, xp, zcol], axis=1)


def _conv3x3_im2col(x_hwc, wmat, brow):
    """3x3 'same' conv as ONE matmul: (H*W, 9*Cin) @ (9*Cin, Cout) + bias."""
    h, w, cin = x_hwc.shape
    xp = _pad_hw1(x_hwc)
    cols = [xp[dy:dy + h, dx:dx + w, :].reshape(h * w, cin)
            for dy in range(3) for dx in range(3)]
    patches = jnp.concatenate(cols, axis=-1)                       # (H*W, 9*Cin)
    return jnp.dot(patches, wmat, preferred_element_type=jnp.float32) + brow


def _flow_block(x_hwc, ksize, w1, b1, w2, b2, sc, off, wpt, clamp):
    """One FrEIA AllInOneBlock forward (permute_soft=False) on a single image (H,W,C).

    Subnet: Conv(k,'same') -> ReLU -> Conv(k,'same');  coupling: a*=0.1,
    s=clamp*tanh(a[:, :c2]), x2' = x2*exp(s)+a[:, c2:], jac=sum(s);
    output: (cat(x1,x2')*scale+offset) @ Wperm^T  (done as two row-split matmuls).
    """
    h, w, c = x_hwc.shape
    s0 = c - c // 2
    s1 = c // 2
    mid = w1.shape[-1]
    hw = h * w

    x1 = x_hwc[:, :, :s0]                       # (H, W, s0)
    x1f = x1.reshape(hw, s0)
    x2f = x_hwc[:, :, s0:].reshape(hw, s1)

    if ksize == 3:
        hmid = _conv3x3_im2col(x1, w1, b1)
    else:  # 1x1 conv: only the center-tap rows of the stacked im2col weight are used
        hmid = jnp.dot(x1f, w1[4 * s0:5 * s0, :],
                       preferred_element_type=jnp.float32) + b1
    hmid = jnp.maximum(hmid, 0.0)

    if ksize == 3:
        a = _conv3x3_im2col(hmid.reshape(h, w, mid), w2, b2)
    else:
        a = jnp.dot(hmid, w2[4 * mid:5 * mid, :],
                    preferred_element_type=jnp.float32) + b2

    a = a * 0.1
    s = clamp * jnp.tanh(a[:, :s1])
    t = a[:, s1:]
    x2n = x2f * jnp.exp(s) + t
    jac = jnp.sum(jnp.sum(s, axis=1, keepdims=True), axis=0, keepdims=True)  # (1, 1)

    # global affine + hard permutation (split-row matmuls: no lane-axis concatenate)
    xs1 = x1f * sc[:, :s0] + off[:, :s0]
    xs2 = x2n * sc[:, s0:] + off[:, s0:]
    y = (jnp.dot(xs1, wpt[:s0, :], preferred_element_type=jnp.float32)
         + jnp.dot(xs2, wpt[s0:, :], preferred_element_type=jnp.float32))    # (H*W, C)
    return y.reshape(h, w, c), jac


# ----------------------------------------------------------------------------
# Fused Pallas kernels (one per flow stage)
# ----------------------------------------------------------------------------
def _coarse_stage_kernel(xp_ref, wp_ref, bp_ref,
                         w1s_ref, b1s_ref, w2s_ref, b2s_ref,
                         sc_ref, of_ref, wpt_ref,
                         y_ref, ljd_ref, *, ksizes, clamp):
    _, h, w, cin = xp_ref.shape
    cout = wp_ref.shape[-1]
    # synthetic feature projection (1x1 conv == matmul) fused into the stage
    f = jnp.dot(xp_ref[0].reshape(h * w, cin), wp_ref[...],
                preferred_element_type=jnp.float32) + bp_ref[...]
    x = f.reshape(h, w, cout)

    jac = jnp.zeros((1, 1), jnp.float32)
    for blk, k in enumerate(ksizes):
        x, j = _flow_block(x, k, w1s_ref[blk], b1s_ref[blk], w2s_ref[blk], b2s_ref[blk],
                           sc_ref[blk], of_ref[blk], wpt_ref[blk], clamp)
        jac = jac + j

    y_ref[...] = x[None]
    ljd_ref[...] = jac.reshape(1, 1, 1)


def _fine_stage_kernel(xp_ref, up_ref, z2_ref, wp_ref, bp_ref,
                       w1s_ref, b1s_ref, w2s_ref, b2s_ref,
                       sc_ref, of_ref, wpt_ref,
                       wh1_ref, ww1t_ref, wh2_ref, ww2t_ref,
                       z1_ref, amap_ref, ljd_ref, *, ksizes, clamp):
    _, h, w, cin = xp_ref.shape
    cproj = wp_ref.shape[-1]
    f = jnp.dot(xp_ref[0].reshape(h * w, cin), wp_ref[...],
                preferred_element_type=jnp.float32) + bp_ref[...]
    # FrEIA Concat node: [fine features, upsampled coarse half] along channels
    x = jnp.concatenate([f.reshape(h, w, cproj), up_ref[0]], axis=-1)

    jac = jnp.zeros((1, 1), jnp.float32)
    for blk, k in enumerate(ksizes):
        x, j = _flow_block(x, k, w1s_ref[blk], b1s_ref[blk], w2s_ref[blk], b2s_ref[blk],
                           sc_ref[blk], of_ref[blk], wpt_ref[blk], clamp)
        jac = jac + j

    z1 = x
    z1_ref[...] = z1[None]
    ljd_ref[...] = jac.reshape(1, 1, 1)

    # anomaly map: per-scale likelihood mean(z^2, C)/2, bilinear resize as two matmuls,
    # mean over scales — fused here so z never needs a separate kernel launch.
    z2 = z2_ref[0]
    l1 = jnp.mean(z1 * z1, axis=-1) * 0.5                 # (h, w)
    l2 = jnp.mean(z2 * z2, axis=-1) * 0.5                 # (h2, w2)
    r1 = jnp.dot(wh1_ref[...],
                 jnp.dot(l1, ww1t_ref[...], preferred_element_type=jnp.float32),
                 preferred_element_type=jnp.float32)
    r2 = jnp.dot(wh2_ref[...],
                 jnp.dot(l2, ww2t_ref[...], preferred_element_type=jnp.float32),
                 preferred_element_type=jnp.float32)
    amap_ref[...] = (0.5 * (r1 + r2))[None]


# ----------------------------------------------------------------------------
# BlockSpec helpers
# ----------------------------------------------------------------------------
def _wspec(a):
    """Broadcast (weight) operand: full array every grid step."""
    n = a.ndim
    return pl.BlockSpec(tuple(a.shape), lambda i: (0,) * n)


def _bspec(a):
    """Per-batch operand: block one image along the leading axis."""
    tail = (0,) * (a.ndim - 1)
    return pl.BlockSpec((1,) + tuple(a.shape[1:]), lambda i: (i,) + tail)


# ----------------------------------------------------------------------------
# Glue: parameters, FrEIA graph plumbing
# ----------------------------------------------------------------------------
def bilinear_matrix(out_size, in_size):
    """Row-stochastic matrix matching F.interpolate(mode='bilinear', align_corners=False)."""
    scale = in_size / out_size
    i = np.arange(out_size)
    src = np.maximum((i + 0.5) * scale - 0.5, 0.0)
    lo = np.minimum(np.floor(src).astype(np.int64), in_size - 1)
    hi = np.minimum(lo + 1, in_size - 1)
    lam = src - lo
    m = np.zeros((out_size, in_size), np.float32)
    np.add.at(m, (i, lo), (1.0 - lam).astype(np.float32))
    np.add.at(m, (i, hi), lam.astype(np.float32))
    return m


def avg_pool_nhwc(x, s):
    b, h, w, c = x.shape
    return x.reshape(b, h // s, s, w // s, s, c).mean(axis=(2, 4))


def pixel_shuffle_nhwc(x):
    """FrEIA IRevNetUpsampling forward == F.pixel_shuffle(block=2), done in NHWC."""
    b, h, w, c4 = x.shape
    c = c4 // 4
    x = x.reshape(b, h, w, c, 2, 2)
    x = x.transpose(0, 1, 4, 2, 5, 3)
    return x.reshape(b, 2 * h, 2 * w, c)


def _init_block(key, channels, ksize, ratio):
    """Parameters of one AllInOneBlock, pre-reshaped to im2col layout."""
    s0 = channels - channels // 2
    s1 = channels // 2
    mid = int(s0 * ratio)
    k1, k2, k3 = jax.random.split(key, 3)
    w1 = 0.1 * jax.random.normal(k1, (ksize, ksize, s0, mid), jnp.float32)
    w2 = 0.1 * jax.random.normal(k2, (ksize, ksize, mid, 2 * s1), jnp.float32)
    # stack everything as 3x3 im2col matrices; 1x1 weights occupy the center-tap rows
    if ksize == 3:
        w1m = w1.reshape(9 * s0, mid)
        w2m = w2.reshape(9 * mid, 2 * s1)
    else:
        w1m = jnp.zeros((9 * s0, mid), jnp.float32).at[4 * s0:5 * s0, :].set(
            w1.reshape(s0, mid))
        w2m = jnp.zeros((9 * mid, 2 * s1), jnp.float32).at[4 * mid:5 * mid, :].set(
            w2.reshape(mid, 2 * s1))
    b1 = jnp.zeros((1, mid), jnp.float32)
    b2 = jnp.zeros((1, 2 * s1), jnp.float32)
    perm = jax.random.permutation(k3, channels)
    w_perm = jnp.zeros((channels, channels), jnp.float32).at[
        jnp.arange(channels), perm].set(1.0)
    # SOFTPLUS global affine init (global_affine_init=1.0): scale = 0.1*softplus(beta=0.5)
    gscale = jnp.full((channels,), 2.0 * np.log(np.exp(0.5 * 10.0) - 1.0), jnp.float32)
    goffset = jnp.zeros((channels,), jnp.float32)
    scale_act = 0.2 * jnp.log1p(jnp.exp(0.5 * gscale))
    return dict(w1=w1m, b1=b1, w2=w2m, b2=b2,
                scale=scale_act.reshape(1, channels),
                offset=goffset.reshape(1, channels),
                wpt=w_perm.T)


def _init_stage(key, channels, n_steps, ratio, hw):
    keys = jax.random.split(key, n_steps)
    ksizes = tuple(3 if s % 2 == 0 else 1 for s in range(n_steps))
    blocks = [_init_block(keys[s], channels, ksizes[s], ratio) for s in range(n_steps)]
    stacked = {k: jnp.stack([b[k] for b in blocks], axis=0) for k in blocks[0]}
    const = sum(float(hw) * jnp.sum(jnp.log(b["scale"])) for b in blocks)
    stacked["ksizes"] = ksizes
    stacked["const"] = const
    return stacked


class UflowPallasModel:
    """U-Flow forward (2 scales): two fused Pallas kernels, one per flow stage."""

    def __init__(self, key, input_size=(32, 32), flow_steps=4, channels=(8, 16),
                 scale_factors=(4, 8), affine_clamp=2.0, affine_subnet_channels_ratio=1.0):
        self.input_size = input_size
        self.clamp = float(affine_clamp)
        self.channels = channels
        self.scale_factors = scale_factors

        kf1, kf2, kflow = jax.random.split(key, 3)
        kcoarse, kfine = jax.random.split(kflow)

        # synthetic feature-extractor projections (see TODO(synk) at top)
        self.wproj_fine = 0.1 * jax.random.normal(kf1, (3, channels[0]), jnp.float32)
        self.bproj_fine = jnp.zeros((1, channels[0]), jnp.float32)
        self.wproj_coarse = 0.1 * jax.random.normal(kf2, (3, channels[1]), jnp.float32)
        self.bproj_coarse = jnp.zeros((1, channels[1]), jnp.float32)

        h1, w1 = input_size[0] // scale_factors[0], input_size[1] // scale_factors[0]
        h2, w2 = input_size[0] // scale_factors[1], input_size[1] // scale_factors[1]
        self.fine_hw = (h1, w1)
        self.coarse_hw = (h2, w2)

        c_coarse = channels[1]
        self.coarse = _init_stage(kcoarse, c_coarse, flow_steps,
                                  affine_subnet_channels_ratio, h2 * w2)
        self.split_up = c_coarse // 8 * 4            # FrEIA Split: section_sizes[0]
        self.c_fine = channels[0] + self.split_up // 4
        self.fine = _init_stage(kfine, self.c_fine, flow_steps,
                                affine_subnet_channels_ratio, h1 * w1)
        self.ljd_const = self.coarse["const"] + self.fine["const"]

        self.wh1 = jnp.asarray(bilinear_matrix(input_size[0], h1))
        self.ww1t = jnp.asarray(bilinear_matrix(input_size[1], w1)).T
        self.wh2 = jnp.asarray(bilinear_matrix(input_size[0], h2))
        self.ww2t = jnp.asarray(bilinear_matrix(input_size[1], w2)).T

    # -- fused stage launchers ------------------------------------------------
    def _run_coarse(self, xp):
        B, h, w, _ = xp.shape
        p = self.coarse
        c = self.channels[1]
        args = (xp, self.wproj_coarse, self.bproj_coarse,
                p["w1"], p["b1"], p["w2"], p["b2"], p["scale"], p["offset"], p["wpt"])
        in_specs = [_bspec(xp)] + [_wspec(a) for a in args[1:]]
        return pl.pallas_call(
            functools.partial(_coarse_stage_kernel, ksizes=p["ksizes"], clamp=self.clamp),
            out_shape=(jax.ShapeDtypeStruct((B, h, w, c), jnp.float32),
                       jax.ShapeDtypeStruct((B, 1, 1), jnp.float32)),
            grid=(B,),
            in_specs=in_specs,
            out_specs=(pl.BlockSpec((1, h, w, c), lambda i: (i, 0, 0, 0)),
                       pl.BlockSpec((1, 1, 1), lambda i: (i, 0, 0))),
            compiler_params=pltpu.CompilerParams(dimension_semantics=("parallel",)),
        )(*args)

    def _run_fine(self, xp, up, z2):
        B, h, w, _ = xp.shape
        p = self.fine
        c = self.c_fine
        H, W = self.input_size
        args = (xp, up, z2, self.wproj_fine, self.bproj_fine,
                p["w1"], p["b1"], p["w2"], p["b2"], p["scale"], p["offset"], p["wpt"],
                self.wh1, self.ww1t, self.wh2, self.ww2t)
        in_specs = [_bspec(xp), _bspec(up), _bspec(z2)] + [_wspec(a) for a in args[3:]]
        return pl.pallas_call(
            functools.partial(_fine_stage_kernel, ksizes=p["ksizes"], clamp=self.clamp),
            out_shape=(jax.ShapeDtypeStruct((B, h, w, c), jnp.float32),
                       jax.ShapeDtypeStruct((B, H, W), jnp.float32),
                       jax.ShapeDtypeStruct((B, 1, 1), jnp.float32)),
            grid=(B,),
            in_specs=in_specs,
            out_specs=(pl.BlockSpec((1, h, w, c), lambda i: (i, 0, 0, 0)),
                       pl.BlockSpec((1, H, W), lambda i: (i, 0, 0)),
                       pl.BlockSpec((1, 1, 1), lambda i: (i, 0, 0))),
            compiler_params=pltpu.CompilerParams(dimension_semantics=("parallel",)),
        )(*args)

    # -- forward ---------------------------------------------------------------
    def __call__(self, image, training=False):
        # image: (B, 3, H, W) float32 (NCHW like torch) -> NHWC
        x = jnp.transpose(image, (0, 2, 3, 1)).astype(jnp.float32)
        B = x.shape[0]

        # synthetic feature extractor: avg-pool per scale (1x1 projection is fused
        # into the Pallas stage kernels)
        xp_fine = avg_pool_nhwc(x, self.scale_factors[0])    # (B, 8, 8, 3)
        xp_coarse = avg_pool_nhwc(x, self.scale_factors[1])  # (B, 4, 4, 3)

        # coarse stage: projection + 4 AllInOneBlocks fused in one kernel
        h_coarse, ljd_c = self._run_coarse(xp_coarse)

        # FrEIA Split -> IRevNetUpsampling (pixel shuffle) glue between the two kernels
        up = pixel_shuffle_nhwc(h_coarse[..., :self.split_up])   # (B, 8, 8, 2)
        z2 = h_coarse[..., self.split_up:]                       # (B, 4, 4, 8)

        # fine stage: projection + concat + 4 blocks + anomaly map fused in one kernel
        z1, amap, ljd_f = self._run_fine(xp_fine, up, z2)

        if training:
            ljd = ljd_c[:, 0, 0] + ljd_f[:, 0, 0] + self.ljd_const
            return [z1, z2], ljd
        return amap.reshape(B, 1, *self.input_size)


if __name__ == "__main__":
    key = jax.random.PRNGKey(0)
    kimg, kmodel = jax.random.split(key)
    image = jax.random.normal(kimg, (2, 3, 32, 32), jnp.float32)

    model = UflowPallasModel(kmodel, input_size=(32, 32), flow_steps=4,
                             channels=(8, 16), scale_factors=(4, 8))

    infer = jax.jit(lambda img: model(img, training=False))
    train_fwd = jax.jit(lambda img: model(img, training=True))

    amap = infer(image)           # eval path (anomaly map)
    z, ljd = train_fwd(image)     # training path (z, ljd)

    jax.block_until_ready(amap)
    jax.block_until_ready(ljd)

    assert amap.shape == (2, 1, 32, 32)
    assert z[0].shape == (2, 8, 8, 10) and z[1].shape == (2, 4, 4, 8)
    assert ljd.shape == (2,)
    assert bool(jnp.all(jnp.isfinite(amap))) and bool(jnp.all(jnp.isfinite(ljd)))
    print("KERNEL_OK")
</pallas_src>

<mosaic_0001>
module attributes {stable_mosaic.version = 11 : i64} {
  func.func @_coarse_stage_kernel(%arg0: i32, %arg1: memref<1x4x4x3xf32, #tpu.memory_space<vmem>>, %arg2: memref<3x16xf32, #tpu.memory_space<vmem>>, %arg3: memref<1x16xf32, #tpu.memory_space<vmem>>, %arg4: memref<4x72x8xf32, #tpu.memory_space<vmem>>, %arg5: memref<4x1x8xf32, #tpu.memory_space<vmem>>, %arg6: memref<4x72x16xf32, #tpu.memory_space<vmem>>, %arg7: memref<4x1x16xf32, #tpu.memory_space<vmem>>, %arg8: memref<4x1x16xf32, #tpu.memory_space<vmem>>, %arg9: memref<4x1x16xf32, #tpu.memory_space<vmem>>, %arg10: memref<4x16x16xf32, #tpu.memory_space<vmem>>, %arg11: memref<1x4x4x16xf32, #tpu.memory_space<vmem>>, %arg12: memref<1x1x1xf32, #tpu.memory_space<vmem>>) attributes {dimension_semantics = [#tpu.dimension_semantics<parallel>], iteration_bounds = array<i64: 2>, scalar_prefetch = 0 : i64, scratch_operands = 0 : i64, tpu.core_type = #tpu.core_type<tc>, window_params = [{transform_indices = @transform_0, window_bounds = array<i64: 1, 4, 4, 3>}, {pipeline_mode = #tpu.pipeline_mode<synchronous>, transform_indices = @transform_1, window_bounds = array<i64: 3, 16>}, {pipeline_mode = #tpu.pipeline_mode<synchronous>, transform_indices = @transform_2, window_bounds = array<i64: 1, 16>}, {pipeline_mode = #tpu.pipeline_mode<synchronous>, transform_indices = @transform_3, window_bounds = array<i64: 4, 72, 8>}, {pipeline_mode = #tpu.pipeline_mode<synchronous>, transform_indices = @transform_4, window_bounds = array<i64: 4, 1, 8>}, {pipeline_mode = #tpu.pipeline_mode<synchronous>, transform_indices = @transform_5, window_bounds = array<i64: 4, 72, 16>}, {pipeline_mode = #tpu.pipeline_mode<synchronous>, transform_indices = @transform_6, window_bounds = array<i64: 4, 1, 16>}, {pipeline_mode = #tpu.pipeline_mode<synchronous>, transform_indices = @transform_7, window_bounds = array<i64: 4, 1, 16>}, {pipeline_mode = #tpu.pipeline_mode<synchronous>, transform_indices = @transform_8, window_bounds = array<i64: 4, 1, 16>}, {pipeline_mode = #tpu.pipeline_mode<synchronous>, transform_indices = @transform_9, window_bounds = array<i64: 4, 16, 16>}, {transform_indices = @transform_10, window_bounds = array<i64: 1, 4, 4, 16>}, {transform_indices = @transform_11, window_bounds = array<i64: 1, 1, 1>}]} {
    %c0 = arith.constant 0 : index
    %c0_0 = arith.constant 0 : index
    %c0_1 = arith.constant 0 : index
    %c0_2 = arith.constant 0 : index
    %0 = vector.load %arg1[%c0, %c0_0, %c0_1, %c0_2] : memref<1x4x4x3xf32, #tpu.memory_space<vmem>>, vector<1x4x4x3xf32>
    %1 = vector.shape_cast %0 : vector<1x4x4x3xf32> to vector<4x4x3xf32>
    %2 = vector.shape_cast %1 : vector<4x4x3xf32> to vector<16x3xf32>
    %c0_3 = arith.constant 0 : index
    %c0_4 = arith.constant 0 : index
    %3 = vector.load %arg2[%c0_3, %c0_4] : memref<3x16xf32, #tpu.memory_space<vmem>>, vector<3x16xf32>
    %cst = arith.constant dense<0.000000e+00> : vector<16x16xf32>
    %4 = tpu.matmul %2, %3, %cst {dimension_numbers = #tpu.dot_dimension_numbers<[1], [0], [0], [1], [0, 0, 1, 1], [], []>} : vector<16x3xf32>, vector<3x16xf32>, vector<16x16xf32> -> vector<16x16xf32>
    %c0_5 = arith.constant 0 : index
    %c0_6 = arith.constant 0 : index
    %5 = vector.load %arg3[%c0_5, %c0_6] : memref<1x16xf32, #tpu.memory_space<vmem>>, vector<1x16xf32>
    %6 = vector.broadcast %5 : vector<1x16xf32> to vector<16x16xf32>
    %7 = arith.addf %4, %6 : vector<16x16xf32>
    %8 = vector.shape_cast %7 : vector<16x16xf32> to vector<4x4x16xf32>
    %cst_7 = arith.constant 0.000000e+00 : f32
    %9 = vector.broadcast %cst_7 : f32 to vector<1x1xf32>
    %c0_8 = arith.constant 0 : index
    %c0_9 = arith.constant 0 : index
    %c0_10 = arith.constant 0 : index
    %10 = vector.load %arg4[%c0_8, %c0_9, %c0_10] : memref<4x72x8xf32, #tpu.memory_space<vmem>>, vector<1x72x8xf32>
    %11 = vector.shape_cast %10 : vector<1x72x8xf32> to vector<72x8xf32>
    %c0_11 = arith.constant 0 : index
    %c0_12 = arith.constant 0 : index
    %c0_13 = arith.constant 0 : index
    %12 = vector.load %arg5[%c0_11, %c0_12, %c0_13] : memref<4x1x8xf32, #tpu.memory_space<vmem>>, vector<1x1x8xf32>
    %13 = vector.shape_cast %12 : vector<1x1x8xf32> to vector<1x8xf32>
    %c0_14 = arith.constant 0 : index
    %c0_15 = arith.constant 0 : index
    %c0_16 = arith.constant 0 : index
    %14 = vector.load %arg6[%c0_14, %c0_15, %c0_16] : memref<4x72x16xf32, #tpu.memory_space<vmem>>, vector<1x72x16xf32>
    %15 = vector.shape_cast %14 : vector<1x72x16xf32> to vector<72x16xf32>
    %c0_17 = arith.constant 0 : index
    %c0_18 = arith.constant 0 : index
    %c0_19 = arith.constant 0 : index
    %16 = vector.load %arg7[%c0_17, %c0_18, %c0_19] : memref<4x1x16xf32, #tpu.memory_space<vmem>>, vector<1x1x16xf32>
    %17 = vector.shape_cast %16 : vector<1x1x16xf32> to vector<1x16xf32>
    %c0_20 = arith.constant 0 : index
    %c0_21 = arith.constant 0 : index
    %c0_22 = arith.constant 0 : index
    %18 = vector.load %arg8[%c0_20, %c0_21, %c0_22] : memref<4x1x16xf32, #tpu.memory_space<vmem>>, vector<1x1x16xf32>
    %19 = vector.shape_cast %18 : vector<1x1x16xf32> to vector<1x16xf32>
    %c0_23 = arith.constant 0 : index
    %c0_24 = arith.constant 0 : index
    %c0_25 = arith.constant 0 : index
    %20 = vector.load %arg9[%c0_23, %c0_24, %c0_25] : memref<4x1x16xf32, #tpu.memory_space<vmem>>, vector<1x1x16xf32>
    %21 = vector.shape_cast %20 : vector<1x1x16xf32> to vector<1x16xf32>
    %c0_26 = arith.constant 0 : index
    %c0_27 = arith.constant 0 : index
    %c0_28 = arith.constant 0 : index
    %22 = vector.load %arg10[%c0_26, %c0_27, %c0_28] : memref<4x16x16xf32, #tpu.memory_space<vmem>>, vector<1x16x16xf32>
    %23 = vector.shape_cast %22 : vector<1x16x16xf32> to vector<16x16xf32>
    %24 = vector.extract_strided_slice %8 {offsets = [0, 0, 0], sizes = [4, 4, 8], strides = [1, 1, 1]} : vector<4x4x16xf32> to vector<4x4x8xf32>
    %25 = vector.shape_cast %24 : vector<4x4x8xf32> to vector<16x8xf32>
    %26 = vector.extract_strided_slice %8 {offsets = [0, 0, 8], sizes = [4, 4, 8], strides = [1, 1, 1]} : vector<4x4x16xf32> to vector<4x4x8xf32>
    %27 = vector.shape_cast %26 : vector<4x4x8xf32> to vector<16x8xf32>
    %cst_29 = arith.constant 0.000000e+00 : f32
    %28 = vector.broadcast %cst_29 : f32 to vector<1x4x8xf32>
    %29 = tpu.concatenate %28, %24, %28 in 0 : vector<1x4x8xf32>, vector<4x4x8xf32>, vector<1x4x8xf32> -> vector<6x4x8xf32>
    %cst_30 = arith.constant 0.000000e+00 : f32
    %30 = vector.broadcast %cst_30 : f32 to vector<6x1x8xf32>
    %31 = tpu.concatenate %30, %29, %30 in 1 : vector<6x1x8xf32>, vector<6x4x8xf32>, vector<6x1x8xf32> -> vector<6x6x8xf32>
    %32 = vector.extract_strided_slice %31 {offsets = [0, 0, 0], sizes = [4, 4, 8], strides = [1, 1, 1]} : vector<6x6x8xf32> to vector<4x4x8xf32>
    %33 = vector.shape_cast %32 : vector<4x4x8xf32> to vector<16x8xf32>
    %34 = vector.extract_strided_slice %31 {offsets = [0, 1, 0], sizes = [4, 4, 8], strides = [1, 1, 1]} : vector<6x6x8xf32> to vector<4x4x8xf32>
    %35 = vector.shape_cast %34 : vector<4x4x8xf32> to vector<16x8xf32>
    %36 = vector.extract_strided_slice %31 {offsets = [0, 2, 0], sizes = [4, 4, 8], strides = [1, 1, 1]} : vector<6x6x8xf32> to vector<4x4x8xf32>
    %37 = vector.shape_cast %36 : vector<4x4x8xf32> to vector<16x8xf32>
    %38 = vector.extract_strided_slice %31 {offsets = [1, 0, 0], sizes = [4, 4, 8], strides = [1, 1, 1]} : vector<6x6x8xf32> to vector<4x4x8xf32>
    %39 = vector.shape_cast %38 : vector<4x4x8xf32> to vector<16x8xf32>
    %40 = vector.extract_strided_slice %31 {offsets = [1, 1, 0], sizes = [4, 4, 8], strides = [1, 1, 1]} : vector<6x6x8xf32> to vector<4x4x8xf32>
    %41 = vector.shape_cast %40 : vector<4x4x8xf32> to vector<16x8xf32>
    %42 = vector.extract_strided_slice %31 {offsets = [1, 2, 0], sizes = [4, 4, 8], strides = [1, 1, 1]} : vector<6x6x8xf32> to vector<4x4x8xf32>
    %43 = vector.shape_cast %42 : vector<4x4x8xf32> to vector<16x8xf32>
    %44 = vector.extract_strided_slice %31 {offsets = [2, 0, 0], sizes = [4, 4, 8], strides = [1, 1, 1]} : vector<6x6x8xf32> to vector<4x4x8xf32>
    %45 = vector.shape_cast %44 : vector<4x4x8xf32> to vector<16x8xf32>
    %46 = vector.extract_strided_slice %31 {offsets = [2, 1, 0], sizes = [4, 4, 8], strides = [1, 1, 1]} : vector<6x6x8xf32> to vector<4x4x8xf32>
    %47 = vector.shape_cast %46 : vector<4x4x8xf32> to vector<16x8xf32>
    %48 = vector.extract_strided_slice %31 {offsets = [2, 2, 0], sizes = [4, 4, 8], strides = [1, 1, 1]} : vector<6x6x8xf32> to vector<4x4x8xf32>
    %49 = vector.shape_cast %48 : vector<4x4x8xf32> to vector<16x8xf32>
    %50 = tpu.concatenate %33, %35, %37, %39, %41, %43, %45, %47, %49 in 1 : vector<16x8xf32>, vector<16x8xf32>, vector<16x8xf32>, vector<16x8xf32>, vector<16x8xf32>, vector<16x8xf32>, vector<16x8xf32>, vector<16x8xf32>, vector<16x8xf32> -> vector<16x72xf32>
    %cst_31 = arith.constant dense<0.000000e+00> : vector<16x8xf32>
    %51 = tpu.matmul %50, %11, %cst_31 {dimension_numbers = #tpu.dot_dimension_numbers<[1], [0], [0], [1], [0, 0, 1, 1], [], []>} : vector<16x72xf32>, vector<72x8xf32>, vector<16x8xf32> -> vector<16x8xf32>
    %52 = vector.broadcast %13 : vector<1x8xf32> to vector<16x8xf32>
    %53 = arith.addf %51, %52 : vector<16x8xf32>
    %cst_32 = arith.constant 0.000000e+00 : f32
    %54 = vector.broadcast %cst_32 : f32 to vector<16x8xf32>
    %55 = arith.maximumf %53, %54 : vector<16x8xf32>
    %56 = vector.shape_cast %55 : vector<16x8xf32> to vector<4x4x8xf32>
    %cst_33 = arith.constant 0.000000e+00 : f32
    %57 = vector.broadcast %cst_33 : f32 to vector<1x4x8xf32>
    %58 = tpu.concatenate %57, %56, %57 in 0 : vector<1x4x8xf32>, vector<4x4x8xf32>, vector<1x4x8xf32> -> vector<6x4x8xf32>
    %cst_34 = arith.constant 0.000000e+00 : f32
    %59 = vector.broadcast %cst_34 : f32 to vector<6x1x8xf32>
    %60 = tpu.concatenate %59, %58, %59 in 1 : vector<6x1x8xf32>, vector<6x4x8xf32>, vector<6x1x8xf32> -> vector<6x6x8xf32>
    %61 = vector.extract_strided_slice %60 {offsets = [0, 0, 0], sizes = [4, 4, 8], strides = [1, 1, 1]} : vector<6x6x8xf32> to vector<4x4x8xf32>
    %62 = vector.shape_cast %61 : vector<4x4x8xf32> to vector<16x8xf32>
    %63 = vector.extract_strided_slice %60 {offsets = [0, 1, 0], sizes = [4, 4, 8], strides = [1, 1, 1]} : vector<6x6x8xf32> to vector<4x4x8xf32>
    %64 = vector.shape_cast %63 : vector<4x4x8xf32> to vector<16x8xf32>
    %65 = vector.extract_strided_slice %60 {offsets = [0, 2, 0], sizes = [4, 4, 8], strides = [1, 1, 1]} : vector<6x6x8xf32> to vector<4x4x8xf32>
    %66 = vector.shape_cast %65 : vector<4x4x8xf32> to vector<16x8xf32>
    %67 = vector.extract_strided_slice %60 {offsets = [1, 0, 0], sizes = [4, 4, 8], strides = [1, 1, 1]} : vector<6x6x8xf32> to vector<4x4x8xf32>
    %68 = vector.shape_cast %67 : vector<4x4x8xf32> to vector<16x8xf32>
    %69 = vector.extract_strided_slice %60 {offsets = [1, 1, 0], sizes = [4, 4, 8], strides = [1, 1, 1]} : vector<6x6x8xf32> to vector<4x4x8xf32>
    %70 = vector.shape_cast %69 : vector<4x4x8xf32> to vector<16x8xf32>
    %71 = vector.extract_strided_slice %60 {offsets = [1, 2, 0], sizes = [4, 4, 8], strides = [1, 1, 1]} : vector<6x6x8xf32> to vector<4x4x8xf32>
    %72 = vector.shape_cast %71 : vector<4x4x8xf32> to vector<16x8xf32>
    %73 = vector.extract_strided_slice %60 {offsets = [2, 0, 0], sizes = [4, 4, 8], strides = [1, 1, 1]} : vector<6x6x8xf32> to vector<4x4x8xf32>
    %74 = vector.shape_cast %73 : vector<4x4x8xf32> to vector<16x8xf32>
    %75 = vector.extract_strided_slice %60 {offsets = [2, 1, 0], sizes = [4, 4, 8], strides = [1, 1, 1]} : vector<6x6x8xf32> to vector<4x4x8xf32>
    %76 = vector.shape_cast %75 : vector<4x4x8xf32> to vector<16x8xf32>
    %77 = vector.extract_strided_slice %60 {offsets = [2, 2, 0], sizes = [4, 4, 8], strides = [1, 1, 1]} : vector<6x6x8xf32> to vector<4x4x8xf32>
    %78 = vector.shape_cast %77 : vector<4x4x8xf32> to vector<16x8xf32>
    %79 = tpu.concatenate %62, %64, %66, %68, %70, %72, %74, %76, %78 in 1 : vector<16x8xf32>, vector<16x8xf32>, vector<16x8xf32>, vector<16x8xf32>, vector<16x8xf32>, vector<16x8xf32>, vector<16x8xf32>, vector<16x8xf32>, vector<16x8xf32> -> vector<16x72xf32>
    %cst_35 = arith.constant dense<0.000000e+00> : vector<16x16xf32>
    %80 = tpu.matmul %79, %15, %cst_35 {dimension_numbers = #tpu.dot_dimension_numbers<[1], [0], [0], [1], [0, 0, 1, 1], [], []>} : vector<16x72xf32>, vector<72x16xf32>, vector<16x16xf32> -> vector<16x16xf32>
    %81 = vector.broadcast %17 : vector<1x16xf32> to vector<16x16xf32>
    %82 = arith.addf %80, %81 : vector<16x16xf32>
    %cst_36 = arith.constant 1.000000e-01 : f32
    %83 = vector.broadcast %cst_36 : f32 to vector<16x16xf32>
    %84 = arith.mulf %82, %83 : vector<16x16xf32>
    %85 = vector.extract_strided_slice %84 {offsets = [0, 0], sizes = [16, 8], strides = [1, 1]} : vector<16x16xf32> to vector<16x8xf32>
    %86 = math.tanh %85 : vector<16x8xf32>
    %cst_37 = arith.constant 2.000000e+00 : f32
    %87 = vector.broadcast %cst_37 : f32 to vector<16x8xf32>
    %88 = arith.mulf %87, %86 : vector<16x8xf32>
    %89 = vector.extract_strided_slice %84 {offsets = [0, 8], sizes = [16, 8], strides = [1, 1]} : vector<16x16xf32> to vector<16x8xf32>
    %90 = math.exp %88 : vector<16x8xf32>
    %91 = arith.mulf %27, %90 : vector<16x8xf32>
    %92 = arith.addf %91, %89 : vector<16x8xf32>
    %cst_38 = arith.constant dense<0.000000e+00> : vector<16xf32>
    %93 = vector.multi_reduction <add>, %88, %cst_38 [1] : vector<16x8xf32> to vector<16xf32>
    %94 = vector.shape_cast %93 : vector<16xf32> to vector<16x1xf32>
    %cst_39 = arith.constant dense<0.000000e+00> : vector<1xf32>
    %95 = vector.multi_reduction <add>, %94, %cst_39 [0] : vector<16x1xf32> to vector<1xf32>
    %96 = vector.shape_cast %95 : vector<1xf32> to vector<1x1xf32>
    %97 = vector.extract_strided_slice %19 {offsets = [0, 0], sizes = [1, 8], strides = [1, 1]} : vector<1x16xf32> to vector<1x8xf32>
    %98 = vector.broadcast %97 : vector<1x8xf32> to vector<16x8xf32>
    %99 = arith.mulf %25, %98 : vector<16x8xf32>
    %100 = vector.extract_strided_slice %21 {offsets = [0, 0], sizes = [1, 8], strides = [1, 1]} : vector<1x16xf32> to vector<1x8xf32>
    %101 = vector.broadcast %100 : vector<1x8xf32> to vector<16x8xf32>
    %102 = arith.addf %99, %101 : vector<16x8xf32>
    %103 = vector.extract_strided_slice %19 {offsets = [0, 8], sizes = [1, 8], strides = [1, 1]} : vector<1x16xf32> to vector<1x8xf32>
    %104 = vector.broadcast %103 : vector<1x8xf32> to vector<16x8xf32>
    %105 = arith.mulf %92, %104 : vector<16x8xf32>
    %106 = vector.extract_strided_slice %21 {offsets = [0, 8], sizes = [1, 8], strides = [1, 1]} : vector<1x16xf32> to vector<1x8xf32>
    %107 = vector.broadcast %106 : vector<1x8xf32> to vector<16x8xf32>
    %108 = arith.addf %105, %107 : vector<16x8xf32>
    %109 = vector.extract_strided_slice %23 {offsets = [0, 0], sizes = [8, 16], strides = [1, 1]} : vector<16x16xf32> to vector<8x16xf32>
    %cst_40 = arith.constant dense<0.000000e+00> : vector<16x16xf32>
    %110 = tpu.matmul %102, %109, %cst_40 {dimension_numbers = #tpu.dot_dimension_numbers<[1], [0], [0], [1], [0, 0, 1, 1], [], []>} : vector<16x8xf32>, vector<8x16xf32>, vector<16x16xf32> -> vector<16x16xf32>
    %111 = vector.extract_strided_slice %23 {offsets = [8, 0], sizes = [8, 16], strides = [1, 1]} : vector<16x16xf32> to vector<8x16xf32>
    %cst_41 = arith.constant dense<0.000000e+00> : vector<16x16xf32>
    %112 = tpu.matmul %108, %111, %cst_41 {dimension_numbers = #tpu.dot_dimension_numbers<[1], [0], [0], [1], [0, 0, 1, 1], [], []>} : vector<16x8xf32>, vector<8x16xf32>, vector<16x16xf32> -> vector<16x16xf32>
    %113 = arith.addf %110, %112 : vector<16x16xf32>
    %114 = vector.shape_cast %113 : vector<16x16xf32> to vector<4x4x16xf32>
    %115 = arith.addf %9, %96 : vector<1x1xf32>
    %c1 = arith.constant 1 : index
    %c0_42 = arith.constant 0 : index
    %c0_43 = arith.constant 0 : index
    %116 = vector.load %arg4[%c1, %c0_42, %c0_43] : memref<4x72x8xf32, #tpu.memory_space<vmem>>, vector<1x72x8xf32>
    %117 = vector.shape_cast %116 : vector<1x72x8xf32> to vector<72x8xf32>
    %c1_44 = arith.constant 1 : index
    %c0_45 = arith.constant 0 : index
    %c0_46 = arith.constant 0 : index
    %118 = vector.load %arg5[%c1_44, %c0_45, %c0_46] : memref<4x1x8xf32, #tpu.memory_space<vmem>>, vector<1x1x8xf32>
    %119 = vector.shape_cast %118 : vector<1x1x8xf32> to vector<1x8xf32>
    %c1_47 = arith.constant 1 : index
    %c0_48 = arith.constant 0 : index
    %c0_49 = arith.constant 0 : index
    %120 = vector.load %arg6[%c1_47, %c0_48, %c0_49] : memref<4x72x16xf32, #tpu.memory_space<vmem>>, vector<1x72x16xf32>
    %121 = vector.shape_cast %120 : vector<1x72x16xf32> to vector<72x16xf32>
    %c1_50 = arith.constant 1 : index
    %c0_51 = arith.constant 0 : index
    %c0_52 = arith.constant 0 : index
    %122 = vector.load %arg7[%c1_50, %c0_51, %c0_52] : memref<4x1x16xf32, #tpu.memory_space<vmem>>, vector<1x1x16xf32>
    %123 = vector.shape_cast %122 : vector<1x1x16xf32> to vector<1x16xf32>
    %c1_53 = arith.constant 1 : index
    %c0_54 = arith.constant 0 : index
    %c0_55 = arith.constant 0 : index
    %124 = vector.load %arg8[%c1_53, %c0_54, %c0_55] : memref<4x1x16xf32, #tpu.memory_space<vmem>>, vector<1x1x16xf32>
    %125 = vector.shape_cast %124 : vector<1x1x16xf32> to vector<1x16xf32>
    %c1_56 = arith.constant 1 : index
    %c0_57 = arith.constant 0 : index
    %c0_58 = arith.constant 0 : index
    %126 = vector.load %arg9[%c1_56, %c0_57, %c0_58] : memref<4x1x16xf32, #tpu.memory_space<vmem>>, vector<1x1x16xf32>
    %127 = vector.shape_cast %126 : vector<1x1x16xf32> to vector<1x16xf32>
    %c1_59 = arith.constant 1 : index
    %c0_60 = arith.constant 0 : index
    %c0_61 = arith.constant 0 : index
    %128 = vector.load %arg10[%c1_59, %c0_60, %c0_61] : memref<4x16x16xf32, #tpu.memory_space<vmem>>, vector<1x16x16xf32>
    %129 = vector.shape_cast %128 : vector<1x16x16xf32> to vector<16x16xf32>
    %130 = vector.extract_strided_slice %114 {offsets = [0, 0, 0], sizes = [4, 4, 8], strides = [1, 1, 1]} : vector<4x4x16xf32> to vector<4x4x8xf32>
    %131 = vector.shape_cast %130 : vector<4x4x8xf32> to vector<16x8xf32>
    %132 = vector.extract_strided_slice %114 {offsets = [0, 0, 8], sizes = [4, 4, 8], strides = [1, 1, 1]} : vector<4x4x16xf32> to vector<4x4x8xf32>
    %133 = vector.shape_cast %132 : vector<4x4x8xf32> to vector<16x8xf32>
    %134 = vector.extract_strided_slice %117 {offsets = [32, 0], sizes = [8, 8], strides = [1, 1]} : vector<72x8xf32> to vector<8x8xf32>
    %cst_62 = arith.constant dense<0.000000e+00> : vector<16x8xf32>
    %135 = tpu.matmul %131, %134, %cst_62 {dimension_numbers = #tpu.dot_dimension_numbers<[1], [0], [0], [1], [0, 0, 1, 1], [], []>} : vector<16x8xf32>, vector<8x8xf32>, vector<16x8xf32> -> vector<16x8xf32>
    %136 = vector.broadcast %119 : vector<1x8xf32> to vector<16x8xf32>
    %137 = arith.addf %135, %136 : vector<16x8xf32>
    %cst_63 = arith.constant 0.000000e+00 : f32
    %138 = vector.broadcast %cst_63 : f32 to vector<16x8xf32>
    %139 = arith.maximumf %137, %138 : vector<16x8xf32>
    %140 = vector.extract_strided_slice %121 {offsets = [32, 0], sizes = [8, 16], strides = [1, 1]} : vector<72x16xf32> to vector<8x16xf32>
    %cst_64 = arith.constant dense<0.000000e+00> : vector<16x16xf32>
    %141 = tpu.matmul %139, %140, %cst_64 {dimension_numbers = #tpu.dot_dimension_numbers<[1], [0], [0], [1], [0, 0, 1, 1], [], []>} : vector<16x8xf32>, vector<8x16xf32>, vector<16x16xf32> -> vector<16x16xf32>
    %142 = vector.broadcast %123 : vector<1x16xf32> to vector<16x16xf32>
    %143 = arith.addf %141, %142 : vector<16x16xf32>
    %cst_65 = arith.constant 1.000000e-01 : f32
    %144 = vector.broadcast %cst_65 : f32 to vector<16x16xf32>
    %145 = arith.mulf %143, %144 : vector<16x16xf32>
    %146 = vector.extract_strided_slice %145 {offsets = [0, 0], sizes = [16, 8], strides = [1, 1]} : vector<16x16xf32> to vector<16x8xf32>
    %147 = math.tanh %146 : vector<16x8xf32>
    %cst_66 = arith.constant 2.000000e+00 : f32
    %148 = vector.broadcast %cst_66 : f32 to vector<16x8xf32>
    %149 = arith.mulf %148, %147 : vector<16x8xf32>
    %150 = vector.extract_strided_slice %145 {offsets = [0, 8], sizes = [16, 8], strides = [1, 1]} : vector<16x16xf32> to vector<16x8xf32>
    %151 = math.exp %149 : vector<16x8xf32>
    %152 = arith.mulf %133, %151 : vector<16x8xf32>
    %153 = arith.addf %152, %150 : vector<16x8xf32>
    %cst_67 = arith.constant dense<0.000000e+00> : vector<16xf32>
    %154 = vector.multi_reduction <add>, %149, %cst_67 [1] : vector<16x8xf32> to vector<16xf32>
    %155 = vector.shape_cast %154 : vector<16xf32> to vector<16x1xf32>
    %cst_68 = arith.constant dense<0.000000e+00> : vector<1xf32>
    %156 = vector.multi_reduction <add>, %155, %cst_68 [0] : vector<16x1xf32> to vector<1xf32>
    %157 = vector.shape_cast %156 : vector<1xf32> to vector<1x1xf32>
    %158 = vector.extract_strided_slice %125 {offsets = [0, 0], sizes = [1, 8], strides = [1, 1]} : vector<1x16xf32> to vector<1x8xf32>
    %159 = vector.broadcast %158 : vector<1x8xf32> to vector<16x8xf32>
    %160 = arith.mulf %131, %159 : vector<16x8xf32>
    %161 = vector.extract_strided_slice %127 {offsets = [0, 0], sizes = [1, 8], strides = [1, 1]} : vector<1x16xf32> to vector<1x8xf32>
    %162 = vector.broadcast %161 : vector<1x8xf32> to vector<16x8xf32>
    %163 = arith.addf %160, %162 : vector<16x8xf32>
    %164 = vector.extract_strided_slice %125 {offsets = [0, 8], sizes = [1, 8], strides = [1, 1]} : vector<1x16xf32> to vector<1x8xf32>
    %165 = vector.broadcast %164 : vector<1x8xf32> to vector<16x8xf32>
    %166 = arith.mulf %153, %165 : vector<16x8xf32>
    %167 = vector.extract_strided_slice %127 {offsets = [0, 8], sizes = [1, 8], strides = [1, 1]} : vector<1x16xf32> to vector<1x8xf32>
    %168 = vector.broadcast %167 : vector<1x8xf32> to vector<16x8xf32>
    %169 = arith.addf %166, %168 : vector<16x8xf32>
    %170 = vector.extract_strided_slice %129 {offsets = [0, 0], sizes = [8, 16], strides = [1, 1]} : vector<16x16xf32> to vector<8x16xf32>
    %cst_69 = arith.constant dense<0.000000e+00> : vector<16x16xf32>
    %171 = tpu.matmul %163, %170, %cst_69 {dimension_numbers = #tpu.dot_dimension_numbers<[1], [0], [0], [1], [0, 0, 1, 1], [], []>} : vector<16x8xf32>, vector<8x16xf32>, vector<16x16xf32> -> vector<16x16xf32>
    %172 = vector.extract_strided_slice %129 {offsets = [8, 0], sizes = [8, 16], strides = [1, 1]} : vector<16x16xf32> to vector<8x16xf32>
    %cst_70 = arith.constant dense<0.000000e+00> : vector<16x16xf32>
    %173 = tpu.matmul %169, %172, %cst_70 {dimension_numbers = #tpu.dot_dimension_numbers<[1], [0], [0], [1], [0, 0, 1, 1], [], []>} : vector<16x8xf32>, vector<8x16xf32>, vector<16x16xf32> -> vector<16x16xf32>
    %174 = arith.addf %171, %173 : vector<16x16xf32>
    %175 = vector.shape_cast %174 : vector<16x16xf32> to vector<4x4x16xf32>
    %176 = arith.addf %115, %157 : vector<1x1xf32>
    %c2 = arith.constant 2 : index
    %c0_71 = arith.constant 0 : index
    %c0_72 = arith.constant 0 : index
    %177 = vector.load %arg4[%c2, %c0_71, %c0_72] : memref<4x72x8xf32, #tpu.memory_space<vmem>>, vector<1x72x8xf32>
    %178 = vector.shape_cast %177 : vector<1x72x8xf32> to vector<72x8xf32>
    %c2_73 = arith.constant 2 : index
    %c0_74 = arith.constant 0 : index
    %c0_75 = arith.constant 0 : index
    %179 = vector.load %arg5[%c2_73, %c0_74, %c0_75] : memref<4x1x8xf32, #tpu.memory_space<vmem>>, vector<1x1x8xf32>
    %180 = vector.shape_cast %179 : vector<1x1x8xf32> to vector<1x8xf32>
    %c2_76 = arith.constant 2 : index
    %c0_77 = arith.constant 0 : index
    %c0_78 = arith.constant 0 : index
    %181 = vector.load %arg6[%c2_76, %c0_77, %c0_78] : memref<4x72x16xf32, #tpu.memory_space<vmem>>, vector<1x72x16xf32>
    %182 = vector.shape_cast %181 : vector<1x72x16xf32> to vector<72x16xf32>
    %c2_79 = arith.constant 2 : index
    %c0_80 = arith.constant 0 : index
    %c0_81 = arith.constant 0 : index
    %183 = vector.load %arg7[%c2_79, %c0_80, %c0_81] : memref<4x1x16xf32, #tpu.memory_space<vmem>>, vector<1x1x16xf32>
    %184 = vector.shape_cast %183 : vector<1x1x16xf32> to vector<1x16xf32>
    %c2_82 = arith.constant 2 : index
    %c0_83 = arith.constant 0 : index
    %c0_84 = arith.constant 0 : index
    %185 = vector.load %arg8[%c2_82, %c0_83, %c0_84] : memref<4x1x16xf32, #tpu.memory_space<vmem>>, vector<1x1x16xf32>
    %186 = vector.shape_cast %185 : vector<1x1x16xf32> to vector<1x16xf32>
    %c2_85 = arith.constant 2 : index
    %c0_86 = arith.constant 0 : index
    %c0_87 = arith.constant 0 : index
    %187 = vector.load %arg9[%c2_85, %c0_86, %c0_87] : memref<4x1x16xf32, #tpu.memory_space<vmem>>, vector<1x1x16xf32>
    %188 = vector.shape_cast %187 : vector<1x1x16xf32> to vector<1x16xf32>
    %c2_88 = arith.constant 2 : index
    %c0_89 = arith.constant 0 : index
    %c0_90 = arith.constant 0 : index
    %189 = vector.load %arg10[%c2_88, %c0_89, %c0_90] : memref<4x16x16xf32, #tpu.memory_space<vmem>>, vector<1x16x16xf32>
    %190 = vector.shape_cast %189 : vector<1x16x16xf32> to vector<16x16xf32>
    %191 = vector.extract_strided_slice %175 {offsets = [0, 0, 0], sizes = [4, 4, 8], strides = [1, 1, 1]} : vector<4x4x16xf32> to vector<4x4x8xf32>
    %192 = vector.shape_cast %191 : vector<4x4x8xf32> to vector<16x8xf32>
    %193 = vector.extract_strided_slice %175 {offsets = [0, 0, 8], sizes = [4, 4, 8], strides = [1, 1, 1]} : vector<4x4x16xf32> to vector<4x4x8xf32>
    %194 = vector.shape_cast %193 : vector<4x4x8xf32> to vector<16x8xf32>
    %cst_91 = arith.constant 0.000000e+00 : f32
    %195 = vector.broadcast %cst_91 : f32 to vector<1x4x8xf32>
    %196 = tpu.concatenate %195, %191, %195 in 0 : vector<1x4x8xf32>, vector<4x4x8xf32>, vector<1x4x8xf32> -> vector<6x4x8xf32>
    %cst_92 = arith.constant 0.000000e+00 : f32
    %197 = vector.broadcast %cst_92 : f32 to vector<6x1x8xf32>
    %198 = tpu.concatenate %197, %196, %197 in 1 : vector<6x1x8xf32>, vector<6x4x8xf32>, vector<6x1x8xf32> -> vector<6x6x8xf32>
    %199 = vector.extract_strided_slice %198 {offsets = [0, 0, 0], sizes = [4, 4, 8], strides = [1, 1, 1]} : vector<6x6x8xf32> to vector<4x4x8xf32>
    %200 = vector.shape_cast %199 : vector<4x4x8xf32> to vector<16x8xf32>
    %201 = vector.extract_strided_slice %198 {offsets = [0, 1, 0], sizes = [4, 4, 8], strides = [1, 1, 1]} : vector<6x6x8xf32> to vector<4x4x8xf32>
    %202 = vector.shape_cast %201 : vector<4x4x8xf32> to vector<16x8xf32>
    %203 = vector.extract_strided_slice %198 {offsets = [0, 2, 0], sizes = [4, 4, 8], strides = [1, 1, 1]} : vector<6x6x8xf32> to vector<4x4x8xf32>
    %204 = vector.shape_cast %203 : vector<4x4x8xf32> to vector<16x8xf32>
    %205 = vector.extract_strided_slice %198 {offsets = [1, 0, 0], sizes = [4, 4, 8], strides = [1, 1, 1]} : vector<6x6x8xf32> to vector<4x4x8xf32>
    %206 = vector.shape_cast %205 : vector<4x4x8xf32> to vector<16x8xf32>
    %207 = vector.extract_strided_slice %198 {offsets = [1, 1, 0], sizes = [4, 4, 8], strides = [1, 1, 1]} : vector<6x6x8xf32> to vector<4x4x8xf32>
    %208 = vector.shape_cast %207 : vector<4x4x8xf32> to vector<16x8xf32>
    %209 = vector.extract_strided_slice %198 {offsets = [1, 2, 0], sizes = [4, 4, 8], strides = [1, 1, 1]} : vector<6x6x8xf32> to vector<4x4x8xf32>
    %210 = vector.shape_cast %209 : vector<4x4x8xf32> to vector<16x8xf32>
    %211 = vector.extract_strided_slice %198 {offsets = [2, 0, 0], sizes = [4, 4, 8], strides = [1, 1, 1]} : vector<6x6x8xf32> to vector<4x4x8xf32>
    %212 = vector.shape_cast %211 : vector<4x4x8xf32> to vector<16x8xf32>
    %213 = vector.extract_strided_slice %198 {offsets = [2, 1, 0], sizes = [4, 4, 8], strides = [1, 1, 1]} : vector<6x6x8xf32> to vector<4x4x8xf32>
    %214 = vector.shape_cast %213 : vector<4x4x8xf32> to vector<16x8xf32>
    %215 = vector.extract_strided_slice %198 {offsets = [2, 2, 0], sizes = [4, 4, 8], strides = [1, 1, 1]} : vector<6x6x8xf32> to vector<4x4x8xf32>
    %216 = vector.shape_cast %215 : vector<4x4x8xf32> to vector<16x8xf32>
    %217 = tpu.concatenate %200, %202, %204, %206, %208, %210, %212, %214, %216 in 1 : vector<16x8xf32>, vector<16x8xf32>, vector<16x8xf32>, vector<16x8xf32>, vector<16x8xf32>, vector<16x8xf32>, vector<16x8xf32>, vector<16x8xf32>, vector<16x8xf32> -> vector<16x72xf32>
    %cst_93 = arith.constant dense<0.000000e+00> : vector<16x8xf32>
    %218 = tpu.matmul %217, %178, %cst_93 {dimension_numbers = #tpu.dot_dimension_numbers<[1], [0], [0], [1], [0, 0, 1, 1], [], []>} : vector<16x72xf32>, vector<72x8xf32>, vector<16x8xf32> -> vector<16x8xf32>
    %219 = vector.broadcast %180 : vector<1x8xf32> to vector<16x8xf32>
    %220 = arith.addf %218, %219 : vector<16x8xf32>
    %cst_94 = arith.constant 0.000000e+00 : f32
    %221 = vector.broadcast %cst_94 : f32 to vector<16x8xf32>
    %222 = arith.maximumf %220, %221 : vector<16x8xf32>
    %223 = vector.shape_cast %222 : vector<16x8xf32> to vector<4x4x8xf32>
    %cst_95 = arith.constant 0.000000e+00 : f32
    %224 = vector.broadcast %cst_95 : f32 to vector<1x4x8xf32>
    %225 = tpu.concatenate %224, %223, %224 in 0 : vector<1x4x8xf32>, vector<4x4x8xf32>, vector<1x4x8xf32> -> vector<6x4x8xf32>
    %cst_96 = arith.constant 0.000000e+00 : f32
    %226 = vector.broadcast %cst_96 : f32 to vector<6x1x8xf32>
    %227 = tpu.concatenate %226, %225, %226 in 1 : vector<6x1x8xf32>, vector<6x4x8xf32>, vector<6x1x8xf32> -> vector<6x6x8xf32>
    %228 = vector.extract_strided_slice %227 {offsets = [0, 0, 0], sizes = [4, 4, 8], strides = [1, 1, 1]} : vector<6x6x8xf32> to vector<4x4x8xf32>
    %229 = vector.shape_cast %228 : vector<4x4x8xf32> to vector<16x8xf32>
    %230 = vector.extract_strided_slice %227 {offsets = [0, 1, 0], sizes = [4, 4, 8], strides = [1, 1, 1]} : vector<6x6x8xf32> to vector<4x4x8xf32>
    %231 = vector.shape_cast %230 : vector<4x4x8xf32> to vector<16x8xf32>
    %232 = vector.extract_strided_slice %227 {offsets = [0, 2, 0], sizes = [4, 4, 8], strides = [1, 1, 1]} : vector<6x6x8xf32> to vector<4x4x8xf32>
    %233 = vector.shape_cast %232 : vector<4x4x8xf32> to vector<16x8xf32>
    %234 = vector.extract_strided_slice %227 {offsets = [1, 0, 0], sizes = [4, 4, 8], strides = [1, 1, 1]} : vector<6x6x8xf32> to vector<4x4x8xf32>
    %235 = vector.shape_cast %234 : vector<4x4x8xf32> to vector<16x8xf32>
    %236 = vector.extract_strided_slice %227 {offsets = [1, 1, 0], sizes = [4, 4, 8], strides = [1, 1, 1]} : vector<6x6x8xf32> to vector<4x4x8xf32>
    %237 = vector.shape_cast %236 : vector<4x4x8xf32> to vector<16x8xf32>
    %238 = vector.extract_strided_slice %227 {offsets = [1, 2, 0], sizes = [4, 4, 8], strides = [1, 1, 1]} : vector<6x6x8xf32> to vector<4x4x8xf32>
    %239 = vector.shape_cast %238 : vector<4x4x8xf32> to vector<16x8xf32>
    %240 = vector.extract_strided_slice %227 {offsets = [2, 0, 0], sizes = [4, 4, 8], strides = [1, 1, 1]} : vector<6x6x8xf32> to vector<4x4x8xf32>
    %241 = vector.shape_cast %240 : vector<4x4x8xf32> to vector<16x8xf32>
    %242 = vector.extract_strided_slice %227 {offsets = [2, 1, 0], sizes = [4, 4, 8], strides = [1, 1, 1]} : vector<6x6x8xf32> to vector<4x4x8xf32>
    %243 = vector.shape_cast %242 : vector<4x4x8xf32> to vector<16x8xf32>
    %244 = vector.extract_strided_slice %227 {offsets = [2, 2, 0], sizes = [4, 4, 8], strides = [1, 1, 1]} : vector<6x6x8xf32> to vector<4x4x8xf32>
    %245 = vector.shape_cast %244 : vector<4x4x8xf32> to vector<16x8xf32>
    %246 = tpu.concatenate %229, %231, %233, %235, %237, %239, %241, %243, %245 in 1 : vector<16x8xf32>, vector<16x8xf32>, vector<16x8xf32>, vector<16x8xf32>, vector<16x8xf32>, vector<16x8xf32>, vector<16x8xf32>, vector<16x8xf32>, vector<16x8xf32> -> vector<16x72xf32>
    %cst_97 = arith.constant dense<0.000000e+00> : vector<16x16xf32>
    %247 = tpu.matmul %246, %182, %cst_97 {dimension_numbers = #tpu.dot_dimension_numbers<[1], [0], [0], [1], [0, 0, 1, 1], [], []>} : vector<16x72xf32>, vector<72x16xf32>, vector<16x16xf32> -> vector<16x16xf32>
    %248 = vector.broadcast %184 : vector<1x16xf32> to vector<16x16xf32>
    %249 = arith.addf %247, %248 : vector<16x16xf32>
    %cst_98 = arith.constant 1.000000e-01 : f32
    %250 = vector.broadcast %cst_98 : f32 to vector<16x16xf32>
    %251 = arith.mulf %249, %250 : vector<16x16xf32>
    %252 = vector.extract_strided_slice %251 {offsets = [0, 0], sizes = [16, 8], strides = [1, 1]} : vector<16x16xf32> to vector<16x8xf32>
    %253 = math.tanh %252 : vector<16x8xf32>
    %cst_99 = arith.constant 2.000000e+00 : f32
    %254 = vector.broadcast %cst_99 : f32 to vector<16x8xf32>
    %255 = arith.mulf %254, %253 : vector<16x8xf32>
    %256 = vector.extract_strided_slice %251 {offsets = [0, 8], sizes = [16, 8], strides = [1, 1]} : vector<16x16xf32> to vector<16x8xf32>
    %257 = math.exp %255 : vector<16x8xf32>
    %258 = arith.mulf %194, %257 : vector<16x8xf32>
    %259 = arith.addf %258, %256 : vector<16x8xf32>
    %cst_100 = arith.constant dense<0.000000e+00> : vector<16xf32>
    %260 = vector.multi_reduction <add>, %255, %cst_100 [1] : vector<16x8xf32> to vector<16xf32>
    %261 = vector.shape_cast %260 : vector<16xf32> to vector<16x1xf32>
    %cst_101 = arith.constant dense<0.000000e+00> : vector<1xf32>
    %262 = vector.multi_reduction <add>, %261, %cst_101 [0] : vector<16x1xf32> to vector<1xf32>
    %263 = vector.shape_cast %262 : vector<1xf32> to vector<1x1xf32>
    %264 = vector.extract_strided_slice %186 {offsets = [0, 0], sizes = [1, 8], strides = [1, 1]} : vector<1x16xf32> to vector<1x8xf32>
    %265 = vector.broadcast %264 : vector<1x8xf32> to vector<16x8xf32>
    %266 = arith.mulf %192, %265 : vector<16x8xf32>
    %267 = vector.extract_strided_slice %188 {offsets = [0, 0], sizes = [1, 8], strides = [1, 1]} : vector<1x16xf32> to vector<1x8xf32>
    %268 = vector.broadcast %267 : vector<1x8xf32> to vector<16x8xf32>
    %269 = arith.addf %266, %268 : vector<16x8xf32>
    %270 = vector.extract_strided_slice %186 {offsets = [0, 8], sizes = [1, 8], strides = [1, 1]} : vector<1x16xf32> to vector<1x8xf32>
    %271 = vector.broadcast %270 : vector<1x8xf32> to vector<16x8xf32>
    %272 = arith.mulf %259, %271 : vector<16x8xf32>
    %273 = vector.extract_strided_slice %188 {offsets = [0, 8], sizes = [1, 8], strides = [1, 1]} : vector<1x16xf32> to vector<1x8xf32>
    %274 = vector.broadcast %273 : vector<1x8xf32> to vector<16x8xf32>
    %275 = arith.addf %272, %274 : vector<16x8xf32>
    %276 = vector.extract_strided_slice %190 {offsets = [0, 0], sizes = [8, 16], strides = [1, 1]} : vector<16x16xf32> to vector<8x16xf32>
    %cst_102 = arith.constant dense<0.000000e+00> : vector<16x16xf32>
    %277 = tpu.matmul %269, %276, %cst_102 {dimension_numbers = #tpu.dot_dimension_numbers<[1], [0], [0], [1], [0, 0, 1, 1], [], []>} : vector<16x8xf32>, vector<8x16xf32>, vector<16x16xf32> -> vector<16x16xf32>
    %278 = vector.extract_strided_slice %190 {offsets = [8, 0], sizes = [8, 16], strides = [1, 1]} : vector<16x16xf32> to vector<8x16xf32>
    %cst_103 = arith.constant dense<0.000000e+00> : vector<16x16xf32>
    %279 = tpu.matmul %275, %278, %cst_103 {dimension_numbers = #tpu.dot_dimension_numbers<[1], [0], [0], [1], [0, 0, 1, 1], [], []>} : vector<16x8xf32>, vector<8x16xf32>, vector<16x16xf32> -> vector<16x16xf32>
    %280 = arith.addf %277, %279 : vector<16x16xf32>
    %281 = vector.shape_cast %280 : vector<16x16xf32> to vector<4x4x16xf32>
    %282 = arith.addf %176, %263 : vector<1x1xf32>
    %c3 = arith.constant 3 : index
    %c0_104 = arith.constant 0 : index
    %c0_105 = arith.constant 0 : index
    %283 = vector.load %arg4[%c3, %c0_104, %c0_105] : memref<4x72x8xf32, #tpu.memory_space<vmem>>, vector<1x72x8xf32>
    %284 = vector.shape_cast %283 : vector<1x72x8xf32> to vector<72x8xf32>
    %c3_106 = arith.constant 3 : index
    %c0_107 = arith.constant 0 : index
    %c0_108 = arith.constant 0 : index
    %285 = vector.load %arg5[%c3_106, %c0_107, %c0_108] : memref<4x1x8xf32, #tpu.memory_space<vmem>>, vector<1x1x8xf32>
    %286 = vector.shape_cast %285 : vector<1x1x8xf32> to vector<1x8xf32>
    %c3_109 = arith.constant 3 : index
    %c0_110 = arith.constant 0 : index
    %c0_111 = arith.constant 0 : index
    %287 = vector.load %arg6[%c3_109, %c0_110, %c0_111] : memref<4x72x16xf32, #tpu.memory_space<vmem>>, vector<1x72x16xf32>
    %288 = vector.shape_cast %287 : vector<1x72x16xf32> to vector<72x16xf32>
    %c3_112 = arith.constant 3 : index
    %c0_113 = arith.constant 0 : index
    %c0_114 = arith.constant 0 : index
    %289 = vector.load %arg7[%c3_112, %c0_113, %c0_114] : memref<4x1x16xf32, #tpu.memory_space<vmem>>, vector<1x1x16xf32>
    %290 = vector.shape_cast %289 : vector<1x1x16xf32> to vector<1x16xf32>
    %c3_115 = arith.constant 3 : index
    %c0_116 = arith.constant 0 : index
    %c0_117 = arith.constant 0 : index
    %291 = vector.load %arg8[%c3_115, %c0_116, %c0_117] : memref<4x1x16xf32, #tpu.memory_space<vmem>>, vector<1x1x16xf32>
    %292 = vector.shape_cast %291 : vector<1x1x16xf32> to vector<1x16xf32>
    %c3_118 = arith.constant 3 : index
    %c0_119 = arith.constant 0 : index
    %c0_120 = arith.constant 0 : index
    %293 = vector.load %arg9[%c3_118, %c0_119, %c0_120] : memref<4x1x16xf32, #tpu.memory_space<vmem>>, vector<1x1x16xf32>
    %294 = vector.shape_cast %293 : vector<1x1x16xf32> to vector<1x16xf32>
    %c3_121 = arith.constant 3 : index
    %c0_122 = arith.constant 0 : index
    %c0_123 = arith.constant 0 : index
    %295 = vector.load %arg10[%c3_121, %c0_122, %c0_123] : memref<4x16x16xf32, #tpu.memory_space<vmem>>, vector<1x16x16xf32>
    %296 = vector.shape_cast %295 : vector<1x16x16xf32> to vector<16x16xf32>
    %297 = vector.extract_strided_slice %281 {offsets = [0, 0, 0], sizes = [4, 4, 8], strides = [1, 1, 1]} : vector<4x4x16xf32> to vector<4x4x8xf32>
    %298 = vector.shape_cast %297 : vector<4x4x8xf32> to vector<16x8xf32>
    %299 = vector.extract_strided_slice %281 {offsets = [0, 0, 8], sizes = [4, 4, 8], strides = [1, 1, 1]} : vector<4x4x16xf32> to vector<4x4x8xf32>
    %300 = vector.shape_cast %299 : vector<4x4x8xf32> to vector<16x8xf32>
    %301 = vector.extract_strided_slice %284 {offsets = [32, 0], sizes = [8, 8], strides = [1, 1]} : vector<72x8xf32> to vector<8x8xf32>
    %cst_124 = arith.constant dense<0.000000e+00> : vector<16x8xf32>
    %302 = tpu.matmul %298, %301, %cst_124 {dimension_numbers = #tpu.dot_dimension_numbers<[1], [0], [0], [1], [0, 0, 1, 1], [], []>} : vector<16x8xf32>, vector<8x8xf32>, vector<16x8xf32> -> vector<16x8xf32>
    %303 = vector.broadcast %286 : vector<1x8xf32> to vector<16x8xf32>
    %304 = arith.addf %302, %303 : vector<16x8xf32>
    %cst_125 = arith.constant 0.000000e+00 : f32
    %305 = vector.broadcast %cst_125 : f32 to vector<16x8xf32>
    %306 = arith.maximumf %304, %305 : vector<16x8xf32>
    %307 = vector.extract_strided_slice %288 {offsets = [32, 0], sizes = [8, 16], strides = [1, 1]} : vector<72x16xf32> to vector<8x16xf32>
    %cst_126 = arith.constant dense<0.000000e+00> : vector<16x16xf32>
    %308 = tpu.matmul %306, %307, %cst_126 {dimension_numbers = #tpu.dot_dimension_numbers<[1], [0], [0], [1], [0, 0, 1, 1], [], []>} : vector<16x8xf32>, vector<8x16xf32>, vector<16x16xf32> -> vector<16x16xf32>
    %309 = vector.broadcast %290 : vector<1x16xf32> to vector<16x16xf32>
    %310 = arith.addf %308, %309 : vector<16x16xf32>
    %cst_127 = arith.constant 1.000000e-01 : f32
    %311 = vector.broadcast %cst_127 : f32 to vector<16x16xf32>
    %312 = arith.mulf %310, %311 : vector<16x16xf32>
    %313 = vector.extract_strided_slice %312 {offsets = [0, 0], sizes = [16, 8], strides = [1, 1]} : vector<16x16xf32> to vector<16x8xf32>
    %314 = math.tanh %313 : vector<16x8xf32>
    %cst_128 = arith.constant 2.000000e+00 : f32
    %315 = vector.broadcast %cst_128 : f32 to vector<16x8xf32>
    %316 = arith.mulf %315, %314 : vector<16x8xf32>
    %317 = vector.extract_strided_slice %312 {offsets = [0, 8], sizes = [16, 8], strides = [1, 1]} : vector<16x16xf32> to vector<16x8xf32>
    %318 = math.exp %316 : vector<16x8xf32>
    %319 = arith.mulf %300, %318 : vector<16x8xf32>
    %320 = arith.addf %319, %317 : vector<16x8xf32>
    %cst_129 = arith.constant dense<0.000000e+00> : vector<16xf32>
    %321 = vector.multi_reduction <add>, %316, %cst_129 [1] : vector<16x8xf32> to vector<16xf32>
    %322 = vector.shape_cast %321 : vector<16xf32> to vector<16x1xf32>
    %cst_130 = arith.constant dense<0.000000e+00> : vector<1xf32>
    %323 = vector.multi_reduction <add>, %322, %cst_130 [0] : vector<16x1xf32> to vector<1xf32>
    %324 = vector.shape_cast %323 : vector<1xf32> to vector<1x1xf32>
    %325 = vector.extract_strided_slice %292 {offsets = [0, 0], sizes = [1, 8], strides = [1, 1]} : vector<1x16xf32> to vector<1x8xf32>
    %326 = vector.broadcast %325 : vector<1x8xf32> to vector<16x8xf32>
    %327 = arith.mulf %298, %326 : vector<16x8xf32>
    %328 = vector.extract_strided_slice %294 {offsets = [0, 0], sizes = [1, 8], strides = [1, 1]} : vector<1x16xf32> to vector<1x8xf32>
    %329 = vector.broadcast %328 : vector<1x8xf32> to vector<16x8xf32>
    %330 = arith.addf %327, %329 : vector<16x8xf32>
    %331 = vector.extract_strided_slice %292 {offsets = [0, 8], sizes = [1, 8], strides = [1, 1]} : vector<1x16xf32> to vector<1x8xf32>
    %332 = vector.broadcast %331 : vector<1x8xf32> to vector<16x8xf32>
    %333 = arith.mulf %320, %332 : vector<16x8xf32>
    %334 = vector.extract_strided_slice %294 {offsets = [0, 8], sizes = [1, 8], strides = [1, 1]} : vector<1x16xf32> to vector<1x8xf32>
    %335 = vector.broadcast %334 : vector<1x8xf32> to vector<16x8xf32>
    %336 = arith.addf %333, %335 : vector<16x8xf32>
    %337 = vector.extract_strided_slice %296 {offsets = [0, 0], sizes = [8, 16], strides = [1, 1]} : vector<16x16xf32> to vector<8x16xf32>
    %cst_131 = arith.constant dense<0.000000e+00> : vector<16x16xf32>
    %338 = tpu.matmul %330, %337, %cst_131 {dimension_numbers = #tpu.dot_dimension_numbers<[1], [0], [0], [1], [0, 0, 1, 1], [], []>} : vector<16x8xf32>, vector<8x16xf32>, vector<16x16xf32> -> vector<16x16xf32>
    %339 = vector.extract_strided_slice %296 {offsets = [8, 0], sizes = [8, 16], strides = [1, 1]} : vector<16x16xf32> to vector<8x16xf32>
    %cst_132 = arith.constant dense<0.000000e+00> : vector<16x16xf32>
    %340 = tpu.matmul %336, %339, %cst_132 {dimension_numbers = #tpu.dot_dimension_numbers<[1], [0], [0], [1], [0, 0, 1, 1], [], []>} : vector<16x8xf32>, vector<8x16xf32>, vector<16x16xf32> -> vector<16x16xf32>
    %341 = arith.addf %338, %340 : vector<16x16xf32>
    %342 = vector.shape_cast %341 : vector<16x16xf32> to vector<4x4x16xf32>
    %343 = arith.addf %282, %324 : vector<1x1xf32>
    %344 = vector.shape_cast %342 : vector<4x4x16xf32> to vector<1x4x4x16xf32>
    %c0_133 = arith.constant 0 : index
    %c0_134 = arith.constant 0 : index
    %c0_135 = arith.constant 0 : index
    %c0_136 = arith.constant 0 : index
    %345 = vector.load %arg11[%c0_133, %c0_134, %c0_135, %c0_136] : memref<1x4x4x16xf32, #tpu.memory_space<vmem>>, vector<1x4x4x16xf32>
    tpu.vector_store %arg11[%c0_133, %c0_134, %c0_135, %c0_136], %344 {strides = array<i32>} : memref<1x4x4x16xf32, #tpu.memory_space<vmem>>, vector<1x4x4x16xf32>,
    %346 = vector.shape_cast %343 : vector<1x1xf32> to vector<1x1x1xf32>
    %c0_137 = arith.constant 0 : index
    %c0_138 = arith.constant 0 : index
    %c0_139 = arith.constant 0 : index
    %347 = vector.load %arg12[%c0_137, %c0_138, %c0_139] : memref<1x1x1xf32, #tpu.memory_space<vmem>>, vector<1x1x1xf32>
    tpu.vector_store %arg12[%c0_137, %c0_138, %c0_139], %346 {strides = array<i32>} : memref<1x1x1xf32, #tpu.memory_space<vmem>>, vector<1x1x1xf32>,
    return
  }
  func.func @transform_0(%arg0: i32) -> (i32, i32, i32, i32) {
    %c0_i32 = arith.constant 0 : i32
    %c0_i32_0 = arith.constant 0 : i32
    %c0_i32_1 = arith.constant 0 : i32
    %c0_i32_2 = arith.constant 0 : i32
    return %arg0, %c0_i32, %c0_i32_0, %c0_i32_1 : i32, i32, i32, i32
  }
  func.func @transform_1(%arg0: i32) -> (i32, i32) {
    %c0_i32 = arith.constant 0 : i32
    %c0_i32_0 = arith.constant 0 : i32
    %c0_i32_1 = arith.constant 0 : i32
    return %c0_i32, %c0_i32_0 : i32, i32
  }
  func.func @transform_2(%arg0: i32) -> (i32, i32) {
    %c0_i32 = arith.constant 0 : i32
    %c0_i32_0 = arith.constant 0 : i32
    %c0_i32_1 = arith.constant 0 : i32
    return %c0_i32, %c0_i32_0 : i32, i32
  }
  func.func @transform_3(%arg0: i32) -> (i32, i32, i32) {
    %c0_i32 = arith.constant 0 : i32
    %c0_i32_0 = arith.constant 0 : i32
    %c0_i32_1 = arith.constant 0 : i32
    %c0_i32_2 = arith.constant 0 : i32
    return %c0_i32, %c0_i32_0, %c0_i32_1 : i32, i32, i32
  }
  func.func @transform_4(%arg0: i32) -> (i32, i32, i32) {
    %c0_i32 = arith.constant 0 : i32
    %c0_i32_0 = arith.constant 0 : i32
    %c0_i32_1 = arith.constant 0 : i32
    %c0_i32_2 = arith.constant 0 : i32
    return %c0_i32, %c0_i32_0, %c0_i32_1 : i32, i32, i32
  }
  func.func @transform_5(%arg0: i32) -> (i32, i32, i32) {
    %c0_i32 = arith.constant 0 : i32
    %c0_i32_0 = arith.constant 0 : i32
    %c0_i32_1 = arith.constant 0 : i32
    %c0_i32_2 = arith.constant 0 : i32
    return %c0_i32, %c0_i32_0, %c0_i32_1 : i32, i32, i32
  }
  func.func @transform_6(%arg0: i32) -> (i32, i32, i32) {
    %c0_i32 = arith.constant 0 : i32
    %c0_i32_0 = arith.constant 0 : i32
    %c0_i32_1 = arith.constant 0 : i32
    %c0_i32_2 = arith.constant 0 : i32
    return %c0_i32, %c0_i32_0, %c0_i32_1 : i32, i32, i32
  }
  func.func @transform_7(%arg0: i32) -> (i32, i32, i32) {
    %c0_i32 = arith.constant 0 : i32
    %c0_i32_0 = arith.constant 0 : i32
    %c0_i32_1 = arith.constant 0 : i32
    %c0_i32_2 = arith.constant 0 : i32
    return %c0_i32, %c0_i32_0, %c0_i32_1 : i32, i32, i32
  }
  func.func @transform_8(%arg0: i32) -> (i32, i32, i32) {
    %c0_i32 = arith.constant 0 : i32
    %c0_i32_0 = arith.constant 0 : i32
    %c0_i32_1 = arith.constant 0 : i32
    %c0_i32_2 = arith.constant 0 : i32
    return %c0_i32, %c0_i32_0, %c0_i32_1 : i32, i32, i32
  }
  func.func @transform_9(%arg0: i32) -> (i32, i32, i32) {
    %c0_i32 = arith.constant 0 : i32
    %c0_i32_0 = arith.constant 0 : i32
    %c0_i32_1 = arith.constant 0 : i32
    %c0_i32_2 = arith.constant 0 : i32
    return %c0_i32, %c0_i32_0, %c0_i32_1 : i32, i32, i32
  }
  func.func @transform_10(%arg0: i32) -> (i32, i32, i32, i32) {
    %c0_i32 = arith.constant 0 : i32
    %c0_i32_0 = arith.constant 0 : i32
    %c0_i32_1 = arith.constant 0 : i32
    %c0_i32_2 = arith.constant 0 : i32
    return %arg0, %c0_i32, %c0_i32_0, %c0_i32_1 : i32, i32, i32, i32
  }
  func.func @transform_11(%arg0: i32) -> (i32, i32, i32) {
    %c0_i32 = arith.constant 0 : i32
    %c0_i32_0 = arith.constant 0 : i32
    %c0_i32_1 = arith.constant 0 : i32
    return %arg0, %c0_i32, %c0_i32_0 : i32, i32, i32
  }
}

module attributes {stable_mosaic.version = 11 : i64} {
  func.func @_fine_stage_kernel(%arg0: i32, %arg1: memref<1x8x8x3xf32, #tpu.memory_space<vmem>>, %arg2: memref<1x8x8x2xf32, #tpu.memory_space<vmem>>, %arg3: memref<1x4x4x8xf32, #tpu.memory_space<vmem>>, %arg4: memref<3x8xf32, #tpu.memory_space<vmem>>, %arg5: memref<1x8xf32, #tpu.memory_space<vmem>>, %arg6: memref<4x45x5xf32, #tpu.memory_space<vmem>>, %arg7: memref<4x1x5xf32, #tpu.memory_space<vmem>>, %arg8: memref<4x45x10xf32, #tpu.memory_space<vmem>>, %arg9: memref<4x1x10xf32, #tpu.memory_space<vmem>>, %arg10: memref<4x1x10xf32, #tpu.memory_space<vmem>>, %arg11: memref<4x1x10xf32, #tpu.memory_space<vmem>>, %arg12: memref<4x10x10xf32, #tpu.memory_space<vmem>>, %arg13: memref<32x8xf32, #tpu.memory_space<vmem>>, %arg14: memref<8x32xf32, #tpu.memory_space<vmem>>, %arg15: memref<32x4xf32, #tpu.memory_space<vmem>>, %arg16: memref<4x32xf32, #tpu.memory_space<vmem>>, %arg17: memref<1x8x8x10xf32, #tpu.memory_space<vmem>>, %arg18: memref<1x32x32xf32, #tpu.memory_space<vmem>>, %arg19: memref<1x1x1xf32, #tpu.memory_space<vmem>>) attributes {dimension_semantics = [#tpu.dimension_semantics<parallel>], iteration_bounds = array<i64: 2>, scalar_prefetch = 0 : i64, scratch_operands = 0 : i64, tpu.core_type = #tpu.core_type<tc>, window_params = [{transform_indices = @transform_0, window_bounds = array<i64: 1, 8, 8, 3>}, {transform_indices = @transform_1, window_bounds = array<i64: 1, 8, 8, 2>}, {transform_indices = @transform_2, window_bounds = array<i64: 1, 4, 4, 8>}, {pipeline_mode = #tpu.pipeline_mode<synchronous>, transform_indices = @transform_3, window_bounds = array<i64: 3, 8>}, {pipeline_mode = #tpu.pipeline_mode<synchronous>, transform_indices = @transform_4, window_bounds = array<i64: 1, 8>}, {pipeline_mode = #tpu.pipeline_mode<synchronous>, transform_indices = @transform_5, window_bounds = array<i64: 4, 45, 5>}, {pipeline_mode = #tpu.pipeline_mode<synchronous>, transform_indices = @transform_6, window_bounds = array<i64: 4, 1, 5>}, {pipeline_mode = #tpu.pipeline_mode<synchronous>, transform_indices = @transform_7, window_bounds = array<i64: 4, 45, 10>}, {pipeline_mode = #tpu.pipeline_mode<synchronous>, transform_indices = @transform_8, window_bounds = array<i64: 4, 1, 10>}, {pipeline_mode = #tpu.pipeline_mode<synchronous>, transform_indices = @transform_9, window_bounds = array<i64: 4, 1, 10>}, {pipeline_mode = #tpu.pipeline_mode<synchronous>, transform_indices = @transform_10, window_bounds = array<i64: 4, 1, 10>}, {pipeline_mode = #tpu.pipeline_mode<synchronous>, transform_indices = @transform_11, window_bounds = array<i64: 4, 10, 10>}, {pipeline_mode = #tpu.pipeline_mode<synchronous>, transform_indices = @transform_12, window_bounds = array<i64: 32, 8>}, {pipeline_mode = #tpu.pipeline_mode<synchronous>, transform_indices = @transform_13, window_bounds = array<i64: 8, 32>}, {pipeline_mode = #tpu.pipeline_mode<synchronous>, transform_indices = @transform_14, window_bounds = array<i64: 32, 4>}, {pipeline_mode = #tpu.pipeline_mode<synchronous>, transform_indices = @transform_15, window_bounds = array<i64: 4, 32>}, {transform_indices = @transform_16, window_bounds = array<i64: 1, 8, 8, 10>}, {transform_indices = @transform_17, window_bounds = array<i64: 1, 32, 32>}, {transform_indices = @transform_18, window_bounds = array<i64: 1, 1, 1>}]} {
    %c0 = arith.constant 0 : index
    %c0_0 = arith.constant 0 : index
    %c0_1 = arith.constant 0 : index
    %c0_2 = arith.constant 0 : index
    %0 = vector.load %arg1[%c0, %c0_0, %c0_1, %c0_2] : memref<1x8x8x3xf32, #tpu.memory_space<vmem>>, vector<1x8x8x3xf32>
    %1 = vector.shape_cast %0 : vector<1x8x8x3xf32> to vector<8x8x3xf32>
    %2 = vector.shape_cast %1 : vector<8x8x3xf32> to vector<64x3xf32>
    %c0_3 = arith.constant 0 : index
    %c0_4 = arith.constant 0 : index
    %3 = vector.load %arg4[%c0_3, %c0_4] : memref<3x8xf32, #tpu.memory_space<vmem>>, vector<3x8xf32>
    %cst = arith.constant dense<0.000000e+00> : vector<64x8xf32>
    %4 = tpu.matmul %2, %3, %cst {dimension_numbers = #tpu.dot_dimension_numbers<[1], [0], [0], [1], [0, 0, 1, 1], [], []>} : vector<64x3xf32>, vector<3x8xf32>, vector<64x8xf32> -> vector<64x8xf32>
    %c0_5 = arith.constant 0 : index
    %c0_6 = arith.constant 0 : index
    %5 = vector.load %arg5[%c0_5, %c0_6] : memref<1x8xf32, #tpu.memory_space<vmem>>, vector<1x8xf32>
    %6 = vector.broadcast %5 : vector<1x8xf32> to vector<64x8xf32>
    %7 = arith.addf %4, %6 : vector<64x8xf32>
    %8 = vector.shape_cast %7 : vector<64x8xf32> to vector<8x8x8xf32>
    %c0_7 = arith.constant 0 : index
    %c0_8 = arith.constant 0 : index
    %c0_9 = arith.constant 0 : index
    %c0_10 = arith.constant 0 : index
    %9 = vector.load %arg2[%c0_7, %c0_8, %c0_9, %c0_10] : memref<1x8x8x2xf32, #tpu.memory_space<vmem>>, vector<1x8x8x2xf32>
    %10 = vector.shape_cast %9 : vector<1x8x8x2xf32> to vector<8x8x2xf32>
    %11 = tpu.concatenate %8, %10 in 2 : vector<8x8x8xf32>, vector<8x8x2xf32> -> vector<8x8x10xf32>
    %cst_11 = arith.constant 0.000000e+00 : f32
    %12 = vector.broadcast %cst_11 : f32 to vector<1x1xf32>
    %c0_12 = arith.constant 0 : index
    %c0_13 = arith.constant 0 : index
    %c0_14 = arith.constant 0 : index
    %13 = vector.load %arg6[%c0_12, %c0_13, %c0_14] : memref<4x45x5xf32, #tpu.memory_space<vmem>>, vector<1x45x5xf32>
    %14 = vector.shape_cast %13 : vector<1x45x5xf32> to vector<45x5xf32>
    %c0_15 = arith.constant 0 : index
    %c0_16 = arith.constant 0 : index
    %c0_17 = arith.constant 0 : index
    %15 = vector.load %arg7[%c0_15, %c0_16, %c0_17] : memref<4x1x5xf32, #tpu.memory_space<vmem>>, vector<1x1x5xf32>
    %16 = vector.shape_cast %15 : vector<1x1x5xf32> to vector<1x5xf32>
    %c0_18 = arith.constant 0 : index
    %c0_19 = arith.constant 0 : index
    %c0_20 = arith.constant 0 : index
    %17 = vector.load %arg8[%c0_18, %c0_19, %c0_20] : memref<4x45x10xf32, #tpu.memory_space<vmem>>, vector<1x45x10xf32>
    %18 = vector.shape_cast %17 : vector<1x45x10xf32> to vector<45x10xf32>
    %c0_21 = arith.constant 0 : index
    %c0_22 = arith.constant 0 : index
    %c0_23 = arith.constant 0 : index
    %19 = vector.load %arg9[%c0_21, %c0_22, %c0_23] : memref<4x1x10xf32, #tpu.memory_space<vmem>>, vector<1x1x10xf32>
    %20 = vector.shape_cast %19 : vector<1x1x10xf32> to vector<1x10xf32>
    %c0_24 = arith.constant 0 : index
    %c0_25 = arith.constant 0 : index
    %c0_26 = arith.constant 0 : index
    %21 = vector.load %arg10[%c0_24, %c0_25, %c0_26] : memref<4x1x10xf32, #tpu.memory_space<vmem>>, vector<1x1x10xf32>
    %22 = vector.shape_cast %21 : vector<1x1x10xf32> to vector<1x10xf32>
    %c0_27 = arith.constant 0 : index
    %c0_28 = arith.constant 0 : index
    %c0_29 = arith.constant 0 : index
    %23 = vector.load %arg11[%c0_27, %c0_28, %c0_29] : memref<4x1x10xf32, #tpu.memory_space<vmem>>, vector<1x1x10xf32>
    %24 = vector.shape_cast %23 : vector<1x1x10xf32> to vector<1x10xf32>
    %c0_30 = arith.constant 0 : index
    %c0_31 = arith.constant 0 : index
    %c0_32 = arith.constant 0 : index
    %25 = vector.load %arg12[%c0_30, %c0_31, %c0_32] : memref<4x10x10xf32, #tpu.memory_space<vmem>>, vector<1x10x10xf32>
    %26 = vector.shape_cast %25 : vector<1x10x10xf32> to vector<10x10xf32>
    %27 = vector.extract_strided_slice %11 {offsets = [0, 0, 0], sizes = [8, 8, 5], strides = [1, 1, 1]} : vector<8x8x10xf32> to vector<8x8x5xf32>
    %28 = vector.shape_cast %27 : vector<8x8x5xf32> to vector<64x5xf32>
    %29 = vector.extract_strided_slice %11 {offsets = [0, 0, 5], sizes = [8, 8, 5], strides = [1, 1, 1]} : vector<8x8x10xf32> to vector<8x8x5xf32>
    %30 = vector.shape_cast %29 : vector<8x8x5xf32> to vector<64x5xf32>
    %cst_33 = arith.constant 0.000000e+00 : f32
    %31 = vector.broadcast %cst_33 : f32 to vector<1x8x5xf32>
    %32 = tpu.concatenate %31, %27, %31 in 0 : vector<1x8x5xf32>, vector<8x8x5xf32>, vector<1x8x5xf32> -> vector<10x8x5xf32>
    %cst_34 = arith.constant 0.000000e+00 : f32
    %33 = vector.broadcast %cst_34 : f32 to vector<10x1x5xf32>
    %34 = tpu.concatenate %33, %32, %33 in 1 : vector<10x1x5xf32>, vector<10x8x5xf32>, vector<10x1x5xf32> -> vector<10x10x5xf32>
    %35 = vector.extract_strided_slice %34 {offsets = [0, 0, 0], sizes = [8, 8, 5], strides = [1, 1, 1]} : vector<10x10x5xf32> to vector<8x8x5xf32>
    %36 = vector.shape_cast %35 : vector<8x8x5xf32> to vector<64x5xf32>
    %37 = vector.extract_strided_slice %34 {offsets = [0, 1, 0], sizes = [8, 8, 5], strides = [1, 1, 1]} : vector<10x10x5xf32> to vector<8x8x5xf32>
    %38 = vector.shape_cast %37 : vector<8x8x5xf32> to vector<64x5xf32>
    %39 = vector.extract_strided_slice %34 {offsets = [0, 2, 0], sizes = [8, 8, 5], strides = [1, 1, 1]} : vector<10x10x5xf32> to vector<8x8x5xf32>
    %40 = vector.shape_cast %39 : vector<8x8x5xf32> to vector<64x5xf32>
    %41 = vector.extract_strided_slice %34 {offsets = [1, 0, 0], sizes = [8, 8, 5], strides = [1, 1, 1]} : vector<10x10x5xf32> to vector<8x8x5xf32>
    %42 = vector.shape_cast %41 : vector<8x8x5xf32> to vector<64x5xf32>
    %43 = vector.extract_strided_slice %34 {offsets = [1, 1, 0], sizes = [8, 8, 5], strides = [1, 1, 1]} : vector<10x10x5xf32> to vector<8x8x5xf32>
    %44 = vector.shape_cast %43 : vector<8x8x5xf32> to vector<64x5xf32>
    %45 = vector.extract_strided_slice %34 {offsets = [1, 2, 0], sizes = [8, 8, 5], strides = [1, 1, 1]} : vector<10x10x5xf32> to vector<8x8x5xf32>
    %46 = vector.shape_cast %45 : vector<8x8x5xf32> to vector<64x5xf32>
    %47 = vector.extract_strided_slice %34 {offsets = [2, 0, 0], sizes = [8, 8, 5], strides = [1, 1, 1]} : vector<10x10x5xf32> to vector<8x8x5xf32>
    %48 = vector.shape_cast %47 : vector<8x8x5xf32> to vector<64x5xf32>
    %49 = vector.extract_strided_slice %34 {offsets = [2, 1, 0], sizes = [8, 8, 5], strides = [1, 1, 1]} : vector<10x10x5xf32> to vector<8x8x5xf32>
    %50 = vector.shape_cast %49 : vector<8x8x5xf32> to vector<64x5xf32>
    %51 = vector.extract_strided_slice %34 {offsets = [2, 2, 0], sizes = [8, 8, 5], strides = [1, 1, 1]} : vector<10x10x5xf32> to vector<8x8x5xf32>
    %52 = vector.shape_cast %51 : vector<8x8x5xf32> to vector<64x5xf32>
    %53 = tpu.concatenate %36, %38, %40, %42, %44, %46, %48, %50, %52 in 1 : vector<64x5xf32>, vector<64x5xf32>, vector<64x5xf32>, vector<64x5xf32>, vector<64x5xf32>, vector<64x5xf32>, vector<64x5xf32>, vector<64x5xf32>, vector<64x5xf32> -> vector<64x45xf32>
    %cst_35 = arith.constant dense<0.000000e+00> : vector<64x5xf32>
    %54 = tpu.matmul %53, %14, %cst_35 {dimension_numbers = #tpu.dot_dimension_numbers<[1], [0], [0], [1], [0, 0, 1, 1], [], []>} : vector<64x45xf32>, vector<45x5xf32>, vector<64x5xf32> -> vector<64x5xf32>
    %55 = vector.broadcast %16 : vector<1x5xf32> to vector<64x5xf32>
    %56 = arith.addf %54, %55 : vector<64x5xf32>
    %cst_36 = arith.constant 0.000000e+00 : f32
    %57 = vector.broadcast %cst_36 : f32 to vector<64x5xf32>
    %58 = arith.maximumf %56, %57 : vector<64x5xf32>
    %59 = vector.shape_cast %58 : vector<64x5xf32> to vector<8x8x5xf32>
    %cst_37 = arith.constant 0.000000e+00 : f32
    %60 = vector.broadcast %cst_37 : f32 to vector<1x8x5xf32>
    %61 = tpu.concatenate %60, %59, %60 in 0 : vector<1x8x5xf32>, vector<8x8x5xf32>, vector<1x8x5xf32> -> vector<10x8x5xf32>
    %cst_38 = arith.constant 0.000000e+00 : f32
    %62 = vector.broadcast %cst_38 : f32 to vector<10x1x5xf32>
    %63 = tpu.concatenate %62, %61, %62 in 1 : vector<10x1x5xf32>, vector<10x8x5xf32>, vector<10x1x5xf32> -> vector<10x10x5xf32>
    %64 = vector.extract_strided_slice %63 {offsets = [0, 0, 0], sizes = [8, 8, 5], strides = [1, 1, 1]} : vector<10x10x5xf32> to vector<8x8x5xf32>
    %65 = vector.shape_cast %64 : vector<8x8x5xf32> to vector<64x5xf32>
    %66 = vector.extract_strided_slice %63 {offsets = [0, 1, 0], sizes = [8, 8, 5], strides = [1, 1, 1]} : vector<10x10x5xf32> to vector<8x8x5xf32>
    %67 = vector.shape_cast %66 : vector<8x8x5xf32> to vector<64x5xf32>
    %68 = vector.extract_strided_slice %63 {offsets = [0, 2, 0], sizes = [8, 8, 5], strides = [1, 1, 1]} : vector<10x10x5xf32> to vector<8x8x5xf32>
    %69 = vector.shape_cast %68 : vector<8x8x5xf32> to vector<64x5xf32>
    %70 = vector.extract_strided_slice %63 {offsets = [1, 0, 0], sizes = [8, 8, 5], strides = [1, 1, 1]} : vector<10x10x5xf32> to vector<8x8x5xf32>
    %71 = vector.shape_cast %70 : vector<8x8x5xf32> to vector<64x5xf32>
    %72 = vector.extract_strided_slice %63 {offsets = [1, 1, 0], sizes = [8, 8, 5], strides = [1, 1, 1]} : vector<10x10x5xf32> to vector<8x8x5xf32>
    %73 = vector.shape_cast %72 : vector<8x8x5xf32> to vector<64x5xf32>
    %74 = vector.extract_strided_slice %63 {offsets = [1, 2, 0], sizes = [8, 8, 5], strides = [1, 1, 1]} : vector<10x10x5xf32> to vector<8x8x5xf32>
    %75 = vector.shape_cast %74 : vector<8x8x5xf32> to vector<64x5xf32>
    %76 = vector.extract_strided_slice %63 {offsets = [2, 0, 0], sizes = [8, 8, 5], strides = [1, 1, 1]} : vector<10x10x5xf32> to vector<8x8x5xf32>
    %77 = vector.shape_cast %76 : vector<8x8x5xf32> to vector<64x5xf32>
    %78 = vector.extract_strided_slice %63 {offsets = [2, 1, 0], sizes = [8, 8, 5], strides = [1, 1, 1]} : vector<10x10x5xf32> to vector<8x8x5xf32>
    %79 = vector.shape_cast %78 : vector<8x8x5xf32> to vector<64x5xf32>
    %80 = vector.extract_strided_slice %63 {offsets = [2, 2, 0], sizes = [8, 8, 5], strides = [1, 1, 1]} : vector<10x10x5xf32> to vector<8x8x5xf32>
    %81 = vector.shape_cast %80 : vector<8x8x5xf32> to vector<64x5xf32>
    %82 = tpu.concatenate %65, %67, %69, %71, %73, %75, %77, %79, %81 in 1 : vector<64x5xf32>, vector<64x5xf32>, vector<64x5xf32>, vector<64x5xf32>, vector<64x5xf32>, vector<64x5xf32>, vector<64x5xf32>, vector<64x5xf32>, vector<64x5xf32> -> vector<64x45xf32>
    %cst_39 = arith.constant dense<0.000000e+00> : vector<64x10xf32>
    %83 = tpu.matmul %82, %18, %cst_39 {dimension_numbers = #tpu.dot_dimension_numbers<[1], [0], [0], [1], [0, 0, 1, 1], [], []>} : vector<64x45xf32>, vector<45x10xf32>, vector<64x10xf32> -> vector<64x10xf32>
    %84 = vector.broadcast %20 : vector<1x10xf32> to vector<64x10xf32>
    %85 = arith.addf %83, %84 : vector<64x10xf32>
    %cst_40 = arith.constant 1.000000e-01 : f32
    %86 = vector.broadcast %cst_40 : f32 to vector<64x10xf32>
    %87 = arith.mulf %85, %86 : vector<64x10xf32>
    %88 = vector.extract_strided_slice %87 {offsets = [0, 0], sizes = [64, 5], strides = [1, 1]} : vector<64x10xf32> to vector<64x5xf32>
    %89 = math.tanh %88 : vector<64x5xf32>
    %cst_41 = arith.constant 2.000000e+00 : f32
    %90 = vector.broadcast %cst_41 : f32 to vector<64x5xf32>
    %91 = arith.mulf %90, %89 : vector<64x5xf32>
    %92 = vector.extract_strided_slice %87 {offsets = [0, 5], sizes = [64, 5], strides = [1, 1]} : vector<64x10xf32> to vector<64x5xf32>
    %93 = math.exp %91 : vector<64x5xf32>
    %94 = arith.mulf %30, %93 : vector<64x5xf32>
    %95 = arith.addf %94, %92 : vector<64x5xf32>
    %cst_42 = arith.constant dense<0.000000e+00> : vector<64xf32>
    %96 = vector.multi_reduction <add>, %91, %cst_42 [1] : vector<64x5xf32> to vector<64xf32>
    %97 = vector.shape_cast %96 : vector<64xf32> to vector<64x1xf32>
    %cst_43 = arith.constant dense<0.000000e+00> : vector<1xf32>
    %98 = vector.multi_reduction <add>, %97, %cst_43 [0] : vector<64x1xf32> to vector<1xf32>
    %99 = vector.shape_cast %98 : vector<1xf32> to vector<1x1xf32>
    %100 = vector.extract_strided_slice %22 {offsets = [0, 0], sizes = [1, 5], strides = [1, 1]} : vector<1x10xf32> to vector<1x5xf32>
    %101 = vector.broadcast %100 : vector<1x5xf32> to vector<64x5xf32>
    %102 = arith.mulf %28, %101 : vector<64x5xf32>
    %103 = vector.extract_strided_slice %24 {offsets = [0, 0], sizes = [1, 5], strides = [1, 1]} : vector<1x10xf32> to vector<1x5xf32>
    %104 = vector.broadcast %103 : vector<1x5xf32> to vector<64x5xf32>
    %105 = arith.addf %102, %104 : vector<64x5xf32>
    %106 = vector.extract_strided_slice %22 {offsets = [0, 5], sizes = [1, 5], strides = [1, 1]} : vector<1x10xf32> to vector<1x5xf32>
    %107 = vector.broadcast %106 : vector<1x5xf32> to vector<64x5xf32>
    %108 = arith.mulf %95, %107 : vector<64x5xf32>
    %109 = vector.extract_strided_slice %24 {offsets = [0, 5], sizes = [1, 5], strides = [1, 1]} : vector<1x10xf32> to vector<1x5xf32>
    %110 = vector.broadcast %109 : vector<1x5xf32> to vector<64x5xf32>
    %111 = arith.addf %108, %110 : vector<64x5xf32>
    %112 = vector.extract_strided_slice %26 {offsets = [0, 0], sizes = [5, 10], strides = [1, 1]} : vector<10x10xf32> to vector<5x10xf32>
    %cst_44 = arith.constant dense<0.000000e+00> : vector<64x10xf32>
    %113 = tpu.matmul %105, %112, %cst_44 {dimension_numbers = #tpu.dot_dimension_numbers<[1], [0], [0], [1], [0, 0, 1, 1], [], []>} : vector<64x5xf32>, vector<5x10xf32>, vector<64x10xf32> -> vector<64x10xf32>
    %114 = vector.extract_strided_slice %26 {offsets = [5, 0], sizes = [5, 10], strides = [1, 1]} : vector<10x10xf32> to vector<5x10xf32>
    %cst_45 = arith.constant dense<0.000000e+00> : vector<64x10xf32>
    %115 = tpu.matmul %111, %114, %cst_45 {dimension_numbers = #tpu.dot_dimension_numbers<[1], [0], [0], [1], [0, 0, 1, 1], [], []>} : vector<64x5xf32>, vector<5x10xf32>, vector<64x10xf32> -> vector<64x10xf32>
    %116 = arith.addf %113, %115 : vector<64x10xf32>
    %117 = vector.shape_cast %116 : vector<64x10xf32> to vector<8x8x10xf32>
    %118 = arith.addf %12, %99 : vector<1x1xf32>
    %c1 = arith.constant 1 : index
    %c0_46 = arith.constant 0 : index
    %c0_47 = arith.constant 0 : index
    %119 = vector.load %arg6[%c1, %c0_46, %c0_47] : memref<4x45x5xf32, #tpu.memory_space<vmem>>, vector<1x45x5xf32>
    %120 = vector.shape_cast %119 : vector<1x45x5xf32> to vector<45x5xf32>
    %c1_48 = arith.constant 1 : index
    %c0_49 = arith.constant 0 : index
    %c0_50 = arith.constant 0 : index
    %121 = vector.load %arg7[%c1_48, %c0_49, %c0_50] : memref<4x1x5xf32, #tpu.memory_space<vmem>>, vector<1x1x5xf32>
    %122 = vector.shape_cast %121 : vector<1x1x5xf32> to vector<1x5xf32>
    %c1_51 = arith.constant 1 : index
    %c0_52 = arith.constant 0 : index
    %c0_53 = arith.constant 0 : index
    %123 = vector.load %arg8[%c1_51, %c0_52, %c0_53] : memref<4x45x10xf32, #tpu.memory_space<vmem>>, vector<1x45x10xf32>
    %124 = vector.shape_cast %123 : vector<1x45x10xf32> to vector<45x10xf32>
    %c1_54 = arith.constant 1 : index
    %c0_55 = arith.constant 0 : index
    %c0_56 = arith.constant 0 : index
    %125 = vector.load %arg9[%c1_54, %c0_55, %c0_56] : memref<4x1x10xf32, #tpu.memory_space<vmem>>, vector<1x1x10xf32>
    %126 = vector.shape_cast %125 : vector<1x1x10xf32> to vector<1x10xf32>
    %c1_57 = arith.constant 1 : index
    %c0_58 = arith.constant 0 : index
    %c0_59 = arith.constant 0 : index
    %127 = vector.load %arg10[%c1_57, %c0_58, %c0_59] : memref<4x1x10xf32, #tpu.memory_space<vmem>>, vector<1x1x10xf32>
    %128 = vector.shape_cast %127 : vector<1x1x10xf32> to vector<1x10xf32>
    %c1_60 = arith.constant 1 : index
    %c0_61 = arith.constant 0 : index
    %c0_62 = arith.constant 0 : index
    %129 = vector.load %arg11[%c1_60, %c0_61, %c0_62] : memref<4x1x10xf32, #tpu.memory_space<vmem>>, vector<1x1x10xf32>
    %130 = vector.shape_cast %129 : vector<1x1x10xf32> to vector<1x10xf32>
    %c1_63 = arith.constant 1 : index
    %c0_64 = arith.constant 0 : index
    %c0_65 = arith.constant 0 : index
    %131 = vector.load %arg12[%c1_63, %c0_64, %c0_65] : memref<4x10x10xf32, #tpu.memory_space<vmem>>, vector<1x10x10xf32>
    %132 = vector.shape_cast %131 : vector<1x10x10xf32> to vector<10x10xf32>
    %133 = vector.extract_strided_slice %117 {offsets = [0, 0, 0], sizes = [8, 8, 5], strides = [1, 1, 1]} : vector<8x8x10xf32> to vector<8x8x5xf32>
    %134 = vector.shape_cast %133 : vector<8x8x5xf32> to vector<64x5xf32>
    %135 = vector.extract_strided_slice %117 {offsets = [0, 0, 5], sizes = [8, 8, 5], strides = [1, 1, 1]} : vector<8x8x10xf32> to vector<8x8x5xf32>
    %136 = vector.shape_cast %135 : vector<8x8x5xf32> to vector<64x5xf32>
    %137 = vector.extract_strided_slice %120 {offsets = [20, 0], sizes = [5, 5], strides = [1, 1]} : vector<45x5xf32> to vector<5x5xf32>
    %cst_66 = arith.constant dense<0.000000e+00> : vector<64x5xf32>
    %138 = tpu.matmul %134, %137, %cst_66 {dimension_numbers = #tpu.dot_dimension_numbers<[1], [0], [0], [1], [0, 0, 1, 1], [], []>} : vector<64x5xf32>, vector<5x5xf32>, vector<64x5xf32> -> vector<64x5xf32>
    %139 = vector.broadcast %122 : vector<1x5xf32> to vector<64x5xf32>
    %140 = arith.addf %138, %139 : vector<64x5xf32>
    %cst_67 = arith.constant 0.000000e+00 : f32
    %141 = vector.broadcast %cst_67 : f32 to vector<64x5xf32>
    %142 = arith.maximumf %140, %141 : vector<64x5xf32>
    %143 = vector.extract_strided_slice %124 {offsets = [20, 0], sizes = [5, 10], strides = [1, 1]} : vector<45x10xf32> to vector<5x10xf32>
    %cst_68 = arith.constant dense<0.000000e+00> : vector<64x10xf32>
    %144 = tpu.matmul %142, %143, %cst_68 {dimension_numbers = #tpu.dot_dimension_numbers<[1], [0], [0], [1], [0, 0, 1, 1], [], []>} : vector<64x5xf32>, vector<5x10xf32>, vector<64x10xf32> -> vector<64x10xf32>
    %145 = vector.broadcast %126 : vector<1x10xf32> to vector<64x10xf32>
    %146 = arith.addf %144, %145 : vector<64x10xf32>
    %cst_69 = arith.constant 1.000000e-01 : f32
    %147 = vector.broadcast %cst_69 : f32 to vector<64x10xf32>
    %148 = arith.mulf %146, %147 : vector<64x10xf32>
    %149 = vector.extract_strided_slice %148 {offsets = [0, 0], sizes = [64, 5], strides = [1, 1]} : vector<64x10xf32> to vector<64x5xf32>
    %150 = math.tanh %149 : vector<64x5xf32>
    %cst_70 = arith.constant 2.000000e+00 : f32
    %151 = vector.broadcast %cst_70 : f32 to vector<64x5xf32>
    %152 = arith.mulf %151, %150 : vector<64x5xf32>
    %153 = vector.extract_strided_slice %148 {offsets = [0, 5], sizes = [64, 5], strides = [1, 1]} : vector<64x10xf32> to vector<64x5xf32>
    %154 = math.exp %152 : vector<64x5xf32>
    %155 = arith.mulf %136, %154 : vector<64x5xf32>
    %156 = arith.addf %155, %153 : vector<64x5xf32>
    %cst_71 = arith.constant dense<0.000000e+00> : vector<64xf32>
    %157 = vector.multi_reduction <add>, %152, %cst_71 [1] : vector<64x5xf32> to vector<64xf32>
    %158 = vector.shape_cast %157 : vector<64xf32> to vector<64x1xf32>
    %cst_72 = arith.constant dense<0.000000e+00> : vector<1xf32>
    %159 = vector.multi_reduction <add>, %158, %cst_72 [0] : vector<64x1xf32> to vector<1xf32>
    %160 = vector.shape_cast %159 : vector<1xf32> to vector<1x1xf32>
    %161 = vector.extract_strided_slice %128 {offsets = [0, 0], sizes = [1, 5], strides = [1, 1]} : vector<1x10xf32> to vector<1x5xf32>
    %162 = vector.broadcast %161 : vector<1x5xf32> to vector<64x5xf32>
    %163 = arith.mulf %134, %162 : vector<64x5xf32>
    %164 = vector.extract_strided_slice %130 {offsets = [0, 0], sizes = [1, 5], strides = [1, 1]} : vector<1x10xf32> to vector<1x5xf32>
    %165 = vector.broadcast %164 : vector<1x5xf32> to vector<64x5xf32>
    %166 = arith.addf %163, %165 : vector<64x5xf32>
    %167 = vector.extract_strided_slice %128 {offsets = [0, 5], sizes = [1, 5], strides = [1, 1]} : vector<1x10xf32> to vector<1x5xf32>
    %168 = vector.broadcast %167 : vector<1x5xf32> to vector<64x5xf32>
    %169 = arith.mulf %156, %168 : vector<64x5xf32>
    %170 = vector.extract_strided_slice %130 {offsets = [0, 5], sizes = [1, 5], strides = [1, 1]} : vector<1x10xf32> to vector<1x5xf32>
    %171 = vector.broadcast %170 : vector<1x5xf32> to vector<64x5xf32>
    %172 = arith.addf %169, %171 : vector<64x5xf32>
    %173 = vector.extract_strided_slice %132 {offsets = [0, 0], sizes = [5, 10], strides = [1, 1]} : vector<10x10xf32> to vector<5x10xf32>
    %cst_73 = arith.constant dense<0.000000e+00> : vector<64x10xf32>
    %174 = tpu.matmul %166, %173, %cst_73 {dimension_numbers = #tpu.dot_dimension_numbers<[1], [0], [0], [1], [0, 0, 1, 1], [], []>} : vector<64x5xf32>, vector<5x10xf32>, vector<64x10xf32> -> vector<64x10xf32>
    %175 = vector.extract_strided_slice %132 {offsets = [5, 0], sizes = [5, 10], strides = [1, 1]} : vector<10x10xf32> to vector<5x10xf32>
    %cst_74 = arith.constant dense<0.000000e+00> : vector<64x10xf32>
    %176 = tpu.matmul %172, %175, %cst_74 {dimension_numbers = #tpu.dot_dimension_numbers<[1], [0], [0], [1], [0, 0, 1, 1], [], []>} : vector<64x5xf32>, vector<5x10xf32>, vector<64x10xf32> -> vector<64x10xf32>
    %177 = arith.addf %174, %176 : vector<64x10xf32>
    %178 = vector.shape_cast %177 : vector<64x10xf32> to vector<8x8x10xf32>
    %179 = arith.addf %118, %160 : vector<1x1xf32>
    %c2 = arith.constant 2 : index
    %c0_75 = arith.constant 0 : index
    %c0_76 = arith.constant 0 : index
    %180 = vector.load %arg6[%c2, %c0_75, %c0_76] : memref<4x45x5xf32, #tpu.memory_space<vmem>>, vector<1x45x5xf32>
    %181 = vector.shape_cast %180 : vector<1x45x5xf32> to vector<45x5xf32>
    %c2_77 = arith.constant 2 : index
    %c0_78 = arith.constant 0 : index
    %c0_79 = arith.constant 0 : index
    %182 = vector.load %arg7[%c2_77, %c0_78, %c0_79] : memref<4x1x5xf32, #tpu.memory_space<vmem>>, vector<1x1x5xf32>
    %183 = vector.shape_cast %182 : vector<1x1x5xf32> to vector<1x5xf32>
    %c2_80 = arith.constant 2 : index
    %c0_81 = arith.constant 0 : index
    %c0_82 = arith.constant 0 : index
    %184 = vector.load %arg8[%c2_80, %c0_81, %c0_82] : memref<4x45x10xf32, #tpu.memory_space<vmem>>, vector<1x45x10xf32>
    %185 = vector.shape_cast %184 : vector<1x45x10xf32> to vector<45x10xf32>
    %c2_83 = arith.constant 2 : index
    %c0_84 = arith.constant 0 : index
    %c0_85 = arith.constant 0 : index
    %186 = vector.load %arg9[%c2_83, %c0_84, %c0_85] : memref<4x1x10xf32, #tpu.memory_space<vmem>>, vector<1x1x10xf32>
    %187 = vector.shape_cast %186 : vector<1x1x10xf32> to vector<1x10xf32>
    %c2_86 = arith.constant 2 : index
    %c0_87 = arith.constant 0 : index
    %c0_88 = arith.constant 0 : index
    %188 = vector.load %arg10[%c2_86, %c0_87, %c0_88] : memref<4x1x10xf32, #tpu.memory_space<vmem>>, vector<1x1x10xf32>
    %189 = vector.shape_cast %188 : vector<1x1x10xf32> to vector<1x10xf32>
    %c2_89 = arith.constant 2 : index
    %c0_90 = arith.constant 0 : index
    %c0_91 = arith.constant 0 : index
    %190 = vector.load %arg11[%c2_89, %c0_90, %c0_91] : memref<4x1x10xf32, #tpu.memory_space<vmem>>, vector<1x1x10xf32>
    %191 = vector.shape_cast %190 : vector<1x1x10xf32> to vector<1x10xf32>
    %c2_92 = arith.constant 2 : index
    %c0_93 = arith.constant 0 : index
    %c0_94 = arith.constant 0 : index
    %192 = vector.load %arg12[%c2_92, %c0_93, %c0_94] : memref<4x10x10xf32, #tpu.memory_space<vmem>>, vector<1x10x10xf32>
    %193 = vector.shape_cast %192 : vector<1x10x10xf32> to vector<10x10xf32>
    %194 = vector.extract_strided_slice %178 {offsets = [0, 0, 0], sizes = [8, 8, 5], strides = [1, 1, 1]} : vector<8x8x10xf32> to vector<8x8x5xf32>
    %195 = vector.shape_cast %194 : vector<8x8x5xf32> to vector<64x5xf32>
    %196 = vector.extract_strided_slice %178 {offsets = [0, 0, 5], sizes = [8, 8, 5], strides = [1, 1, 1]} : vector<8x8x10xf32> to vector<8x8x5xf32>
    %197 = vector.shape_cast %196 : vector<8x8x5xf32> to vector<64x5xf32>
    %cst_95 = arith.constant 0.000000e+00 : f32
    %198 = vector.broadcast %cst_95 : f32 to vector<1x8x5xf32>
    %199 = tpu.concatenate %198, %194, %198 in 0 : vector<1x8x5xf32>, vector<8x8x5xf32>, vector<1x8x5xf32> -> vector<10x8x5xf32>
    %cst_96 = arith.constant 0.000000e+00 : f32
    %200 = vector.broadcast %cst_96 : f32 to vector<10x1x5xf32>
    %201 = tpu.concatenate %200, %199, %200 in 1 : vector<10x1x5xf32>, vector<10x8x5xf32>, vector<10x1x5xf32> -> vector<10x10x5xf32>
    %202 = vector.extract_strided_slice %201 {offsets = [0, 0, 0], sizes = [8, 8, 5], strides = [1, 1, 1]} : vector<10x10x5xf32> to vector<8x8x5xf32>
    %203 = vector.shape_cast %202 : vector<8x8x5xf32> to vector<64x5xf32>
    %204 = vector.extract_strided_slice %201 {offsets = [0, 1, 0], sizes = [8, 8, 5], strides = [1, 1, 1]} : vector<10x10x5xf32> to vector<8x8x5xf32>
    %205 = vector.shape_cast %204 : vector<8x8x5xf32> to vector<64x5xf32>
    %206 = vector.extract_strided_slice %201 {offsets = [0, 2, 0], sizes = [8, 8, 5], strides = [1, 1, 1]} : vector<10x10x5xf32> to vector<8x8x5xf32>
    %207 = vector.shape_cast %206 : vector<8x8x5xf32> to vector<64x5xf32>
    %208 = vector.extract_strided_slice %201 {offsets = [1, 0, 0], sizes = [8, 8, 5], strides = [1, 1, 1]} : vector<10x10x5xf32> to vector<8x8x5xf32>
    %209 = vector.shape_cast %208 : vector<8x8x5xf32> to vector<64x5xf32>
    %210 = vector.extract_strided_slice %201 {offsets = [1, 1, 0], sizes = [8, 8, 5], strides = [1, 1, 1]} : vector<10x10x5xf32> to vector<8x8x5xf32>
    %211 = vector.shape_cast %210 : vector<8x8x5xf32> to vector<64x5xf32>
    %212 = vector.extract_strided_slice %201 {offsets = [1, 2, 0], sizes = [8, 8, 5], strides = [1, 1, 1]} : vector<10x10x5xf32> to vector<8x8x5xf32>
    %213 = vector.shape_cast %212 : vector<8x8x5xf32> to vector<64x5xf32>
    %214 = vector.extract_strided_slice %201 {offsets = [2, 0, 0], sizes = [8, 8, 5], strides = [1, 1, 1]} : vector<10x10x5xf32> to vector<8x8x5xf32>
    %215 = vector.shape_cast %214 : vector<8x8x5xf32> to vector<64x5xf32>
    %216 = vector.extract_strided_slice %201 {offsets = [2, 1, 0], sizes = [8, 8, 5], strides = [1, 1, 1]} : vector<10x10x5xf32> to vector<8x8x5xf32>
    %217 = vector.shape_cast %216 : vector<8x8x5xf32> to vector<64x5xf32>
    %218 = vector.extract_strided_slice %201 {offsets = [2, 2, 0], sizes = [8, 8, 5], strides = [1, 1, 1]} : vector<10x10x5xf32> to vector<8x8x5xf32>
    %219 = vector.shape_cast %218 : vector<8x8x5xf32> to vector<64x5xf32>
    %220 = tpu.concatenate %203, %205, %207, %209, %211, %213, %215, %217, %219 in 1 : vector<64x5xf32>, vector<64x5xf32>, vector<64x5xf32>, vector<64x5xf32>, vector<64x5xf32>, vector<64x5xf32>, vector<64x5xf32>, vector<64x5xf32>, vector<64x5xf32> -> vector<64x45xf32>
    %cst_97 = arith.constant dense<0.000000e+00> : vector<64x5xf32>
    %221 = tpu.matmul %220, %181, %cst_97 {dimension_numbers = #tpu.dot_dimension_numbers<[1], [0], [0], [1], [0, 0, 1, 1], [], []>} : vector<64x45xf32>, vector<45x5xf32>, vector<64x5xf32> -> vector<64x5xf32>
    %222 = vector.broadcast %183 : vector<1x5xf32> to vector<64x5xf32>
    %223 = arith.addf %221, %222 : vector<64x5xf32>
    %cst_98 = arith.constant 0.000000e+00 : f32
    %224 = vector.broadcast %cst_98 : f32 to vector<64x5xf32>
    %225 = arith.maximumf %223, %224 : vector<64x5xf32>
    %226 = vector.shape_cast %225 : vector<64x5xf32> to vector<8x8x5xf32>
    %cst_99 = arith.constant 0.000000e+00 : f32
    %227 = vector.broadcast %cst_99 : f32 to vector<1x8x5xf32>
    %228 = tpu.concatenate %227, %226, %227 in 0 : vector<1x8x5xf32>, vector<8x8x5xf32>, vector<1x8x5xf32> -> vector<10x8x5xf32>
    %cst_100 = arith.constant 0.000000e+00 : f32
    %229 = vector.broadcast %cst_100 : f32 to vector<10x1x5xf32>
    %230 = tpu.concatenate %229, %228, %229 in 1 : vector<10x1x5xf32>, vector<10x8x5xf32>, vector<10x1x5xf32> -> vector<10x10x5xf32>
    %231 = vector.extract_strided_slice %230 {offsets = [0, 0, 0], sizes = [8, 8, 5], strides = [1, 1, 1]} : vector<10x10x5xf32> to vector<8x8x5xf32>
    %232 = vector.shape_cast %231 : vector<8x8x5xf32> to vector<64x5xf32>
    %233 = vector.extract_strided_slice %230 {offsets = [0, 1, 0], sizes = [8, 8, 5], strides = [1, 1, 1]} : vector<10x10x5xf32> to vector<8x8x5xf32>
    %234 = vector.shape_cast %233 : vector<8x8x5xf32> to vector<64x5xf32>
    %235 = vector.extract_strided_slice %230 {offsets = [0, 2, 0], sizes = [8, 8, 5], strides = [1, 1, 1]} : vector<10x10x5xf32> to vector<8x8x5xf32>
    %236 = vector.shape_cast %235 : vector<8x8x5xf32> to vector<64x5xf32>
    %237 = vector.extract_strided_slice %230 {offsets = [1, 0, 0], sizes = [8, 8, 5], strides = [1, 1, 1]} : vector<10x10x5xf32> to vector<8x8x5xf32>
    %238 = vector.shape_cast %237 : vector<8x8x5xf32> to vector<64x5xf32>
    %239 = vector.extract_strided_slice %230 {offsets = [1, 1, 0], sizes = [8, 8, 5], strides = [1, 1, 1]} : vector<10x10x5xf32> to vector<8x8x5xf32>
    %240 = vector.shape_cast %239 : vector<8x8x5xf32> to vector<64x5xf32>
    %241 = vector.extract_strided_slice %230 {offsets = [1, 2, 0], sizes = [8, 8, 5], strides = [1, 1, 1]} : vector<10x10x5xf32> to vector<8x8x5xf32>
    %242 = vector.shape_cast %241 : vector<8x8x5xf32> to vector<64x5xf32>
    %243 = vector.extract_strided_slice %230 {offsets = [2, 0, 0], sizes = [8, 8, 5], strides = [1, 1, 1]} : vector<10x10x5xf32> to vector<8x8x5xf32>
    %244 = vector.shape_cast %243 : vector<8x8x5xf32> to vector<64x5xf32>
    %245 = vector.extract_strided_slice %230 {offsets = [2, 1, 0], sizes = [8, 8, 5], strides = [1, 1, 1]} : vector<10x10x5xf32> to vector<8x8x5xf32>
    %246 = vector.shape_cast %245 : vector<8x8x5xf32> to vector<64x5xf32>
    %247 = vector.extract_strided_slice %230 {offsets = [2, 2, 0], sizes = [8, 8, 5], strides = [1, 1, 1]} : vector<10x10x5xf32> to vector<8x8x5xf32>
    %248 = vector.shape_cast %247 : vector<8x8x5xf32> to vector<64x5xf32>
    %249 = tpu.concatenate %232, %234, %236, %238, %240, %242, %244, %246, %248 in 1 : vector<64x5xf32>, vector<64x5xf32>, vector<64x5xf32>, vector<64x5xf32>, vector<64x5xf32>, vector<64x5xf32>, vector<64x5xf32>, vector<64x5xf32>, vector<64x5xf32> -> vector<64x45xf32>
    %cst_101 = arith.constant dense<0.000000e+00> : vector<64x10xf32>
    %250 = tpu.matmul %249, %185, %cst_101 {dimension_numbers = #tpu.dot_dimension_numbers<[1], [0], [0], [1], [0, 0, 1, 1], [], []>} : vector<64x45xf32>, vector<45x10xf32>, vector<64x10xf32> -> vector<64x10xf32>
    %251 = vector.broadcast %187 : vector<1x10xf32> to vector<64x10xf32>
    %252 = arith.addf %250, %251 : vector<64x10xf32>
    %cst_102 = arith.constant 1.000000e-01 : f32
    %253 = vector.broadcast %cst_102 : f32 to vector<64x10xf32>
    %254 = arith.mulf %252, %253 : vector<64x10xf32>
    %255 = vector.extract_strided_slice %254 {offsets = [0, 0], sizes = [64, 5], strides = [1, 1]} : vector<64x10xf32> to vector<64x5xf32>
    %256 = math.tanh %255 : vector<64x5xf32>
    %cst_103 = arith.constant 2.000000e+00 : f32
    %257 = vector.broadcast %cst_103 : f32 to vector<64x5xf32>
    %258 = arith.mulf %257, %256 : vector<64x5xf32>
    %259 = vector.extract_strided_slice %254 {offsets = [0, 5], sizes = [64, 5], strides = [1, 1]} : vector<64x10xf32> to vector<64x5xf32>
    %260 = math.exp %258 : vector<64x5xf32>
    %261 = arith.mulf %197, %260 : vector<64x5xf32>
    %262 = arith.addf %261, %259 : vector<64x5xf32>
    %cst_104 = arith.constant dense<0.000000e+00> : vector<64xf32>
    %263 = vector.multi_reduction <add>, %258, %cst_104 [1] : vector<64x5xf32> to vector<64xf32>
    %264 = vector.shape_cast %263 : vector<64xf32> to vector<64x1xf32>
    %cst_105 = arith.constant dense<0.000000e+00> : vector<1xf32>
    %265 = vector.multi_reduction <add>, %264, %cst_105 [0] : vector<64x1xf32> to vector<1xf32>
    %266 = vector.shape_cast %265 : vector<1xf32> to vector<1x1xf32>
    %267 = vector.extract_strided_slice %189 {offsets = [0, 0], sizes = [1, 5], strides = [1, 1]} : vector<1x10xf32> to vector<1x5xf32>
    %268 = vector.broadcast %267 : vector<1x5xf32> to vector<64x5xf32>
    %269 = arith.mulf %195, %268 : vector<64x5xf32>
    %270 = vector.extract_strided_slice %191 {offsets = [0, 0], sizes = [1, 5], strides = [1, 1]} : vector<1x10xf32> to vector<1x5xf32>
    %271 = vector.broadcast %270 : vector<1x5xf32> to vector<64x5xf32>
    %272 = arith.addf %269, %271 : vector<64x5xf32>
    %273 = vector.extract_strided_slice %189 {offsets = [0, 5], sizes = [1, 5], strides = [1, 1]} : vector<1x10xf32> to vector<1x5xf32>
    %274 = vector.broadcast %273 : vector<1x5xf32> to vector<64x5xf32>
    %275 = arith.mulf %262, %274 : vector<64x5xf32>
    %276 = vector.extract_strided_slice %191 {offsets = [0, 5], sizes = [1, 5], strides = [1, 1]} : vector<1x10xf32> to vector<1x5xf32>
    %277 = vector.broadcast %276 : vector<1x5xf32> to vector<64x5xf32>
    %278 = arith.addf %275, %277 : vector<64x5xf32>
    %279 = vector.extract_strided_slice %193 {offsets = [0, 0], sizes = [5, 10], strides = [1, 1]} : vector<10x10xf32> to vector<5x10xf32>
    %cst_106 = arith.constant dense<0.000000e+00> : vector<64x10xf32>
    %280 = tpu.matmul %272, %279, %cst_106 {dimension_numbers = #tpu.dot_dimension_numbers<[1], [0], [0], [1], [0, 0, 1, 1], [], []>} : vector<64x5xf32>, vector<5x10xf32>, vector<64x10xf32> -> vector<64x10xf32>
    %281 = vector.extract_strided_slice %193 {offsets = [5, 0], sizes = [5, 10], strides = [1, 1]} : vector<10x10xf32> to vector<5x10xf32>
    %cst_107 = arith.constant dense<0.000000e+00> : vector<64x10xf32>
    %282 = tpu.matmul %278, %281, %cst_107 {dimension_numbers = #tpu.dot_dimension_numbers<[1], [0], [0], [1], [0, 0, 1, 1], [], []>} : vector<64x5xf32>, vector<5x10xf32>, vector<64x10xf32> -> vector<64x10xf32>
    %283 = arith.addf %280, %282 : vector<64x10xf32>
    %284 = vector.shape_cast %283 : vector<64x10xf32> to vector<8x8x10xf32>
    %285 = arith.addf %179, %266 : vector<1x1xf32>
    %c3 = arith.constant 3 : index
    %c0_108 = arith.constant 0 : index
    %c0_109 = arith.constant 0 : index
    %286 = vector.load %arg6[%c3, %c0_108, %c0_109] : memref<4x45x5xf32, #tpu.memory_space<vmem>>, vector<1x45x5xf32>
    %287 = vector.shape_cast %286 : vector<1x45x5xf32> to vector<45x5xf32>
    %c3_110 = arith.constant 3 : index
    %c0_111 = arith.constant 0 : index
    %c0_112 = arith.constant 0 : index
    %288 = vector.load %arg7[%c3_110, %c0_111, %c0_112] : memref<4x1x5xf32, #tpu.memory_space<vmem>>, vector<1x1x5xf32>
    %289 = vector.shape_cast %288 : vector<1x1x5xf32> to vector<1x5xf32>
    %c3_113 = arith.constant 3 : index
    %c0_114 = arith.constant 0 : index
    %c0_115 = arith.constant 0 : index
    %290 = vector.load %arg8[%c3_113, %c0_114, %c0_115] : memref<4x45x10xf32, #tpu.memory_space<vmem>>, vector<1x45x10xf32>
    %291 = vector.shape_cast %290 : vector<1x45x10xf32> to vector<45x10xf32>
    %c3_116 = arith.constant 3 : index
    %c0_117 = arith.constant 0 : index
    %c0_118 = arith.constant 0 : index
    %292 = vector.load %arg9[%c3_116, %c0_117, %c0_118] : memref<4x1x10xf32, #tpu.memory_space<vmem>>, vector<1x1x10xf32>
    %293 = vector.shape_cast %292 : vector<1x1x10xf32> to vector<1x10xf32>
    %c3_119 = arith.constant 3 : index
    %c0_120 = arith.constant 0 : index
    %c0_121 = arith.constant 0 : index
    %294 = vector.load %arg10[%c3_119, %c0_120, %c0_121] : memref<4x1x10xf32, #tpu.memory_space<vmem>>, vector<1x1x10xf32>
    %295 = vector.shape_cast %294 : vector<1x1x10xf32> to vector<1x10xf32>
    %c3_122 = arith.constant 3 : index
    %c0_123 = arith.constant 0 : index
    %c0_124 = arith.constant 0 : index
    %296 = vector.load %arg11[%c3_122, %c0_123, %c0_124] : memref<4x1x10xf32, #tpu.memory_space<vmem>>, vector<1x1x10xf32>
    %297 = vector.shape_cast %296 : vector<1x1x10xf32> to vector<1x10xf32>
    %c3_125 = arith.constant 3 : index
    %c0_126 = arith.constant 0 : index
    %c0_127 = arith.constant 0 : index
    %298 = vector.load %arg12[%c3_125, %c0_126, %c0_127] : memref<4x10x10xf32, #tpu.memory_space<vmem>>, vector<1x10x10xf32>
    %299 = vector.shape_cast %298 : vector<1x10x10xf32> to vector<10x10xf32>
    %300 = vector.extract_strided_slice %284 {offsets = [0, 0, 0], sizes = [8, 8, 5], strides = [1, 1, 1]} : vector<8x8x10xf32> to vector<8x8x5xf32>
    %301 = vector.shape_cast %300 : vector<8x8x5xf32> to vector<64x5xf32>
    %302 = vector.extract_strided_slice %284 {offsets = [0, 0, 5], sizes = [8, 8, 5], strides = [1, 1, 1]} : vector<8x8x10xf32> to vector<8x8x5xf32>
    %303 = vector.shape_cast %302 : vector<8x8x5xf32> to vector<64x5xf32>
    %304 = vector.extract_strided_slice %287 {offsets = [20, 0], sizes = [5, 5], strides = [1, 1]} : vector<45x5xf32> to vector<5x5xf32>
    %cst_128 = arith.constant dense<0.000000e+00> : vector<64x5xf32>
    %305 = tpu.matmul %301, %304, %cst_128 {dimension_numbers = #tpu.dot_dimension_numbers<[1], [0], [0], [1], [0, 0, 1, 1], [], []>} : vector<64x5xf32>, vector<5x5xf32>, vector<64x5xf32> -> vector<64x5xf32>
    %306 = vector.broadcast %289 : vector<1x5xf32> to vector<64x5xf32>
    %307 = arith.addf %305, %306 : vector<64x5xf32>
    %cst_129 = arith.constant 0.000000e+00 : f32
    %308 = vector.broadcast %cst_129 : f32 to vector<64x5xf32>
    %309 = arith.maximumf %307, %308 : vector<64x5xf32>
    %310 = vector.extract_strided_slice %291 {offsets = [20, 0], sizes = [5, 10], strides = [1, 1]} : vector<45x10xf32> to vector<5x10xf32>
    %cst_130 = arith.constant dense<0.000000e+00> : vector<64x10xf32>
    %311 = tpu.matmul %309, %310, %cst_130 {dimension_numbers = #tpu.dot_dimension_numbers<[1], [0], [0], [1], [0, 0, 1, 1], [], []>} : vector<64x5xf32>, vector<5x10xf32>, vector<64x10xf32> -> vector<64x10xf32>
    %312 = vector.broadcast %293 : vector<1x10xf32> to vector<64x10xf32>
    %313 = arith.addf %311, %312 : vector<64x10xf32>
    %cst_131 = arith.constant 1.000000e-01 : f32
    %314 = vector.broadcast %cst_131 : f32 to vector<64x10xf32>
    %315 = arith.mulf %313, %314 : vector<64x10xf32>
    %316 = vector.extract_strided_slice %315 {offsets = [0, 0], sizes = [64, 5], strides = [1, 1]} : vector<64x10xf32> to vector<64x5xf32>
    %317 = math.tanh %316 : vector<64x5xf32>
    %cst_132 = arith.constant 2.000000e+00 : f32
    %318 = vector.broadcast %cst_132 : f32 to vector<64x5xf32>
    %319 = arith.mulf %318, %317 : vector<64x5xf32>
    %320 = vector.extract_strided_slice %315 {offsets = [0, 5], sizes = [64, 5], strides = [1, 1]} : vector<64x10xf32> to vector<64x5xf32>
    %321 = math.exp %319 : vector<64x5xf32>
    %322 = arith.mulf %303, %321 : vector<64x5xf32>
    %323 = arith.addf %322, %320 : vector<64x5xf32>
    %cst_133 = arith.constant dense<0.000000e+00> : vector<64xf32>
    %324 = vector.multi_reduction <add>, %319, %cst_133 [1] : vector<64x5xf32> to vector<64xf32>
    %325 = vector.shape_cast %324 : vector<64xf32> to vector<64x1xf32>
    %cst_134 = arith.constant dense<0.000000e+00> : vector<1xf32>
    %326 = vector.multi_reduction <add>, %325, %cst_134 [0] : vector<64x1xf32> to vector<1xf32>
    %327 = vector.shape_cast %326 : vector<1xf32> to vector<1x1xf32>
    %328 = vector.extract_strided_slice %295 {offsets = [0, 0], sizes = [1, 5], strides = [1, 1]} : vector<1x10xf32> to vector<1x5xf32>
    %329 = vector.broadcast %328 : vector<1x5xf32> to vector<64x5xf32>
    %330 = arith.mulf %301, %329 : vector<64x5xf32>
    %331 = vector.extract_strided_slice %297 {offsets = [0, 0], sizes = [1, 5], strides = [1, 1]} : vector<1x10xf32> to vector<1x5xf32>
    %332 = vector.broadcast %331 : vector<1x5xf32> to vector<64x5xf32>
    %333 = arith.addf %330, %332 : vector<64x5xf32>
    %334 = vector.extract_strided_slice %295 {offsets = [0, 5], sizes = [1, 5], strides = [1, 1]} : vector<1x10xf32> to vector<1x5xf32>
    %335 = vector.broadcast %334 : vector<1x5xf32> to vector<64x5xf32>
    %336 = arith.mulf %323, %335 : vector<64x5xf32>
    %337 = vector.extract_strided_slice %297 {offsets = [0, 5], sizes = [1, 5], strides = [1, 1]} : vector<1x10xf32> to vector<1x5xf32>
    %338 = vector.broadcast %337 : vector<1x5xf32> to vector<64x5xf32>
    %339 = arith.addf %336, %338 : vector<64x5xf32>
    %340 = vector.extract_strided_slice %299 {offsets = [0, 0], sizes = [5, 10], strides = [1, 1]} : vector<10x10xf32> to vector<5x10xf32>
    %cst_135 = arith.constant dense<0.000000e+00> : vector<64x10xf32>
    %341 = tpu.matmul %333, %340, %cst_135 {dimension_numbers = #tpu.dot_dimension_numbers<[1], [0], [0], [1], [0, 0, 1, 1], [], []>} : vector<64x5xf32>, vector<5x10xf32>, vector<64x10xf32> -> vector<64x10xf32>
    %342 = vector.extract_strided_slice %299 {offsets = [5, 0], sizes = [5, 10], strides = [1, 1]} : vector<10x10xf32> to vector<5x10xf32>
    %cst_136 = arith.constant dense<0.000000e+00> : vector<64x10xf32>
    %343 = tpu.matmul %339, %342, %cst_136 {dimension_numbers = #tpu.dot_dimension_numbers<[1], [0], [0], [1], [0, 0, 1, 1], [], []>} : vector<64x5xf32>, vector<5x10xf32>, vector<64x10xf32> -> vector<64x10xf32>
    %344 = arith.addf %341, %343 : vector<64x10xf32>
    %345 = vector.shape_cast %344 : vector<64x10xf32> to vector<8x8x10xf32>
    %346 = arith.addf %285, %327 : vector<1x1xf32>
    %347 = vector.shape_cast %345 : vector<8x8x10xf32> to vector<1x8x8x10xf32>
    %c0_137 = arith.constant 0 : index
    %c0_138 = arith.constant 0 : index
    %c0_139 = arith.constant 0 : index
    %c0_140 = arith.constant 0 : index
    %348 = vector.load %arg17[%c0_137, %c0_138, %c0_139, %c0_140] : memref<1x8x8x10xf32, #tpu.memory_space<vmem>>, vector<1x8x8x10xf32>
    tpu.vector_store %arg17[%c0_137, %c0_138, %c0_139, %c0_140], %347 {strides = array<i32>} : memref<1x8x8x10xf32, #tpu.memory_space<vmem>>, vector<1x8x8x10xf32>,
    %349 = vector.shape_cast %346 : vector<1x1xf32> to vector<1x1x1xf32>
    %c0_141 = arith.constant 0 : index
    %c0_142 = arith.constant 0 : index
    %c0_143 = arith.constant 0 : index
    %350 = vector.load %arg19[%c0_141, %c0_142, %c0_143] : memref<1x1x1xf32, #tpu.memory_space<vmem>>, vector<1x1x1xf32>
    tpu.vector_store %arg19[%c0_141, %c0_142, %c0_143], %349 {strides = array<i32>} : memref<1x1x1xf32, #tpu.memory_space<vmem>>, vector<1x1x1xf32>,
    %c0_144 = arith.constant 0 : index
    %c0_145 = arith.constant 0 : index
    %c0_146 = arith.constant 0 : index
    %c0_147 = arith.constant 0 : index
    %351 = vector.load %arg3[%c0_144, %c0_145, %c0_146, %c0_147] : memref<1x4x4x8xf32, #tpu.memory_space<vmem>>, vector<1x4x4x8xf32>
    %352 = vector.shape_cast %351 : vector<1x4x4x8xf32> to vector<4x4x8xf32>
    %353 = arith.mulf %345, %345 : vector<8x8x10xf32>
    %cst_148 = arith.constant dense<0.000000e+00> : vector<8x8xf32>
    %354 = vector.multi_reduction <add>, %353, %cst_148 [2] : vector<8x8x10xf32> to vector<8x8xf32>
    %cst_149 = arith.constant 1.000000e+01 : f32
    %355 = vector.broadcast %cst_149 : f32 to vector<8x8xf32>
    %356 = arith.divf %354, %355 : vector<8x8xf32>
    %cst_150 = arith.constant 5.000000e-01 : f32
    %357 = vector.broadcast %cst_150 : f32 to vector<8x8xf32>
    %358 = arith.mulf %356, %357 : vector<8x8xf32>
    %359 = arith.mulf %352, %352 : vector<4x4x8xf32>
    %cst_151 = arith.constant dense<0.000000e+00> : vector<4x4xf32>
    %360 = vector.multi_reduction <add>, %359, %cst_151 [2] : vector<4x4x8xf32> to vector<4x4xf32>
    %cst_152 = arith.constant 8.000000e+00 : f32
    %361 = vector.broadcast %cst_152 : f32 to vector<4x4xf32>
    %362 = arith.divf %360, %361 : vector<4x4xf32>
    %cst_153 = arith.constant 5.000000e-01 : f32
    %363 = vector.broadcast %cst_153 : f32 to vector<4x4xf32>
    %364 = arith.mulf %362, %363 : vector<4x4xf32>
    %c0_154 = arith.constant 0 : index
    %c0_155 = arith.constant 0 : index
    %365 = vector.load %arg13[%c0_154, %c0_155] : memref<32x8xf32, #tpu.memory_space<vmem>>, vector<32x8xf32>
    %c0_156 = arith.constant 0 : index
    %c0_157 = arith.constant 0 : index
    %366 = vector.load %arg14[%c0_156, %c0_157] : memref<8x32xf32, #tpu.memory_space<vmem>>, vector<8x32xf32>
    %cst_158 = arith.constant dense<0.000000e+00> : vector<8x32xf32>
    %367 = tpu.matmul %358, %366, %cst_158 {dimension_numbers = #tpu.dot_dimension_numbers<[1], [0], [0], [1], [0, 0, 1, 1], [], []>} : vector<8x8xf32>, vector<8x32xf32>, vector<8x32xf32> -> vector<8x32xf32>
    %cst_159 = arith.constant dense<0.000000e+00> : vector<32x32xf32>
    %368 = tpu.matmul %365, %367, %cst_159 {dimension_numbers = #tpu.dot_dimension_numbers<[1], [0], [0], [1], [0, 0, 1, 1], [], []>} : vector<32x8xf32>, vector<8x32xf32>, vector<32x32xf32> -> vector<32x32xf32>
    %c0_160 = arith.constant 0 : index
    %c0_161 = arith.constant 0 : index
    %369 = vector.load %arg15[%c0_160, %c0_161] : memref<32x4xf32, #tpu.memory_space<vmem>>, vector<32x4xf32>
    %c0_162 = arith.constant 0 : index
    %c0_163 = arith.constant 0 : index
    %370 = vector.load %arg16[%c0_162, %c0_163] : memref<4x32xf32, #tpu.memory_space<vmem>>, vector<4x32xf32>
    %cst_164 = arith.constant dense<0.000000e+00> : vector<4x32xf32>
    %371 = tpu.matmul %364, %370, %cst_164 {dimension_numbers = #tpu.dot_dimension_numbers<[1], [0], [0], [1], [0, 0, 1, 1], [], []>} : vector<4x4xf32>, vector<4x32xf32>, vector<4x32xf32> -> vector<4x32xf32>
    %cst_165 = arith.constant dense<0.000000e+00> : vector<32x32xf32>
    %372 = tpu.matmul %369, %371, %cst_165 {dimension_numbers = #tpu.dot_dimension_numbers<[1], [0], [0], [1], [0, 0, 1, 1], [], []>} : vector<32x4xf32>, vector<4x32xf32>, vector<32x32xf32> -> vector<32x32xf32>
    %373 = arith.addf %368, %372 : vector<32x32xf32>
    %cst_166 = arith.constant 5.000000e-01 : f32
    %374 = vector.broadcast %cst_166 : f32 to vector<32x32xf32>
    %375 = arith.mulf %374, %373 : vector<32x32xf32>
    %376 = vector.shape_cast %375 : vector<32x32xf32> to vector<1x32x32xf32>
    %c0_167 = arith.constant 0 : index
    %c0_168 = arith.constant 0 : index
    %c0_169 = arith.constant 0 : index
    %377 = vector.load %arg18[%c0_167, %c0_168, %c0_169] : memref<1x32x32xf32, #tpu.memory_space<vmem>>, vector<1x32x32xf32>
    tpu.vector_store %arg18[%c0_167, %c0_168, %c0_169], %376 {strides = array<i32>} : memref<1x32x32xf32, #tpu.memory_space<vmem>>, vector<1x32x32xf32>,
    return
  }
  func.func @transform_0(%arg0: i32) -> (i32, i32, i32, i32) {
    %c0_i32 = arith.constant 0 : i32
    %c0_i32_0 = arith.constant 0 : i32
    %c0_i32_1 = arith.constant 0 : i32
    %c0_i32_2 = arith.constant 0 : i32
    return %arg0, %c0_i32, %c0_i32_0, %c0_i32_1 : i32, i32, i32, i32
  }
  func.func @transform_1(%arg0: i32) -> (i32, i32, i32, i32) {
    %c0_i32 = arith.constant 0 : i32
    %c0_i32_0 = arith.constant 0 : i32
    %c0_i32_1 = arith.constant 0 : i32
    %c0_i32_2 = arith.constant 0 : i32
    return %arg0, %c0_i32, %c0_i32_0, %c0_i32_1 : i32, i32, i32, i32
  }
  func.func @transform_2(%arg0: i32) -> (i32, i32, i32, i32) {
    %c0_i32 = arith.constant 0 : i32
    %c0_i32_0 = arith.constant 0 : i32
    %c0_i32_1 = arith.constant 0 : i32
    %c0_i32_2 = arith.constant 0 : i32
    return %arg0, %c0_i32, %c0_i32_0, %c0_i32_1 : i32, i32, i32, i32
  }
  func.func @transform_3(%arg0: i32) -> (i32, i32) {
    %c0_i32 = arith.constant 0 : i32
    %c0_i32_0 = arith.constant 0 : i32
    %c0_i32_1 = arith.constant 0 : i32
    return %c0_i32, %c0_i32_0 : i32, i32
  }
  func.func @transform_4(%arg0: i32) -> (i32, i32) {
    %c0_i32 = arith.constant 0 : i32
    %c0_i32_0 = arith.constant 0 : i32
    %c0_i32_1 = arith.constant 0 : i32
    return %c0_i32, %c0_i32_0 : i32, i32
  }
  func.func @transform_5(%arg0: i32) -> (i32, i32, i32) {
    %c0_i32 = arith.constant 0 : i32
    %c0_i32_0 = arith.constant 0 : i32
    %c0_i32_1 = arith.constant 0 : i32
    %c0_i32_2 = arith.constant 0 : i32
    return %c0_i32, %c0_i32_0, %c0_i32_1 : i32, i32, i32
  }
  func.func @transform_6(%arg0: i32) -> (i32, i32, i32) {
    %c0_i32 = arith.constant 0 : i32
    %c0_i32_0 = arith.constant 0 : i32
    %c0_i32_1 = arith.constant 0 : i32
    %c0_i32_2 = arith.constant 0 : i32
    return %c0_i32, %c0_i32_0, %c0_i32_1 : i32, i32, i32
  }
  func.func @transform_7(%arg0: i32) -> (i32, i32, i32) {
    %c0_i32 = arith.constant 0 : i32
    %c0_i32_0 = arith.constant 0 : i32
    %c0_i32_1 = arith.constant 0 : i32
    %c0_i32_2 = arith.constant 0 : i32
    return %c0_i32, %c0_i32_0, %c0_i32_1 : i32, i32, i32
  }
  func.func @transform_8(%arg0: i32) -> (i32, i32, i32) {
    %c0_i32 = arith.constant 0 : i32
    %c0_i32_0 = arith.constant 0 : i32
    %c0_i32_1 = arith.constant 0 : i32
    %c0_i32_2 = arith.constant 0 : i32
    return %c0_i32, %c0_i32_0, %c0_i32_1 : i32, i32, i32
  }
  func.func @transform_9(%arg0: i32) -> (i32, i32, i32) {
    %c0_i32 = arith.constant 0 : i32
    %c0_i32_0 = arith.constant 0 : i32
    %c0_i32_1 = arith.constant 0 : i32
    %c0_i32_2 = arith.constant 0 : i32
    return %c0_i32, %c0_i32_0, %c0_i32_1 : i32, i32, i32
  }
  func.func @transform_10(%arg0: i32) -> (i32, i32, i32) {
    %c0_i32 = arith.constant 0 : i32
    %c0_i32_0 = arith.constant 0 : i32
    %c0_i32_1 = arith.constant 0 : i32
    %c0_i32_2 = arith.constant 0 : i32
    return %c0_i32, %c0_i32_0, %c0_i32_1 : i32, i32, i32
  }
  func.func @transform_11(%arg0: i32) -> (i32, i32, i32) {
    %c0_i32 = arith.constant 0 : i32
    %c0_i32_0 = arith.constant 0 : i32
    %c0_i32_1 = arith.constant 0 : i32
    %c0_i32_2 = arith.constant 0 : i32
    return %c0_i32, %c0_i32_0, %c0_i32_1 : i32, i32, i32
  }
  func.func @transform_12(%arg0: i32) -> (i32, i32) {
    %c0_i32 = arith.constant 0 : i32
    %c0_i32_0 = arith.constant 0 : i32
    %c0_i32_1 = arith.constant 0 : i32
    return %c0_i32, %c0_i32_0 : i32, i32
  }
  func.func @transform_13(%arg0: i32) -> (i32, i32) {
    %c0_i32 = arith.constant 0 : i32
    %c0_i32_0 = arith.constant 0 : i32
    %c0_i32_1 = arith.constant 0 : i32
    return %c0_i32, %c0_i32_0 : i32, i32
  }
  func.func @transform_14(%arg0: i32) -> (i32, i32) {
    %c0_i32 = arith.constant 0 : i32
    %c0_i32_0 = arith.constant 0 : i32
    %c0_i32_1 = arith.constant 0 : i32
    return %c0_i32, %c0_i32_0 : i32, i32
  }
  func.func @transform_15(%arg0: i32) -> (i32, i32) {
    %c0_i32 = arith.constant 0 : i32
    %c0_i32_0 = arith.constant 0 : i32
    %c0_i32_1 = arith.constant 0 : i32
    return %c0_i32, %c0_i32_0 : i32, i32
  }
  func.func @transform_16(%arg0: i32) -> (i32, i32, i32, i32) {
    %c0_i32 = arith.constant 0 : i32
    %c0_i32_0 = arith.constant 0 : i32
    %c0_i32_1 = arith.constant 0 : i32
    %c0_i32_2 = arith.constant 0 : i32
    return %arg0, %c0_i32, %c0_i32_0, %c0_i32_1 : i32, i32, i32, i32
  }
  func.func @transform_17(%arg0: i32) -> (i32, i32, i32) {
    %c0_i32 = arith.constant 0 : i32
    %c0_i32_0 = arith.constant 0 : i32
    %c0_i32_1 = arith.constant 0 : i32
    return %arg0, %c0_i32, %c0_i32_0 : i32, i32, i32
  }
  func.func @transform_18(%arg0: i32) -> (i32, i32, i32) {
    %c0_i32 = arith.constant 0 : i32
    %c0_i32_0 = arith.constant 0 : i32
    %c0_i32_1 = arith.constant 0 : i32
    return %arg0, %c0_i32, %c0_i32_0 : i32, i32, i32
  }
}

</mosaic_0001>

<bundles_post_ra>
// kernel: _lambda_.2
= control target key start
LH: loop header
LB: loop body
LE: loop exit
PB: predicated region body
PF: predicated region fallthrough
CT: control target
= control target key end

     0   :  { %s4588_s0 = inlined_call_operand.vmem [shape: f32[2,4,4,3], index: 0, kind: input, shape index: {}]   ;;  %s4589_s1 = inlined_call_operand.vmem [shape: f32[3,16], index: 1, kind: input, shape index: {}]   ;;  %s4590_s2 = inlined_call_operand.vmem [shape: f32[1,16], index: 2, kind: input, shape index: {}]   ;;  %s4591_s3 = inlined_call_operand.vmem [shape: f32[4,72,8], index: 3, kind: input, shape index: {}]   ;;  %s4592_s4 = inlined_call_operand.vmem [shape: f32[4,1,8], index: 4, kind: input, shape index: {}]   ;;  %s4593_s5 = inlined_call_operand.vmem [shape: f32[4,72,16], index: 5, kind: input, shape index: {}]   ;;  %s4594_s6 = inlined_call_operand.vmem [shape: f32[4,1,16], index: 6, kind: input, shape index: {}, may-alias: {6,8}]   ;;  %s4595_s7 = inlined_call_operand.vmem [shape: f32[4,1,16], index: 7, kind: input, shape index: {}]   ;;  %s4596_s8 = inlined_call_operand.vmem [shape: f32[4,1,16], index: 8, kind: input, shape index: {}, may-alias: {6,8}]   ;;  %s4597_s9 = inlined_call_operand.vmem [shape: f32[4,16,16], index: 9, kind: input, shape index: {}]   ;;  %s4598_s10 = inlined_call_operand.vmem [shape: f32[2,4,4,16], index: 10, kind: output, shape index: {0}]   ;;  %s4599_s11 = inlined_call_operand.hbm [shape: f32[2,1,1], index: 11, kind: output, shape index: {1}]  }
   0x1   :  { %4624 = sst [smem:[#allocation10_spill]] %s4588_s0 }
   0x2   :  { %4625 = sst [smem:[#allocation11_spill]] %s4589_s1 }
   0x3   :  { %4626 = sst [smem:[#allocation12_spill]] %s4590_s2 }
   0x4   :  { %17 = vsyncpa [#allocation3], 0 }
   0x5   :  { %19 = vsyncpa [#allocation3 + $0x1], 0  ;;  %s3714_s17 = smov 0   ;;  %s3716_s18 = smov 0  }
   0x6   :  { %s3718_s19 = smov 0   ;;  %s3720_s20 = smov 0  }
   0x7 LB: > { %4627 = sst [smem:[#allocation5_spill]] %s3629_s17  ;;  %s3735_s21 = sadd.s32 4294967295, %s3641_s20   ;;  %s3641_s20 = sphi %s3720_s20, %s4653_s20   ;;  %s3637_s19 = sphi %s3718_s19, %s4655_s19   ;;  %s3633_s18 = sphi %s3716_s18, %s4657_s18   ;;  %s3629_s17 = sphi %s3714_s17, %s4656_s17  }
   0x8   : > { %4628 = sst [smem:[#allocation6_spill]] %s3637_s19  ;;  %s3053_s22 = sadd.s32 4294967294, %s3641_s20  }
   0x9   : > { %s3739_s23 = sadd.s32 1, %s3641_s20   ;;  %s273_s24 = sadd.s32 1, %s3637_s19 }
   0xa   : > { %4629 = sst [smem:[#allocation7_spill]] %s3739_s23  ;;  %s270_s25 = ssub.s32 %s3641_s20, %s3739_s23 }
   0xb   : > { %p283_p0 = scmp.ne.s32.totalorder %s3637_s19, %s3633_s18  ;;  %p271_p1 = scmp.eq.s32.totalorder %s270_s25, 0 }
   0xc   : > { %p284_p2 = scmp.eq.s32.totalorder %s3735_s21, 1  ;;  %p289_p3 = scmp.ne.s32.totalorder %s3633_s18, %s3629_s17 }
   0xd   : > { %p290_p4 = scmp.eq.s32.totalorder %s3053_s22, 1  ;;  %p3056_p7 = scmp.ge.s32.totalorder %s3641_s20, 1 }
   0xe   : > { %s3750_s26 = scalar_select %p271_p1, %s3637_s19, %s273_s24  }
   0xf   : > { %p3752_p5 = por %p284_p2, %p283_p0  ;;  %p3756_p6 = por %p290_p4, %p289_p3 }
  0x10   : > { %4630 = sst [smem:[#allocation8_spill]] %s3750_s26  ;;  %p343_p8 = scmp.lt.s32.totalorder %s3641_s20, 3 }
  0x11   : > { %s4632_s28 = scalar_select %p3756_p6, 1, 0 }
  0x12   : > { %p344_p9 = pnand %p3056_p7, %p343_p8 }
  0x13   : > { %4633 = sst [smem:[#allocation9_spill]] %s4632_s28  ;;  %s4634_s1 = sld [smem:[#allocation11_spill]] (!%p344_p9)  ;;  %vm420_vm0 = vcmask (!%p344_p9), 1042432   ;;  %vm415_vm1 = vcmask (!%p344_p9), 23552   ;;  %v3643_v3 = vmov (!%p344_p9), 0.0   ;;  %vm540_vm2 = vcmask (!%p344_p9), 1040384  }
  0x14   : > { %347 = sbr.rel (%p344_p9) target bundleno = 4577 (0x11e1), region = 60  ;;  %p387_p10 = scmp.lt.s32.totalorder (!%p344_p9), %s3735_s21, 1  ;;  %v530_v4 = vrot.slane (!%p344_p9), %v3643_v3, 7  ;;  %vm546_vm3 = vcmask (!%p344_p9), 1044480   ;;  %vm578_vm4 = vcmask (!%p344_p9), 1041408   ;;  %vm579_vm5 = vcmask (!%p344_p9), 1045508  }
  0x15   : > { %s4635_s0 = sld [smem:[#allocation10_spill]] (!%p344_p9)  ;;  %s4636_s2 = sld [smem:[#allocation12_spill]] (!%p344_p9)  ;;  %vm560_vm6 = vcmask (!%p344_p9), 1046532   ;;  %vm3829_vm7 = vmor (!%p344_p9), %vm578_vm4, %vm579_vm5  ;;  %v505_v53 = vld [vmem:[%s4591_s3] sm:$0xff] (!%p344_p9)  ;;  %v506_v54 = vld [vmem:[%s4591_s3 + $0x8] sm:$0xff] (!%p344_p9)  ;;  %vm672_vm9 = vcmask (!%p344_p9), 64512  }
  0x16   : > { %v541_v7 = vsel (!%p344_p9), %vm540_vm2, 0.0, %v530_v4  ;;  %s4607_s25 = smov (!%p344_p9), 24   ;;  %vm3839_vm8 = vmor (!%p344_p9), %vm420_vm0, %vm560_vm6  ;;  %s4601_s29 = smov (!%p344_p9), 48   ;;  %v507_v57 = vld [vmem:[%s4591_s3 + $0x10] sm:$0xff] (!%p344_p9)  ;;  %v508_v58 = vld [vmem:[%s4591_s3 + $0x18] sm:$0xff] (!%p344_p9)  ;;  %vm675_vm10 = vcmask (!%p344_p9), 130048  }
  0x17   : > { %v3791_v13 = vsel (!%p344_p9), %vm546_vm3, %v541_v7, 0.0  ;;  %s4605_s30 = smov (!%p344_p9), 16   ;;  %s4603_s14 = smov (!%p344_p9), 8   ;;  %v3428_v4 = vpack.c.bf16 (!%p344_p9), %v508_v58, %v507_v57  ;;  %vm678_vm11 = vcmask (!%p344_p9), 195584   ;;  %vm681_vm12 = vcmask (!%p344_p9), 261120   ;;  %v3129_v39 = vld [vmem:[%s4593_s5 + $0xb0] sm:$0xff] (!%p344_p9) }
  0x18   : > { %v556_v20 = vcombine.high (!%p344_p9), %v3791_v13, %v3791_v13  ;;  %v3069_v29 = vrot.slane (!%p344_p9), %v3791_v13, 10  ;;  %v3065_v33 = vrot.slane (!%p344_p9), %v3791_v13, 9  ;;  %s4615_s22 = smov (!%p344_p9), 32   ;;  %vm684_vm13 = vcmask (!%p344_p9), 326656   ;;  %s4648_s24 = smov (!%p344_p9), 120   ;;  %v3131_v34 = vld [vmem:[%s4593_s5 + $0xc0] sm:$0xff] (!%p344_p9) }
  0x19   : > { %v401_v0 = vld [vmem:[%s4634_s1] sm:$0x7] (!%p344_p9)  ;;  %vm687_vm14 = vcmask (!%p344_p9), 392192   ;;  %vm690_vm15 = vcmask (!%p344_p9), 457728   ;;  %s4646_s1 = smov (!%p344_p9), 56  }
  0x1a   : > { %3275 = vmatprep.subr.msk.mxu0 (!%p344_p9), %vm420_vm0, %v401_v0  ;;  %v583_v31 = vrot.slane (!%p344_p9), %v556_v20, 6  ;;  %v564_v35 = vrot.slane (!%p344_p9), %v556_v20, 5  ;;  %v511_v20 = vld [vmem:[%s4591_s3 + $0x30] sm:$0xff] (!%p344_p9) }
  0x1b   : > { %3276 = vmatpush3.msk.msra.mxu0 %vm420_vm0, %v401_v0  ;;  %s3769_s12 = scalar_select %p387_p10, %s3735_s21, 1  ;;  %v3061_v5 = vld [vmem:[%s4636_s2] ss:$0 sm:$0xff]  ;;  %v3424_v0 = vpack.c.bf16 %v506_v54, %v505_v53  ;;  %vm693_vm0 = vcmask 523264  }
  0x1c   : > { %v3856_v45 = vsel %vm3829_vm7, %v3069_v29, %v583_v31  ;;  %v3863_v48 = vsel %vm3839_vm8, %v3065_v33, %v564_v35  ;;  %v513_v29 = vld [vmem:[%s4591_s3 + $0x40] sm:$0xff]  ;;  %s4647_s2 = smov 64  }
  0x1d   : > { %s4600_s13 = sshll.u32 %s3769_s12, 4  ;;  %3425 = vmatprep.subr.bf16.mxu1 %v3424_v0  ;;  %v3930_v31 = vld [vmem:[%s4597_s9] sm:$0xff] }
  0x1e   : > { %s391_s16 = scalar_lea.vmem %s4635_s0, %s4600_s13  ;;  %3427 = vmatpush3.bf16.msra.mxu1 %v3424_v0  ;;  %s4617_s0 = smov 120  }
  0x1f   : > { %v3545_v1 = vld [vmem:[%s391_s16] sm:$0xff]   ;;  %v3546_v2 = vld [vmem:[%s391_s16 + $0x8] sm:$0xff]   ;;  %3429 = vmatprep.subr.bf16.mxu1 %v3428_v4  ;;  %s4613_s16 = smov 40  }
  0x20   : > { %3277 = vmatprep.mubr.msk.f32.mxu0 %vm415_vm1, %v3545_v1 }
  0x21   : > { %3278 = vmatmul.mubr.msk.f32.vlgmr.msra.gmra.mrb[0].mxu0 %vm415_vm1, %v3546_v2  ;;  %vm702_vm1 = vcmask 588800  }
  0x22   : > { %3431 = vmatpush3.bf16.msra.mxu1 %v3428_v4 }
  0xf4   : > { %v3279_v6 = vpop.f32.mrb[0].mxu0 }
  0xf5   : > { %v3781_v8 = vadd.f32 %v3279_v6, %v3061_v5  ;;  %v490_v9 = vpop.f32.mrb[1].mxu0  ;;  %v510_v6 = vld [vmem:[%s4591_s3 + $0x28] sm:$0xff] }
  0xf6   : > { %v3783_v10 = vadd.f32 %v3061_v5, %v490_v9  ;;  %v509_v5 = vld [vmem:[%s4591_s3 + $0x20] sm:$0xff] }
  0xf7   : > { %v3787_v11 = vcombine.high %v3781_v8, %v3781_v8  ;;  %v533_v12 = vrot.slane %v3781_v8, 7 }
  0xf8   : > { %v3795_v14 = vcombine.high %v3783_v10, %v3783_v10  ;;  %v531_v15 = vrot.slane %v3783_v10, 7 }
  0xf9   : > { %v534_v16 = vrot.slane %v3787_v11, 7  ;;  %v544_v17 = vsel %vm540_vm2, 0.0, %v533_v12 }
  0xfa   : > { %v532_v18 = vrot.slane %v3795_v14, 7  ;;  %v542_v19 = vsel %vm540_vm2, 0.0, %v531_v15  ;;  %v3809_v23 = vsel %vm546_vm3, %v544_v17, 0.0  ;;  %v3432_v17 = vpack.c.bf16 %v510_v6, %v509_v5 }
  0xfb   : > { %v545_v21 = vsel %vm540_vm2, 0.0, %v534_v16  ;;  %v3806_v22 = vsel %vm546_vm3, %v542_v19, 0.0  ;;  %v559_v41 = vcombine.high %v3809_v23, %v3809_v23  ;;  %v3068_v60 = vrot.slane %v3809_v23, 9 }
  0xfc   : > { %v3812_v24 = vsel %vm546_vm3, %v545_v21, 0.0  ;;  %v543_v25 = vsel %vm540_vm2, 0.0, %v532_v18  ;;  %v557_v26 = vcombine.high %v3806_v22, %v3806_v22  ;;  %v3070_v40 = vrot.slane %v3806_v22, 10  ;;  %v512_v21 = vld [vmem:[%s4591_s3 + $0x38] sm:$0xff]  ;;  %3433 = vmatprep.subr.bf16.mxu1 %v3432_v17 }
  0xfd   : > { %v628_v27 = vcombine.low %v3809_v23, %v3812_v24  ;;  %v3820_v28 = vsel %vm546_vm3, %v543_v25, 0.0  ;;  %v598_v37 = vcombine.high %v3812_v24, %v3812_v24  ;;  %v651_v42 = vcombine.low %v3812_v24, %v3791_v13  ;;  %3435 = vmatpush3.bf16.msra.mxu1 %v3432_v17 }
  0xfe   : > { %v627_v30 = vcombine.low %v3806_v22, %v3820_v28  ;;  %v587_v32 = vrot.slane %v557_v26, 6  ;;  %v568_v36 = vrot.slane %v557_v26, 5  ;;  %v558_v38 = vcombine.high %v3820_v28, %v3820_v28 }
  0xff   : > { %631 = vrot.lane.b32.xlu1 %v628_v27, %s4607_s25  ;;  %v3066_v43 = vrot.slane %v3806_v22, 9  ;;  %v3852_v44 = vcombine.low %v3820_v28, %v3809_v23  ;;  %v601_v47 = vrot.slane %v598_v37, 5  ;;  %v576_v51 = vrot.slane %v559_v41, 5 }
 0x100   : > { %629 = vrot.lane.b32.xlu0 %v627_v30, %s4607_s25  ;;  %v588_v46 = vsel %vm3829_vm7, %v3070_v40, %v587_v32  ;;  %v572_v50 = vrot.slane %v558_v38, 5  ;;  %v3073_v52 = vrot.slane %v3812_v24, 9  ;;  %v3067_v56 = vrot.slane %v3820_v28, 9 }
 0x101   : > { %v569_v49 = vsel %vm3839_vm8, %v3066_v43, %v568_v36  ;;  %v619_v55 = vcombine.low %v3856_v45, %v588_v46  ;;  %v605_v62 = vrot.slane %v598_v37, 6  ;;  %v577_v1 = vsel %vm3839_vm8, %v3068_v60, %v576_v51 }
 0x102   : > { %v611_v59 = vcombine.low %v3863_v48, %v569_v49  ;;  %v602_v61 = vsel %vm3839_vm8, %v3073_v52, %v601_v47  ;;  %v573_v63 = vsel %vm3839_vm8, %v3067_v56, %v572_v50  ;;  %v595_v2 = vrot.slane %v559_v41, 6  ;;  %v3951_v52 = vld [vmem:[%s4596_s8] ss:$0 sm:$0xff] }
 0x103   : > { %654 = vrot.lane.b32.xlu1 %v651_v42, %s4601_s29  ;;  %v3074_v3 = vrot.slane %v3812_v24, 10  ;;  %v636_v7 = vcombine.low %v577_v1, %v602_v61  ;;  %v612_v9 = vcombine.low %v573_v63, %v577_v1  ;;  %v3072_v12 = vrot.slane %v3809_v23, 10 }
 0x104   : > { %652 = vrot.lane.b32.xlu0 %v3852_v44, %s4601_s29  ;;  %v591_v16 = vrot.slane %v558_v38, 6  ;;  %v3071_v19 = vrot.slane %v3820_v28, 10  ;;  %v635_v24 = vcombine.low %v569_v49, %v573_v63  ;;  %v3436_v26 = vpack.c.bf16 %v512_v21, %v511_v20  ;;  %s4611_s29 = smov 56  }
 0x105   : > { %v606_v15 = vsel %vm3829_vm7, %v3074_v3, %v605_v62  ;;  %v596_v18 = vsel %vm3829_vm7, %v3072_v12, %v595_v2  ;;  %v658_v30 = vcombine.low %v602_v61, %v3863_v48  ;;  %v607_v43 = vcombine.low %v3791_v13, %v3806_v22 }
 0x106   : > { %v644_v23 = vcombine.low %v596_v18, %v606_v15  ;;  %v592_v25 = vsel %vm3829_vm7, %v3071_v19, %v591_v16  ;;  %3437 = vmatprep.subr.bf16.mxu1 %v3436_v26  ;;  %v665_v32 = vcombine.low %v606_v15, %v3856_v45  ;;  %v3964_v61 = vcombine.high %v3951_v52, %v3951_v52 }
 0x107   : > { %621 = vrot.lane.b32.xlu1 %v619_v55, %s4605_s30  ;;  %v620_v27 = vcombine.low %v592_v25, %v596_v18  ;;  %v643_v28 = vcombine.low %v588_v46, %v592_v25  ;;  %3439 = vmatpush3.bf16.msra.mxu1 %v3436_v26  ;;  %v3941_v46 = vld [vmem:[%s4595_s7] ss:$0 sm:$0xff] }
 0x108   : > { %613 = vrot.lane.b32.xlu0 %v611_v59, %s4603_s14  ;;  %3296 = vmatprep.subr.mxu1 %v513_v29  ;;  %v3946_v51 = vcombine.high %v3941_v46, %v3941_v46  ;;  %v1075_v0 = vmul.f32 %v3941_v46, %v3783_v10  ;;  %v1077_v6 = vmul.f32 %v3941_v46, %v3781_v8  ;;  %v3075_v25 = vld [vmem:[%s4592_s4] ss:$0 sm:$0xff] }
 0x10a   : > { %v1076_v60 = vmul.f32 %v3946_v51, %v3795_v14  ;;  %v1078_v3 = vmul.f32 %v3946_v51, %v3787_v11  ;;  %v1087_v16 = vadd.f32 %v3951_v52, %v1075_v0 }
 0x10b   : > { %639 = vrot.lane.b32.xlu1 %v636_v7, %s4615_s22  ;;  %3297 = vmatpush3.msra.mxu1 %v513_v29 }
 0x10c   : > { %615 = vrot.lane.b32.xlu0 %v612_v9, %s4603_s14  ;;  %3327 = vmatprep.subr.mxu1 %v3930_v31  ;;  %v1088_v5 = vadd.f32 %v3964_v61, %v1076_v60  ;;  %v1090_v19 = vadd.f32 %v3964_v61, %v1078_v3  ;;  %s4644_s14 = smov 40  }
 0x10e   : > { %v1192_v21 = vcombine.low %v1087_v16, %v1088_v5  ;;  %v515_v16 = vld [vmem:[%s4593_s5] sm:$0xff] }
 0x10f   : > { %647 = vrot.lane.b32.xlu1 %v644_v23, %s4613_s16  ;;  %v1089_v23 = vadd.f32 %v3951_v52, %v1077_v6 }
 0x110   : > { %637 = vrot.lane.b32.xlu0 %v635_v24, %s4615_s22  ;;  %s4643_s22 = smov 8  }
 0x111   : > { %v1193_v24 = vcombine.low %v1089_v23, %v1090_v19  ;;  %v517_v23 = vld [vmem:[%s4593_s5 + $0x10] sm:$0xff] }
 0x113   : > { %623 = vrot.lane.b32.xlu1 %v620_v27, %s4605_s30  ;;  %s4609_s30 = smov 64  }
 0x114   : > { %645 = vrot.lane.b32.xlu0 %v643_v28, %s4613_s16  ;;  %s4645_s16 = smov 16  }
 0x117   : > { %661 = vrot.lane.b32.xlu1 %v658_v30, %s4611_s29 }
 0x118   : > { %659 = vrot.lane.b32.xlu0 %v612_v9, %s4611_s29  ;;  %s4649_s29 = smov 24  }
 0x11b   : > { %668 = vrot.lane.b32.xlu1 %v665_v32, %s4609_s30 }
 0x11c   : > { %666 = vrot.lane.b32.xlu0 %v620_v27, %s4609_s30  ;;  %s4642_s30 = smov 32  }
 0x171   : > { %v632_v33 = vpop.permute.xlu1 %631 }
 0x172   : > { %v630_v35 = vpop.permute.xlu0 %629 }
 0x175   : > { %v655_v36 = vpop.permute.xlu1 %654 }
 0x176   : > { %v653_v37 = vpop.permute.xlu0 %652 }
 0x179   : > { %v622_v38 = vpop.permute.xlu1 %621 }
 0x17a   : > { %v614_v40 = vpop.permute.xlu0 %613 }
 0x17b   : > { %v673_v49 = vsel %vm672_vm9, %v607_v43, %v614_v40 }
 0x17c   : > { %v676_v22 = vsel %vm675_vm10, %v673_v49, %v622_v38 }
 0x17d   : > { %v640_v41 = vpop.permute.xlu1 %639  ;;  %v679_v58 = vsel %vm678_vm11, %v676_v22, %v630_v35 }
 0x17e   : > { %v616_v42 = vpop.permute.xlu0 %615 }
 0x17f   : > { %v674_v53 = vsel %vm672_vm9, %v3852_v44, %v616_v42 }
 0x181   : > { %v648_v47 = vpop.permute.xlu1 %647 }
 0x182   : > { %v638_v50 = vpop.permute.xlu0 %637 }
 0x183   : > { %v682_v44 = vsel %vm681_vm12, %v679_v58, %v638_v50 }
 0x185   : > { %v624_v54 = vpop.permute.xlu1 %623 }
 0x186   : > { %v677_v55 = vsel %vm675_vm10, %v674_v53, %v624_v54  ;;  %v646_v56 = vpop.permute.xlu0 %645 }
 0x187   : > { %v680_v57 = vsel %vm678_vm11, %v677_v55, %v632_v33  ;;  %v685_v1 = vsel %vm684_vm13, %v682_v44, %v646_v56 }
 0x188   : > { %v683_v59 = vsel %vm681_vm12, %v680_v57, %v640_v41  ;;  %v688_v7 = vsel %vm687_vm14, %v685_v1, %v653_v37 }
 0x189   : > { %v662_v62 = vpop.permute.xlu1 %661  ;;  %v686_v63 = vsel %vm684_vm13, %v683_v59, %v648_v47 }
 0x18a   : > { %v660_v2 = vpop.permute.xlu0 %659  ;;  %v689_v4 = vsel %vm687_vm14, %v686_v63, %v655_v36 }
 0x18b   : > { %v691_v12 = vsel %vm690_vm15, %v688_v7, %v660_v2  ;;  %v692_v17 = vsel %vm690_vm15, %v689_v4, %v662_v62 }
 0x18d   : > { %v669_v9 = vpop.permute.xlu1 %668 }
 0x18e   : > { %v667_v15 = vpop.permute.xlu0 %666  ;;  %v695_v20 = vsel %vm693_vm0, %v692_v17, %v669_v9  ;;  %v516_v17 = vld [vmem:[%s4593_s5 + $0x8] sm:$0xff] }
 0x18f   : > { %v694_v18 = vsel %vm693_vm0, %v691_v12, %v667_v15 }
 0x190   : > { %3298 = vmatprep.mubr.msk.f32.mxu1 %vm702_vm1, %v694_v18 }
 0x191   : > { %3299 = vmatmul.mubr.msk.f32.vlgmr.msra.gmra.mrb[0].mxu1 %vm702_vm1, %v695_v20 }
 0x192   : > { %3329 = vmatprep.mubr.msk.f32.mxu1 %vm672_vm9, %v1192_v21  ;;  %3328 = vmatpush3.msra.mxu1 %v3930_v31 }
 0x195   : > { %3330 = vmatmul.mubr.msk.f32.vlgmr.msra.gmra.mrb[2].mxu1 %vm672_vm9, %v1193_v24  ;;  %v518_v24 = vld [vmem:[%s4593_s5 + $0x18] sm:$0xff] }
 0x264   : > { %v3300_v26 = vpop.f32.mrb[0].mxu1 }
 0x265   : > { %v781_v27 = vadd.f32 %v3300_v26, %v3075_v25  ;;  %v775_v28 = vpop.f32.mrb[1].mxu1 }
 0x266   : > { %v776_v29 = vadd.f32 %v3075_v25, %v775_v28 }
 0x267   : > { %v785_v30 = vmax.f32 %v781_v27, 0.0 }
 0x268   : > { %v784_v32 = vmax.f32 %v776_v29, 0.0  ;;  %v3993_v33 = vpop.f32.mrb[2].mxu1 }
 0x269   : > { %v789_v35 = vcombine.high %v785_v30, %v785_v30  ;;  %v792_v36 = vrot.slane %v785_v30, 7  ;;  %v3995_v37 = vpop.f32.mrb[3].mxu1 }
 0x26a   : > { %v788_v31 = vcombine.high %v784_v32, %v784_v32  ;;  %v790_v38 = vrot.slane %v784_v32, 7 }
 0x26b   : > { %v793_v40 = vrot.slane %v789_v35, 7  ;;  %v800_v41 = vsel %vm540_vm2, 0.0, %v792_v36  ;;  %v3440_v35 = vpack.c.bf16 %v516_v17, %v515_v16 }
 0x26c   : > { %v804_v42 = vsel %vm546_vm3, %v800_v41, 0.0  ;;  %v791_v43 = vrot.slane %v788_v31, 7  ;;  %v798_v47 = vsel %vm540_vm2, 0.0, %v790_v38 }
 0x26d   : > { %v801_v49 = vsel %vm540_vm2, 0.0, %v793_v40  ;;  %v4002_v50 = vsel %vm546_vm3, %v798_v47, 0.0  ;;  %v811_v22 = vcombine.high %v804_v42, %v804_v42  ;;  %v3080_v62 = vrot.slane %v804_v42, 9  ;;  %3441 = vmatprep.subr.bf16.mxu0 %v3440_v35  ;;  %v520_v47 = vld [vmem:[%s4593_s5 + $0x28] sm:$0xff] }
 0x26e   : > { %v805_v53 = vsel %vm546_vm3, %v801_v49, 0.0  ;;  %v799_v54 = vsel %vm540_vm2, 0.0, %v791_v43  ;;  %v809_v55 = vcombine.high %v4002_v50, %v4002_v50  ;;  %v3078_v2 = vrot.slane %v4002_v50, 9  ;;  %3443 = vmatpush3.bf16.msra.mxu0 %v3440_v35  ;;  %v519_v43 = vld [vmem:[%s4593_s5 + $0x20] sm:$0xff] }
 0x26f   : > { %v803_v56 = vsel %vm546_vm3, %v799_v54, 0.0  ;;  %v867_v57 = vcombine.low %v804_v42, %v805_v53  ;;  %v822_v58 = vrot.slane %v811_v22, 5  ;;  %v837_v44 = vcombine.high %v805_v53, %v805_v53  ;;  %v521_v54 = vld [vmem:[%s4593_s5 + $0x30] sm:$0xff] }
 0x270   : > { %v866_v59 = vcombine.low %v4002_v50, %v803_v56  ;;  %v4010_v60 = vcombine.low %v803_v56, %v804_v42  ;;  %v814_v63 = vrot.slane %v809_v55, 5  ;;  %v3084_v0 = vrot.slane %v805_v53, 9 }
 0x271   : > { %870 = vrot.lane.b32.xlu1 %v867_v57, %s4607_s25  ;;  %v840_v1 = vrot.slane %v837_v44, 5  ;;  %v834_v3 = vrot.slane %v811_v22, 6  ;;  %v890_v4 = vcombine.low %v805_v53, %v3791_v13  ;;  %v823_v5 = vsel %vm3839_vm8, %v3080_v62, %v822_v58 }
 0x272   : > { %868 = vrot.lane.b32.xlu0 %v866_v59, %s4607_s25  ;;  %v810_v6 = vcombine.high %v803_v56, %v803_v56  ;;  %v815_v9 = vsel %vm3839_vm8, %v3078_v2, %v814_v63  ;;  %v3083_v12 = vrot.slane %v804_v42, 10  ;;  %v844_v15 = vrot.slane %v837_v44, 6  ;;  %s4641_s25 = smov 48   ;;  %v523_v59 = vld [vmem:[%s4593_s5 + $0x40] sm:$0xff] }
 0x273   : > { %v841_v7 = vsel %vm3839_vm8, %v3084_v0, %v840_v1  ;;  %v3085_v18 = vrot.slane %v805_v53, 10  ;;  %v826_v19 = vrot.slane %v809_v55, 6  ;;  %v3079_v20 = vrot.slane %v803_v56, 9  ;;  %v522_v55 = vld [vmem:[%s4593_s5 + $0x38] sm:$0xff] }
 0x274   : > { %v818_v21 = vrot.slane %v810_v6, 5  ;;  %v835_v25 = vsel %vm3829_vm7, %v3083_v12, %v834_v3  ;;  %v3081_v26 = vrot.slane %v4002_v50, 10  ;;  %v3082_v27 = vrot.slane %v803_v56, 10 }
 0x275   : > { %893 = vrot.lane.b32.xlu1 %v890_v4, %s4641_s25  ;;  %v830_v28 = vrot.slane %v810_v6, 6  ;;  %v875_v29 = vcombine.low %v823_v5, %v841_v7  ;;  %v850_v30 = vcombine.low %v3863_v48, %v815_v9  ;;  %v845_v36 = vsel %vm3829_vm7, %v3085_v18, %v844_v15 }
 0x276   : > { %891 = vrot.lane.b32.xlu0 %v4010_v60, %s4641_s25  ;;  %v819_v32 = vsel %vm3839_vm8, %v3079_v20, %v818_v21  ;;  %v3444_v40 = vpack.c.bf16 %v518_v24, %v517_v23  ;;  %v827_v41 = vsel %vm3829_vm7, %v3081_v26, %v826_v19  ;;  %v883_v49 = vcombine.low %v835_v25, %v845_v36 }
 0x277   : > { %v851_v31 = vcombine.low %v819_v32, %v823_v5  ;;  %v831_v38 = vsel %vm3829_vm7, %v3082_v27, %v830_v28  ;;  %v3448_v22 = vpack.c.bf16 %v520_v47, %v519_v43  ;;  %v858_v53 = vcombine.low %v3856_v45, %v827_v41 }
 0x278   : > { %v859_v42 = vcombine.low %v831_v38, %v835_v25  ;;  %3445 = vmatprep.subr.bf16.mxu0 %v3444_v40  ;;  %v3452_v56 = vpack.c.bf16 %v522_v55, %v521_v54  ;;  %v874_v57 = vcombine.low %v815_v9, %v819_v32  ;;  %v882_v58 = vcombine.low %v827_v41, %v831_v38 }
 0x279   : > { %878 = vrot.lane.b32.xlu1 %v875_v29, %s4642_s30  ;;  %3447 = vmatpush3.bf16.msra.mxu0 %v3444_v40  ;;  %v897_v44 = vcombine.low %v841_v7, %v3863_v48  ;;  %v904_v62 = vcombine.low %v845_v36, %v3856_v45  ;;  %v846_v9 = vcombine.low %v3791_v13, %v4002_v50  ;;  %v3086_v40 = vld [vmem:[%s4594_s6] ss:$0 sm:$0xff] }
 0x27a   : > { %852 = vrot.lane.b32.xlu0 %v850_v30, %s4643_s22  ;;  %3449 = vmatprep.subr.bf16.mxu0 %v3448_v22 }
 0x27d   : > { %886 = vrot.lane.b32.xlu1 %v883_v49, %s4644_s14  ;;  %3451 = vmatpush3.bf16.msra.mxu0 %v3448_v22 }
 0x27e   : > { %860 = vrot.lane.b32.xlu0 %v858_v53, %s4645_s16  ;;  %3453 = vmatprep.subr.bf16.mxu0 %v3452_v56 }
 0x281   : > { %854 = vrot.lane.b32.xlu1 %v851_v31, %s4643_s22  ;;  %3455 = vmatpush3.bf16.msra.mxu0 %v3452_v56 }
 0x282   : > { %876 = vrot.lane.b32.xlu0 %v874_v57, %s4642_s30  ;;  %3317 = vmatprep.subr.mxu0 %v523_v59 }
 0x285   : > { %862 = vrot.lane.b32.xlu1 %v859_v42, %s4645_s16  ;;  %3318 = vmatpush3.msra.mxu0 %v523_v59 }
 0x286   : > { %884 = vrot.lane.b32.xlu0 %v882_v58, %s4644_s14 }
 0x289   : > { %900 = vrot.lane.b32.xlu1 %v897_v44, %s4646_s1 }
 0x28a   : > { %898 = vrot.lane.b32.xlu0 %v851_v31, %s4646_s1 }
 0x28d   : > { %907 = vrot.lane.b32.xlu1 %v904_v62, %s4647_s2 }
 0x28e   : > { %905 = vrot.lane.b32.xlu0 %v859_v42, %s4647_s2 }
 0x2e3   : > { %v871_v63 = vpop.permute.xlu1 %870 }
 0x2e4   : > { %v869_v0 = vpop.permute.xlu0 %868 }
 0x2e7   : > { %v894_v1 = vpop.permute.xlu1 %893 }
 0x2e8   : > { %v892_v2 = vpop.permute.xlu0 %891 }
 0x2eb   : > { %v879_v3 = vpop.permute.xlu1 %878 }
 0x2ec   : > { %v853_v4 = vpop.permute.xlu0 %852 }
 0x2ed   : > { %v911_v15 = vsel %vm672_vm9, %v846_v9, %v853_v4 }
 0x2ef   : > { %v887_v5 = vpop.permute.xlu1 %886 }
 0x2f0   : > { %v861_v6 = vpop.permute.xlu0 %860 }
 0x2f1   : > { %v913_v16 = vsel %vm675_vm10, %v911_v15, %v861_v6 }
 0x2f2   : > { %v915_v23 = vsel %vm678_vm11, %v913_v16, %v869_v0 }
 0x2f3   : > { %v855_v7 = vpop.permute.xlu1 %854 }
 0x2f4   : > { %v877_v12 = vpop.permute.xlu0 %876  ;;  %v912_v17 = vsel %vm672_vm9, %v4010_v60, %v855_v7 }
 0x2f5   : > { %v917_v50 = vsel %vm681_vm12, %v915_v23, %v877_v12 }
 0x2f7   : > { %v863_v18 = vpop.permute.xlu1 %862 }
 0x2f8   : > { %v914_v19 = vsel %vm675_vm10, %v912_v17, %v863_v18  ;;  %v885_v20 = vpop.permute.xlu0 %884 }
 0x2f9   : > { %v916_v21 = vsel %vm678_vm11, %v914_v19, %v871_v63  ;;  %v919_v27 = vsel %vm684_vm13, %v917_v50, %v885_v20  ;;  %v528_v63 = vld [vmem:[%s4597_s9 + $0x8] sm:$0xff] }
 0x2fa   : > { %v918_v24 = vsel %vm681_vm12, %v916_v21, %v879_v3  ;;  %v921_v29 = vsel %vm687_vm14, %v919_v27, %v892_v2  ;;  %3322 = vmatprep.subr.mxu0 %v528_v63 }
 0x2fb   : > { %v920_v25 = vsel %vm684_vm13, %v918_v24, %v887_v5  ;;  %v901_v26 = vpop.permute.xlu1 %900 }
 0x2fc   : > { %v899_v28 = vpop.permute.xlu0 %898  ;;  %v922_v60 = vsel %vm687_vm14, %v920_v25, %v894_v1 }
 0x2fd   : > { %v923_v32 = vsel %vm690_vm15, %v921_v29, %v899_v28  ;;  %v924_v36 = vsel %vm690_vm15, %v922_v60, %v901_v26 }
 0x2ff   : > { %v908_v30 = vpop.permute.xlu1 %907 }
 0x300   : > { %v906_v35 = vpop.permute.xlu0 %905  ;;  %v926_v38 = vsel %vm693_vm0, %v924_v36, %v908_v30 }
 0x301   : > { %v925_v31 = vsel %vm693_vm0, %v923_v32, %v906_v35 }
 0x302   : > { %3319 = vmatprep.mubr.msk.f32.mxu0 %vm702_vm1, %v925_v31 }
 0x303   : > { %3320 = vmatmul.mubr.msk.f32.vlgmr.msra.gmra.mrb[2].mxu0 %vm702_vm1, %v926_v38 }
 0x304   : > { %3323 = vmatpush3.msra.mxu0 %v528_v63 }
 0x3d6   : > { %v3321_v41 = vpop.f32.mrb[2].mxu0 }
 0x3d7   : > { %v1011_v42 = vadd.f32 %v3321_v41, %v3086_v40  ;;  %v1005_v43 = vpop.f32.mrb[3].mxu0 }
 0x3d8   : > { %v1006_v47 = vadd.f32 %v3086_v40, %v1005_v43 }
 0x3d9   : > { %v1015_v49 = vmul.f32 0.1, %v1011_v42  ;;  %v3106_v42 = vld [vmem:[%s4594_s6 + $0x1] ss:$0 sm:$0xff] }
 0x3da   : > { %v1014_v22 = vmul.f32 0.1, %v1006_v47 }
 0x3db   : > { %3547 = vtanh.f32 %v1015_v49  ;;  %v1047_v19 = vcombine.high %v1015_v49, %v1015_v49 }
 0x3dc   : > { %3549 = vtanh.f32 %v1014_v22  ;;  %v1046_v5 = vcombine.high %v1014_v22, %v1014_v22 }
 0x3e5   : > { %v3548_v53 = vpop.eup %3547 }
 0x3e6   : > { %v3550_v54 = vpop.eup %3549  ;;  %v4103_v55 = vmul.f32 2.0, %v3548_v53 }
 0x3e7   : > { %v4105_v56 = vmul.f32 2.0, %v3550_v54 }
 0x3e8   : > { %v1022_v57 = vmul.f32 1.442695, %v4103_v55 }
 0x3e9   : > { %v1020_v58 = vmul.f32 1.442695, %v4105_v56 }
 0x3eb   : > { %3551 = vpow2.f32 %v1020_v58 }
 0x3ec   : > { %3553 = vpow2.f32 %v1022_v57 }
 0x3f5   : > { %v3552_v59 = vpop.eup %3551 }
 0x3f6   : > { %1028 = vrot.lane.b32.xlu0 %v3552_v59, %s4643_s22  ;;  %v1026_v44 = vcombine.high %v3552_v59, %v3552_v59  ;;  %v3554_v62 = vpop.eup %3553 }
 0x3f7   : > { %v1027_v0 = vcombine.high %v3554_v62, %v3554_v62 }
 0x3f8   : > { %1030 = vrot.lane.b32.xlu1 %v1026_v44, %s4643_s22 }
 0x3fa   : > { %1032 = vrot.lane.b32.xlu0 %v3554_v62, %s4643_s22 }
 0x3fc   : > { %1034 = vrot.lane.b32.xlu1 %v1027_v0, %s4643_s22 }
 0x468   : > { %v1029_v1 = vpop.permute.xlu0 %1028 }
 0x469   : > { %v1040_v2 = vmul.f32 %v1029_v1, %v3783_v10 }
 0x46a   : > { %v1031_v3 = vpop.permute.xlu1 %1030 }
 0x46b   : > { %v1050_v4 = vadd.f32 %v1040_v2, %v1014_v22  ;;  %v1041_v6 = vmul.f32 %v1031_v3, %v3795_v14  ;;  %v3102_v3 = vld [vmem:[%s4597_s9 + $0x18] sm:$0xff] }
 0x46c   : > { %v1033_v7 = vpop.permute.xlu0 %1032  ;;  %3342 = vmatprep.subr.mxu1 %v3102_v3 }
 0x46d   : > { %v1091_v9 = vmul.f32 %v3941_v46, %v1050_v4  ;;  %v1051_v12 = vadd.f32 %v1046_v5, %v1041_v6  ;;  %v1042_v15 = vmul.f32 %v1033_v7, %v3781_v8  ;;  %3343 = vmatpush3.msra.mxu1 %v3102_v3  ;;  %v3101_v6 = vld [vmem:[%s4597_s9 + $0x10] sm:$0xff] }
 0x46e   : > { %v1035_v16 = vpop.permute.xlu1 %1034  ;;  %3347 = vmatprep.subr.mxu1 %v3101_v6 }
 0x46f   : > { %v1092_v17 = vmul.f32 %v3946_v51, %v1051_v12  ;;  %v1052_v18 = vadd.f32 %v1042_v15, %v1015_v49  ;;  %v1043_v20 = vmul.f32 %v1035_v16, %v3787_v11  ;;  %v1095_v23 = vadd.f32 %v3951_v52, %v1091_v9  ;;  %v3109_v9 = vld [vmem:[%s4595_s7 + $0x1] ss:$0 sm:$0xff] }
 0x470   : > { %v3110_v15 = vld [vmem:[%s4596_s8 + $0x1] ss:$0 sm:$0xff] }
 0x471   : > { %v1093_v10 = vmul.f32 %v3941_v46, %v1052_v18  ;;  %v1053_v21 = vadd.f32 %v1047_v19, %v1043_v20  ;;  %v1096_v14 = vadd.f32 %v1092_v17, %v3964_v61 }
 0x473   : > { %v1094_v24 = vmul.f32 %v3946_v51, %v1053_v21  ;;  %v1103_v50 = vcombine.low %v1095_v23, %v1096_v14  ;;  %v1097_v8 = vadd.f32 %v3951_v52, %v1093_v10  ;;  %v3095_v51 = vld [vmem:[%s4591_s3 + $0x68] sm:$0xff]  ;;  %v1530_v10 = vcombine.high %v3109_v9, %v3109_v9 }
 0x474   : > { %3332 = vmatprep.subr.mxu0 %v3095_v51 }
 0x475   : > { %1105 = vrot.lane.b32.xlu0 %v1103_v50, %s4617_s0  ;;  %v1098_v25 = vadd.f32 %v1094_v24, %v3964_v61  ;;  %v1542_v24 = vcombine.high %v3110_v15, %v3110_v15 }
 0x477   : > { %v1104_v26 = vcombine.low %v1097_v8, %v1098_v25 }
 0x479   : > { %1107 = vrot.lane.b32.xlu1 %v1104_v26, %s4617_s0  ;;  %s3187_s0 = sshll.u32 %s3735_s21, 4 }
 0x47a   : > { %s4547_s23 = scalar_lea.hbm %s4599_s11, %s3187_s0 }
 0x4e7   : > { %v1106_v11 = vpop.permute.xlu0 %1105 }
 0x4e8   : > { %3324 = vmatprep.mubr.msk.f32.mxu0 %vm672_vm9, %v1106_v11 }
 0x4eb   : > { %v1108_v46 = vpop.permute.xlu1 %1107 }
 0x4ec   : > { %3325 = vmatmul.mubr.msk.f32.vlgmr.msra.gmra.mrb[4].mxu0 %vm672_vm9, %v1108_v46 }
 0x4ed   : > { %3333 = vmatpush3.msra.mxu0 %v3095_v51 }
 0x5bf   : > { %v3326_v27 = vpop.f32.mrb[4].mxu0 }
 0x5c0   : > { %v4136_v52 = vadd.f32 %v3993_v33, %v3326_v27  ;;  %v1179_v61 = vpop.f32.mrb[5].mxu0  ;;  %v3097_v33 = vld [vmem:[%s4593_s5 + $0x68] sm:$0xff] }
 0x5c1   : > { %v4139_v28 = vadd.f32 %v3995_v37, %v1179_v61  ;;  %3337 = vmatprep.subr.mxu0 %v3097_v33  ;;  %v3103_v37 = vld [vmem:[%s4592_s4 + $0x1] ss:$0 sm:$0xff] }
 0x5c2   : > { %v4143_v60 = vcombine.high %v4136_v52, %v4136_v52 }
 0x5c3   : > { %v4147_v29 = vcombine.high %v4139_v28, %v4139_v28 }
 0x5c4   : > { %v1302_v32 = vcombine.low %v4136_v52, %v4143_v60 }
 0x5c5   : > { %v1301_v30 = vcombine.low %v4139_v28, %v4147_v29 }
 0x5c7   : > { %3334 = vmatprep.mubr.msk.f32.mxu0 %vm672_vm9, %v1301_v30 }
 0x5c8   : > { %3335 = vmatmul.mubr.msk.f32.vlgmr.msra.gmra.mrb[6].mxu0 %vm672_vm9, %v1302_v32 }
 0x5c9   : > { %3338 = vmatpush3.msra.mxu0 %v3097_v33 }
 0x69b   : > { %v3336_v35 = vpop.f32.mrb[6].mxu0 }
 0x69c   : > { %v1379_v36 = vadd.f32 %v3336_v35, %v3103_v37  ;;  %v1373_v31 = vpop.f32.mrb[7].mxu0  ;;  %v1533_v35 = vmul.f32 %v1530_v10, %v4147_v29 }
 0x69d   : > { %v1374_v38 = vadd.f32 %v3103_v37, %v1373_v31 }
 0x69e   : > { %v1383_v41 = vmax.f32 %v1379_v36, 0.0  ;;  %v1532_v36 = vmul.f32 %v3109_v9, %v4139_v28 }
 0x69f   : > { %v1382_v40 = vmax.f32 %v1374_v38, 0.0  ;;  %v1545_v38 = vadd.f32 %v1542_v24, %v1533_v35 }
 0x6a1   : > { %3339 = vmatprep.mubr.msk.f32.mxu0 %vm672_vm9, %v1382_v40  ;;  %v1544_v40 = vadd.f32 %v3110_v15, %v1532_v36 }
 0x6a2   : > { %3340 = vmatmul.mubr.msk.f32.vlgmr.msra.gmra.mrb[8].mxu0 %vm672_vm9, %v1383_v41  ;;  %v1535_v41 = vmul.f32 %v1530_v10, %v4143_v60 }
 0x775   : > { %v3341_v43 = vpop.f32.mrb[8].mxu0 }
 0x776   : > { %v1468_v47 = vadd.f32 %v3341_v43, %v3106_v42  ;;  %v1462_v49 = vpop.f32.mrb[9].mxu0  ;;  %v1649_v43 = vcombine.low %v1544_v40, %v1545_v38 }
 0x777   : > { %v1463_v22 = vadd.f32 %v3106_v42, %v1462_v49  ;;  %v1547_v49 = vadd.f32 %v1542_v24, %v1535_v41 }
 0x778   : > { %v1472_v53 = vmul.f32 0.1, %v1468_v47  ;;  %v1534_v47 = vmul.f32 %v3109_v9, %v4136_v52 }
 0x779   : > { %v1471_v54 = vmul.f32 0.1, %v1463_v22 }
 0x77a   : > { %3555 = vtanh.f32 %v1472_v53  ;;  %v1504_v25 = vcombine.high %v1472_v53, %v1472_v53 }
 0x77b   : > { %3557 = vtanh.f32 %v1471_v54  ;;  %v1503_v17 = vcombine.high %v1471_v54, %v1471_v54 }
 0x784   : > { %v3556_v57 = vpop.eup %3555 }
 0x785   : > { %v3558_v58 = vpop.eup %3557  ;;  %v4166_v59 = vmul.f32 2.0, %v3556_v57 }
 0x786   : > { %v4168_v44 = vmul.f32 2.0, %v3558_v58 }
 0x787   : > { %v1479_v62 = vmul.f32 1.442695, %v4166_v59 }
 0x788   : > { %v1477_v63 = vmul.f32 1.442695, %v4168_v44 }
 0x78a   : > { %3559 = vpow2.f32 %v1477_v63 }
 0x78b   : > { %3561 = vpow2.f32 %v1479_v62 }
 0x794   : > { %v3560_v0 = vpop.eup %3559 }
 0x795   : > { %1485 = vrot.lane.b32.xlu0 %v3560_v0, %s4643_s22  ;;  %v1483_v1 = vcombine.high %v3560_v0, %v3560_v0  ;;  %v3562_v2 = vpop.eup %3561 }
 0x796   : > { %v1484_v4 = vcombine.high %v3562_v2, %v3562_v2 }
 0x797   : > { %1487 = vrot.lane.b32.xlu1 %v1483_v1, %s4643_s22 }
 0x799   : > { %1489 = vrot.lane.b32.xlu0 %v3562_v2, %s4643_s22 }
 0x79b   : > { %1491 = vrot.lane.b32.xlu1 %v1484_v4, %s4643_s22 }
 0x807   : > { %v1486_v5 = vpop.permute.xlu0 %1485 }
 0x808   : > { %v1497_v7 = vmul.f32 %v1486_v5, %v4139_v28 }
 0x809   : > { %v1488_v12 = vpop.permute.xlu1 %1487 }
 0x80a   : > { %v1507_v16 = vadd.f32 %v1497_v7, %v1471_v54  ;;  %v1498_v18 = vmul.f32 %v1488_v12, %v4147_v29  ;;  %v1546_v29 = vadd.f32 %v3110_v15, %v1534_v47 }
 0x80b   : > { %v1490_v19 = vpop.permute.xlu0 %1489 }
 0x80c   : > { %v1548_v20 = vmul.f32 %v3109_v9, %v1507_v16  ;;  %v1508_v21 = vadd.f32 %v1503_v17, %v1498_v18  ;;  %v1499_v23 = vmul.f32 %v1490_v19, %v4136_v52  ;;  %v1650_v22 = vcombine.low %v1546_v29, %v1547_v49  ;;  %v3119_v49 = vld [vmem:[%s4591_s3 + $0xb0] sm:$0xff]  ;;  %v3120_v29 = vld [vmem:[%s4591_s3 + $0xb8] sm:$0xff] }
 0x80d   : > { %v1492_v14 = vpop.permute.xlu1 %1491 }
 0x80e   : > { %v1549_v50 = vmul.f32 %v1530_v10, %v1508_v21  ;;  %v1509_v8 = vadd.f32 %v1499_v23, %v1472_v53  ;;  %v1500_v26 = vmul.f32 %v1492_v14, %v4143_v60  ;;  %v1552_v51 = vadd.f32 %v3110_v15, %v1548_v20 }
 0x810   : > { %v1550_v11 = vmul.f32 %v3109_v9, %v1509_v8  ;;  %v1510_v46 = vadd.f32 %v1504_v25, %v1500_v26  ;;  %v1553_v27 = vadd.f32 %v1549_v50, %v1542_v24  ;;  %v3115_v25 = vld [vmem:[%s4591_s3 + $0x90] sm:$0xff] }
 0x812   : > { %v1551_v61 = vmul.f32 %v1530_v10, %v1510_v46  ;;  %v1560_v30 = vcombine.low %v1552_v51, %v1553_v27  ;;  %v1554_v32 = vadd.f32 %v3110_v15, %v1550_v11  ;;  %v3116_v51 = vld [vmem:[%s4591_s3 + $0x98] sm:$0xff]  ;;  %v3117_v27 = vld [vmem:[%s4591_s3 + $0xa0] sm:$0xff] }
 0x813   : > { %v3456_v40 = vpack.c.bf16 %v3116_v51, %v3115_v25 }
 0x814   : > { %1562 = vrot.lane.b32.xlu0 %v1560_v30, %s4648_s24  ;;  %v1555_v33 = vadd.f32 %v1551_v61, %v1542_v24  ;;  %v3118_v61 = vld [vmem:[%s4591_s3 + $0xa8] sm:$0xff] }
 0x815   : > { %v3460_v41 = vpack.c.bf16 %v3118_v61, %v3117_v27  ;;  %3457 = vmatprep.subr.bf16.mxu0 %v3456_v40 }
 0x816   : > { %v1561_v37 = vcombine.low %v1554_v32, %v1555_v33  ;;  %3459 = vmatpush3.bf16.msra.mxu0 %v3456_v40 }
 0x817   : > { %3461 = vmatprep.subr.bf16.mxu0 %v3460_v41 }
 0x818   : > { %1564 = vrot.lane.b32.xlu1 %v1561_v37, %s4648_s24 }
 0x81a   : > { %3463 = vmatpush3.bf16.msra.mxu0 %v3460_v41 }
 0x886   : > { %v1563_v31 = vpop.permute.xlu0 %1562 }
 0x887   : > { %3344 = vmatprep.mubr.msk.f32.mxu1 %vm672_vm9, %v1563_v31 }
 0x88a   : > { %v1565_v42 = vpop.permute.xlu1 %1564 }
 0x88b   : > { %3345 = vmatmul.mubr.msk.f32.vlgmr.msra.gmra.mrb[4].mxu1 %vm672_vm9, %v1565_v42 }
 0x88c   : > { %3348 = vmatpush3.msra.mxu1 %v3101_v6  ;;  %3349 = vmatprep.mubr.msk.f32.mxu1 %vm672_vm9, %v1649_v43 }
 0x893   : > { %3350 = vmatmul.mubr.msk.f32.vlgmr.msra.gmra.mrb[4].mxu1 %vm672_vm9, %v1650_v22 }
 0x966   : > { %v4202_v28 = vpop.f32.mrb[4].mxu1 }
 0x967   : > { %v4206_v53 = vcombine.high %v4202_v28, %v4202_v28  ;;  %v1770_v60 = vrot.slane %v4202_v28, 7  ;;  %v4209_v54 = vpop.f32.mrb[5].mxu1 }
 0x968   : > { %v4213_v52 = vcombine.high %v4209_v54, %v4209_v54  ;;  %v1768_v57 = vrot.slane %v4209_v54, 7 }
 0x969   : > { %v1771_v58 = vrot.slane %v4206_v53, 7  ;;  %v1778_v62 = vsel %vm540_vm2, 0.0, %v1770_v60 }
 0x96a   : > { %v1782_v63 = vsel %vm546_vm3, %v1778_v62, 0.0  ;;  %v1769_v0 = vrot.slane %v4213_v52, 7  ;;  %v1776_v1 = vsel %vm540_vm2, 0.0, %v1768_v57  ;;  %v3464_v62 = vpack.c.bf16 %v3120_v29, %v3119_v49  ;;  %v3147_v29 = vld [vmem:[%s4592_s4 + $0x2] ss:$0 sm:$0xff] }
 0x96b   : > { %v1779_v2 = vsel %vm540_vm2, 0.0, %v1771_v58  ;;  %v4223_v3 = vsel %vm546_vm3, %v1776_v1, 0.0  ;;  %v1789_v6 = vcombine.high %v1782_v63, %v1782_v63  ;;  %v3141_v24 = vrot.slane %v1782_v63, 9 }
 0x96c   : > { %v1783_v4 = vsel %vm546_vm3, %v1779_v2, 0.0  ;;  %v1777_v5 = vsel %vm540_vm2, 0.0, %v1769_v0  ;;  %v1787_v16 = vcombine.high %v4223_v3, %v4223_v3  ;;  %v3139_v10 = vrot.slane %v4223_v3, 9  ;;  %v3122_v0 = vld [vmem:[%s4591_s3 + $0xc8] sm:$0xff]  ;;  %3465 = vmatprep.subr.bf16.mxu0 %v3464_v62 }
 0x96d   : > { %v1845_v7 = vcombine.low %v1782_v63, %v1783_v4  ;;  %v1781_v9 = vsel %vm546_vm3, %v1777_v5, 0.0  ;;  %v1815_v15 = vcombine.high %v1783_v4, %v1783_v4  ;;  %v1800_v17 = vrot.slane %v1789_v6, 5  ;;  %3467 = vmatpush3.bf16.msra.mxu0 %v3464_v62 }
 0x96e   : > { %v1844_v12 = vcombine.low %v4223_v3, %v1781_v9  ;;  %v3145_v18 = vrot.slane %v1783_v4, 9  ;;  %v1868_v20 = vcombine.low %v1783_v4, %v3791_v13  ;;  %v1792_v21 = vrot.slane %v1787_v16, 5 }
 0x96f   : > { %1848 = vrot.lane.b32.xlu1 %v1845_v7, %s4649_s29  ;;  %v1818_v19 = vrot.slane %v1815_v15, 5  ;;  %v1822_v23 = vrot.slane %v1815_v15, 6  ;;  %v4235_v14 = vcombine.low %v1781_v9, %v1782_v63  ;;  %v1788_v8 = vcombine.high %v1781_v9, %v1781_v9 }
 0x970   : > { %1846 = vrot.lane.b32.xlu0 %v1844_v12, %s4649_s29  ;;  %v1793_v26 = vsel %vm3839_vm8, %v3139_v10, %v1792_v21  ;;  %v3146_v11 = vrot.slane %v1783_v4, 10  ;;  %v1804_v46 = vrot.slane %v1787_v16, 6  ;;  %v1801_v30 = vsel %vm3839_vm8, %v3141_v24, %v1800_v17 }
 0x971   : > { %v1819_v50 = vsel %vm3839_vm8, %v3145_v18, %v1818_v19  ;;  %v1812_v32 = vrot.slane %v1789_v6, 6  ;;  %v3144_v37 = vrot.slane %v1782_v63, 10  ;;  %v3142_v36 = vrot.slane %v4223_v3, 10  ;;  %v3121_v63 = vld [vmem:[%s4591_s3 + $0xc0] sm:$0xff] }
 0x972   : > { %v1853_v33 = vcombine.low %v1801_v30, %v1819_v50  ;;  %v1823_v35 = vsel %vm3829_vm7, %v3146_v11, %v1822_v23  ;;  %v1828_v31 = vcombine.low %v3863_v48, %v1793_v26  ;;  %v1796_v38 = vrot.slane %v1788_v8, 5 }
 0x973   : > { %1871 = vrot.lane.b32.xlu1 %v1868_v20, %s4641_s25  ;;  %v1805_v42 = vsel %vm3829_vm7, %v3142_v36, %v1804_v46  ;;  %v1813_v43 = vsel %vm3829_vm7, %v3144_v37, %v1812_v32  ;;  %v3140_v47 = vrot.slane %v1781_v9, 9  ;;  %v1808_v58 = vrot.slane %v1788_v8, 6 }
 0x974   : > { %1869 = vrot.lane.b32.xlu0 %v4235_v14, %s4641_s25  ;;  %v1861_v22 = vcombine.low %v1813_v43, %v1823_v35  ;;  %v1836_v60 = vcombine.low %v3856_v45, %v1805_v42  ;;  %v3143_v1 = vrot.slane %v1781_v9, 10  ;;  %v3468_v6 = vpack.c.bf16 %v3122_v0, %v3121_v63  ;;  %v3123_v9 = vld [vmem:[%s4591_s3 + $0xd0] sm:$0xff] }
 0x975   : > { %v1797_v57 = vsel %vm3839_vm8, %v3140_v47, %v1796_v38  ;;  %v1875_v15 = vcombine.low %v1819_v50, %v3863_v48  ;;  %v1882_v16 = vcombine.low %v1823_v35, %v3856_v45  ;;  %v1824_v8 = vcombine.low %v3791_v13, %v4223_v3 }
 0x976   : > { %v1829_v2 = vcombine.low %v1797_v57, %v1801_v30  ;;  %v1852_v4 = vcombine.low %v1793_v26, %v1797_v57  ;;  %v1809_v5 = vsel %vm3829_vm7, %v3143_v1, %v1808_v58  ;;  %3469 = vmatprep.subr.bf16.mxu0 %v3468_v6 }
 0x977   : > { %1856 = vrot.lane.b32.xlu1 %v1853_v33, %s4642_s30  ;;  %v1837_v7 = vcombine.low %v1809_v5, %v1813_v43  ;;  %v1860_v12 = vcombine.low %v1805_v42, %v1809_v5  ;;  %3471 = vmatpush3.bf16.msra.mxu0 %v3468_v6 }
 0x978   : > { %1830 = vrot.lane.b32.xlu0 %v1828_v31, %s4643_s22  ;;  %3368 = vmatprep.subr.mxu0 %v3123_v9 }
 0x97b   : > { %1864 = vrot.lane.b32.xlu1 %v1861_v22, %s4644_s14  ;;  %3369 = vmatpush3.msra.mxu0 %v3123_v9 }
 0x97c   : > { %1838 = vrot.lane.b32.xlu0 %v1836_v60, %s4645_s16 }
 0x97f   : > { %1832 = vrot.lane.b32.xlu1 %v1829_v2, %s4643_s22 }
 0x980   : > { %1854 = vrot.lane.b32.xlu0 %v1852_v4, %s4642_s30 }
 0x983   : > { %1840 = vrot.lane.b32.xlu1 %v1837_v7, %s4645_s16 }
 0x984   : > { %1862 = vrot.lane.b32.xlu0 %v1860_v12, %s4644_s14 }
 0x987   : > { %1878 = vrot.lane.b32.xlu1 %v1875_v15, %s4646_s1 }
 0x988   : > { %1876 = vrot.lane.b32.xlu0 %v1829_v2, %s4646_s1 }
 0x98b   : > { %1885 = vrot.lane.b32.xlu1 %v1882_v16, %s4647_s2 }
 0x98c   : > { %1883 = vrot.lane.b32.xlu0 %v1837_v7, %s4647_s2 }
 0x9e1   : > { %v1849_v17 = vpop.permute.xlu1 %1848 }
 0x9e2   : > { %v1847_v18 = vpop.permute.xlu0 %1846 }
 0x9e5   : > { %v1872_v19 = vpop.permute.xlu1 %1871 }
 0x9e6   : > { %v1870_v20 = vpop.permute.xlu0 %1869 }
 0x9e9   : > { %v1857_v10 = vpop.permute.xlu1 %1856 }
 0x9ea   : > { %v1831_v21 = vpop.permute.xlu0 %1830 }
 0x9eb   : > { %v1889_v26 = vsel %vm672_vm9, %v1824_v8, %v1831_v21 }
 0x9ed   : > { %v1865_v23 = vpop.permute.xlu1 %1864 }
 0x9ee   : > { %v1839_v24 = vpop.permute.xlu0 %1838 }
 0x9ef   : > { %v1891_v11 = vsel %vm675_vm10, %v1889_v26, %v1839_v24 }
 0x9f0   : > { %v1893_v32 = vsel %vm678_vm11, %v1891_v11, %v1847_v18 }
 0x9f1   : > { %v1833_v50 = vpop.permute.xlu1 %1832 }
 0x9f2   : > { %v1855_v25 = vpop.permute.xlu0 %1854  ;;  %v1890_v46 = vsel %vm672_vm9, %v4235_v14, %v1833_v50 }
 0x9f3   : > { %v1895_v3 = vsel %vm681_vm12, %v1893_v32, %v1855_v25 }
 0x9f5   : > { %v1841_v51 = vpop.permute.xlu1 %1840 }
 0x9f6   : > { %v1892_v27 = vsel %vm675_vm10, %v1890_v46, %v1841_v51  ;;  %v1863_v61 = vpop.permute.xlu0 %1862 }
 0x9f7   : > { %v1894_v30 = vsel %vm678_vm11, %v1892_v27, %v1849_v17  ;;  %v1897_v36 = vsel %vm684_vm13, %v1895_v3, %v1863_v61 }
 0x9f8   : > { %v1896_v33 = vsel %vm681_vm12, %v1894_v30, %v1857_v10  ;;  %v1899_v38 = vsel %vm687_vm14, %v1897_v36, %v1870_v20  ;;  %v3125_v36 = vld [vmem:[%s4593_s5 + $0x90] sm:$0xff] }
 0x9f9   : > { %v1898_v37 = vsel %vm684_vm13, %v1896_v33, %v1865_v23  ;;  %v1879_v35 = vpop.permute.xlu1 %1878 }
 0x9fa   : > { %v1877_v31 = vpop.permute.xlu0 %1876  ;;  %v1900_v14 = vsel %vm687_vm14, %v1898_v37, %v1872_v19 }
 0x9fb   : > { %v1901_v41 = vsel %vm690_vm15, %v1899_v38, %v1877_v31  ;;  %v1902_v43 = vsel %vm690_vm15, %v1900_v14, %v1879_v35  ;;  %v3126_v31 = vld [vmem:[%s4593_s5 + $0x98] sm:$0xff] }
 0x9fd   : > { %v1886_v40 = vpop.permute.xlu1 %1885 }
 0x9fe   : > { %v1884_v42 = vpop.permute.xlu0 %1883  ;;  %v1904_v49 = vsel %vm693_vm0, %v1902_v43, %v1886_v40  ;;  %v3128_v43 = vld [vmem:[%s4593_s5 + $0xa8] sm:$0xff] }
 0x9ff   : > { %v1903_v47 = vsel %vm693_vm0, %v1901_v41, %v1884_v42  ;;  %v3127_v42 = vld [vmem:[%s4593_s5 + $0xa0] sm:$0xff] }
 0xa00   : > { %3370 = vmatprep.mubr.msk.f32.mxu0 %vm702_vm1, %v1903_v47 }
 0xa01   : > { %3371 = vmatmul.mubr.msk.f32.vlgmr.msra.gmra.mrb[10].mxu0 %vm702_vm1, %v1904_v49 }
 0xad4   : > { %v3372_v22 = vpop.f32.mrb[10].mxu0 }
 0xad5   : > { %v1989_v60 = vadd.f32 %v3372_v22, %v3147_v29  ;;  %v1983_v57 = vpop.f32.mrb[11].mxu0 }
 0xad6   : > { %v1984_v58 = vadd.f32 %v3147_v29, %v1983_v57 }
 0xad7   : > { %v1993_v62 = vmax.f32 %v1989_v60, 0.0 }
 0xad8   : > { %v1992_v63 = vmax.f32 %v1984_v58, 0.0 }
 0xad9   : > { %v1997_v0 = vcombine.high %v1993_v62, %v1993_v62  ;;  %v2000_v1 = vrot.slane %v1993_v62, 7  ;;  %v3472_v62 = vpack.c.bf16 %v3126_v31, %v3125_v36 }
 0xada   : > { %v1996_v2 = vcombine.high %v1992_v63, %v1992_v63  ;;  %v1998_v4 = vrot.slane %v1992_v63, 7 }
 0xadb   : > { %v2001_v5 = vrot.slane %v1997_v0, 7  ;;  %v2008_v6 = vsel %vm540_vm2, 0.0, %v2000_v1  ;;  %3473 = vmatprep.subr.bf16.mxu1 %v3472_v62 }
 0xadc   : > { %v2012_v7 = vsel %vm546_vm3, %v2008_v6, 0.0  ;;  %v1999_v12 = vrot.slane %v1996_v2, 7  ;;  %v2006_v9 = vsel %vm540_vm2, 0.0, %v1998_v4  ;;  %v3476_v2 = vpack.c.bf16 %v3128_v43, %v3127_v42  ;;  %3475 = vmatpush3.bf16.msra.mxu1 %v3472_v62  ;;  %v3130_v6 = vld [vmem:[%s4593_s5 + $0xb8] sm:$0xff] }
 0xadd   : > { %v2009_v15 = vsel %vm540_vm2, 0.0, %v2001_v5  ;;  %v4329_v16 = vsel %vm546_vm3, %v2006_v9, 0.0  ;;  %v2019_v17 = vcombine.high %v2012_v7, %v2012_v7  ;;  %v3152_v25 = vrot.slane %v2012_v7, 9 }
 0xade   : > { %v2013_v18 = vsel %vm546_vm3, %v2009_v15, 0.0  ;;  %v2007_v19 = vsel %vm540_vm2, 0.0, %v1999_v12  ;;  %v2017_v20 = vcombine.high %v4329_v16, %v4329_v16  ;;  %v3150_v51 = vrot.slane %v4329_v16, 9  ;;  %3477 = vmatprep.subr.bf16.mxu1 %v3476_v2  ;;  %v3132_v15 = vld [vmem:[%s4593_s5 + $0xc8] sm:$0xff] }
 0xadf   : > { %v2011_v10 = vsel %vm546_vm3, %v2007_v19, 0.0  ;;  %v2075_v21 = vcombine.low %v2012_v7, %v2013_v18  ;;  %v2030_v23 = vrot.slane %v2019_v17, 5  ;;  %v2045_v8 = vcombine.high %v2013_v18, %v2013_v18 }
 0xae0   : > { %v2074_v24 = vcombine.low %v4329_v16, %v2011_v10  ;;  %v4337_v50 = vcombine.low %v2011_v10, %v2012_v7  ;;  %v2022_v26 = vrot.slane %v2017_v20, 5  ;;  %v3156_v11 = vrot.slane %v2013_v18, 9  ;;  %3479 = vmatpush3.bf16.msra.mxu1 %v3476_v2 }
 0xae1   : > { %2078 = vrot.lane.b32.xlu1 %v2075_v21, %s4649_s29  ;;  %v2048_v46 = vrot.slane %v2045_v8, 5  ;;  %v2042_v27 = vrot.slane %v2019_v17, 6  ;;  %v2098_v61 = vcombine.low %v2013_v18, %v3791_v13  ;;  %v2031_v30 = vsel %vm3839_vm8, %v3152_v25, %v2030_v23 }
 0xae2   : > { %2076 = vrot.lane.b32.xlu0 %v2074_v24, %s4649_s29  ;;  %v2018_v32 = vcombine.high %v2011_v10, %v2011_v10  ;;  %v2023_v3 = vsel %vm3839_vm8, %v3150_v51, %v2022_v26  ;;  %v3155_v37 = vrot.slane %v2012_v7, 10  ;;  %v2052_v35 = vrot.slane %v2045_v8, 6 }
 0xae3   : > { %v2049_v33 = vsel %vm3839_vm8, %v3156_v11, %v2048_v46  ;;  %v3157_v14 = vrot.slane %v2013_v18, 10  ;;  %v2034_v38 = vrot.slane %v2017_v20, 6  ;;  %v3151_v40 = vrot.slane %v2011_v10, 9  ;;  %v3133_v20 = vld [vmem:[%s4593_s5 + $0xd0] sm:$0xff] }
 0xae4   : > { %v2026_v41 = vrot.slane %v2018_v32, 5  ;;  %v2043_v47 = vsel %vm3829_vm7, %v3155_v37, %v2042_v27  ;;  %v3153_v49 = vrot.slane %v4329_v16, 10  ;;  %v3154_v29 = vrot.slane %v2011_v10, 10 }
 0xae5   : > { %2101 = vrot.lane.b32.xlu1 %v2098_v61, %s4641_s25  ;;  %v2038_v22 = vrot.slane %v2018_v32, 6  ;;  %v2083_v60 = vcombine.low %v2031_v30, %v2049_v33  ;;  %v2058_v57 = vcombine.low %v3863_v48, %v2023_v3  ;;  %v2053_v63 = vsel %vm3829_vm7, %v3157_v14, %v2052_v35 }
 0xae6   : > { %2099 = vrot.lane.b32.xlu0 %v4337_v50, %s4641_s25  ;;  %v2027_v58 = vsel %vm3839_vm8, %v3151_v40, %v2026_v41  ;;  %v2035_v4 = vsel %vm3829_vm7, %v3153_v49, %v2034_v38  ;;  %v2091_v7 = vcombine.low %v2043_v47, %v2053_v63  ;;  %v3480_v12 = vpack.c.bf16 %v3130_v6, %v3129_v39 }
 0xae7   : > { %v2059_v0 = vcombine.low %v2027_v58, %v2031_v30  ;;  %v2039_v1 = vsel %vm3829_vm7, %v3154_v29, %v2038_v22  ;;  %v2066_v9 = vcombine.low %v3856_v45, %v2035_v4  ;;  %v3484_v17 = vpack.c.bf16 %v3132_v15, %v3131_v34  ;;  %v3138_v15 = vld [vmem:[%s4597_s9 + $0x28] sm:$0xff] }
 0xae8   : > { %v2067_v5 = vcombine.low %v2039_v1, %v2043_v47  ;;  %3481 = vmatprep.subr.bf16.mxu1 %v3480_v12  ;;  %v2082_v18 = vcombine.low %v2023_v3, %v2027_v58  ;;  %v2090_v19 = vcombine.low %v2035_v4, %v2039_v1  ;;  %v2105_v10 = vcombine.low %v2049_v33, %v3863_v48 }
 0xae9   : > { %2086 = vrot.lane.b32.xlu1 %v2083_v60, %s4642_s30  ;;  %3483 = vmatpush3.bf16.msra.mxu1 %v3480_v12  ;;  %v2112_v21 = vcombine.low %v2053_v63, %v3856_v45  ;;  %v2054_v27 = vcombine.low %v3791_v13, %v4329_v16  ;;  %v3158_v60 = vld [vmem:[%s4594_s6 + $0x2] ss:$0 sm:$0xff]  ;;  %vm2950_vm2 = vcmask 0  }
 0xaea   : > { %2060 = vrot.lane.b32.xlu0 %v2058_v57, %s4643_s22  ;;  %3485 = vmatprep.subr.bf16.mxu1 %v3484_v17 }
 0xaeb   : > { %3394 = vmatprep.subr.mxu0 %v3138_v15 }
 0xaec   : > { %3395 = vmatpush3.msra.mxu0 %v3138_v15  ;;  %v3178_v15 = vld [vmem:[%s4594_s6 + $0x3] ss:$0 sm:$0xff] }
 0xaed   : > { %2094 = vrot.lane.b32.xlu1 %v2091_v7, %s4644_s14  ;;  %3487 = vmatpush3.bf16.msra.mxu1 %v3484_v17 }
 0xaee   : > { %2068 = vrot.lane.b32.xlu0 %v2066_v9, %s4645_s16  ;;  %3389 = vmatprep.subr.mxu1 %v3133_v20 }
 0xaf1   : > { %2062 = vrot.lane.b32.xlu1 %v2059_v0, %s4643_s22  ;;  %3390 = vmatpush3.msra.mxu1 %v3133_v20 }
 0xaf2   : > { %2084 = vrot.lane.b32.xlu0 %v2082_v18, %s4642_s30 }
 0xaf5   : > { %2070 = vrot.lane.b32.xlu1 %v2067_v5, %s4645_s16 }
 0xaf6   : > { %2092 = vrot.lane.b32.xlu0 %v2090_v19, %s4644_s14  ;;  %v3137_v19 = vld [vmem:[%s4597_s9 + $0x20] sm:$0xff] }
 0xaf7   : > { %3399 = vmatprep.subr.mxu0 %v3137_v19 }
 0xaf9   : > { %2108 = vrot.lane.b32.xlu1 %v2105_v10, %s4646_s1  ;;  %v3161_v10 = vld [vmem:[%s4595_s7 + $0x2] ss:$0 sm:$0xff] }
 0xafa   : > { %2106 = vrot.lane.b32.xlu0 %v2059_v0, %s4646_s1  ;;  %s3653_s1 = smov [#allocation2]  }
 0xafd   : > { %2115 = vrot.lane.b32.xlu1 %v2112_v21, %s4647_s2 }
 0xafe   : > { %2113 = vrot.lane.b32.xlu0 %v2067_v5, %s4647_s2  ;;  %s3583_s2 = sshll.u32 %s3653_s1, 4  ;;  %s3584_s2 = int_to_ptr.vmem [resolvable:$false] %s3583_s2 }
 0xaff   : > { %s3585_s25 = scalar_lea.vmem %s3584_s2, 32 }
 0xb53   : > { %v2079_v23 = vpop.permute.xlu1 %2078 }
 0xb54   : > { %v2077_v24 = vpop.permute.xlu0 %2076 }
 0xb57   : > { %v2102_v8 = vpop.permute.xlu1 %2101 }
 0xb58   : > { %v2100_v25 = vpop.permute.xlu0 %2099 }
 0xb5b   : > { %v2087_v26 = vpop.permute.xlu1 %2086 }
 0xb5c   : > { %v2061_v11 = vpop.permute.xlu0 %2060 }
 0xb5d   : > { %v2119_v30 = vsel %vm672_vm9, %v2054_v27, %v2061_v11  ;;  %v2281_v11 = vcombine.high %v3161_v10, %v3161_v10 }
 0xb5f   : > { %v2095_v46 = vpop.permute.xlu1 %2094 }
 0xb60   : > { %v2069_v48 = vpop.permute.xlu0 %2068 }
 0xb61   : > { %v2121_v45 = vsel %vm675_vm10, %v2119_v30, %v2069_v48 }
 0xb62   : > { %v2123_v36 = vsel %vm678_vm11, %v2121_v45, %v2077_v24 }
 0xb63   : > { %v2063_v51 = vpop.permute.xlu1 %2062 }
 0xb64   : > { %v2085_v61 = vpop.permute.xlu0 %2084  ;;  %v2120_v32 = vsel %vm672_vm9, %v4337_v50, %v2063_v51 }
 0xb65   : > { %v2125_v13 = vsel %vm681_vm12, %v2123_v36, %v2085_v61 }
 0xb67   : > { %v2071_v33 = vpop.permute.xlu1 %2070 }
 0xb68   : > { %v2122_v3 = vsel %vm675_vm10, %v2120_v32, %v2071_v33  ;;  %v2093_v37 = vpop.permute.xlu0 %2092 }
 0xb69   : > { %v2124_v35 = vsel %vm678_vm11, %v2122_v3, %v2079_v23  ;;  %v2127_v38 = vsel %vm684_vm13, %v2125_v13, %v2093_v37  ;;  %v3162_v23 = vld [vmem:[%s4596_s8 + $0x2] ss:$0 sm:$0xff] }
 0xb6a   : > { %v2126_v31 = vsel %vm681_vm12, %v2124_v35, %v2087_v26  ;;  %v2129_v41 = vsel %vm687_vm14, %v2127_v38, %v2100_v25  ;;  %v2293_v27 = vcombine.high %v3162_v23, %v3162_v23 }
 0xb6b   : > { %v2128_v16 = vsel %vm684_vm13, %v2126_v31, %v2095_v46  ;;  %v2109_v14 = vpop.permute.xlu1 %2108 }
 0xb6c   : > { %v2107_v40 = vpop.permute.xlu0 %2106  ;;  %v2130_v50 = vsel %vm687_vm14, %v2128_v16, %v2102_v8 }
 0xb6d   : > { %v2131_v43 = vsel %vm690_vm15, %v2129_v41, %v2107_v40  ;;  %v2132_v49 = vsel %vm690_vm15, %v2130_v50, %v2109_v14  ;;  %v2284_v40 = vmul.f32 %v2281_v11, %v4213_v52  ;;  %v2283_v50 = vmul.f32 %v3161_v10, %v4209_v54 }
 0xb6f   : > { %v2116_v42 = vpop.permute.xlu1 %2115 }
 0xb70   : > { %v2114_v47 = vpop.permute.xlu0 %2113  ;;  %v2134_v22 = vsel %vm693_vm0, %v2132_v49, %v2116_v42  ;;  %v2296_v42 = vadd.f32 %v2293_v27, %v2284_v40 }
 0xb71   : > { %v2133_v29 = vsel %vm693_vm0, %v2131_v43, %v2114_v47  ;;  %v2295_v43 = vadd.f32 %v3162_v23, %v2283_v50  ;;  %v2286_v47 = vmul.f32 %v2281_v11, %v4206_v53 }
 0xb72   : > { %3391 = vmatprep.mubr.msk.f32.mxu1 %vm702_vm1, %v2133_v29 }
 0xb73   : > { %3392 = vmatmul.mubr.msk.f32.vlgmr.msra.gmra.mrb[6].mxu1 %vm702_vm1, %v2134_v22  ;;  %v2400_v29 = vcombine.low %v2295_v43, %v2296_v42  ;;  %v2285_v22 = vmul.f32 %v4202_v28, %v3161_v10 }
 0xc46   : > { %v3393_v57 = vpop.f32.mrb[6].mxu1 }
 0xc47   : > { %v2219_v58 = vadd.f32 %v3393_v57, %v3158_v60  ;;  %v2213_v62 = vpop.f32.mrb[7].mxu1 }
 0xc48   : > { %v2214_v63 = vadd.f32 %v3158_v60, %v2213_v62  ;;  %v2298_v60 = vadd.f32 %v2293_v27, %v2286_v47 }
 0xc49   : > { %v2223_v0 = vmul.f32 0.1, %v2219_v58 }
 0xc4a   : > { %v2222_v1 = vmul.f32 0.1, %v2214_v63 }
 0xc4b   : > { %3563 = vtanh.f32 %v2223_v0  ;;  %v2255_v32 = vcombine.high %v2223_v0, %v2223_v0 }
 0xc4c   : > { %3565 = vtanh.f32 %v2222_v1  ;;  %v2254_v8 = vcombine.high %v2222_v1, %v2222_v1 }
 0xc55   : > { %v3564_v2 = vpop.eup %3563 }
 0xc56   : > { %v3566_v4 = vpop.eup %3565  ;;  %v4430_v5 = vmul.f32 2.0, %v3564_v2  ;;  %v3175_v2 = vld [vmem:[%s4592_s4 + $0x3] ss:$0 sm:$0xff] }
 0xc57   : > { %v4432_v39 = vmul.f32 2.0, %v3566_v4 }
 0xc58   : > { %v2230_v6 = vmul.f32 1.442695, %v4430_v5 }
 0xc59   : > { %v2228_v7 = vmul.f32 1.442695, %v4432_v39 }
 0xc5b   : > { %3567 = vpow2.f32 %v2228_v7 }
 0xc5c   : > { %3569 = vpow2.f32 %v2230_v6 }
 0xc65   : > { %v3568_v12 = vpop.eup %3567 }
 0xc66   : > { %2236 = vrot.lane.b32.xlu0 %v3568_v12, %s4643_s22  ;;  %v2234_v9 = vcombine.high %v3568_v12, %v3568_v12  ;;  %v3570_v34 = vpop.eup %3569 }
 0xc67   : > { %v2235_v17 = vcombine.high %v3570_v34, %v3570_v34 }
 0xc68   : > { %2238 = vrot.lane.b32.xlu1 %v2234_v9, %s4643_s22 }
 0xc6a   : > { %2240 = vrot.lane.b32.xlu0 %v3570_v34, %s4643_s22 }
 0xc6c   : > { %2242 = vrot.lane.b32.xlu1 %v2235_v17, %s4643_s22 }
 0xcd8   : > { %v2237_v18 = vpop.permute.xlu0 %2236 }
 0xcd9   : > { %v2248_v20 = vmul.f32 %v2237_v18, %v4209_v54  ;;  %v3167_v54 = vld [vmem:[%s4591_s3 + $0xf8] sm:$0xff] }
 0xcda   : > { %v2239_v21 = vpop.permute.xlu1 %2238  ;;  %3404 = vmatprep.subr.mxu1 %v3167_v54 }
 0xcdb   : > { %v2258_v24 = vadd.f32 %v2248_v20, %v2222_v1  ;;  %v2249_v25 = vmul.f32 %v2239_v21, %v4213_v52  ;;  %v2297_v52 = vadd.f32 %v3162_v23, %v2285_v22  ;;  %3405 = vmatpush3.msra.mxu1 %v3167_v54  ;;  %v3169_v1 = vld [vmem:[%s4593_s5 + $0xf8] sm:$0xff] }
 0xcdc   : > { %v2241_v26 = vpop.permute.xlu0 %2240 }
 0xcdd   : > { %v2299_v46 = vmul.f32 %v3161_v10, %v2258_v24  ;;  %v2259_v48 = vadd.f32 %v2254_v8, %v2249_v25  ;;  %v2250_v51 = vmul.f32 %v4202_v28, %v2241_v26  ;;  %v2401_v57 = vcombine.low %v2297_v52, %v2298_v60 }
 0xcde   : > { %v2243_v61 = vpop.permute.xlu1 %2242 }
 0xcdf   : > { %v2300_v30 = vmul.f32 %v2281_v11, %v2259_v48  ;;  %v2260_v45 = vadd.f32 %v2250_v51, %v2223_v0  ;;  %v2251_v33 = vmul.f32 %v2243_v61, %v4206_v53  ;;  %v2303_v35 = vadd.f32 %v3162_v23, %v2299_v46  ;;  %v3174_v61 = vld [vmem:[%s4597_s9 + $0x38] sm:$0xff] }
 0xce0   : > { %3414 = vmatprep.subr.mxu1 %v3174_v61 }
 0xce1   : > { %v2301_v3 = vmul.f32 %v3161_v10, %v2260_v45  ;;  %v2261_v37 = vadd.f32 %v2255_v32, %v2251_v33  ;;  %v2304_v36 = vadd.f32 %v2300_v30, %v2293_v27  ;;  %v3173_v45 = vld [vmem:[%s4597_s9 + $0x30] sm:$0xff]  ;;  %v3181_v33 = vld [vmem:[%s4595_s7 + $0x3] ss:$0 sm:$0xff] }
 0xce3   : > { %v2302_v31 = vmul.f32 %v2281_v11, %v2261_v37  ;;  %v2311_v13 = vcombine.low %v2303_v35, %v2304_v36  ;;  %v2305_v16 = vadd.f32 %v3162_v23, %v2301_v3  ;;  %v3182_v37 = vld [vmem:[%s4596_s8 + $0x3] ss:$0 sm:$0xff] }
 0xce4   : > { %v2750_v50 = vcombine.high %v3182_v37, %v3182_v37 }
 0xce5   : > { %2313 = vrot.lane.b32.xlu0 %v2311_v13, %s4648_s24  ;;  %v2306_v14 = vadd.f32 %v2302_v31, %v2293_v27 }
 0xce7   : > { %v2312_v38 = vcombine.low %v2305_v16, %v2306_v14  ;;  %v2738_v16 = vcombine.high %v3181_v33, %v3181_v33 }
 0xce9   : > { %2315 = vrot.lane.b32.xlu1 %v2312_v38, %s4648_s24 }
 0xd57   : > { %v2314_v41 = vpop.permute.xlu0 %2313 }
 0xd58   : > { %3396 = vmatprep.mubr.msk.f32.mxu0 %vm672_vm9, %v2314_v41 }
 0xd5b   : > { %v2316_v49 = vpop.permute.xlu1 %2315 }
 0xd5c   : > { %3397 = vmatmul.mubr.msk.f32.vlgmr.msra.gmra.mrb[12].mxu0 %vm672_vm9, %v2316_v49 }
 0xd5d   : > { %3400 = vmatpush3.msra.mxu0 %v3137_v19  ;;  %3401 = vmatprep.mubr.msk.f32.mxu0 %vm672_vm9, %v2400_v29 }
 0xd5e   : > { %3409 = vmatprep.subr.mxu0 %v3169_v1 }
 0xd64   : > { %3402 = vmatmul.mubr.msk.f32.vlgmr.msra.gmra.mrb[12].mxu0 %vm672_vm9, %v2401_v57 }
 0xd65   : > { %3410 = vmatpush3.msra.mxu0 %v3169_v1 }
 0xe37   : > { %v4469_v53 = vpop.f32.mrb[12].mxu0 }
 0xe38   : > { %v4473_v28 = vcombine.high %v4469_v53, %v4469_v53  ;;  %v4475_v58 = vpop.f32.mrb[13].mxu0 }
 0xe39   : > { %v4479_v62 = vcombine.high %v4475_v58, %v4475_v58 }
 0xe3a   : > { %v2510_v0 = vcombine.low %v4469_v53, %v4473_v28 }
 0xe3b   : > { %v2509_v63 = vcombine.low %v4475_v58, %v4479_v62 }
 0xe3d   : > { %3406 = vmatprep.mubr.msk.f32.mxu1 %vm672_vm9, %v2509_v63 }
 0xe3e   : > { %3407 = vmatmul.mubr.msk.f32.vlgmr.msra.gmra.mrb[8].mxu1 %vm672_vm9, %v2510_v0 }
 0xe3f   : > { %3415 = vmatpush3.msra.mxu1 %v3174_v61 }
 0xe40   : > { %3419 = vmatprep.subr.mxu1 %v3173_v45 }
 0xf11   : > { %v3408_v4 = vpop.f32.mrb[8].mxu1 }
 0xf12   : > { %v2587_v6 = vadd.f32 %v3408_v4, %v3175_v2  ;;  %v2581_v7 = vpop.f32.mrb[9].mxu1  ;;  %v1511_v4 = vsel %vm672_vm9, %v4168_v44, 0.0 }
 0xf13   : > { %v2582_v12 = vadd.f32 %v3175_v2, %v2581_v7  ;;  %v1054_v2 = vsel %vm672_vm9, %v4105_v56, 0.0  ;;  %v1057_v7 = vsel %vm672_vm9, %v4103_v55, 0.0  ;;  %v2262_v56 = vsel %vm672_vm9, %v4432_v39, 0.0 }
 0xf14   : > { %v2591_v34 = vmax.f32 %v2587_v6, 0.0  ;;  %v1514_v6 = vsel %vm672_vm9, %v4166_v59, 0.0  ;;  %v2741_v59 = vmul.f32 %v2738_v16, %v4479_v62 }
 0xf15   : > { %v2590_v9 = vmax.f32 %v2582_v12, 0.0  ;;  %v2265_v12 = vsel %vm672_vm9, %v4430_v5, 0.0 }
 0xf17   : > { %3411 = vmatprep.mubr.msk.f32.mxu0 %vm672_vm9, %v2590_v9 }
 0xf18   : > { %3412 = vmatmul.mubr.msk.f32.vlgmr.msra.gmra.mrb[14].mxu0 %vm672_vm9, %v2591_v34  ;;  %v2740_v34 = vmul.f32 %v3181_v33, %v4475_v58 }
 0xf1a   : > { %v2752_v5 = vadd.f32 %v3182_v37, %v2740_v34 }
 0xfeb   : > { %v3413_v17 = vpop.f32.mrb[14].mxu0 }
 0xfec   : > { %v2676_v18 = vadd.f32 %v3413_v17, %v3178_v15  ;;  %v2670_v19 = vpop.f32.mrb[15].mxu0  ;;  %v2743_v17 = vmul.f32 %v2738_v16, %v4473_v28 }
 0xfed   : > { %v2671_v20 = vadd.f32 %v3178_v15, %v2670_v19  ;;  %v2753_v15 = vadd.f32 %v2750_v50, %v2741_v59  ;;  %v2742_v19 = vmul.f32 %v4469_v53, %v3181_v33 }
 0xfee   : > { %v2680_v10 = vmul.f32 0.1, %v2676_v18 }
 0xfef   : > { %v2679_v21 = vmul.f32 0.1, %v2671_v20  ;;  %v2857_v39 = vcombine.low %v2752_v5, %v2753_v15  ;;  %v2755_v20 = vadd.f32 %v2750_v50, %v2743_v17 }
 0xff0   : > { %3571 = vtanh.f32 %v2680_v10  ;;  %v2712_v47 = vcombine.high %v2680_v10, %v2680_v10 }
 0xff1   : > { %3573 = vtanh.f32 %v2679_v21  ;;  %v2711_v36 = vcombine.high %v2679_v21, %v2679_v21 }
 0xffa   : > { %v3572_v23 = vpop.eup %3571 }
 0xffb   : > { %v3574_v24 = vpop.eup %3573  ;;  %v2684_v8 = vmul.f32 2.0, %v3572_v23 }
 0xffc   : > { %v2683_v25 = vmul.f32 2.0, %v3574_v24 }
 0xffd   : > { %v2687_v26 = vmul.f32 1.442695, %v2684_v8  ;;  %v2722_v9 = vsel %vm672_vm9, %v2684_v8, 0.0 }
 0xffe   : > { %v2685_v11 = vmul.f32 1.442695, %v2683_v25  ;;  %v2719_v44 = vsel %vm672_vm9, %v2683_v25, 0.0 }
0x1000   : > { %3575 = vpow2.f32 %v2685_v11 }
0x1001   : > { %3577 = vpow2.f32 %v2687_v26 }
0x100a   : > { %v3576_v46 = vpop.eup %3575 }
0x100b   : > { %2693 = vrot.lane.b32.xlu0 %v3576_v46, %s4643_s22  ;;  %v2691_v48 = vcombine.high %v3576_v46, %v3576_v46  ;;  %v3578_v51 = vpop.eup %3577 }
0x100c   : > { %v2692_v27 = vcombine.high %v3578_v51, %v3578_v51 }
0x100d   : > { %2695 = vrot.lane.b32.xlu1 %v2691_v48, %s4643_s22 }
0x100f   : > { %2697 = vrot.lane.b32.xlu0 %v3578_v51, %s4643_s22 }
0x1011   : > { %2699 = vrot.lane.b32.xlu1 %v2692_v27, %s4643_s22 }
0x107d   : > { %v2694_v30 = vpop.permute.xlu0 %2693 }
0x107e   : > { %v2705_v32 = vmul.f32 %v2694_v30, %v4475_v58 }
0x107f   : > { %v2696_v3 = vpop.permute.xlu1 %2695 }
0x1080   : > { %v2715_v35 = vadd.f32 %v2705_v32, %v2679_v21  ;;  %v2706_v31 = vmul.f32 %v2696_v3, %v4479_v62  ;;  %v2754_v62 = vadd.f32 %v3182_v37, %v2742_v19 }
0x1081   : > { %v2698_v13 = vpop.permute.xlu0 %2697 }
0x1082   : > { %v2756_v14 = vmul.f32 %v3181_v33, %v2715_v35  ;;  %v2716_v38 = vadd.f32 %v2711_v36, %v2706_v31  ;;  %v2707_v40 = vmul.f32 %v4469_v53, %v2698_v13 }
0x1083   : > { %v2700_v41 = vpop.permute.xlu1 %2699 }
0x1084   : > { %v2757_v42 = vmul.f32 %v2738_v16, %v2716_v38  ;;  %v2717_v43 = vadd.f32 %v2707_v40, %v2680_v10  ;;  %v2708_v49 = vmul.f32 %v2700_v41, %v4473_v28  ;;  %v2760_v60 = vadd.f32 %v3182_v37, %v2756_v14 }
0x1085   : > { %v2858_v10 = vcombine.low %v2754_v62, %v2755_v20 }
0x1086   : > { %v2758_v29 = vmul.f32 %v3181_v33, %v2717_v43  ;;  %v2718_v22 = vadd.f32 %v2712_v47, %v2708_v49  ;;  %v2761_v52 = vadd.f32 %v2757_v42, %v2750_v50 }
0x1088   : > { %v2759_v57 = vmul.f32 %v2738_v16, %v2718_v22  ;;  %v2768_v54 = vcombine.low %v2760_v60, %v2761_v52  ;;  %v2762_v63 = vadd.f32 %v3182_v37, %v2758_v29 }
0x108a   : > { %2770 = vrot.lane.b32.xlu0 %v2768_v54, %s4648_s24  ;;  %v2763_v0 = vadd.f32 %v2759_v57, %v2750_v50 }
0x108c   : > { %v2769_v1 = vcombine.low %v2762_v63, %v2763_v0 }
0x108e   : > { %2772 = vrot.lane.b32.xlu1 %v2769_v1, %s4648_s24  ;;  %s385_s24 = sand.u32 1, %s3633_s18  }
0x108f   : > { %s386_s26 = scalar_lea.vmem [#allocation2], %s385_s24  ;;  %s2958_s14 = scalar_lea.sflag [#allocation3], %s385_s24 }
0x1090   : > { %s2973_s30 = sshll.u32 %s386_s26, 4  ;;  %s2974_s30 = int_to_ptr.vmem [resolvable:$true] %s2973_s30 }
0x1091   : > { %s3579_s16 = scalar_lea.vmem %s2974_s30, 16  ;;  %p3586_p0 = scmp.lt.s32.totalorder %s2974_s30, %s3584_s2 }
0x1092   : > { %p3580_p11 = scmp.ne.s32.totalorder %s2974_s30, %s3579_s16  ;;  %p3587_p1 = scmp.lt.s32.totalorder %s3585_s25, %s3579_s16 }
0x1094   : > { %p3581_p12 = pnand %p3580_p11, %p3752_p5  ;;  %p3588_p2 = por %p3587_p1, %p3586_p0 }
0x1096   : > { %p3582_p13 = pneg %p3581_p12 }
0x1098   : > { %p3589_p3 = pnand %p3588_p2, %p3582_p13 }
0x10a9   : > { %1055 = vadd.xlane.f32.xlu0 %v1054_v2 }
0x10ad   : > { %1512 = vadd.xlane.f32.xlu0 %v1511_v4 }
0x10b1   : > { %1515 = vadd.xlane.f32.xlu0 %v1514_v6 }
0x10b2   : > { %1058 = vadd.xlane.f32.xlu1 %v1057_v7 }
0x10b5   : > { %2266 = vadd.xlane.f32.xlu0 %v2265_v12 }
0x10b6   : > { %2263 = vadd.xlane.f32.xlu1 %v2262_v56 }
0x10b9   : > { %2723 = vadd.xlane.f32.xlu0 %v2722_v9 }
0x10ba   : > { %2720 = vadd.xlane.f32.xlu1 %v2719_v44 }
0x10fc   : > { %v2771_v55 = vpop.permute.xlu0 %2770 }
0x10fd   : > { %3416 = vmatprep.mubr.msk.f32.mxu1 %vm672_vm9, %v2771_v55 }
0x1100   : > { %v2773_v18 = vpop.permute.xlu1 %2772 }
0x1101   : > { %3417 = vmatmul.mubr.msk.f32.vlgmr.msra.gmra.mrb[10].mxu1 %vm672_vm9, %v2773_v18 }
0x1102   : > { %3420 = vmatpush3.msra.mxu1 %v3173_v45  ;;  %3421 = vmatprep.mubr.msk.f32.mxu1 %vm672_vm9, %v2857_v39 }
0x1109   : > { %3422 = vmatmul.mubr.msk.f32.vlgmr.msra.gmra.mrb[10].mxu1 %vm672_vm9, %v2858_v10 }
0x1136   : > { %v1056_v58 = vpop.xlane.xlu0 %1055 }
0x113a   : > { %v1513_v21 = vpop.xlane.xlu0 %1512 }
0x113e   : > { %v1516_v23 = vpop.xlane.xlu0 %1515 }
0x113f   : > { %v1517_v24 = vadd.f32 %v1516_v23, %v1513_v21  ;;  %v1059_v8 = vpop.xlane.xlu1 %1058 }
0x1140   : > { %v1060_v28 = vadd.f32 %v1059_v8, %v1056_v58 }
0x1141   : > { %v1518_v25 = vrot.slane %v1517_v24, 4 }
0x1142   : > { %v1061_v26 = vrot.slane %v1060_v28, 4  ;;  %v2267_v11 = vpop.xlane.xlu0 %2266 }
0x1143   : > { %v1519_v53 = vadd.f32 %v1518_v25, %v1517_v24  ;;  %v2264_v46 = vpop.xlane.xlu1 %2263 }
0x1144   : > { %v1062_v48 = vadd.f32 %v1061_v26, %v1060_v28  ;;  %v2268_v51 = vadd.f32 %v2267_v11, %v2264_v46 }
0x1145   : > { %v1520_v27 = vrot.slane %v1519_v53, 2 }
0x1146   : > { %v1063_v61 = vrot.slane %v1062_v48, 2  ;;  %v2269_v30 = vrot.slane %v2268_v51, 4  ;;  %v2724_v45 = vpop.xlane.xlu0 %2723 }
0x1147   : > { %v1521_v32 = vadd.f32 %v1520_v27, %v1519_v53  ;;  %v2721_v33 = vpop.xlane.xlu1 %2720 }
0x1148   : > { %v1064_v3 = vadd.f32 %v1063_v61, %v1062_v48  ;;  %v2270_v37 = vadd.f32 %v2269_v30, %v2268_v51  ;;  %v2725_v35 = vadd.f32 %v2724_v45, %v2721_v33 }
0x1149   : > { %v1522_v36 = vrot.slane %v1521_v32, 1 }
0x114a   : > { %v1065_v31 = vrot.slane %v1064_v3, 1  ;;  %v2271_v13 = vrot.slane %v2270_v37, 2  ;;  %v2726_v16 = vrot.slane %v2725_v35, 4 }
0x114b   : > { %v1523_v40 = vadd.f32 %v1522_v36, %v1521_v32 }
0x114c   : > { %v2272_v14 = vadd.f32 %v2271_v13, %v2270_v37  ;;  %v2727_v38 = vadd.f32 %v2726_v16, %v2725_v35  ;;  %v1066_v50 = vadd.f32 %v1065_v31, %v1064_v3 }
0x114e   : > { %v2273_v41 = vrot.slane %v2272_v14, 1  ;;  %v2728_v42 = vrot.slane %v2727_v38, 2  ;;  %v1736_v49 = vadd.f32 %v1523_v40, %v1066_v50 }
0x1150   : > { %v2274_v43 = vadd.f32 %v2273_v41, %v2272_v14  ;;  %v2729_v47 = vadd.f32 %v2728_v42, %v2727_v38 }
0x1152   : > { %v2730_v29 = vrot.slane %v2729_v47, 1  ;;  %v2487_v22 = vadd.f32 %v2274_v43, %v1736_v49 }
0x1154   : > { %v2731_v60 = vadd.f32 %v2730_v29, %v2729_v47 }
0x1156   : > { %v2938_v52 = vadd.f32 %v2731_v60, %v2487_v22 }
0x1158   : > { %2951 = vst.msk [vmem:[%s386_s26] sm:$0x1] %vm2950_vm2, %v2938_v52 }
0x1159   : > { %3592 = shalt.err (!%p3589_p3)
}
0x115a   : > { %s3593_s21 = scalar_lea.hbm %s4547_s23, 16  ;;  %s3597_s13 = scalar_lea.hbm %s4599_s11, 32 }
0x115b   : > { %p3594_p4 = scmp.ne.s32.totalorder %s4547_s23, %s3593_s21  ;;  %p3598_p9 = scmp.lt.u32.totalorder %s4547_s23, %s4599_s11 }
0x115c   : > { %p3599_p10 = scmp.lt.u32.totalorder %s3597_s13, %s3593_s21  ;;  %p3601_p12 = scmp.lt.u32.totalorder %s3593_s21, %s4547_s23 }
0x115d   : > { %p3595_p7 = pnand %p3594_p4, %p3752_p5 }
0x115e   : > { %p3600_p11 = por %p3599_p10, %p3598_p9 }
0x115f   : > { %p3596_p8 = pneg %p3595_p7 }
0x1160   : > { %p3602_p13 = por %p3601_p12, %p3600_p11 }
0x1162   : > { %p3603_p0 = pnand %p3602_p13, %p3596_p8 }
0x1164   : > { %3606 = shalt.err (!%p3603_p0)
}
0x1165   : > { %3496 = dma.vmem_to_hbm [thread:$0]  (%p3752_p5), %s2974_s30, 16, %s4547_s23, %s2958_s14   ;;  %vm2945_vm3 = vcmask 125952  }
0x1166   : > { %s4650_s24 = sshll.u32 %s3769_s12, 4 }
0x1167   : > { %s396_s17 = scalar_lea.vmem %s4598_s10, %s4650_s24 }
0x11dc   : > { %v3423_v57 = vpop.f32.mrb[10].mxu1 }
0x11dd   : > { %v2942_v54 = vcombine.high %v3423_v57, %v3423_v57  ;;  %2948 = vst.msk [vmem:[%s396_s17 + $0x8] sm:$0xf] %vm2945_vm3, %v3423_v57  ;;  %v2929_v63 = vpop.f32.mrb[11].mxu1 }
0x11de   : > { %v2941_v0 = vcombine.high %v2929_v63, %v2929_v63  ;;  %2946 = vst.msk [vmem:[%s396_s17] sm:$0xf] %vm2945_vm3, %v2929_v63 }
0x11df   : > { %2949 = vst.msk [vmem:[%s396_s17 + $0xc] sm:$0xf] %vm2945_vm3, %v2942_v54 }
0x11e0   : > { %2947 = vst.msk [vmem:[%s396_s17 + $0x4] sm:$0xf] %vm2945_vm3, %v2941_v0 }
0x11e1 PF: > { %s4651_s27 = sld [smem:[#allocation5_spill]]  ;;  %p3502_p1 = scmp.ge.s32.totalorder %s3641_s20, 2 }
0x11e3   : > { %p3499_p5 = pnand %p3502_p1, %p3756_p6 }
0x11e7   : > { %s2993_s23 = sand.u32 1, %s4651_s27  }
0x11e8   : > { %s2994_s12 = scalar_lea.sflag [#allocation3], %s2993_s23 }
0x11e9   : > { %3624 = dma.done.wait (!%p3499_p5), %s2994_s12, 16  }
0x11ea   : > { %3626 = vsyncadd (!%p3499_p5), %s2994_s12, 4294967280  ;;  %s4653_s20 = sld [smem:[#allocation7_spill]]  ;;  %s4654_s30 = sld [smem:[#allocation6_spill]] }
0x11eb   : > { %s4655_s19 = sld [smem:[#allocation8_spill]]  ;;  %s4656_s17 = smov %s3633_s18 }
0x11f0   : > { %p22_p2 = scmp.ge.s32.totalorder %s4653_s20, 4   ;;  %s4657_s18 = smov %s4654_s30 }
0x11f2   :  { %24 = sbr.rel (!%p22_p2) target bundleno = 7 (0x7), region = 128 }
0x11f9   :  { %2998 = vsyncpa [#allocation3], 1 }
0x11fa   :  { %3000 = vsyncpa [#allocation3 + $0x1], 1 }

// kernel: _lambda_.3
= control target key start
LH: loop header
LB: loop body
LE: loop exit
PB: predicated region body
PF: predicated region fallthrough
CT: control target
= control target key end

     0   :  { %s9559_s0 = inlined_call_operand.vmem [shape: f32[2,8,8,3], index: 0, kind: input, shape index: {}]   ;;  %s9560_s1 = inlined_call_operand.vmem [shape: f32[2,8,8,2], index: 1, kind: input, shape index: {}]   ;;  %s9561_s2 = inlined_call_operand.vmem [shape: f32[2,4,4,8], index: 2, kind: input, shape index: {}]   ;;  %s9562_s3 = inlined_call_operand.vmem [shape: f32[3,8], index: 3, kind: input, shape index: {}]   ;;  %s9563_s4 = inlined_call_operand.vmem [shape: f32[1,8], index: 4, kind: input, shape index: {}]   ;;  %s9564_s5 = inlined_call_operand.vmem [shape: f32[4,45,5], index: 5, kind: input, shape index: {}]   ;;  %s9565_s6 = inlined_call_operand.vmem [shape: f32[4,1,5], index: 6, kind: input, shape index: {}]   ;;  %s9566_s7 = inlined_call_operand.vmem [shape: f32[4,45,10], index: 7, kind: input, shape index: {}]   ;;  %s9567_s8 = inlined_call_operand.vmem [shape: f32[4,1,10], index: 8, kind: input, shape index: {}, may-alias: {8,10}]   ;;  %s9568_s9 = inlined_call_operand.vmem [shape: f32[4,1,10], index: 9, kind: input, shape index: {}]   ;;  %s9569_s10 = inlined_call_operand.vmem [shape: f32[4,1,10], index: 10, kind: input, shape index: {}, may-alias: {8,10}]   ;;  %s9570_s11 = inlined_call_operand.vmem [shape: f32[4,10,10], index: 11, kind: input, shape index: {}]   ;;  %s9571_s12 = inlined_call_operand.vmem [shape: f32[32,8], index: 12, kind: input, shape index: {}]   ;;  %s9572_s13 = inlined_call_operand.vmem [shape: f32[8,32], index: 13, kind: input, shape index: {}]   ;;  %s9573_s14 = inlined_call_operand.vmem [shape: f32[32,4], index: 14, kind: input, shape index: {}]   ;;  %s9574_s15 = inlined_call_operand.vmem [shape: f32[4,32], index: 15, kind: input, shape index: {}]   ;;  %s9575_s16 = inlined_call_operand.hbm [shape: f32[2,8,8,10], index: 16, kind: output, shape index: {0}]   ;;  %s9576_s17 = inlined_call_operand.hbm [shape: f32[2,32,32], index: 17, kind: output, shape index: {1}]   ;;  %s9577_s18 = inlined_call_operand.hbm [shape: f32[2,1,1], index: 18, kind: output, shape index: {2}]  }
   0x1   :  { %9614 = sst [smem:[#allocation16_spill]] %s9559_s0 }
   0x2   :  { %9615 = sst [smem:[#allocation17_spill]] %s9560_s1 }
   0x3   :  { %9616 = sst [smem:[#allocation18_spill]] %s9561_s2 }
   0x4   :  { %9617 = sst [smem:[#allocation19_spill]] %s9562_s3 }
   0x5   :  { %9618 = sst [smem:[#allocation20_spill]] %s9563_s4 }
   0x6   :  { %9619 = sst [smem:[#allocation21_spill]] %s9564_s5 }
   0x7   :  { %9620 = sst [smem:[#allocation22_spill]] %s9575_s16 }
   0x8   :  { %9621 = sst [smem:[#allocation23_spill]] %s9576_s17 }
   0x9   :  { %9622 = sst [smem:[#allocation24_spill]] %s9577_s18 }
   0xa   :  { %24 = vsyncpa [#allocation3], 0 }
   0xb   :  { %26 = vsyncpa [#allocation3 + $0x1], 0 }
   0xc   :  { %27 = vsyncpa [#allocation5], 0 }
   0xd   :  { %29 = vsyncpa [#allocation5 + $0x1], 0  ;;  %s7270_s27 = smov 0   ;;  %s7272_s28 = smov 0  }
   0xe   :  { %s7274_s29 = smov 0   ;;  %s7276_s30 = smov 0  }
   0xf LB: > { %9623 = sst [smem:[#allocation9_spill]] %s7144_s27  ;;  %s7291_s0 = sadd.s32 4294967295, %s7156_s30   ;;  %s7156_s30 = sphi %s7276_s30, %s9667_s30   ;;  %s7152_s29 = sphi %s7274_s29, %s9669_s29   ;;  %s7148_s28 = sphi %s7272_s28, %s9671_s28   ;;  %s7144_s27 = sphi %s7270_s27, %s9670_s27  }
  0x10   : > { %9624 = sst [smem:[#allocation10_spill]] %s7152_s29  ;;  %s9578_s19 = sadd.s32 4294967294, %s7156_s30  }
  0x11   : > { %9625 = sst [smem:[#allocation11_spill]] %s7156_s30  ;;  %s7295_s1 = sadd.s32 1, %s7156_s30  }
  0x12   : > { %9626 = sst [smem:[#allocation12_spill]] %s7295_s1  ;;  %s393_s20 = sadd.s32 1, %s7152_s29 }
  0x13   : > { %s390_s21 = ssub.s32 %s7156_s30, %s7295_s1  ;;  %p403_p0 = scmp.ne.s32.totalorder %s7152_s29, %s7148_s28 }
  0x14   : > { %p391_p1 = scmp.eq.s32.totalorder %s390_s21, 0  ;;  %p404_p2 = scmp.eq.s32.totalorder %s7291_s0, 1 }
  0x15   : > { %p409_p3 = scmp.ne.s32.totalorder %s7148_s28, %s7144_s27  ;;  %p410_p4 = scmp.eq.s32.totalorder %s9578_s19, 1 }
  0x16   : > { %s7308_s22 = scalar_select %p391_p1, %s7152_s29, %s393_s20  }
  0x17   : > { %p7310_p5 = por %p404_p2, %p403_p0  ;;  %p7314_p6 = por %p410_p4, %p409_p3 }
  0x18   : > { %9627 = sst [smem:[#allocation13_spill]] %s7308_s22  ;;  %p6017_p7 = scmp.ge.s32.totalorder %s7156_s30, 1 }
  0x19   : > { %s9629_s23 = scalar_select %p7314_p6, 1, 0 }
  0x1a   : > { %p543_p8 = scmp.lt.s32.totalorder %s7156_s30, 3 }
  0x1b   : > { %9630 = sst [smem:[#allocation14_spill]] %s9629_s23 }
  0x1c   : > { %p544_p9 = pnand %p6017_p7, %p543_p8 }
  0x1e   : > { %547 = sbr.rel (%p544_p9) target bundleno = 5456 (0x1550), region = 84 }
  0x25   : > { %s9631_s3 = sld [smem:[#allocation19_spill]]  ;;  %vm672_vm0 = vcmask 1042432   ;;  %p616_p10 = scmp.lt.s32.totalorder %s7291_s0, 1  ;;  %vm647_vm1 = vcmask 23552   ;;  %v9609_v10 = vmov 0.0   ;;  %vm875_vm2 = vcmask 1040384  }
  0x26   : > { %s9632_s22 = sld [smem:[#allocation16_spill]]  ;;  %s9633_s1 = sld [smem:[#allocation17_spill]]  ;;  %v857_v11 = vrot.slane %v9609_v10, 7  ;;  %vm910_vm3 = vcmask 1046528   ;;  %vm935_vm4 = vcmask 1045504   ;;  %vm9604_vm5 = vcmask 64512  }
  0x27   : > { %s7327_s26 = scalar_select %p616_p10, %s7291_s0, 1  ;;  %vm1263_vm6 = vcmask 1044480   ;;  %vm7168_vm7 = vmmov 1   ;;  %vm1160_vm9 = vcmask 39936   ;;  %vm1169_vm10 = vcmask 80896  }
  0x28   : > { %s9582_s19 = smov 8   ;;  %v7364_v16 = vsel %vm875_vm2, 0.0, %v857_v11  ;;  %v885_v17 = vsel %vm875_vm2, %v857_v11, 0.0  ;;  %s9634_s4 = sld [smem:[#allocation20_spill]]  ;;  %vm7522_vm8 = vmpackc.low %vm1263_vm6, %vm7168_vm7  ;;  %vm1178_vm11 = vcmask 121856   ;;  %vm1187_vm12 = vcmask 162816  }
  0x29   : > { %s6255_s20 = sshll.u32 %s7327_s26, 6  ;;  %v911_v20 = vrot.slane %v7364_v16, 1  ;;  %v912_v21 = vrot.slane %v885_v17, 1  ;;  %v936_v24 = vrot.slane %v7364_v16, 2  ;;  %v937_v25 = vrot.slane %v885_v17, 2  ;;  %s9598_s24 = smov 15  }
  0x2a   : > { %s9596_s25 = smov 20   ;;  %s9584_s21 = smov 40   ;;  %vm1196_vm13 = vcmask 203776   ;;  %vm1205_vm14 = vcmask 244736   ;;  %vm1214_vm15 = vcmask 285696   ;;  %vm1238_vm7 = vcmask 367616  }
  0x2b   : > { %v639_v0 = vld [vmem:[%s9631_s3] sm:$0x7]  ;;  %v913_v23 = vsel %vm910_vm3, %v911_v20, %v912_v21  ;;  %v7385_v26 = vsel %vm935_vm4, %v936_v24, %v937_v25  ;;  %s9635_s5 = sld [smem:[#allocation21_spill]]  ;;  %s9644_s23 = smov 10  }
  0x2c   : > { %6447 = vmatprep.subr.msk.mxu0 %vm672_vm0, %v639_v0  ;;  %s7333_s29 = scalar_lea.vmem %s9632_s22, %s6255_s20  ;;  %s7338_s3 = scalar_lea.vmem %s9633_s1, %s6255_s20 }
  0x2d   : > { %6448 = vmatpush3.msk.msra.mxu0 %vm672_vm0, %v639_v0  ;;  %v631_v1 = vld [vmem:[%s7333_s29] sm:$0xff]  ;;  %v632_v2 = vld [vmem:[%s7333_s29 + $0x8] sm:$0xff]  ;;  %v633_v3 = vld [vmem:[%s7333_s29 + $0x10] sm:$0xff]  ;;  %s9586_s1 = smov 5   ;;  %s9594_s22 = smov 10  }
  0x2e   : > { %6449 = vmatprep.mubr.msk.f32.mxu0 %vm647_vm1, %v631_v1  ;;  %v781_v4 = vld [vmem:[%s7338_s3] sm:$0xff]  ;;  %v634_v5 = vld [vmem:[%s7333_s29 + $0x18] sm:$0xff]  ;;  %v783_v6 = vld [vmem:[%s7338_s3 + $0x10] sm:$0xff]  ;;  %s9588_s20 = smov 25   ;;  %s9605_s30 = smov 123  }
  0x2f   : > { %6450 = vmatmul.mubr.msk.f32.vlgmr.msra.gmra.mrb[0].mxu0 %vm647_vm1, %v632_v2  ;;  %797 = vrot.lane.b32.xlu0 %v781_v4, %s9582_s19  ;;  %v635_v7 = vld [vmem:[%s7333_s29 + $0x20] sm:$0xff]  ;;  %v782_v8 = vld [vmem:[%s7338_s3 + $0x8] sm:$0xff]  ;;  %v784_v9 = vld [vmem:[%s7338_s3 + $0x18] sm:$0xff]  ;;  %s7171_s18 = smov [#allocation2]  }
  0x30   : > { %6452 = vmatprep.mubr.msk.f32.mxu0 %vm647_vm1, %v633_v3  ;;  %801 = vrot.lane.b32.xlu1 %v783_v6, %s9582_s19  ;;  %v636_v12 = vld [vmem:[%s7333_s29 + $0x28] sm:$0xff]  ;;  %v637_v13 = vld [vmem:[%s7333_s29 + $0x30] sm:$0xff]  ;;  %v785_v14 = vld [vmem:[%s7338_s3 + $0x20] sm:$0xff]  ;;  %s7038_s17 = sshll.u32 %s7171_s18, 4  ;;  %s7039_s17 = int_to_ptr.vmem [resolvable:$false] %s7038_s17 }
  0x31   : > { %v786_v15 = vld [vmem:[%s7338_s3 + $0x28] sm:$0xff]  ;;  %v638_v18 = vld [vmem:[%s7333_s29 + $0x38] sm:$0xff]  ;;  %v787_v19 = vld [vmem:[%s7338_s3 + $0x30] sm:$0xff]  ;;  %s9590_s29 = smov 30   ;;  %s7040_s27 = scalar_lea.vmem %s7039_s17, 2048 }
  0x32   : > { %v788_v22 = vld [vmem:[%s7338_s3 + $0x38] sm:$0xff]  ;;  %s9592_s3 = smov 35   ;;  %v7392_v28 = vld [vmem:[%s9634_s4] ss:$0 sm:$0xff] }
  0x33   : > { %6453 = vmatmul.mubr.msk.f32.gmra.mrb[2].mxu0 %vm647_vm1, %v634_v5  ;;  %799 = vrot.lane.b32.xlu0 %v782_v8, %s9582_s19 }
  0x34   : > { %6455 = vmatprep.mubr.msk.f32.mxu0 %vm647_vm1, %v635_v7  ;;  %803 = vrot.lane.b32.xlu1 %v784_v9, %s9582_s19 }
  0x37   : > { %6456 = vmatmul.mubr.msk.f32.gmra.mrb[4].mxu0 %vm647_vm1, %v636_v12  ;;  %805 = vrot.lane.b32.xlu0 %v785_v14, %s9582_s19 }
  0x38   : > { %6458 = vmatprep.mubr.msk.f32.mxu0 %vm647_vm1, %v637_v13  ;;  %807 = vrot.lane.b32.xlu1 %v786_v15, %s9582_s19 }
  0x3b   : > { %6459 = vmatmul.mubr.msk.f32.gmra.mrb[6].mxu0 %vm647_vm1, %v638_v18  ;;  %809 = vrot.lane.b32.xlu0 %v787_v19, %s9582_s19  ;;  %vm1223_vm1 = vcmask 326656  }
  0x3c   : > { %811 = vrot.lane.b32.xlu1 %v788_v22, %s9582_s19  ;;  %s9639_s19 = smov 30  }
  0x3f   : > { %968 = vrot.lane.b32.xlu0 %v913_v23, %s9586_s1 }
  0x40   : > { %1102 = vrot.lane.b32.xlu1 %v7364_v16, %s9590_s29 }
  0x43   : > { %992 = vrot.lane.b32.xlu0 %v7385_v26, %s9594_s22 }
  0x44   : > { %1126 = vrot.lane.b32.xlu1 %v913_v23, %s9592_s3 }
  0xa1   : > { %v798_v27 = vpop.permute.xlu0 %797 }
  0xa2   : > { %v802_v39 = vpop.permute.xlu1 %801 }
  0xa5   : > { %v800_v30 = vpop.permute.xlu0 %799 }
  0xa6   : > { %v804_v52 = vpop.permute.xlu1 %803 }
  0xaa   : > { %v808_v25 = vpop.permute.xlu1 %807 }
 0x102   : > { %v6451_v29 = vpop.f32.mrb[0].mxu0 }
 0x103   : > { %v748_v31 = vadd.f32 %v6451_v29, %v7392_v28  ;;  %v742_v32 = vpop.f32.mrb[1].mxu0 }
 0x104   : > { %v743_v33 = vadd.f32 %v7392_v28, %v742_v32  ;;  %v806_v32 = vpop.permute.xlu0 %805 }
 0x105   : > { %v7397_v34 = vsel %vm9604_vm5, %v748_v31, %v800_v30  ;;  %v830_v30 = vld [vmem:[%s9635_s5] sm:$0xff]  ;;  %v831_v31 = vld [vmem:[%s9635_s5 + $0x8] sm:$0xff] }
 0x106   : > { %v7400_v35 = vsel %vm9604_vm5, %v743_v33, %v798_v27  ;;  %v859_v36 = vrot.slane %v7397_v34, 7  ;;  %v6454_v37 = vpop.f32.mrb[2].mxu0  ;;  %v6751_v33 = vpack.c.bf16 %v831_v31, %v830_v30 }
 0x107   : > { %v858_v38 = vrot.slane %v7400_v35, 7  ;;  %v752_v40 = vpop.f32.mrb[3].mxu0  ;;  %v758_v48 = vadd.f32 %v6454_v37, %v7392_v28  ;;  %v832_v37 = vld [vmem:[%s9635_s5 + $0x10] sm:$0xff] }
 0x108   : > { %v887_v41 = vsel %vm875_vm2, %v859_v36, 0.0  ;;  %v7406_v42 = vsel %vm875_vm2, 0.0, %v859_v36  ;;  %v753_v57 = vadd.f32 %v7392_v28, %v752_v40  ;;  %6752 = vmatprep.subr.bf16.mxu1 %v6751_v33 }
 0x109   : > { %1018 = vrot.lane.b32.xlu1 %v7406_v42, %s9598_s24  ;;  %v7411_v43 = vsel %vm875_vm2, 0.0, %v858_v38  ;;  %v917_v44 = vrot.slane %v7406_v42, 1  ;;  %v918_v45 = vrot.slane %v887_v41, 1  ;;  %v942_v50 = vrot.slane %v7406_v42, 2  ;;  %6754 = vmatpush3.bf16.msra.mxu1 %v6751_v33 }
 0x10a   : > { %1016 = vrot.lane.b32.xlu0 %v7411_v43, %s9598_s24  ;;  %v6457_v46 = vpop.f32.mrb[4].mxu0  ;;  %v943_v51 = vrot.slane %v887_v41, 2  ;;  %v886_v53 = vsel %vm875_vm2, %v858_v38, 0.0  ;;  %v7426_v56 = vsel %vm9604_vm5, %v758_v48, %v804_v52  ;;  %v914_v59 = vrot.slane %v7411_v43, 1  ;;  %v833_v38 = vld [vmem:[%s9635_s5 + $0x18] sm:$0xff] }
 0x10b   : > { %v7416_v47 = vpop.f32.mrb[5].mxu0  ;;  %v919_v49 = vsel %vm910_vm3, %v917_v44, %v918_v45  ;;  %v915_v60 = vrot.slane %v886_v53, 1  ;;  %v861_v63 = vrot.slane %v7426_v56, 7  ;;  %v7441_v0 = vsel %vm9604_vm5, %v753_v57, %v802_v39  ;;  %v834_v45 = vld [vmem:[%s9635_s5 + $0x20] sm:$0xff] }
 0x10c   : > { %v944_v58 = vsel %vm935_vm4, %v942_v50, %v943_v51  ;;  %v860_v2 = vrot.slane %v7441_v0, 7  ;;  %v939_v12 = vrot.slane %v7411_v43, 2  ;;  %v940_v13 = vrot.slane %v886_v53, 2 }
 0x10d   : > { %1088 = vrot.lane.b32.xlu1 %v7406_v42, %s9590_s29  ;;  %v916_v1 = vsel %vm910_vm3, %v914_v59, %v915_v60  ;;  %v7448_v3 = vsel %vm875_vm2, 0.0, %v861_v63  ;;  %v889_v4 = vsel %vm875_vm2, %v861_v63, 0.0  ;;  %v768_v23 = vadd.f32 %v6457_v46, %v7392_v28  ;;  %v835_v46 = vld [vmem:[%s9635_s5 + $0x28] sm:$0x1f] }
 0x10e   : > { %1042 = vrot.lane.b32.xlu0 %v919_v49, %s9596_s25  ;;  %v6460_v54 = vpop.f32.mrb[6].mxu0  ;;  %v7455_v5 = vsel %vm875_vm2, 0.0, %v860_v2  ;;  %v923_v6 = vrot.slane %v7448_v3, 1  ;;  %v924_v7 = vrot.slane %v889_v4, 1  ;;  %v948_v9 = vrot.slane %v7448_v3, 2 }
 0x10f   : > { %v772_v55 = vpop.f32.mrb[7].mxu0  ;;  %v7434_v61 = vadd.f32 %v6460_v54, %v7392_v28  ;;  %v949_v11 = vrot.slane %v889_v4, 2  ;;  %v888_v14 = vsel %vm875_vm2, %v860_v2, 0.0  ;;  %v941_v17 = vsel %vm935_vm4, %v939_v12, %v940_v13  ;;  %v812_v4 = vpop.permute.xlu1 %811 }
 0x110   : > { %v7437_v62 = vadd.f32 %v7392_v28, %v772_v55  ;;  %v925_v8 = vsel %vm910_vm3, %v923_v6, %v924_v7  ;;  %v920_v18 = vrot.slane %v7455_v5, 1  ;;  %v921_v19 = vrot.slane %v888_v14, 1 }
 0x111   : > { %972 = vrot.lane.b32.xlu1 %v919_v49, %s9586_s1  ;;  %v950_v15 = vsel %vm935_vm4, %v948_v9, %v949_v11  ;;  %v945_v21 = vrot.slane %v7455_v5, 2  ;;  %v946_v22 = vrot.slane %v888_v14, 2  ;;  %v7482_v27 = vsel %vm9604_vm5, %v768_v23, %v808_v25 }
 0x112   : > { %1066 = vrot.lane.b32.xlu0 %v944_v58, %s9588_s20  ;;  %v922_v20 = vsel %vm910_vm3, %v920_v18, %v921_v19  ;;  %v763_v29 = vadd.f32 %v7392_v28, %v7416_v47  ;;  %v863_v36 = vrot.slane %v7482_v27, 7  ;;  %v6755_v39 = vpack.c.bf16 %v833_v38, %v832_v37 }
 0x113   : > { %v947_v24 = vsel %vm935_vm4, %v945_v21, %v946_v22  ;;  %v6759_v47 = vpack.c.bf16 %v835_v46, %v834_v45  ;;  %v7556_v6 = vsel %vm9604_vm5, %v7434_v61, %v812_v4  ;;  %v7593_v25 = vpop.permute.xlu1 %1102 }
 0x114   : > { %v7497_v28 = vsel %vm9604_vm5, %v763_v29, %v806_v32  ;;  %v7509_v41 = vsel %vm875_vm2, 0.0, %v863_v36  ;;  %6756 = vmatprep.subr.bf16.mxu1 %v6755_v39  ;;  %v891_v44 = vsel %vm875_vm2, %v863_v36, 0.0  ;;  %v865_v7 = vrot.slane %v7556_v6, 7 }
 0x115   : > { %996 = vrot.lane.b32.xlu1 %v944_v58, %s9594_s22  ;;  %v862_v40 = vrot.slane %v7497_v28, 7  ;;  %6758 = vmatpush3.bf16.msra.mxu1 %v6755_v39  ;;  %v929_v50 = vrot.slane %v7509_v41, 1  ;;  %v930_v51 = vrot.slane %v891_v44, 1  ;;  %v954_v53 = vrot.slane %v7509_v41, 2 }
 0x116   : > { %1040 = vrot.lane.b32.xlu0 %v916_v1, %s9596_s25  ;;  %6761 = vmatprep.subr.msk.bf16.mxu1 %vm7522_vm8, %v6759_v47  ;;  %v955_v54 = vrot.slane %v891_v44, 2  ;;  %v884_v9 = vsel %vm875_vm2, 0.0, %v865_v7  ;;  %v893_v12 = vsel %vm875_vm2, %v865_v7, 0.0 }
 0x117   : > { %v931_v52 = vsel %vm910_vm3, %v929_v50, %v930_v51  ;;  %v890_v55 = vsel %vm875_vm2, %v862_v40, 0.0  ;;  %v962_v14 = vrot.slane %v884_v9, 1  ;;  %v966_v21 = vrot.slane %v893_v12, 2  ;;  %v7600_v32 = vpop.permute.xlu1 %1126 }
 0x118   : > { %v956_v57 = vsel %vm935_vm4, %v954_v53, %v955_v54  ;;  %v927_v59 = vrot.slane %v890_v55, 1 }
 0x119   : > { %1112 = vrot.lane.b32.xlu1 %v919_v49, %s9592_s3  ;;  %v7527_v49 = vsel %vm875_vm2, 0.0, %v862_v40  ;;  %6764 = vmatpush3.bf16.msk.msra.mxu1 %vm7522_vm8, %v6759_v47 }
 0x11a   : > { %1022 = vrot.lane.b32.xlu0 %v7448_v3, %s9598_s24  ;;  %v951_v63 = vrot.slane %v7527_v49, 2 }
 0x11d   : > { %1136 = vrot.lane.b32.xlu1 %v944_v58, %s9584_s21  ;;  %s9640_s21 = smov 40   ;;  %v926_v58 = vrot.slane %v7527_v49, 1 }
 0x11e   : > { %1090 = vrot.lane.b32.xlu0 %v7455_v5, %s9590_s29 }
 0x11f   : > { %v928_v60 = vsel %vm910_vm3, %v926_v58, %v927_v59 }
 0x121   : > { %970 = vrot.lane.b32.xlu1 %v916_v1, %s9586_s1  ;;  %v952_v1 = vrot.slane %v890_v55, 2 }
 0x122   : > { %976 = vrot.lane.b32.xlu0 %v925_v8, %s9586_s1 }
 0x123   : > { %v953_v2 = vsel %vm935_vm4, %v951_v63, %v952_v1 }
 0x125   : > { %994 = vrot.lane.b32.xlu1 %v941_v17, %s9594_s22 }
 0x126   : > { %1070 = vrot.lane.b32.xlu0 %v950_v15, %s9588_s20 }
 0x129   : > { %1064 = vrot.lane.b32.xlu1 %v941_v17, %s9588_s20 }
 0x12a   : > { %974 = vrot.lane.b32.xlu0 %v922_v20, %s9586_s1  ;;  %s9641_s1 = smov 5  }
 0x12d   : > { %1092 = vrot.lane.b32.xlu1 %v7448_v3, %s9590_s29  ;;  %s9636_s29 = smov 25  }
 0x12e   : > { %998 = vrot.lane.b32.xlu0 %v947_v24, %s9594_s22 }
 0x131   : > { %1020 = vrot.lane.b32.xlu1 %v7455_v5, %s9598_s24 }
 0x132   : > { %1114 = vrot.lane.b32.xlu0 %v922_v20, %s9592_s3 }
 0x135   : > { %1046 = vrot.lane.b32.xlu1 %v925_v8, %s9596_s25 }
 0x136   : > { %1068 = vrot.lane.b32.xlu0 %v947_v24, %s9636_s29 }
 0x139   : > { %1000 = vrot.lane.b32.xlu1 %v950_v15, %s9594_s22 }
 0x13a   : > { %1026 = vrot.lane.b32.xlu0 %v7509_v41, %s9598_s24 }
 0x13d   : > { %1116 = vrot.lane.b32.xlu1 %v925_v8, %s9592_s3  ;;  %v810_v8 = vpop.permute.xlu0 %809 }
 0x13e   : > { %1094 = vrot.lane.b32.xlu0 %v7527_v49, %s9639_s19  ;;  %v7567_v11 = vsel %vm9604_vm5, %v7437_v62, %v810_v8  ;;  %vm2339_vm5 = vcmask 1043456  }
 0x13f   : > { %v864_v61 = vrot.slane %v7567_v11, 7 }
 0x141   : > { %1140 = vrot.lane.b32.xlu1 %v950_v15, %s9640_s21  ;;  %v7576_v13 = vsel %vm875_vm2, 0.0, %v864_v61  ;;  %v963_v15 = vrot.slane %v893_v12, 1  ;;  %v892_v17 = vsel %vm875_vm2, %v864_v61, 0.0  ;;  %v969_v30 = vpop.permute.xlu0 %968 }
 0x142   : > { %980 = vrot.lane.b32.xlu0 %v931_v52, %s9641_s1  ;;  %v932_v18 = vrot.slane %v7576_v13, 1  ;;  %v933_v19 = vrot.slane %v892_v17, 1  ;;  %v957_v23 = vrot.slane %v7576_v13, 2  ;;  %v1161_v54 = vsel %vm1160_vm9, %v7364_v16, %v969_v30 }
 0x143   : > { %v964_v62 = vsel %vm910_vm3, %v962_v14, %v963_v15 }
 0x144   : > { %v934_v22 = vsel %vm910_vm3, %v932_v18, %v933_v19 }
 0x145   : > { %1044 = vrot.lane.b32.xlu1 %v922_v20, %s9596_s25  ;;  %v965_v20 = vrot.slane %v884_v9, 2  ;;  %v993_v33 = vpop.permute.xlu0 %992 }
 0x146   : > { %1074 = vrot.lane.b32.xlu0 %v956_v57, %s9636_s29  ;;  %v7615_v55 = vsel %vm1169_vm10, %v1161_v54, %v993_v33 }
 0x147   : > { %v967_v29 = vsel %vm935_vm4, %v965_v20, %v966_v21 }
 0x149   : > { %1138 = vrot.lane.b32.xlu1 %v947_v24, %s9640_s21  ;;  %v958_v24 = vrot.slane %v892_v17, 2 }
 0x14a   : > { %978 = vrot.lane.b32.xlu0 %v928_v60, %s9641_s1 }
 0x14b   : > { %v959_v31 = vsel %vm935_vm4, %v957_v23, %v958_v24 }
 0x14d   : > { %1096 = vrot.lane.b32.xlu1 %v7509_v41, %s9639_s19 }
 0x14e   : > { %1002 = vrot.lane.b32.xlu0 %v953_v2, %s9594_s22 }
 0x151   : > { %1024 = vrot.lane.b32.xlu1 %v7527_v49, %s9598_s24 }
 0x152   : > { %1118 = vrot.lane.b32.xlu0 %v928_v60, %s9592_s3 }
 0x155   : > { %1050 = vrot.lane.b32.xlu1 %v931_v52, %s9596_s25 }
 0x156   : > { %1072 = vrot.lane.b32.xlu0 %v953_v2, %s9636_s29 }
 0x159   : > { %1004 = vrot.lane.b32.xlu1 %v956_v57, %s9594_s22 }
 0x15a   : > { %1030 = vrot.lane.b32.xlu0 %v884_v9, %s9598_s24 }
 0x15d   : > { %1120 = vrot.lane.b32.xlu1 %v931_v52, %s9592_s3 }
 0x15e   : > { %1100 = vrot.lane.b32.xlu0 %v884_v9, %s9639_s19 }
 0x161   : > { %1144 = vrot.lane.b32.xlu1 %v956_v57, %s9640_s21 }
 0x162   : > { %1098 = vrot.lane.b32.xlu0 %v7576_v13, %s9639_s19 }
 0x165   : > { %1048 = vrot.lane.b32.xlu1 %v928_v60, %s9596_s25 }
 0x166   : > { %1054 = vrot.lane.b32.xlu0 %v964_v62, %s9596_s25 }
 0x169   : > { %1142 = vrot.lane.b32.xlu1 %v953_v2, %s9640_s21 }
 0x16a   : > { %1124 = vrot.lane.b32.xlu0 %v964_v62, %s9592_s3 }
 0x16d   : > { %1028 = vrot.lane.b32.xlu1 %v7576_v13, %s9598_s24 }
 0x16e   : > { %982 = vrot.lane.b32.xlu0 %v934_v22, %s9641_s1 }
 0x171   : > { %1078 = vrot.lane.b32.xlu1 %v967_v29, %s9636_s29 }
 0x172   : > { %1006 = vrot.lane.b32.xlu0 %v959_v31, %s9594_s22 }
 0x175   : > { %1052 = vrot.lane.b32.xlu1 %v934_v22, %s9596_s25 }
 0x176   : > { %1122 = vrot.lane.b32.xlu0 %v934_v22, %s9592_s3  ;;  %s9642_s3 = smov 35  }
 0x179   : > { %1076 = vrot.lane.b32.xlu1 %v959_v31, %s9636_s29 }
 0x17a   : > { %1146 = vrot.lane.b32.xlu0 %v959_v31, %s9640_s21 }
 0x17b   : > { %v1019_v36 = vpop.permute.xlu1 %1018 }
 0x17c   : > { %v1017_v37 = vpop.permute.xlu0 %1016 }
 0x17d   : > { %1150 = vrot.lane.b32.xlu1 %v7385_v26, %s9640_s21  ;;  %v1179_v59 = vsel %vm1178_vm11, %v7615_v55, %v1017_v37 }
 0x17e   : > { %1148 = vrot.lane.b32.xlu0 %v967_v29, %s9640_s21 }
 0x17f   : > { %v1089_v38 = vpop.permute.xlu1 %1088 }
 0x180   : > { %v1043_v39 = vpop.permute.xlu0 %1042 }
 0x183   : > { %v973_v40 = vpop.permute.xlu1 %972 }
 0x184   : > { %v1067_v44 = vpop.permute.xlu0 %1066  ;;  %v1163_v30 = vsel %vm1160_vm9, %v7406_v42, %v973_v40 }
 0x187   : > { %v997_v45 = vpop.permute.xlu1 %996 }
 0x188   : > { %v1041_v46 = vpop.permute.xlu0 %1040  ;;  %v1172_v31 = vsel %vm1169_vm10, %v1163_v30, %v997_v45 }
 0x189   : > { %v1188_v60 = vsel %vm1187_vm12, %v1179_v59, %v1041_v46 }
 0x18b   : > { %v1113_v47 = vpop.permute.xlu1 %1112 }
 0x18c   : > { %v7608_v50 = vpop.permute.xlu0 %1022 }
 0x18f   : > { %v1137_v51 = vpop.permute.xlu1 %1136 }
 0x190   : > { %v1091_v52 = vpop.permute.xlu0 %1090 }
 0x193   : > { %v971_v53 = vpop.permute.xlu1 %970 }
 0x194   : > { %v7612_v26 = vpop.permute.xlu0 %976  ;;  %v1162_v18 = vsel %vm1160_vm9, %v7411_v43, %v971_v53 }
 0x197   : > { %v995_v57 = vpop.permute.xlu1 %994 }
 0x198   : > { %v7617_v58 = vpop.permute.xlu0 %1070  ;;  %v1171_v19 = vsel %vm1169_vm10, %v1162_v18, %v995_v57  ;;  %v1165_v18 = vsel %vm1160_vm9, %v7448_v3, %v7612_v26 }
 0x199   : > { %v1180_v22 = vsel %vm1178_vm11, %v1171_v19, %v1019_v36 }
 0x19a   : > { %v1189_v24 = vsel %vm1187_vm12, %v1180_v22, %v1043_v39 }
 0x19b   : > { %v1065_v63 = vpop.permute.xlu1 %1064  ;;  %v1198_v43 = vsel %vm1196_vm13, %v1189_v24, %v1067_v44 }
 0x19c   : > { %v1197_v16 = vsel %vm1196_vm13, %v1188_v60, %v1065_v63  ;;  %v975_v1 = vpop.permute.xlu0 %974  ;;  %v1207_v39 = vsel %vm1205_vm14, %v1198_v43, %v1091_v52 }
 0x19d   : > { %v1206_v2 = vsel %vm1205_vm14, %v1197_v16, %v1089_v38 }
 0x19e   : > { %v1215_v4 = vsel %vm1214_vm15, %v1206_v2, %v1113_v47 }
 0x19f   : > { %v1093_v7 = vpop.permute.xlu1 %1092  ;;  %v1224_v8 = vsel %vm1223_vm1, %v1215_v4, %v1137_v51 }
 0x1a0   : > { %v999_v9 = vpop.permute.xlu0 %998  ;;  %6473 = vmatprep.mubr.msk.f32.mxu1 %vm1238_vm7, %v1224_v8  ;;  %v1164_v8 = vsel %vm1160_vm9, %v7455_v5, %v975_v1 }
 0x1a3   : > { %v1021_v61 = vpop.permute.xlu1 %1020 }
 0x1a4   : > { %v1115_v12 = vpop.permute.xlu0 %1114  ;;  %v1181_v33 = vsel %vm1178_vm11, %v1172_v31, %v1021_v61  ;;  %v1173_v61 = vsel %vm1169_vm10, %v1164_v8, %v999_v9 }
 0x1a5   : > { %v1216_v51 = vsel %vm1214_vm15, %v1207_v39, %v1115_v12  ;;  %v1182_v19 = vsel %vm1178_vm11, %v1173_v61, %v7608_v50 }
 0x1a7   : > { %v1047_v14 = vpop.permute.xlu1 %1046 }
 0x1a8   : > { %v1069_v15 = vpop.permute.xlu0 %1068 }
 0x1ab   : > { %v1001_v62 = vpop.permute.xlu1 %1000 }
 0x1ac   : > { %v7627_v17 = vpop.permute.xlu0 %1026  ;;  %v1174_v22 = vsel %vm1169_vm10, %v1165_v18, %v1001_v62 }
 0x1af   : > { %v1117_v20 = vpop.permute.xlu1 %1116 }
 0x1b0   : > { %v1095_v21 = vpop.permute.xlu0 %1094 }
 0x1b3   : > { %v1141_v23 = vpop.permute.xlu1 %1140 }
 0x1b4   : > { %v7634_v29 = vpop.permute.xlu0 %980 }
 0x1b7   : > { %v1045_v37 = vpop.permute.xlu1 %1044 }
 0x1b8   : > { %v1190_v38 = vsel %vm1187_vm12, %v1181_v33, %v1045_v37  ;;  %v7642_v46 = vpop.permute.xlu0 %1074 }
 0x1b9   : > { %v1199_v36 = vsel %vm1196_vm13, %v1190_v38, %v1069_v15 }
 0x1ba   : > { %v1208_v47 = vsel %vm1205_vm14, %v1199_v36, %v1093_v7 }
 0x1bb   : > { %v1139_v42 = vpop.permute.xlu1 %1138  ;;  %v1217_v40 = vsel %vm1214_vm15, %v1208_v47, %v1117_v20  ;;  %v1191_v20 = vsel %vm1187_vm12, %v1182_v19, %v1047_v14  ;;  %v7717_v19 = vld [vmem:[%s9565_s6] ss:$0 sm:$0xff] }
 0x1bc   : > { %v1225_v45 = vsel %vm1223_vm1, %v1216_v51, %v1139_v42  ;;  %v979_v53 = vpop.permute.xlu0 %978  ;;  %v1226_v44 = vsel %vm1223_vm1, %v1217_v40, %v1141_v23  ;;  %v1200_v9 = vsel %vm1196_vm13, %v1191_v20, %v7617_v58 }
 0x1bd   : > { %6474 = vmatmul.mubr.msk.f32.vlgmr.msra.gmra.mrb[0].mxu1 %vm1238_vm7, %v1225_v45  ;;  %v1209_v3 = vsel %vm1205_vm14, %v1200_v9, %v1095_v21  ;;  %v1166_v21 = vsel %vm1160_vm9, %v7527_v49, %v979_v53  ;;  %v1167_v49 = vsel %vm1160_vm9, %v7509_v41, %v7634_v29 }
 0x1be   : > { %6476 = vmatprep.mubr.msk.f32.mxu1 %vm1238_vm7, %v1226_v44 }
 0x1bf   : > { %v1097_v54 = vpop.permute.xlu1 %1096 }
 0x1c0   : > { %v1003_v57 = vpop.permute.xlu0 %1002 }
 0x1c1   : > { %v1175_v38 = vsel %vm1169_vm10, %v1166_v21, %v1003_v57 }
 0x1c2   : > { %v1184_v42 = vsel %vm1178_vm11, %v1175_v38, %v7627_v17 }
 0x1c3   : > { %v1025_v59 = vpop.permute.xlu1 %1024 }
 0x1c4   : > { %v1119_v52 = vpop.permute.xlu0 %1118  ;;  %v1183_v23 = vsel %vm1178_vm11, %v1174_v22, %v1025_v59 }
 0x1c5   : > { %v1218_v50 = vsel %vm1214_vm15, %v1209_v3, %v1119_v52 }
 0x1c7   : > { %v1051_v60 = vpop.permute.xlu1 %1050 }
 0x1c8   : > { %v1073_v63 = vpop.permute.xlu0 %1072  ;;  %v1193_v45 = vsel %vm1187_vm12, %v1184_v42, %v1051_v60 }
 0x1c9   : > { %v1202_v57 = vsel %vm1196_vm13, %v1193_v45, %v7642_v46 }
 0x1cb   : > { %v1005_v16 = vpop.permute.xlu1 %1004 }
 0x1cc   : > { %v1031_v2 = vpop.permute.xlu0 %1030 }
 0x1cf   : > { %v1121_v4 = vpop.permute.xlu1 %1120 }
 0x1d0   : > { %v1101_v7 = vpop.permute.xlu0 %1100 }
 0x1d3   : > { %v1145_v12 = vpop.permute.xlu1 %1144 }
 0x1d4   : > { %v1099_v15 = vpop.permute.xlu0 %1098 }
 0x1d5   : > { %v1211_v17 = vsel %vm1205_vm14, %v1202_v57, %v1099_v15 }
 0x1d7   : > { %v1049_v24 = vpop.permute.xlu1 %1048 }
 0x1d8   : > { %v1192_v5 = vsel %vm1187_vm12, %v1183_v23, %v1049_v24  ;;  %v1055_v1 = vpop.permute.xlu0 %1054 }
 0x1d9   : > { %v1201_v30 = vsel %vm1196_vm13, %v1192_v5, %v1073_v63 }
 0x1da   : > { %v1210_v26 = vsel %vm1205_vm14, %v1201_v30, %v1097_v54 }
 0x1db   : > { %v1143_v14 = vpop.permute.xlu1 %1142  ;;  %v1219_v62 = vsel %vm1214_vm15, %v1210_v26, %v1121_v4 }
 0x1dc   : > { %v1227_v31 = vsel %vm1223_vm1, %v1218_v50, %v1143_v14  ;;  %v1125_v33 = vpop.permute.xlu0 %1124  ;;  %v1228_v43 = vsel %vm1223_vm1, %v1219_v62, %v1145_v12 }
 0x1dd   : > { %6477 = vmatmul.mubr.msk.f32.gmra.mrb[2].mxu1 %vm1238_vm7, %v1227_v31 }
 0x1de   : > { %6479 = vmatprep.mubr.msk.f32.mxu1 %vm1238_vm7, %v1228_v43 }
 0x1df   : > { %v1029_v58 = vpop.permute.xlu1 %1028 }
 0x1e0   : > { %v983_v37 = vpop.permute.xlu0 %982 }
 0x1e1   : > { %v1168_v39 = vsel %vm1160_vm9, %v7576_v13, %v983_v37  ;;  %v1176_v13 = vsel %vm1169_vm10, %v1167_v49, %v1005_v16 }
 0x1e2   : > { %v1185_v59 = vsel %vm1178_vm11, %v1176_v13, %v1029_v58 }
 0x1e3   : > { %v1079_v36 = vpop.permute.xlu1 %1078 }
 0x1e4   : > { %v1007_v47 = vpop.permute.xlu0 %1006 }
 0x1e5   : > { %v1177_v51 = vsel %vm1169_vm10, %v1168_v39, %v1007_v47 }
 0x1e6   : > { %v1186_v40 = vsel %vm1178_vm11, %v1177_v51, %v1031_v2 }
 0x1e7   : > { %v1053_v44 = vpop.permute.xlu1 %1052  ;;  %v1195_v53 = vsel %vm1187_vm12, %v1186_v40, %v1055_v1 }
 0x1e8   : > { %v1123_v54 = vpop.permute.xlu0 %1122  ;;  %v1204_v52 = vsel %vm1196_vm13, %v1195_v53, %v1079_v36  ;;  %v1194_v60 = vsel %vm1187_vm12, %v1185_v59, %v1053_v44 }
 0x1e9   : > { %v1220_v2 = vsel %vm1214_vm15, %v1211_v17, %v1123_v54  ;;  %v1213_v46 = vsel %vm1205_vm14, %v1204_v52, %v7593_v25 }
 0x1ea   : > { %v1222_v18 = vsel %vm1214_vm15, %v1213_v46, %v7600_v32  ;;  %v839_v46 = vld [vmem:[%s9566_s7 + $0x10] sm:$0xff] }
 0x1eb   : > { %v1077_v63 = vpop.permute.xlu1 %1076 }
 0x1ec   : > { %v1203_v41 = vsel %vm1196_vm13, %v1194_v60, %v1077_v63  ;;  %v1147_v29 = vpop.permute.xlu0 %1146  ;;  %v837_v63 = vld [vmem:[%s9566_s7] sm:$0xff] }
 0x1ed   : > { %v1212_v4 = vsel %vm1205_vm14, %v1203_v41, %v1101_v7  ;;  %v1229_v16 = vsel %vm1223_vm1, %v1220_v2, %v1147_v29  ;;  %v838_v2 = vld [vmem:[%s9566_s7 + $0x8] sm:$0xff] }
 0x1ee   : > { %6480 = vmatmul.mubr.msk.f32.gmra.mrb[4].mxu1 %vm1238_vm7, %v1229_v16  ;;  %v1221_v12 = vsel %vm1214_vm15, %v1212_v4, %v1125_v33  ;;  %v6765_v41 = vpack.c.bf16 %v838_v2, %v837_v63 }
 0x1ef   : > { %v7704_v8 = vpop.permute.xlu1 %1150 }
 0x1f0   : > { %v1149_v61 = vpop.permute.xlu0 %1148  ;;  %v1231_v7 = vsel %vm1223_vm1, %v1222_v18, %v7704_v8  ;;  %6766 = vmatprep.subr.bf16.mxu0 %v6765_v41 }
 0x1f1   : > { %v1230_v15 = vsel %vm1223_vm1, %v1221_v12, %v1149_v61  ;;  %6768 = vmatpush3.bf16.msra.mxu0 %v6765_v41  ;;  %v840_v61 = vld [vmem:[%s9566_s7 + $0x18] sm:$0xff] }
 0x1f2   : > { %6482 = vmatprep.mubr.msk.f32.mxu1 %vm1238_vm7, %v1230_v15  ;;  %v6769_v15 = vpack.c.bf16 %v840_v61, %v839_v46 }
 0x1f3   : > { %6483 = vmatmul.mubr.msk.f32.gmra.mrb[6].mxu1 %vm1238_vm7, %v1231_v7 }
 0x1f4   : > { %6770 = vmatprep.subr.bf16.mxu0 %v6769_v15 }
 0x1f5   : > { %6772 = vmatpush3.bf16.msra.mxu0 %v6769_v15 }
 0x290   : > { %v6475_v20 = vpop.f32.mrb[0].mxu1 }
 0x291   : > { %v1339_v22 = vadd.f32 %v6475_v20, %v7717_v19  ;;  %v1333_v23 = vpop.f32.mrb[1].mxu1 }
 0x292   : > { %v1334_v24 = vadd.f32 %v7717_v19, %v1333_v23 }
 0x293   : > { %v1373_v5 = vmax.f32 %v1339_v22, 0.0 }
 0x294   : > { %v1372_v1 = vmax.f32 %v1334_v24, 0.0 }
 0x295   : > { %v1389_v9 = vrot.slane %v1373_v5, 7 }
 0x296   : > { %v1388_v30 = vrot.slane %v1372_v1, 7  ;;  %v841_v1 = vld [vmem:[%s9566_s7 + $0x20] sm:$0xff] }
 0x297   : > { %v7722_v3 = vsel %vm875_vm2, 0.0, %v1389_v9  ;;  %v1413_v26 = vsel %vm875_vm2, %v1389_v9, 0.0  ;;  %v842_v9 = vld [vmem:[%s9566_s7 + $0x28] sm:$0x1f] }
 0x298   : > { %v1438_v50 = vrot.slane %v1413_v26, 1  ;;  %1528 = vrot.lane.b32.xlu1 %v7722_v3, %s9598_s24  ;;  %v7728_v14 = vsel %vm875_vm2, 0.0, %v1388_v30  ;;  %v1437_v62 = vrot.slane %v7722_v3, 1  ;;  %v1459_v31 = vrot.slane %v1413_v26, 2 }
 0x299   : > { %1526 = vrot.lane.b32.xlu0 %v7728_v14, %s9598_s24  ;;  %v1458_v43 = vrot.slane %v7722_v3, 2  ;;  %v1412_v58 = vsel %vm875_vm2, %v1388_v30, 0.0  ;;  %v1434_v38 = vrot.slane %v7728_v14, 1  ;;  %v1455_v47 = vrot.slane %v7728_v14, 2 }
 0x29a   : > { %v1439_v33 = vsel %vm910_vm3, %v1437_v62, %v1438_v50  ;;  %v1435_v37 = vrot.slane %v1412_v58, 1  ;;  %v1456_v39 = vrot.slane %v1412_v58, 2  ;;  %v6773_v30 = vpack.c.bf16 %v842_v9, %v841_v1 }
 0x29b   : > { %v1460_v21 = vsel %vm935_vm4, %v1458_v43, %v1459_v31 }
 0x29c   : > { %1598 = vrot.lane.b32.xlu1 %v7722_v3, %s9639_s19  ;;  %v1436_v36 = vsel %vm910_vm3, %v1434_v38, %v1435_v37  ;;  %v1457_v51 = vsel %vm935_vm4, %v1455_v47, %v1456_v39  ;;  %6775 = vmatprep.subr.msk.bf16.mxu0 %vm7522_vm8, %v6773_v30 }
 0x29d   : > { %1552 = vrot.lane.b32.xlu0 %v1439_v33, %s9596_s25  ;;  %6778 = vmatpush3.bf16.msk.msra.mxu0 %vm7522_vm8, %v6773_v30 }
 0x2a0   : > { %1486 = vrot.lane.b32.xlu1 %v1439_v33, %s9641_s1 }
 0x2a1   : > { %1576 = vrot.lane.b32.xlu0 %v1460_v21, %s9636_s29 }
 0x2a4   : > { %1507 = vrot.lane.b32.xlu1 %v1460_v21, %s9594_s22 }
 0x2a5   : > { %1484 = vrot.lane.b32.xlu0 %v1436_v36, %s9641_s1 }
 0x2a8   : > { %1619 = vrot.lane.b32.xlu1 %v1439_v33, %s9642_s3 }
 0x2a9   : > { %1550 = vrot.lane.b32.xlu0 %v1436_v36, %s9596_s25 }
 0x2ac   : > { %1640 = vrot.lane.b32.xlu1 %v1460_v21, %s9640_s21 }
 0x2b0   : > { %1505 = vrot.lane.b32.xlu1 %v1457_v51, %s9594_s22  ;;  %v6478_v42 = vpop.f32.mrb[2].mxu1  ;;  %s9645_s22 = smov 15  }
 0x2b1   : > { %v1349_v40 = vadd.f32 %v6478_v42, %v7717_v19  ;;  %v1343_v45 = vpop.f32.mrb[3].mxu1 }
 0x2b2   : > { %v1344_v44 = vadd.f32 %v7717_v19, %v1343_v45 }
 0x2b3   : > { %v1375_v49 = vmax.f32 %v1349_v40, 0.0 }
 0x2b4   : > { %v1374_v53 = vmax.f32 %v1344_v44, 0.0  ;;  %1574 = vrot.lane.b32.xlu1 %v1457_v51, %s9636_s29 }
 0x2b5   : > { %v1391_v54 = vrot.slane %v1375_v49, 7 }
 0x2b6   : > { %v1390_v57 = vrot.slane %v1374_v53, 7 }
 0x2b7   : > { %v7756_v13 = vsel %vm875_vm2, 0.0, %v1391_v54  ;;  %v1415_v59 = vsel %vm875_vm2, %v1391_v54, 0.0 }
 0x2b8   : > { %1602 = vrot.lane.b32.xlu1 %v7756_v13, %s9639_s19  ;;  %1532 = vrot.lane.b32.xlu0 %v7756_v13, %s9598_s24  ;;  %v1444_v17 = vrot.slane %v1415_v59, 1  ;;  %v7764_v52 = vsel %vm875_vm2, 0.0, %v1390_v57  ;;  %v1443_v60 = vrot.slane %v7756_v13, 1  ;;  %v1465_v29 = vrot.slane %v1415_v59, 2 }
 0x2b9   : > { %v1464_v16 = vrot.slane %v7756_v13, 2  ;;  %v1414_v12 = vsel %vm875_vm2, %v1390_v57, 0.0  ;;  %v1440_v5 = vrot.slane %v7764_v52, 1  ;;  %v1461_v43 = vrot.slane %v7764_v52, 2 }
 0x2ba   : > { %v1445_v4 = vsel %vm910_vm3, %v1443_v60, %v1444_v17  ;;  %v1441_v22 = vrot.slane %v1414_v12, 1  ;;  %v1462_v50 = vrot.slane %v1414_v12, 2 }
 0x2bb   : > { %v1466_v24 = vsel %vm935_vm4, %v1464_v16, %v1465_v29 }
 0x2bc   : > { %1600 = vrot.lane.b32.xlu0 %v7764_v52, %s9639_s19  ;;  %1530 = vrot.lane.b32.xlu1 %v7764_v52, %s9598_s24  ;;  %s9643_s24 = smov 20   ;;  %v1442_v33 = vsel %vm910_vm3, %v1440_v5, %v1441_v22  ;;  %v1463_v37 = vsel %vm935_vm4, %v1461_v43, %v1462_v50 }
 0x2c0   : > { %1490 = vrot.lane.b32.xlu0 %v1445_v4, %s9641_s1  ;;  %1556 = vrot.lane.b32.xlu1 %v1445_v4, %s9643_s24 }
 0x2c1   : > { %v6481_v18 = vpop.f32.mrb[4].mxu1 }
 0x2c2   : > { %v1359_v7 = vadd.f32 %v6481_v18, %v7717_v19  ;;  %v1353_v20 = vpop.f32.mrb[5].mxu1 }
 0x2c3   : > { %v1354_v23 = vadd.f32 %v7717_v19, %v1353_v20 }
 0x2c4   : > { %1580 = vrot.lane.b32.xlu0 %v1466_v24, %s9636_s29  ;;  %1511 = vrot.lane.b32.xlu1 %v1466_v24, %s9644_s23  ;;  %v1377_v21 = vmax.f32 %v1359_v7, 0.0 }
 0x2c5   : > { %v1376_v36 = vmax.f32 %v1354_v23, 0.0 }
 0x2c6   : > { %v6484_v26 = vpop.f32.mrb[6].mxu1  ;;  %v1393_v38 = vrot.slane %v1377_v21, 7 }
 0x2c7   : > { %v1369_v62 = vadd.f32 %v6484_v26, %v7717_v19  ;;  %v1363_v31 = vpop.f32.mrb[7].mxu1  ;;  %v1392_v39 = vrot.slane %v1376_v36, 7 }
 0x2c8   : > { %v1364_v58 = vadd.f32 %v7717_v19, %v1363_v31  ;;  %1623 = vrot.lane.b32.xlu1 %v1445_v4, %s9642_s3  ;;  %1488 = vrot.lane.b32.xlu0 %v1442_v33, %s9641_s1  ;;  %v7818_v19 = vsel %vm875_vm2, 0.0, %v1393_v38  ;;  %v1417_v47 = vsel %vm875_vm2, %v1393_v38, 0.0 }
 0x2c9   : > { %v1450_v51 = vrot.slane %v1417_v47, 1  ;;  %v7826_v42 = vsel %vm875_vm2, 0.0, %v1392_v39  ;;  %v1449_v40 = vrot.slane %v7818_v19, 1  ;;  %v1471_v45 = vrot.slane %v1417_v47, 2 }
 0x2ca   : > { %v1470_v49 = vrot.slane %v7818_v19, 2  ;;  %v1416_v53 = vsel %vm875_vm2, %v1392_v39, 0.0  ;;  %v1446_v59 = vrot.slane %v7826_v42, 1  ;;  %v1467_v63 = vrot.slane %v7826_v42, 2 }
 0x2cb   : > { %v1451_v44 = vsel %vm910_vm3, %v1449_v40, %v1450_v51  ;;  %v1447_v54 = vrot.slane %v1416_v53, 1  ;;  %v1468_v17 = vrot.slane %v1416_v53, 2  ;;  %v1379_v41 = vmax.f32 %v1369_v62, 0.0 }
 0x2cc   : > { %1644 = vrot.lane.b32.xlu1 %v1466_v24, %s9640_s21  ;;  %1509 = vrot.lane.b32.xlu0 %v1463_v37, %s9644_s23  ;;  %v1472_v57 = vsel %vm935_vm4, %v1470_v49, %v1471_v45  ;;  %v1378_v29 = vmax.f32 %v1364_v58, 0.0 }
 0x2cd   : > { %v1448_v60 = vsel %vm910_vm3, %v1446_v59, %v1447_v54  ;;  %v1469_v2 = vsel %vm935_vm4, %v1467_v63, %v1468_v17  ;;  %v1395_v4 = vrot.slane %v1379_v41, 7 }
 0x2ce   : > { %v1394_v16 = vrot.slane %v1378_v29, 7 }
 0x2cf   : > { %v1419_v46 = vsel %vm875_vm2, %v1395_v4, 0.0  ;;  %v1411_v61 = vsel %vm875_vm2, 0.0, %v1395_v4 }
 0x2d0   : > { %1554 = vrot.lane.b32.xlu1 %v1442_v33, %s9643_s24  ;;  %1621 = vrot.lane.b32.xlu0 %v1442_v33, %s9642_s3  ;;  %v1482_v12 = vrot.slane %v1419_v46, 2  ;;  %v7856_v15 = vsel %vm875_vm2, 0.0, %v1394_v16  ;;  %v1481_v18 = vrot.slane %v1411_v61, 2  ;;  %v1418_v7 = vsel %vm875_vm2, %v1394_v16, 0.0 }
 0x2d1   : > { %v1453_v20 = vrot.slane %v1418_v7, 1  ;;  %v1452_v23 = vrot.slane %v7856_v15, 1  ;;  %v1479_v24 = vrot.slane %v1419_v46, 1  ;;  %v1474_v5 = vrot.slane %v1418_v7, 2 }
 0x2d2   : > { %v1483_v22 = vsel %vm935_vm4, %v1481_v18, %v1482_v12  ;;  %v1478_v1 = vrot.slane %v1411_v61, 1  ;;  %v1473_v30 = vrot.slane %v7856_v15, 2 }
 0x2d3   : > { %v1454_v9 = vsel %vm910_vm3, %v1452_v23, %v1453_v20 }
 0x2d4   : > { %1642 = vrot.lane.b32.xlu1 %v1463_v37, %s9640_s21  ;;  %1578 = vrot.lane.b32.xlu0 %v1463_v37, %s9636_s29  ;;  %v1480_v26 = vsel %vm910_vm3, %v1478_v1, %v1479_v24  ;;  %v1475_v50 = vsel %vm935_vm4, %v1473_v30, %v1474_v5 }
 0x2d8   : > { %1606 = vrot.lane.b32.xlu1 %v7818_v19, %s9639_s19  ;;  %1536 = vrot.lane.b32.xlu0 %v7818_v19, %s9645_s22 }
 0x2dc   : > { %1534 = vrot.lane.b32.xlu1 %v7826_v42, %s9645_s22  ;;  %1604 = vrot.lane.b32.xlu0 %v7826_v42, %s9639_s19 }
 0x2e0   : > { %1560 = vrot.lane.b32.xlu1 %v1451_v44, %s9643_s24  ;;  %1494 = vrot.lane.b32.xlu0 %v1451_v44, %s9641_s1 }
 0x2e4   : > { %1515 = vrot.lane.b32.xlu1 %v1472_v57, %s9644_s23  ;;  %1584 = vrot.lane.b32.xlu0 %v1472_v57, %s9636_s29 }
 0x2e8   : > { %1627 = vrot.lane.b32.xlu1 %v1451_v44, %s9642_s3  ;;  %1492 = vrot.lane.b32.xlu0 %v1448_v60, %s9641_s1 }
 0x2ec   : > { %1648 = vrot.lane.b32.xlu1 %v1472_v57, %s9640_s21  ;;  %1513 = vrot.lane.b32.xlu0 %v1469_v2, %s9644_s23 }
 0x2f0   : > { %1558 = vrot.lane.b32.xlu1 %v1448_v60, %s9643_s24  ;;  %1625 = vrot.lane.b32.xlu0 %v1448_v60, %s9642_s3 }
 0x2f4   : > { %1646 = vrot.lane.b32.xlu1 %v1469_v2, %s9640_s21  ;;  %1582 = vrot.lane.b32.xlu0 %v1469_v2, %s9636_s29 }
 0x2f8   : > { %1540 = vrot.lane.b32.xlu0 %v1411_v61, %s9645_s22  ;;  %1538 = vrot.lane.b32.xlu1 %v7856_v15, %s9645_s22 }
 0x2fc   : > { %1610 = vrot.lane.b32.xlu0 %v1411_v61, %s9639_s19  ;;  %1588 = vrot.lane.b32.xlu1 %v1483_v22, %s9636_s29 }
 0x300   : > { %1608 = vrot.lane.b32.xlu0 %v7856_v15, %s9639_s19  ;;  %1562 = vrot.lane.b32.xlu1 %v1454_v9, %s9643_s24 }
 0x304   : > { %1564 = vrot.lane.b32.xlu0 %v1480_v26, %s9643_s24  ;;  %1586 = vrot.lane.b32.xlu1 %v1475_v50, %s9636_s29 }
 0x308   : > { %1631 = vrot.lane.b32.xlu1 %v1480_v26, %s9642_s3  ;;  %1496 = vrot.lane.b32.xlu0 %v1454_v9, %s9641_s1 }
 0x30a   : > { %v1529_v62 = vpop.permute.xlu1 %1528 }
 0x30b   : > { %v1527_v31 = vpop.permute.xlu0 %1526 }
 0x30c   : > { %1517 = vrot.lane.b32.xlu0 %v1475_v50, %s9644_s23  ;;  %v1675_v40 = vsel %vm1178_vm11, %v7615_v55, %v1527_v31 }
 0x30e   : > { %v1599_v33 = vpop.permute.xlu1 %1598 }
 0x30f   : > { %v1553_v43 = vpop.permute.xlu0 %1552 }
 0x310   : > { %1629 = vrot.lane.b32.xlu0 %v1454_v9, %s9642_s3 }
 0x312   : > { %v1487_v58 = vpop.permute.xlu1 %1486 }
 0x313   : > { %v1577_v21 = vpop.permute.xlu0 %1576  ;;  %v1662_v5 = vsel %vm1160_vm9, %v7722_v3, %v1487_v58 }
 0x314   : > { %1650 = vrot.lane.b32.xlu0 %v1475_v50, %s9640_s21 }
 0x316   : > { %v1508_v37 = vpop.permute.xlu1 %1507 }
 0x317   : > { %v1485_v36 = vpop.permute.xlu0 %1484  ;;  %v1669_v1 = vsel %vm1169_vm10, %v1662_v5, %v1508_v37 }
 0x318   : > { %1652 = vrot.lane.b32.xlu0 %v1483_v22, %s9640_s21  ;;  %v1661_v16 = vsel %vm1160_vm9, %v7728_v14, %v1485_v36 }
 0x31a   : > { %v1620_v38 = vpop.permute.xlu1 %1619 }
 0x31b   : > { %v1551_v51 = vpop.permute.xlu0 %1550 }
 0x31c   : > { %v1683_v45 = vsel %vm1187_vm12, %v1675_v40, %v1551_v51 }
 0x31e   : > { %v1641_v39 = vpop.permute.xlu1 %1640 }
 0x322   : > { %v1506_v47 = vpop.permute.xlu1 %1505 }
 0x323   : > { %v1668_v12 = vsel %vm1169_vm10, %v1661_v16, %v1506_v47 }
 0x324   : > { %v1676_v18 = vsel %vm1178_vm11, %v1668_v12, %v1529_v62 }
 0x325   : > { %v1684_v22 = vsel %vm1187_vm12, %v1676_v18, %v1553_v43 }
 0x326   : > { %v1575_v44 = vpop.permute.xlu1 %1574  ;;  %v1692_v9 = vsel %vm1196_vm13, %v1684_v22, %v1577_v21 }
 0x327   : > { %v1691_v49 = vsel %vm1196_vm13, %v1683_v45, %v1575_v44 }
 0x328   : > { %v1699_v53 = vsel %vm1205_vm14, %v1691_v49, %v1599_v33 }
 0x329   : > { %v1707_v54 = vsel %vm1214_vm15, %v1699_v53, %v1620_v38 }
 0x32a   : > { %v1533_v57 = vpop.permute.xlu0 %1532  ;;  %v1603_v59 = vpop.permute.xlu1 %1602  ;;  %v1715_v17 = vsel %vm1223_vm1, %v1707_v54, %v1641_v39 }
 0x32b   : > { %6497 = vmatprep.mubr.msk.f32.mxu0 %vm1238_vm7, %v1715_v17 }
 0x32e   : > { %v1601_v60 = vpop.permute.xlu0 %1600  ;;  %v1531_v63 = vpop.permute.xlu1 %1530 }
 0x32f   : > { %v1700_v14 = vsel %vm1205_vm14, %v1692_v9, %v1601_v60  ;;  %v1677_v30 = vsel %vm1178_vm11, %v1669_v1, %v1531_v63 }
 0x332   : > { %v1491_v2 = vpop.permute.xlu0 %1490  ;;  %v1557_v41 = vpop.permute.xlu1 %1556 }
 0x333   : > { %v1664_v12 = vsel %vm1160_vm9, %v7756_v13, %v1491_v2 }
 0x336   : > { %v1581_v29 = vpop.permute.xlu0 %1580  ;;  %v1512_v4 = vpop.permute.xlu1 %1511 }
 0x337   : > { %v1671_v18 = vsel %vm1169_vm10, %v1664_v12, %v1512_v4 }
 0x33a   : > { %v1489_v46 = vpop.permute.xlu0 %1488  ;;  %v1624_v61 = vpop.permute.xlu1 %1623 }
 0x33b   : > { %v1663_v44 = vsel %vm1160_vm9, %v7764_v52, %v1489_v46 }
 0x33e   : > { %v1510_v7 = vpop.permute.xlu0 %1509  ;;  %v1645_v20 = vpop.permute.xlu1 %1644 }
 0x33f   : > { %v1670_v54 = vsel %vm1169_vm10, %v1663_v44, %v1510_v7 }
 0x342   : > { %v1622_v23 = vpop.permute.xlu0 %1621  ;;  %v1555_v24 = vpop.permute.xlu1 %1554 }
 0x343   : > { %v1708_v26 = vsel %vm1214_vm15, %v1700_v14, %v1622_v23  ;;  %v1685_v50 = vsel %vm1187_vm12, %v1677_v30, %v1555_v24 }
 0x346   : > { %v1579_v62 = vpop.permute.xlu0 %1578  ;;  %v1643_v31 = vpop.permute.xlu1 %1642 }
 0x347   : > { %v1693_v33 = vsel %vm1196_vm13, %v1685_v50, %v1579_v62  ;;  %v1716_v43 = vsel %vm1223_vm1, %v1708_v26, %v1643_v31 }
 0x348   : > { %v1701_v3 = vsel %vm1205_vm14, %v1693_v33, %v1603_v59  ;;  %6498 = vmatmul.mubr.msk.f32.vlgmr.msra.gmra.mrb[8].mxu0 %vm1238_vm7, %v1716_v43  ;;  %v1678_v59 = vsel %vm1178_vm11, %v1670_v54, %v1533_v57 }
 0x349   : > { %v1709_v58 = vsel %vm1214_vm15, %v1701_v3, %v1624_v61  ;;  %v1686_v63 = vsel %vm1187_vm12, %v1678_v59, %v1557_v41 }
 0x34a   : > { %v1537_v37 = vpop.permute.xlu0 %1536  ;;  %v1607_v21 = vpop.permute.xlu1 %1606  ;;  %v1717_v38 = vsel %vm1223_vm1, %v1709_v58, %v1645_v20  ;;  %v1694_v20 = vsel %vm1196_vm13, %v1686_v63, %v1581_v29 }
 0x34b   : > { %6500 = vmatprep.mubr.msk.f32.mxu0 %vm1238_vm7, %v1717_v38 }
 0x34e   : > { %v1605_v36 = vpop.permute.xlu0 %1604  ;;  %v1535_v39 = vpop.permute.xlu1 %1534 }
 0x34f   : > { %v1702_v52 = vsel %vm1205_vm14, %v1694_v20, %v1605_v36  ;;  %v1679_v46 = vsel %vm1178_vm11, %v1671_v18, %v1535_v39  ;;  %v6046_v20 = vld [vmem:[%s9567_s8] ss:$0 sm:$0xff] }
 0x352   : > { %v1495_v47 = vpop.permute.xlu0 %1494  ;;  %v1561_v51 = vpop.permute.xlu1 %1560 }
 0x356   : > { %v1585_v40 = vpop.permute.xlu0 %1584  ;;  %v1516_v45 = vpop.permute.xlu1 %1515 }
 0x35a   : > { %v1493_v49 = vpop.permute.xlu0 %1492  ;;  %v1628_v53 = vpop.permute.xlu1 %1627 }
 0x35b   : > { %v1665_v26 = vsel %vm1160_vm9, %v7826_v42, %v1493_v49  ;;  %v1666_v42 = vsel %vm1160_vm9, %v7818_v19, %v1495_v47 }
 0x35c   : > { %v1673_v49 = vsel %vm1169_vm10, %v1666_v42, %v1516_v45 }
 0x35e   : > { %v1514_v17 = vpop.permute.xlu0 %1513  ;;  %v1649_v60 = vpop.permute.xlu1 %1648 }
 0x35f   : > { %v1672_v62 = vsel %vm1169_vm10, %v1665_v26, %v1514_v17 }
 0x360   : > { %v1680_v33 = vsel %vm1178_vm11, %v1672_v62, %v1537_v37 }
 0x361   : > { %v1688_v38 = vsel %vm1187_vm12, %v1680_v33, %v1561_v51 }
 0x362   : > { %v1626_v16 = vpop.permute.xlu0 %1625  ;;  %v1559_v61 = vpop.permute.xlu1 %1558 }
 0x363   : > { %v1710_v7 = vsel %vm1214_vm15, %v1702_v52, %v1626_v16  ;;  %v1687_v57 = vsel %vm1187_vm12, %v1679_v46, %v1559_v61 }
 0x366   : > { %v1583_v22 = vpop.permute.xlu0 %1582  ;;  %v1647_v23 = vpop.permute.xlu1 %1646 }
 0x367   : > { %v1695_v41 = vsel %vm1196_vm13, %v1687_v57, %v1583_v22  ;;  %v1718_v24 = vsel %vm1223_vm1, %v1710_v7, %v1647_v23 }
 0x368   : > { %v1703_v13 = vsel %vm1205_vm14, %v1695_v41, %v1607_v21  ;;  %6501 = vmatmul.mubr.msk.f32.gmra.mrb[10].mxu0 %vm1238_vm7, %v1718_v24 }
 0x369   : > { %v1711_v2 = vsel %vm1214_vm15, %v1703_v13, %v1628_v53  ;;  %v1696_v53 = vsel %vm1196_vm13, %v1688_v38, %v1585_v40 }
 0x36a   : > { %v1541_v29 = vpop.permute.xlu0 %1540  ;;  %v1719_v4 = vsel %vm1223_vm1, %v1711_v2, %v1649_v60  ;;  %v1539_v1 = vpop.permute.xlu1 %1538 }
 0x36b   : > { %6503 = vmatprep.mubr.msk.f32.mxu0 %vm1238_vm7, %v1719_v4 }
 0x36e   : > { %v1611_v5 = vpop.permute.xlu0 %1610  ;;  %v1589_v14 = vpop.permute.xlu1 %1588 }
 0x372   : > { %v1609_v9 = vpop.permute.xlu0 %1608  ;;  %v1563_v31 = vpop.permute.xlu1 %1562 }
 0x373   : > { %v1704_v54 = vsel %vm1205_vm14, %v1696_v53, %v1609_v9 }
 0x376   : > { %v1565_v30 = vpop.permute.xlu0 %1564  ;;  %v1587_v36 = vpop.permute.xlu1 %1586 }
 0x37a   : > { %v1497_v50 = vpop.permute.xlu0 %1496  ;;  %v1632_v47 = vpop.permute.xlu1 %1631 }
 0x37b   : > { %v1667_v43 = vsel %vm1160_vm9, %v7856_v15, %v1497_v50  ;;  %v1681_v15 = vsel %vm1178_vm11, %v1673_v49, %v1539_v1 }
 0x37c   : > { %v1689_v59 = vsel %vm1187_vm12, %v1681_v15, %v1563_v31 }
 0x37d   : > { %v1697_v51 = vsel %vm1196_vm13, %v1689_v59, %v1587_v36 }
 0x37e   : > { %v1518_v3 = vpop.permute.xlu0 %1517  ;;  %v1705_v63 = vsel %vm1205_vm14, %v1697_v51, %v1611_v5 }
 0x37f   : > { %v1674_v58 = vsel %vm1169_vm10, %v1667_v43, %v1518_v3  ;;  %v1713_v16 = vsel %vm1214_vm15, %v1705_v63, %v1632_v47 }
 0x380   : > { %v1682_v21 = vsel %vm1178_vm11, %v1674_v58, %v1541_v29 }
 0x381   : > { %v1690_v39 = vsel %vm1187_vm12, %v1682_v21, %v1565_v30 }
 0x382   : > { %v1630_v44 = vpop.permute.xlu0 %1629  ;;  %v1698_v37 = vsel %vm1196_vm13, %v1690_v39, %v1589_v14 }
 0x383   : > { %v1712_v17 = vsel %vm1214_vm15, %v1704_v54, %v1630_v44  ;;  %v1706_v19 = vsel %vm1205_vm14, %v1698_v37, %v7593_v25 }
 0x384   : > { %v1714_v40 = vsel %vm1214_vm15, %v1706_v19, %v7600_v32 }
 0x385   : > { %v1722_v18 = vsel %vm1223_vm1, %v1714_v40, %v7704_v8 }
 0x386   : > { %v1651_v60 = vpop.permute.xlu0 %1650 }
 0x387   : > { %v1720_v45 = vsel %vm1223_vm1, %v1712_v17, %v1651_v60 }
 0x388   : > { %6504 = vmatmul.mubr.msk.f32.gmra.mrb[12].mxu0 %vm1238_vm7, %v1720_v45 }
 0x38a   : > { %v1653_v61 = vpop.permute.xlu0 %1652 }
 0x38b   : > { %v1721_v12 = vsel %vm1223_vm1, %v1713_v16, %v1653_v61 }
 0x38c   : > { %6506 = vmatprep.mubr.msk.f32.mxu0 %vm1238_vm7, %v1721_v12 }
 0x38d   : > { %6507 = vmatmul.mubr.msk.f32.gmra.mrb[14].mxu0 %vm1238_vm7, %v1722_v18 }
 0x41b   : > { %v6499_v52 = vpop.f32.mrb[8].mxu0 }
 0x41c   : > { %v1828_v46 = vadd.f32 %v6499_v52, %v6046_v20  ;;  %v1822_v7 = vpop.f32.mrb[9].mxu0 }
 0x41d   : > { %v1823_v57 = vadd.f32 %v6046_v20, %v1822_v7 }
 0x41e   : > { %v7965_v22 = vmul.f32 0.1, %v1828_v46 }
 0x41f   : > { %v7967_v23 = vmul.f32 0.1, %v1823_v57 }
 0x420   : > { %6906 = vtanh.f32 %v7965_v22 }
 0x421   : > { %6908 = vtanh.f32 %v7967_v23 }
 0x42a   : > { %v6907_v41 = vpop.eup %6906 }
 0x42b   : > { %v6909_v24 = vpop.eup %6908  ;;  %v7971_v13 = vmul.f32 2.0, %v6907_v41 }
 0x42c   : > { %v7973_v2 = vmul.f32 2.0, %v6909_v24 }
 0x42d   : > { %v1887_v29 = vmul.f32 1.442695, %v7971_v13 }
 0x42e   : > { %v1885_v4 = vmul.f32 1.442695, %v7973_v2 }
 0x42f   : > { %6910 = vpow2.f32 %v1887_v29  ;;  %v8024_v29 = vld [vmem:[%s9570_s11] sm:$0xff] }
 0x430   : > { %6912 = vpow2.f32 %v1885_v4  ;;  %v847_v4 = vld [vmem:[%s9570_s11 + $0x8] sm:$0x3] }
 0x439   : > { %v6911_v5 = vpop.eup %6910 }
 0x43a   : > { %v6913_v1 = vpop.eup %6912  ;;  %1911 = vrot.lane.b32.xlu0 %v6911_v5, %s9641_s1  ;;  %v2056_v5 = vrot.slane %v8024_v29, 5 }
 0x43b   : > { %1909 = vrot.lane.b32.xlu1 %v6913_v1, %s9641_s1  ;;  %v6502_v9 = vpop.f32.mrb[10].mxu0  ;;  %v2057_v1 = vrot.slane %v847_v4, 5 }
 0x43c   : > { %v1838_v14 = vadd.f32 %v6502_v9, %v6046_v20  ;;  %v1832_v30 = vpop.f32.mrb[11].mxu0 }
 0x43d   : > { %v1833_v26 = vadd.f32 %v6046_v20, %v1832_v30  ;;  %v2058_v9 = vsel %vm672_vm0, %v2056_v5, %v2057_v1 }
 0x43e   : > { %v7979_v50 = vmul.f32 0.1, %v1838_v14  ;;  %6509 = vmatprep.subr.msk.mxu1 %vm1263_vm6, %v2058_v9 }
 0x43f   : > { %v7981_v62 = vmul.f32 0.1, %v1833_v26  ;;  %6510 = vmatpush3.msk.msra.mxu1 %vm1263_vm6, %v2058_v9 }
 0x440   : > { %6914 = vtanh.f32 %v7979_v50  ;;  %6523 = vmatprep.subr.msk.mxu1 %vm1263_vm6, %v8024_v29 }
 0x441   : > { %6916 = vtanh.f32 %v7981_v62 }
 0x44a   : > { %v6915_v31 = vpop.eup %6914 }
 0x44b   : > { %v6917_v33 = vpop.eup %6916  ;;  %v7985_v43 = vmul.f32 2.0, %v6915_v31 }
 0x44c   : > { %v7987_v3 = vmul.f32 2.0, %v6917_v33 }
 0x44d   : > { %v1891_v58 = vmul.f32 1.442695, %v7985_v43 }
 0x44e   : > { %v1889_v21 = vmul.f32 1.442695, %v7987_v3 }
 0x44f   : > { %6918 = vpow2.f32 %v1891_v58  ;;  %v8041_v58 = vld [vmem:[%s9568_s9] ss:$0 sm:$0xff] }
 0x450   : > { %6920 = vpow2.f32 %v1889_v21 }
 0x459   : > { %v6919_v38 = vpop.eup %6918 }
 0x45a   : > { %v6921_v36 = vpop.eup %6920  ;;  %1915 = vrot.lane.b32.xlu0 %v6919_v38, %s9641_s1 }
 0x45b   : > { %v6505_v39 = vpop.f32.mrb[12].mxu0  ;;  %1913 = vrot.lane.b32.xlu1 %v6921_v36, %s9641_s1  ;;  %v8048_v36 = vld [vmem:[%s9569_s10] ss:$0 sm:$0xff] }
 0x45c   : > { %v1848_v42 = vadd.f32 %v6505_v39, %v6046_v20  ;;  %v1842_v44 = vpop.f32.mrb[13].mxu0 }
 0x45d   : > { %v1843_v49 = vadd.f32 %v6046_v20, %v1842_v44 }
 0x45e   : > { %v7993_v37 = vmul.f32 0.1, %v1848_v42 }
 0x45f   : > { %v7995_v15 = vmul.f32 0.1, %v1843_v49 }
 0x460   : > { %6922 = vtanh.f32 %v7993_v37  ;;  %v6508_v53 = vpop.f32.mrb[14].mxu0 }
 0x461   : > { %6924 = vtanh.f32 %v7995_v15  ;;  %v1858_v54 = vadd.f32 %v6508_v53, %v6046_v20  ;;  %v1852_v59 = vpop.f32.mrb[15].mxu0 }
 0x462   : > { %v1853_v51 = vadd.f32 %v6046_v20, %v1852_v59 }
 0x463   : > { %v7999_v17 = vmul.f32 0.1, %v1858_v54 }
 0x464   : > { %v8001_v60 = vmul.f32 0.1, %v1853_v51 }
 0x465   : > { %6926 = vtanh.f32 %v7999_v17 }
 0x466   : > { %6928 = vtanh.f32 %v8001_v60 }
 0x46a   : > { %v6923_v19 = vpop.eup %6922 }
 0x46b   : > { %v6925_v47 = vpop.eup %6924  ;;  %v8005_v45 = vmul.f32 2.0, %v6923_v19 }
 0x46c   : > { %v8007_v63 = vmul.f32 2.0, %v6925_v47 }
 0x46d   : > { %v1895_v40 = vmul.f32 1.442695, %v8005_v45 }
 0x46e   : > { %v1893_v16 = vmul.f32 1.442695, %v8007_v63 }
 0x46f   : > { %v6927_v61 = vpop.eup %6926  ;;  %6930 = vpow2.f32 %v1895_v40 }
 0x470   : > { %v6929_v12 = vpop.eup %6928  ;;  %6932 = vpow2.f32 %v1893_v16  ;;  %v8011_v18 = vmul.f32 2.0, %v6927_v61 }
 0x471   : > { %v8013_v20 = vmul.f32 2.0, %v6929_v12 }
 0x472   : > { %v1899_v52 = vmul.f32 1.442695, %v8011_v18 }
 0x473   : > { %v1897_v46 = vmul.f32 1.442695, %v8013_v20 }
 0x474   : > { %6934 = vpow2.f32 %v1899_v52 }
 0x475   : > { %6936 = vpow2.f32 %v1897_v46 }
 0x479   : > { %v6931_v7 = vpop.eup %6930 }
 0x47a   : > { %v6933_v57 = vpop.eup %6932  ;;  %1919 = vrot.lane.b32.xlu0 %v6931_v7, %s9641_s1 }
 0x47b   : > { %1917 = vrot.lane.b32.xlu1 %v6933_v57, %s9641_s1 }
 0x47e   : > { %v6935_v41 = vpop.eup %6934 }
 0x47f   : > { %v6937_v24 = vpop.eup %6936  ;;  %1923 = vrot.lane.b32.xlu0 %v6935_v41, %s9641_s1 }
 0x480   : > { %1921 = vrot.lane.b32.xlu1 %v6937_v24, %s9641_s1 }
 0x4ac   : > { %v1912_v14 = vpop.permute.xlu0 %1911 }
 0x4ad   : > { %v1934_v30 = vmul.f32 %v1912_v14, %v7397_v34  ;;  %v1910_v26 = vpop.permute.xlu1 %1909 }
 0x4ae   : > { %v1933_v31 = vmul.f32 %v1910_v26, %v7400_v35 }
 0x4af   : > { %v1942_v33 = vadd.f32 %v1934_v30, %v7965_v22 }
 0x4b0   : > { %v1941_v21 = vadd.f32 %v1933_v31, %v7967_v23 }
 0x4b1   : > { %v2015_v38 = vmul.f32 %v8041_v58, %v1942_v33 }
 0x4b2   : > { %v2014_v39 = vmul.f32 %v8041_v58, %v1941_v21 }
 0x4b3   : > { %v2023_v42 = vadd.f32 %v8048_v36, %v2015_v38 }
 0x4b4   : > { %v2022_v22 = vadd.f32 %v8048_v36, %v2014_v39 }
 0x4b5   : > { %2040 = vrot.lane.b32.xlu0 %v2023_v42, %s9605_s30 }
 0x4b6   : > { %2038 = vrot.lane.b32.xlu1 %v2022_v22, %s9605_s30 }
 0x4cc   : > { %v1916_v44 = vpop.permute.xlu0 %1915 }
 0x4cd   : > { %v1936_v23 = vmul.f32 %v1916_v44, %v7426_v56  ;;  %v1914_v49 = vpop.permute.xlu1 %1913 }
 0x4ce   : > { %v1935_v53 = vmul.f32 %v1914_v49, %v7441_v0  ;;  %v1992_v49 = vmul.f32 %v8041_v58, %v7400_v35 }
 0x4cf   : > { %v1944_v54 = vadd.f32 %v1936_v23, %v7979_v50 }
 0x4d0   : > { %v1943_v59 = vadd.f32 %v1935_v53, %v7981_v62  ;;  %v1993_v53 = vmul.f32 %v8041_v58, %v7397_v34  ;;  %v1996_v34 = vmul.f32 %v8041_v58, %v7497_v28 }
 0x4d1   : > { %v2017_v51 = vmul.f32 %v8041_v58, %v1944_v54 }
 0x4d2   : > { %v2016_v19 = vmul.f32 %v8041_v58, %v1943_v59  ;;  %v2007_v35 = vadd.f32 %v8048_v36, %v1993_v53 }
 0x4d3   : > { %v2025_v47 = vadd.f32 %v8048_v36, %v2017_v51  ;;  %v2006_v51 = vadd.f32 %v8048_v36, %v1992_v49 }
 0x4d4   : > { %v2024_v40 = vadd.f32 %v8048_v36, %v2016_v19  ;;  %v1995_v19 = vmul.f32 %v8041_v58, %v7426_v56 }
 0x4d5   : > { %2044 = vrot.lane.b32.xlu0 %v2025_v47, %s9605_s30 }
 0x4d6   : > { %2042 = vrot.lane.b32.xlu1 %v2024_v40, %s9605_s30  ;;  %v1997_v40 = vmul.f32 %v8041_v58, %v7482_v27 }
 0x4d8   : > { %v2011_v56 = vadd.f32 %v8048_v36, %v1997_v40 }
 0x4ec   : > { %v1920_v16 = vpop.permute.xlu0 %1919 }
 0x4ed   : > { %v1938_v61 = vmul.f32 %v1920_v16, %v7482_v27  ;;  %v1918_v12 = vpop.permute.xlu1 %1917  ;;  %v2010_v16 = vadd.f32 %v8048_v36, %v1996_v34 }
 0x4ee   : > { %v1937_v50 = vmul.f32 %v1918_v12, %v7497_v28  ;;  %v1999_v28 = vmul.f32 %v8041_v58, %v7556_v6 }
 0x4ef   : > { %v1946_v62 = vadd.f32 %v1938_v61, %v7993_v37  ;;  %v1998_v61 = vmul.f32 %v8041_v58, %v7567_v11 }
 0x4f0   : > { %v1945_v52 = vadd.f32 %v1937_v50, %v7995_v15  ;;  %v2013_v27 = vadd.f32 %v8048_v36, %v1999_v28  ;;  %v6080_v50 = vld [vmem:[%s9566_s7 + $0x48] sm:$0xff] }
 0x4f1   : > { %v2019_v46 = vmul.f32 %v8041_v58, %v1946_v62  ;;  %v1924_v7 = vpop.permute.xlu0 %1923  ;;  %v2012_v12 = vadd.f32 %v8048_v36, %v1998_v61 }
 0x4f2   : > { %v2018_v57 = vmul.f32 %v8041_v58, %v1945_v52  ;;  %v1940_v41 = vmul.f32 %v1924_v7, %v7556_v6  ;;  %v1922_v24 = vpop.permute.xlu1 %1921  ;;  %v2491_v6 = vrot.slane %v6080_v50, 4 }
 0x4f3   : > { %v1939_v4 = vmul.f32 %v1922_v24, %v7567_v11  ;;  %v2027_v5 = vadd.f32 %v8048_v36, %v2019_v46  ;;  %v6079_v11 = vld [vmem:[%s9566_s7 + $0x40] sm:$0xff] }
 0x4f4   : > { %v1948_v1 = vadd.f32 %v1940_v41, %v7999_v17  ;;  %v2026_v9 = vadd.f32 %v8048_v36, %v2018_v57  ;;  %v6076_v17 = vld [vmem:[%s9635_s5 + $0x40] sm:$0xff]  ;;  %v2490_v62 = vrot.slane %v6079_v11, 4 }
 0x4f5   : > { %v1947_v37 = vadd.f32 %v1939_v4, %v8001_v60  ;;  %2048 = vrot.lane.b32.xlu0 %v2027_v5, %s9605_s30  ;;  %v6077_v60 = vld [vmem:[%s9635_s5 + $0x48] sm:$0xff]  ;;  %v2340_v31 = vrot.slane %v6076_v17, 4  ;;  %v6086_v5 = vld [vmem:[%s9565_s6 + $0x1] ss:$0 sm:$0xff] }
 0x4f6   : > { %v2021_v15 = vmul.f32 %v8041_v58, %v1948_v1  ;;  %2046 = vrot.lane.b32.xlu1 %v2026_v9, %s9605_s30  ;;  %v2341_v33 = vrot.slane %v6077_v60, 4 }
 0x4f7   : > { %v2020_v14 = vmul.f32 %v8041_v58, %v1947_v37 }
 0x4f8   : > { %v2029_v30 = vadd.f32 %v8048_v36, %v2021_v15  ;;  %v2342_v21 = vsel %vm2339_vm5, %v2340_v31, %v2341_v33 }
 0x4f9   : > { %v2028_v26 = vadd.f32 %v8048_v36, %v2020_v14  ;;  %6537 = vmatprep.subr.msk.mxu0 %vm1263_vm6, %v2342_v21 }
 0x4fa   : > { %2052 = vrot.lane.b32.xlu0 %v2029_v30, %s9605_s30  ;;  %6538 = vmatpush3.msk.msra.mxu0 %vm1263_vm6, %v2342_v21 }
 0x4fb   : > { %2050 = vrot.lane.b32.xlu1 %v2028_v26, %s9605_s30 }
 0x527   : > { %v2041_v39 = vpop.permute.xlu0 %2040 }
 0x528   : > { %v2039_v38 = vpop.permute.xlu1 %2038 }
 0x529   : > { %6511 = vmatprep.mubr.msk.f32.mxu1 %vm1160_vm9, %v2039_v38 }
 0x52a   : > { %6512 = vmatmul.mubr.msk.f32.vlgmr.msra.gmra.mrb[8].mxu1 %vm1160_vm9, %v2041_v39 }
 0x52b   : > { %6524 = vmatpush3.msk.msra.mxu1 %vm1263_vm6, %v8024_v29  ;;  %v1994_v29 = vmul.f32 %v8041_v58, %v7441_v0  ;;  %v2009_v0 = vadd.f32 %v8048_v36, %v1995_v19  ;;  %v2492_v58 = vsel %vm2339_vm5, %v2490_v62, %v2491_v6 }
 0x52c   : > { %6551 = vmatprep.subr.msk.mxu0 %vm1263_vm6, %v2492_v58 }
 0x52d   : > { %v2008_v47 = vadd.f32 %v8048_v36, %v1994_v29 }
 0x547   : > { %v2045_v22 = vpop.permute.xlu0 %2044 }
 0x548   : > { %v2043_v42 = vpop.permute.xlu1 %2042 }
 0x549   : > { %6514 = vmatprep.mubr.msk.f32.mxu1 %vm1160_vm9, %v2043_v42 }
 0x54a   : > { %6515 = vmatmul.mubr.msk.f32.gmra.mrb[10].mxu1 %vm1160_vm9, %v2045_v22 }
 0x567   : > { %v2049_v44 = vpop.permute.xlu0 %2048 }
 0x568   : > { %v2047_v23 = vpop.permute.xlu1 %2046 }
 0x569   : > { %6517 = vmatprep.mubr.msk.f32.mxu1 %vm1160_vm9, %v2047_v23 }
 0x56a   : > { %6518 = vmatmul.mubr.msk.f32.gmra.mrb[12].mxu1 %vm1160_vm9, %v2049_v44 }
 0x56c   : > { %v2053_v59 = vpop.permute.xlu0 %2052 }
 0x56d   : > { %v2051_v54 = vpop.permute.xlu1 %2050 }
 0x56e   : > { %6520 = vmatprep.mubr.msk.f32.mxu1 %vm1160_vm9, %v2051_v54 }
 0x56f   : > { %6521 = vmatmul.mubr.msk.f32.gmra.mrb[14].mxu1 %vm1160_vm9, %v2053_v59 }
 0x570   : > { %6525 = vmatprep.mubr.msk.f32.mxu1 %vm1160_vm9, %v2006_v51 }
 0x573   : > { %6526 = vmatmul.mubr.msk.f32.vlgmr.msra.gmra.mrb[8].mxu1 %vm1160_vm9, %v2007_v35  ;;  %v6096_v35 = vld [vmem:[%s9567_s8 + $0x1] ss:$0 sm:$0xff] }
 0x574   : > { %6528 = vmatprep.mubr.msk.f32.mxu1 %vm1160_vm9, %v2008_v47 }
 0x577   : > { %6529 = vmatmul.mubr.msk.f32.gmra.mrb[10].mxu1 %vm1160_vm9, %v2009_v0 }
 0x578   : > { %6531 = vmatprep.mubr.msk.f32.mxu1 %vm1160_vm9, %v2010_v16 }
 0x57b   : > { %6532 = vmatmul.mubr.msk.f32.gmra.mrb[12].mxu1 %vm1160_vm9, %v2011_v56 }
 0x57c   : > { %6534 = vmatprep.mubr.msk.f32.mxu1 %vm1160_vm9, %v2012_v12 }
 0x57f   : > { %6535 = vmatmul.mubr.msk.f32.gmra.mrb[14].mxu1 %vm1160_vm9, %v2013_v27 }
 0x646   : > { %v8144_v52 = vpop.f32.mrb[8].mxu1 }
 0x647   : > { %v8146_v46 = vpop.f32.mrb[9].mxu1 }
 0x648   : > { %6539 = vmatprep.mubr.msk.f32.mxu0 %vm1160_vm9, %v8146_v46 }
 0x649   : > { %6540 = vmatmul.mubr.msk.f32.vlgmr.msra.gmra.mrb[16].mxu0 %vm1160_vm9, %v8144_v52 }
 0x64a   : > { %v8152_v36 = vpop.f32.mrb[10].mxu1  ;;  %6552 = vmatpush3.msk.msra.mxu0 %vm1263_vm6, %v2492_v58 }
 0x64b   : > { %v8155_v7 = vpop.f32.mrb[11].mxu1 }
 0x64c   : > { %6542 = vmatprep.mubr.msk.f32.mxu0 %vm1160_vm9, %v8155_v7 }
 0x64d   : > { %6543 = vmatmul.mubr.msk.f32.gmra.mrb[18].mxu0 %vm1160_vm9, %v8152_v36 }
 0x64e   : > { %v8161_v57 = vpop.f32.mrb[12].mxu1 }
 0x64f   : > { %v8163_v41 = vpop.f32.mrb[13].mxu1 }
 0x650   : > { %6545 = vmatprep.mubr.msk.f32.mxu0 %vm1160_vm9, %v8163_v41 }
 0x651   : > { %6546 = vmatmul.mubr.msk.f32.gmra.mrb[20].mxu0 %vm1160_vm9, %v8161_v57 }
 0x652   : > { %v8169_v24 = vpop.f32.mrb[14].mxu1 }
 0x653   : > { %v8171_v4 = vpop.f32.mrb[15].mxu1 }
 0x654   : > { %6548 = vmatprep.mubr.msk.f32.mxu0 %vm1160_vm9, %v8171_v4 }
 0x655   : > { %6549 = vmatmul.mubr.msk.f32.gmra.mrb[22].mxu0 %vm1160_vm9, %v8169_v24 }
 0x71c   : > { %v6541_v1 = vpop.f32.mrb[16].mxu0 }
 0x71d   : > { %v2441_v9 = vadd.f32 %v6541_v1, %v6086_v5  ;;  %v2435_v37 = vpop.f32.mrb[17].mxu0 }
 0x71e   : > { %v2436_v15 = vadd.f32 %v6086_v5, %v2435_v37 }
 0x71f   : > { %v2475_v26 = vmax.f32 %v2441_v9, 0.0 }
 0x720   : > { %v2474_v14 = vmax.f32 %v2436_v15, 0.0  ;;  %v6544_v30 = vpop.f32.mrb[18].mxu0 }
 0x721   : > { %v2451_v17 = vadd.f32 %v6544_v30, %v6086_v5  ;;  %v2445_v60 = vpop.f32.mrb[19].mxu0 }
 0x722   : > { %v2446_v31 = vadd.f32 %v6086_v5, %v2445_v60  ;;  %6553 = vmatprep.mubr.msk.f32.mxu0 %vm1160_vm9, %v2474_v14 }
 0x723   : > { %6554 = vmatmul.mubr.msk.f32.vlgmr.msra.gmra.mrb[24].mxu0 %vm1160_vm9, %v2475_v26  ;;  %v2477_v38 = vmax.f32 %v2451_v17, 0.0 }
 0x724   : > { %v2476_v33 = vmax.f32 %v2446_v31, 0.0  ;;  %v6547_v21 = vpop.f32.mrb[20].mxu0 }
 0x725   : > { %v2461_v39 = vadd.f32 %v6547_v21, %v6086_v5  ;;  %v2455_v42 = vpop.f32.mrb[21].mxu0 }
 0x726   : > { %v2456_v22 = vadd.f32 %v6086_v5, %v2455_v42  ;;  %6556 = vmatprep.mubr.msk.f32.mxu0 %vm1160_vm9, %v2476_v33 }
 0x727   : > { %6557 = vmatmul.mubr.msk.f32.gmra.mrb[26].mxu0 %vm1160_vm9, %v2477_v38  ;;  %v2479_v49 = vmax.f32 %v2461_v39, 0.0 }
 0x728   : > { %v2478_v44 = vmax.f32 %v2456_v22, 0.0  ;;  %v6550_v23 = vpop.f32.mrb[22].mxu0 }
 0x729   : > { %v2471_v53 = vadd.f32 %v6550_v23, %v6086_v5  ;;  %v2465_v54 = vpop.f32.mrb[23].mxu0 }
 0x72a   : > { %v2466_v29 = vadd.f32 %v6086_v5, %v2465_v54  ;;  %6559 = vmatprep.mubr.msk.f32.mxu0 %vm1160_vm9, %v2478_v44 }
 0x72b   : > { %6560 = vmatmul.mubr.msk.f32.gmra.mrb[28].mxu0 %vm1160_vm9, %v2479_v49  ;;  %v2481_v51 = vmax.f32 %v2471_v53, 0.0 }
 0x72c   : > { %v2480_v59 = vmax.f32 %v2466_v29, 0.0 }
 0x72e   : > { %6562 = vmatprep.mubr.msk.f32.mxu0 %vm1160_vm9, %v2480_v59 }
 0x72f   : > { %6563 = vmatmul.mubr.msk.f32.gmra.mrb[30].mxu0 %vm1160_vm9, %v2481_v51 }
 0x7f6   : > { %v6555_v19 = vpop.f32.mrb[24].mxu0 }
 0x7f7   : > { %v2591_v34 = vadd.f32 %v6555_v19, %v6096_v35  ;;  %v2585_v47 = vpop.f32.mrb[25].mxu0 }
 0x7f8   : > { %v2586_v0 = vadd.f32 %v6096_v35, %v2585_v47 }
 0x7f9   : > { %v8191_v40 = vmul.f32 0.1, %v2591_v34 }
 0x7fa   : > { %v8193_v16 = vmul.f32 0.1, %v2586_v0  ;;  %v6558_v61 = vpop.f32.mrb[26].mxu0 }
 0x7fb   : > { %6938 = vtanh.f32 %v8191_v40  ;;  %v2601_v56 = vadd.f32 %v6558_v61, %v6096_v35  ;;  %v2595_v28 = vpop.f32.mrb[27].mxu0 }
 0x7fc   : > { %6940 = vtanh.f32 %v8193_v16  ;;  %v2596_v12 = vadd.f32 %v6096_v35, %v2595_v28 }
 0x7fd   : > { %v8197_v27 = vmul.f32 0.1, %v2601_v56 }
 0x7fe   : > { %v8199_v11 = vmul.f32 0.1, %v2596_v12  ;;  %v6561_v50 = vpop.f32.mrb[28].mxu0 }
 0x7ff   : > { %6942 = vtanh.f32 %v8197_v27  ;;  %v2611_v62 = vadd.f32 %v6561_v50, %v6096_v35  ;;  %v2605_v6 = vpop.f32.mrb[29].mxu0 }
 0x800   : > { %6944 = vtanh.f32 %v8199_v11  ;;  %v2606_v58 = vadd.f32 %v6096_v35, %v2605_v6 }
 0x801   : > { %v8203_v5 = vmul.f32 0.1, %v2611_v62 }
 0x802   : > { %v8205_v1 = vmul.f32 0.1, %v2606_v58  ;;  %v6564_v9 = vpop.f32.mrb[30].mxu0 }
 0x803   : > { %6946 = vtanh.f32 %v8203_v5  ;;  %v2621_v37 = vadd.f32 %v6564_v9, %v6096_v35  ;;  %v2615_v15 = vpop.f32.mrb[31].mxu0  ;;  %v8247_v9 = vld [vmem:[%s9570_s11 + $0x10] sm:$0xff] }
 0x804   : > { %6948 = vtanh.f32 %v8205_v1  ;;  %v2616_v14 = vadd.f32 %v6096_v35, %v2615_v15  ;;  %v2819_v15 = vrot.slane %v8247_v9, 5 }
 0x805   : > { %v6939_v30 = vpop.eup %6938  ;;  %v8209_v26 = vmul.f32 0.1, %v2621_v37  ;;  %v6085_v37 = vld [vmem:[%s9570_s11 + $0x18] sm:$0x3] }
 0x806   : > { %v6941_v17 = vpop.eup %6940  ;;  %v8211_v60 = vmul.f32 2.0, %v6939_v30  ;;  %v8213_v31 = vmul.f32 0.1, %v2616_v14  ;;  %v2820_v14 = vrot.slane %v6085_v37, 5 }
 0x807   : > { %v8215_v33 = vmul.f32 2.0, %v6941_v17  ;;  %6950 = vtanh.f32 %v8209_v26 }
 0x808   : > { %v2650_v21 = vmul.f32 1.442695, %v8211_v60  ;;  %6952 = vtanh.f32 %v8213_v31  ;;  %v2821_v17 = vsel %vm672_vm0, %v2819_v15, %v2820_v14 }
 0x809   : > { %v6943_v38 = vpop.eup %6942  ;;  %v2648_v39 = vmul.f32 1.442695, %v8215_v33  ;;  %6565 = vmatprep.subr.msk.mxu1 %vm1263_vm6, %v2821_v17 }
 0x80a   : > { %v6945_v42 = vpop.eup %6944  ;;  %6954 = vpow2.f32 %v2650_v21  ;;  %v8221_v22 = vmul.f32 2.0, %v6943_v38  ;;  %6566 = vmatpush3.msk.msra.mxu1 %vm1263_vm6, %v2821_v17 }
 0x80b   : > { %6956 = vpow2.f32 %v2648_v39  ;;  %v8223_v44 = vmul.f32 2.0, %v6945_v42  ;;  %6579 = vmatprep.subr.msk.mxu1 %vm1263_vm6, %v8247_v9 }
 0x80c   : > { %v2654_v23 = vmul.f32 1.442695, %v8221_v22 }
 0x80d   : > { %v6947_v49 = vpop.eup %6946  ;;  %v2652_v53 = vmul.f32 1.442695, %v8223_v44 }
 0x80e   : > { %v6949_v54 = vpop.eup %6948  ;;  %6958 = vpow2.f32 %v2654_v23  ;;  %v8227_v29 = vmul.f32 2.0, %v6947_v49 }
 0x80f   : > { %6960 = vpow2.f32 %v2652_v53  ;;  %v8229_v59 = vmul.f32 2.0, %v6949_v54  ;;  %v8267_v53 = vld [vmem:[%s9568_s9 + $0x1] ss:$0 sm:$0xff] }
 0x810   : > { %v2658_v51 = vmul.f32 1.442695, %v8227_v29 }
 0x811   : > { %v6951_v35 = vpop.eup %6950  ;;  %v2656_v19 = vmul.f32 1.442695, %v8229_v59 }
 0x812   : > { %v6953_v34 = vpop.eup %6952  ;;  %6962 = vpow2.f32 %v2658_v51  ;;  %v8233_v47 = vmul.f32 2.0, %v6951_v35 }
 0x813   : > { %6964 = vpow2.f32 %v2656_v19  ;;  %v8235_v0 = vmul.f32 2.0, %v6953_v34 }
 0x814   : > { %v6955_v61 = vpop.eup %6954  ;;  %v2662_v56 = vmul.f32 1.442695, %v8233_v47 }
 0x815   : > { %9646 = vst [vmem:[#allocation15_spill] sm:$0xff] %v8235_v0  ;;  %v6957_v28 = vpop.eup %6956  ;;  %v2660_v12 = vmul.f32 1.442695, %v8235_v0  ;;  %2674 = vrot.lane.b32.xlu0 %v6955_v61, %s9641_s1  ;;  %v8275_v61 = vld [vmem:[%s9569_s10 + $0x1] ss:$0 sm:$0xff] }
 0x816   : > { %6966 = vpow2.f32 %v2662_v56  ;;  %2672 = vrot.lane.b32.xlu1 %v6957_v28, %s9641_s1 }
 0x817   : > { %6968 = vpow2.f32 %v2660_v12 }
 0x818   : > { %v6959_v50 = vpop.eup %6958 }
 0x819   : > { %v6961_v62 = vpop.eup %6960  ;;  %2678 = vrot.lane.b32.xlu0 %v6959_v50, %s9641_s1 }
 0x81a   : > { %2676 = vrot.lane.b32.xlu1 %v6961_v62, %s9641_s1 }
 0x81c   : > { %v6963_v6 = vpop.eup %6962 }
 0x81d   : > { %v6965_v58 = vpop.eup %6964  ;;  %2682 = vrot.lane.b32.xlu0 %v6963_v6, %s9641_s1 }
 0x81e   : > { %2680 = vrot.lane.b32.xlu1 %v6965_v58, %s9641_s1 }
 0x820   : > { %v6967_v30 = vpop.eup %6966 }
 0x821   : > { %v6969_v21 = vpop.eup %6968  ;;  %2686 = vrot.lane.b32.xlu0 %v6967_v30, %s9641_s1 }
 0x822   : > { %2684 = vrot.lane.b32.xlu1 %v6969_v21, %s9641_s1 }
 0x887   : > { %v2675_v38 = vpop.permute.xlu0 %2674 }
 0x888   : > { %v2697_v39 = vmul.f32 %v8144_v52, %v2675_v38  ;;  %v2673_v42 = vpop.permute.xlu1 %2672 }
 0x889   : > { %v2696_v23 = vmul.f32 %v2673_v42, %v8146_v46 }
 0x88a   : > { %v2705_v49 = vadd.f32 %v2697_v39, %v8191_v40 }
 0x88b   : > { %v2704_v54 = vadd.f32 %v2696_v23, %v8193_v16  ;;  %v2679_v51 = vpop.permute.xlu0 %2678 }
 0x88c   : > { %v2778_v35 = vmul.f32 %v8267_v53, %v2705_v49  ;;  %v2699_v19 = vmul.f32 %v8152_v36, %v2679_v51  ;;  %v2677_v34 = vpop.permute.xlu1 %2676 }
 0x88d   : > { %v2777_v40 = vmul.f32 %v8267_v53, %v2704_v54  ;;  %v2698_v56 = vmul.f32 %v2677_v34, %v8155_v7 }
 0x88e   : > { %v2707_v28 = vadd.f32 %v2699_v19, %v8197_v27  ;;  %v2786_v12 = vadd.f32 %v8275_v61, %v2778_v35 }
 0x88f   : > { %v2706_v16 = vadd.f32 %v2698_v56, %v8199_v11  ;;  %v2683_v50 = vpop.permute.xlu0 %2682  ;;  %v2785_v62 = vadd.f32 %v8275_v61, %v2777_v40 }
 0x890   : > { %v2780_v6 = vmul.f32 %v8267_v53, %v2707_v28  ;;  %v2701_v58 = vmul.f32 %v8161_v57, %v2683_v50  ;;  %v2681_v37 = vpop.permute.xlu1 %2680  ;;  %2803 = vrot.lane.b32.xlu0 %v2786_v12, %s9605_s30  ;;  %v2755_v50 = vmul.f32 %v8267_v53, %v8146_v46 }
 0x891   : > { %v2779_v15 = vmul.f32 %v8267_v53, %v2706_v16  ;;  %v2700_v14 = vmul.f32 %v2681_v37, %v8163_v41  ;;  %2801 = vrot.lane.b32.xlu1 %v2785_v62, %s9605_s30  ;;  %v2756_v62 = vmul.f32 %v8144_v52, %v8267_v53 }
 0x892   : > { %v2709_v27 = vadd.f32 %v2701_v58, %v8203_v5  ;;  %v2788_v11 = vadd.f32 %v8275_v61, %v2780_v6  ;;  %v2757_v58 = vmul.f32 %v8267_v53, %v8155_v7 }
 0x893   : > { %v2708_v30 = vadd.f32 %v2700_v14, %v8205_v1  ;;  %v2687_v17 = vpop.permute.xlu0 %2686  ;;  %v2787_v21 = vadd.f32 %v8275_v61, %v2779_v15  ;;  %v2770_v46 = vadd.f32 %v8275_v61, %v2756_v62  ;;  %v2758_v15 = vmul.f32 %v8152_v36, %v8267_v53 }
 0x894   : > { %v2782_v38 = vmul.f32 %v8267_v53, %v2709_v27  ;;  %v2703_v39 = vmul.f32 %v8169_v24, %v2687_v17  ;;  %2807 = vrot.lane.b32.xlu0 %v2788_v11, %s9605_s30  ;;  %v2685_v42 = vpop.permute.xlu1 %2684  ;;  %v2771_v52 = vadd.f32 %v8275_v61, %v2757_v58  ;;  %v2759_v14 = vmul.f32 %v8267_v53, %v8163_v41 }
 0x895   : > { %v2781_v23 = vmul.f32 %v8267_v53, %v2708_v30  ;;  %v2702_v49 = vmul.f32 %v2685_v42, %v8171_v4  ;;  %2805 = vrot.lane.b32.xlu1 %v2787_v21, %s9605_s30  ;;  %v2772_v7 = vadd.f32 %v8275_v61, %v2758_v15  ;;  %v2760_v27 = vmul.f32 %v8161_v57, %v8267_v53 }
 0x896   : > { %v2711_v5 = vadd.f32 %v2703_v39, %v8209_v26  ;;  %v2790_v1 = vadd.f32 %v8275_v61, %v2782_v38  ;;  %v2773_v11 = vadd.f32 %v8275_v61, %v2759_v14  ;;  %v2761_v30 = vmul.f32 %v8267_v53, %v8171_v4 }
 0x897   : > { %v2710_v54 = vadd.f32 %v2702_v49, %v8213_v31  ;;  %v2789_v51 = vadd.f32 %v8275_v61, %v2781_v23  ;;  %v2774_v36 = vadd.f32 %v8275_v61, %v2760_v27  ;;  %v2762_v41 = vmul.f32 %v8169_v24, %v8267_v53 }
 0x898   : > { %v2784_v35 = vmul.f32 %v8267_v53, %v2711_v5  ;;  %2811 = vrot.lane.b32.xlu0 %v2790_v1, %s9605_s30  ;;  %v2775_v17 = vadd.f32 %v8275_v61, %v2761_v30 }
 0x899   : > { %v2783_v19 = vmul.f32 %v8267_v53, %v2710_v54  ;;  %2809 = vrot.lane.b32.xlu1 %v2789_v51, %s9605_s30  ;;  %v2776_v57 = vadd.f32 %v8275_v61, %v2762_v41 }
 0x89a   : > { %v2792_v34 = vadd.f32 %v8275_v61, %v2784_v35 }
 0x89b   : > { %v2791_v40 = vadd.f32 %v8275_v61, %v2783_v19 }
 0x89c   : > { %2815 = vrot.lane.b32.xlu0 %v2792_v34, %s9605_s30 }
 0x89d   : > { %2813 = vrot.lane.b32.xlu1 %v2791_v40, %s9605_s30  ;;  %s9647_s30 = smov 123  }
 0x902   : > { %v2804_v26 = vpop.permute.xlu0 %2803 }
 0x903   : > { %v2802_v31 = vpop.permute.xlu1 %2801 }
 0x904   : > { %6567 = vmatprep.mubr.msk.f32.mxu1 %vm1160_vm9, %v2802_v31 }
 0x905   : > { %6568 = vmatmul.mubr.msk.f32.vlgmr.msra.gmra.mrb[16].mxu1 %vm1160_vm9, %v2804_v26 }
 0x906   : > { %v2808_v56 = vpop.permute.xlu0 %2807  ;;  %6580 = vmatpush3.msk.msra.mxu1 %vm1263_vm6, %v8247_v9  ;;  %v2769_v9 = vadd.f32 %v8275_v61, %v2755_v50 }
 0x907   : > { %v2806_v28 = vpop.permute.xlu1 %2805 }
 0x908   : > { %6570 = vmatprep.mubr.msk.f32.mxu1 %vm1160_vm9, %v2806_v28 }
 0x909   : > { %6571 = vmatmul.mubr.msk.f32.gmra.mrb[18].mxu1 %vm1160_vm9, %v2808_v56 }
 0x90a   : > { %v2812_v12 = vpop.permute.xlu0 %2811 }
 0x90b   : > { %v2810_v16 = vpop.permute.xlu1 %2809 }
 0x90c   : > { %6573 = vmatprep.mubr.msk.f32.mxu1 %vm1160_vm9, %v2810_v16 }
 0x90d   : > { %6574 = vmatmul.mubr.msk.f32.gmra.mrb[20].mxu1 %vm1160_vm9, %v2812_v12 }
 0x90e   : > { %v2816_v37 = vpop.permute.xlu0 %2815 }
 0x90f   : > { %v2814_v6 = vpop.permute.xlu1 %2813 }
 0x910   : > { %6576 = vmatprep.mubr.msk.f32.mxu1 %vm1160_vm9, %v2814_v6 }
 0x911   : > { %6577 = vmatmul.mubr.msk.f32.gmra.mrb[22].mxu1 %vm1160_vm9, %v2816_v37 }
 0x912   : > { %6581 = vmatprep.mubr.msk.f32.mxu1 %vm1160_vm9, %v2769_v9 }
 0x915   : > { %6582 = vmatmul.mubr.msk.f32.vlgmr.msra.gmra.mrb[16].mxu1 %vm1160_vm9, %v2770_v46 }
 0x916   : > { %6584 = vmatprep.mubr.msk.f32.mxu1 %vm1160_vm9, %v2771_v52 }
 0x919   : > { %6585 = vmatmul.mubr.msk.f32.gmra.mrb[18].mxu1 %vm1160_vm9, %v2772_v7 }
 0x91a   : > { %6587 = vmatprep.mubr.msk.f32.mxu1 %vm1160_vm9, %v2773_v11 }
 0x91d   : > { %6588 = vmatmul.mubr.msk.f32.gmra.mrb[20].mxu1 %vm1160_vm9, %v2774_v36 }
 0x91e   : > { %6590 = vmatprep.mubr.msk.f32.mxu1 %vm1160_vm9, %v2775_v17  ;;  %v6126_v17 = vld [vmem:[%s9635_s5 + $0x60] sm:$0xff] }
 0x921   : > { %6591 = vmatmul.mubr.msk.f32.gmra.mrb[22].mxu1 %vm1160_vm9, %v2776_v57  ;;  %v6127_v57 = vld [vmem:[%s9635_s5 + $0x68] sm:$0xff] }
 0x9e8   : > { %v8353_v4 = vpop.f32.mrb[16].mxu1 }
 0x9e9   : > { %v3111_v21 = vrot.slane %v8353_v4, 7  ;;  %v8356_v38 = vpop.f32.mrb[17].mxu1 }
 0x9ea   : > { %v3110_v39 = vrot.slane %v8356_v38, 7 }
 0x9eb   : > { %v8360_v24 = vsel %vm875_vm2, 0.0, %v3111_v21  ;;  %v3135_v53 = vsel %vm875_vm2, %v3111_v21, 0.0 }
 0x9ec   : > { %3250 = vrot.lane.b32.xlu0 %v8360_v24, %s9645_s22  ;;  %v8365_v42 = vpop.f32.mrb[18].mxu1  ;;  %v3160_v23 = vrot.slane %v3135_v53, 1  ;;  %v8370_v49 = vsel %vm875_vm2, 0.0, %v3110_v39  ;;  %v3159_v5 = vrot.slane %v8360_v24, 1  ;;  %v3181_v35 = vrot.slane %v3135_v53, 2 }
 0x9ed   : > { %v8367_v61 = vpop.f32.mrb[19].mxu1  ;;  %3248 = vrot.lane.b32.xlu1 %v8370_v49, %s9645_s22  ;;  %v3134_v34 = vsel %vm875_vm2, %v3110_v39, 0.0  ;;  %v3180_v26 = vrot.slane %v8360_v24, 2  ;;  %v3156_v56 = vrot.slane %v8370_v49, 1  ;;  %v3113_v50 = vrot.slane %v8365_v42, 7 }
 0x9ee   : > { %v3161_v51 = vsel %vm910_vm3, %v3159_v5, %v3160_v23  ;;  %v3157_v31 = vrot.slane %v3134_v34, 1  ;;  %v3178_v16 = vrot.slane %v3134_v34, 2  ;;  %v3177_v62 = vrot.slane %v8370_v49, 2  ;;  %v6128_v5 = vld [vmem:[%s9635_s5 + $0x70] sm:$0xff] }
 0x9ef   : > { %v3182_v28 = vsel %vm935_vm4, %v3180_v26, %v3181_v35  ;;  %v8402_v6 = vsel %vm875_vm2, 0.0, %v3113_v50  ;;  %v3112_v9 = vrot.slane %v8367_v61, 7  ;;  %v3137_v37 = vsel %vm875_vm2, %v3113_v50, 0.0  ;;  %v6130_v26 = vld [vmem:[%s9635_s5 + $0x80] sm:$0xff] }
 0x9f0   : > { %3320 = vrot.lane.b32.xlu0 %v8360_v24, %s9639_s19  ;;  %v8377_v1 = vpop.f32.mrb[20].mxu1  ;;  %v3158_v12 = vsel %vm910_vm3, %v3156_v56, %v3157_v31  ;;  %v3179_v58 = vsel %vm935_vm4, %v3177_v62, %v3178_v16  ;;  %v3166_v46 = vrot.slane %v3137_v37, 1  ;;  %v3165_v52 = vrot.slane %v8402_v6, 1  ;;  %v6131_v31 = vld [vmem:[%s9635_s5 + $0x88] sm:$0x1f] }
 0x9f1   : > { %v8379_v54 = vpop.f32.mrb[21].mxu1  ;;  %3274 = vrot.lane.b32.xlu1 %v3161_v51, %s9643_s24  ;;  %v8411_v15 = vsel %vm875_vm2, 0.0, %v3112_v9  ;;  %v3187_v14 = vrot.slane %v3137_v37, 2  ;;  %v3186_v27 = vrot.slane %v8402_v6, 2  ;;  %v3136_v11 = vsel %vm875_vm2, %v3112_v9, 0.0 }
 0x9f2   : > { %v3167_v7 = vsel %vm910_vm3, %v3165_v52, %v3166_v46  ;;  %v3163_v30 = vrot.slane %v3136_v11, 1  ;;  %v3162_v41 = vrot.slane %v8411_v15, 1  ;;  %v3184_v21 = vrot.slane %v3136_v11, 2 }
 0x9f3   : > { %v3188_v36 = vsel %vm935_vm4, %v3186_v27, %v3187_v14  ;;  %v3183_v53 = vrot.slane %v8411_v15, 2  ;;  %v6779_v23 = vpack.c.bf16 %v6127_v57, %v6126_v17  ;;  %v6787_v56 = vpack.c.bf16 %v6131_v31, %v6130_v26 }
 0x9f4   : > { %3208 = vrot.lane.b32.xlu0 %v3161_v51, %s9641_s1  ;;  %v8384_v19 = vpop.f32.mrb[22].mxu1  ;;  %v3164_v39 = vsel %vm910_vm3, %v3162_v41, %v3163_v30  ;;  %v3114_v16 = vrot.slane %v8379_v54, 7 }
 0x9f5   : > { %v8387_v40 = vpop.f32.mrb[23].mxu1  ;;  %3298 = vrot.lane.b32.xlu1 %v3182_v28, %s9636_s29  ;;  %6780 = vmatprep.subr.bf16.mxu0 %v6779_v23  ;;  %v3185_v35 = vsel %vm935_vm4, %v3183_v53, %v3184_v21  ;;  %v3117_v57 = vrot.slane %v8384_v19, 7 }
 0x9f6   : > { %6782 = vmatpush3.bf16.msra.mxu0 %v6779_v23  ;;  %v8471_v9 = vsel %vm875_vm2, 0.0, %v3114_v16  ;;  %v3138_v14 = vsel %vm875_vm2, %v3114_v16, 0.0  ;;  %v3116_v53 = vrot.slane %v8387_v40, 7 }
 0x9f7   : > { %v3168_v11 = vrot.slane %v8471_v9, 1  ;;  %v3190_v30 = vrot.slane %v3138_v14, 2  ;;  %v3189_v41 = vrot.slane %v8471_v9, 2  ;;  %v3133_v21 = vsel %vm875_vm2, 0.0, %v3117_v57 }
 0x9f8   : > { %3229 = vrot.lane.b32.xlu0 %v3182_v28, %s9644_s23  ;;  %v3140_v26 = vsel %vm875_vm2, %v3116_v53, 0.0 }
 0x9f9   : > { %3206 = vrot.lane.b32.xlu1 %v3158_v12, %s9641_s1  ;;  %v3191_v17 = vsel %vm935_vm4, %v3189_v41, %v3190_v30  ;;  %v3175_v31 = vrot.slane %v3140_v26, 1 }
 0x9fc   : > { %3341 = vrot.lane.b32.xlu0 %v3161_v51, %s9642_s3  ;;  %v6129_v51 = vld [vmem:[%s9635_s5 + $0x78] sm:$0xff] }
 0x9fd   : > { %3272 = vrot.lane.b32.xlu1 %v3158_v12, %s9643_s24  ;;  %v6783_v34 = vpack.c.bf16 %v6129_v51, %v6128_v5  ;;  %v8508_v51 = vsel %vm875_vm2, 0.0, %v3116_v53 }
 0x9fe   : > { %v3174_v16 = vrot.slane %v8508_v51, 1 }
 0x9ff   : > { %6784 = vmatprep.subr.bf16.mxu0 %v6783_v34 }
 0xa00   : > { %3362 = vrot.lane.b32.xlu0 %v3182_v28, %s9640_s21  ;;  %6786 = vmatpush3.bf16.msra.mxu0 %v6783_v34  ;;  %v3115_v28 = vrot.slane %v8377_v1, 7  ;;  %v3203_v34 = vrot.slane %v3133_v21, 2 }
 0xa01   : > { %3254 = vrot.lane.b32.xlu1 %v8402_v6, %s9645_s22  ;;  %6789 = vmatprep.subr.msk.bf16.mxu0 %vm7522_vm8, %v6787_v56 }
 0xa02   : > { %v8463_v12 = vsel %vm875_vm2, 0.0, %v3115_v28  ;;  %v3139_v50 = vsel %vm875_vm2, %v3115_v28, 0.0 }
 0xa03   : > { %v3172_v62 = vrot.slane %v3139_v50, 1  ;;  %v3193_v37 = vrot.slane %v3139_v50, 2  ;;  %v3192_v52 = vrot.slane %v8463_v12, 2  ;;  %v3196_v50 = vrot.slane %v3140_v26, 2 }
 0xa04   : > { %3227 = vrot.lane.b32.xlu0 %v3179_v58, %s9644_s23  ;;  %6792 = vmatpush3.bf16.msk.msra.mxu0 %vm7522_vm8, %v6787_v56 }
 0xa05   : > { %3322 = vrot.lane.b32.xlu1 %v8411_v15, %s9639_s19  ;;  %v3194_v27 = vsel %vm935_vm4, %v3192_v52, %v3193_v37 }
 0xa08   : > { %3296 = vrot.lane.b32.xlu0 %v3179_v58, %s9636_s29  ;;  %v3171_v58 = vrot.slane %v8463_v12, 1 }
 0xa09   : > { %3212 = vrot.lane.b32.xlu1 %v3167_v7, %s9641_s1 }
 0xa0a   : > { %v3173_v46 = vsel %vm910_vm3, %v3171_v58, %v3172_v62  ;;  %v3176_v62 = vsel %vm910_vm3, %v3174_v16, %v3175_v31  ;;  %v3195_v58 = vrot.slane %v8508_v51, 2 }
 0xa0c   : > { %3324 = vrot.lane.b32.xlu0 %v8402_v6, %s9639_s19  ;;  %v3197_v37 = vsel %vm935_vm4, %v3195_v58, %v3196_v50 }
 0xa0d   : > { %3302 = vrot.lane.b32.xlu1 %v3188_v36, %s9636_s29 }
 0xa10   : > { %3252 = vrot.lane.b32.xlu0 %v8411_v15, %s9645_s22 }
 0xa11   : > { %3210 = vrot.lane.b32.xlu1 %v3164_v39, %s9641_s1 }
 0xa14   : > { %3278 = vrot.lane.b32.xlu0 %v3167_v7, %s9643_s24 }
 0xa15   : > { %3231 = vrot.lane.b32.xlu1 %v3185_v35, %s9644_s23 }
 0xa18   : > { %3233 = vrot.lane.b32.xlu0 %v3188_v36, %s9644_s23 }
 0xa19   : > { %3343 = vrot.lane.b32.xlu1 %v3164_v39, %s9642_s3 }
 0xa1c   : > { %3345 = vrot.lane.b32.xlu0 %v3167_v7, %s9642_s3  ;;  %v3169_v7 = vrot.slane %v3138_v14, 1 }
 0xa1d   : > { %3300 = vrot.lane.b32.xlu1 %v3185_v35, %s9636_s29 }
 0xa20   : > { %3366 = vrot.lane.b32.xlu0 %v3188_v36, %s9640_s21  ;;  %v3170_v36 = vsel %vm910_vm3, %v3168_v11, %v3169_v7 }
 0xa21   : > { %3258 = vrot.lane.b32.xlu1 %v8463_v12, %s9645_s22 }
 0xa24   : > { %3276 = vrot.lane.b32.xlu0 %v3164_v39, %s9643_s24  ;;  %v3141_v39 = vsel %vm875_vm2, %v3117_v57, 0.0 }
 0xa25   : > { %3326 = vrot.lane.b32.xlu1 %v8471_v9, %s9639_s19  ;;  %v3201_v23 = vrot.slane %v3141_v39, 1  ;;  %v3204_v5 = vrot.slane %v3141_v39, 2 }
 0xa27   : > { %v3205_v28 = vsel %vm935_vm4, %v3203_v34, %v3204_v5 }
 0xa28   : > { %3364 = vrot.lane.b32.xlu0 %v3185_v35, %s9640_s21  ;;  %v3200_v35 = vrot.slane %v3133_v21, 1 }
 0xa29   : > { %3216 = vrot.lane.b32.xlu1 %v3173_v46, %s9641_s1 }
 0xa2a   : > { %v3202_v56 = vsel %vm910_vm3, %v3200_v35, %v3201_v23 }
 0xa2c   : > { %3328 = vrot.lane.b32.xlu0 %v8463_v12, %s9639_s19 }
 0xa2d   : > { %3306 = vrot.lane.b32.xlu1 %v3194_v27, %s9636_s29 }
 0xa30   : > { %3256 = vrot.lane.b32.xlu0 %v8471_v9, %s9645_s22 }
 0xa31   : > { %3214 = vrot.lane.b32.xlu1 %v3170_v36, %s9641_s1 }
 0xa34   : > { %3282 = vrot.lane.b32.xlu0 %v3173_v46, %s9643_s24 }
 0xa35   : > { %3235 = vrot.lane.b32.xlu1 %v3191_v17, %s9644_s23 }
 0xa38   : > { %3237 = vrot.lane.b32.xlu0 %v3194_v27, %s9644_s23 }
 0xa39   : > { %3347 = vrot.lane.b32.xlu1 %v3170_v36, %s9642_s3 }
 0xa3c   : > { %3349 = vrot.lane.b32.xlu0 %v3173_v46, %s9642_s3 }
 0xa3d   : > { %3304 = vrot.lane.b32.xlu1 %v3191_v17, %s9636_s29 }
 0xa40   : > { %3370 = vrot.lane.b32.xlu0 %v3194_v27, %s9640_s21 }
 0xa41   : > { %3262 = vrot.lane.b32.xlu1 %v3133_v21, %s9645_s22 }
 0xa44   : > { %3280 = vrot.lane.b32.xlu0 %v3170_v36, %s9643_s24 }
 0xa45   : > { %3332 = vrot.lane.b32.xlu1 %v3133_v21, %s9639_s19 }
 0xa48   : > { %3368 = vrot.lane.b32.xlu0 %v3191_v17, %s9640_s21 }
 0xa49   : > { %3330 = vrot.lane.b32.xlu1 %v8508_v51, %s9639_s19 }
 0xa4c   : > { %3260 = vrot.lane.b32.xlu0 %v8508_v51, %s9645_s22 }
 0xa4d   : > { %3286 = vrot.lane.b32.xlu1 %v3202_v56, %s9643_s24 }
 0xa50   : > { %3310 = vrot.lane.b32.xlu0 %v3205_v28, %s9636_s29 }
 0xa51   : > { %3218 = vrot.lane.b32.xlu1 %v3176_v62, %s9641_s1 }
 0xa54   : > { %3284 = vrot.lane.b32.xlu0 %v3176_v62, %s9643_s24 }
 0xa55   : > { %3239 = vrot.lane.b32.xlu1 %v3197_v37, %s9644_s23 }
 0xa58   : > { %3308 = vrot.lane.b32.xlu0 %v3197_v37, %s9636_s29 }
 0xa59   : > { %3351 = vrot.lane.b32.xlu1 %v3176_v62, %s9642_s3 }
 0xa5c   : > { %3353 = vrot.lane.b32.xlu0 %v3202_v56, %s9642_s3 }
 0xa5d   : > { %3372 = vrot.lane.b32.xlu1 %v3197_v37, %s9640_s21 }
 0xa5e   : > { %v3251_v46 = vpop.permute.xlu0 %3250 }
 0xa5f   : > { %v3249_v52 = vpop.permute.xlu1 %3248 }
 0xa60   : > { %v3397_v53 = vsel %vm1178_vm11, %v7615_v55, %v3249_v52 }
 0xa61   : > { %3374 = vrot.lane.b32.xlu1 %v3205_v28, %s9640_s21 }
 0xa62   : > { %v3321_v14 = vpop.permute.xlu0 %3320 }
 0xa63   : > { %v3275_v7 = vpop.permute.xlu1 %3274 }
 0xa66   : > { %v3209_v27 = vpop.permute.xlu0 %3208 }
 0xa67   : > { %v3299_v11 = vpop.permute.xlu1 %3298 }
 0xa6a   : > { %v3230_v30 = vpop.permute.xlu0 %3229 }
 0xa6b   : > { %v3207_v36 = vpop.permute.xlu1 %3206 }
 0xa6e   : > { %v3342_v41 = vpop.permute.xlu0 %3341 }
 0xa6f   : > { %v3273_v17 = vpop.permute.xlu1 %3272 }
 0xa70   : > { %v3405_v23 = vsel %vm1187_vm12, %v3397_v53, %v3273_v17  ;;  %v3383_v53 = vsel %vm1160_vm9, %v8370_v49, %v3207_v36 }
 0xa72   : > { %v3363_v57 = vpop.permute.xlu0 %3362 }
 0xa73   : > { %v3255_v21 = vpop.permute.xlu1 %3254 }
 0xa76   : > { %v3228_v39 = vpop.permute.xlu0 %3227 }
 0xa77   : > { %v3323_v5 = vpop.permute.xlu1 %3322 }
 0xa7a   : > { %v3297_v35 = vpop.permute.xlu0 %3296 }
 0xa7b   : > { %v3413_v34 = vsel %vm1196_vm13, %v3405_v23, %v3297_v35  ;;  %v3213_v56 = vpop.permute.xlu1 %3212  ;;  %v3390_v23 = vsel %vm1169_vm10, %v3383_v53, %v3228_v39 }
 0xa7c   : > { %v3421_v26 = vsel %vm1205_vm14, %v3413_v34, %v3321_v14 }
 0xa7d   : > { %v3429_v31 = vsel %vm1214_vm15, %v3421_v26, %v3342_v41  ;;  %v3398_v41 = vsel %vm1178_vm11, %v3390_v23, %v3251_v46 }
 0xa7e   : > { %v3325_v28 = vpop.permute.xlu0 %3324  ;;  %v3437_v16 = vsel %vm1223_vm1, %v3429_v31, %v3363_v57  ;;  %v3406_v57 = vsel %vm1187_vm12, %v3398_v41, %v3275_v7  ;;  %v3384_v31 = vsel %vm1160_vm9, %v8360_v24, %v3209_v27 }
 0xa7f   : > { %6605 = vmatprep.mubr.msk.f32.mxu0 %vm1238_vm7, %v3437_v16  ;;  %v3303_v50 = vpop.permute.xlu1 %3302  ;;  %v3391_v16 = vsel %vm1169_vm10, %v3384_v31, %v3230_v30  ;;  %v3414_v10 = vsel %vm1196_vm13, %v3406_v57, %v3299_v11 }
 0xa80   : > { %v3422_v46 = vsel %vm1205_vm14, %v3414_v10, %v3323_v5 }
 0xa82   : > { %v3253_v62 = vpop.permute.xlu0 %3252 }
 0xa83   : > { %v3211_v58 = vpop.permute.xlu1 %3210  ;;  %v3399_v0 = vsel %vm1178_vm11, %v3391_v16, %v3253_v62 }
 0xa84   : > { %v3385_v31 = vsel %vm1160_vm9, %v8411_v15, %v3211_v58 }
 0xa86   : > { %v3279_v37 = vpop.permute.xlu0 %3278 }
 0xa87   : > { %v3232_v52 = vpop.permute.xlu1 %3231 }
 0xa8a   : > { %v3234_v17 = vpop.permute.xlu0 %3233 }
 0xa8b   : > { %v3344_v14 = vpop.permute.xlu1 %3343 }
 0xa8c   : > { %v3430_v7 = vsel %vm1214_vm15, %v3422_v46, %v3344_v14  ;;  %v3386_v46 = vsel %vm1160_vm9, %v8402_v6, %v3213_v56 }
 0xa8e   : > { %v3346_v35 = vpop.permute.xlu0 %3345 }
 0xa8f   : > { %v3301_v34 = vpop.permute.xlu1 %3300 }
 0xa92   : > { %v3367_v26 = vpop.permute.xlu0 %3366 }
 0xa93   : > { %v3259_v49 = vpop.permute.xlu1 %3258 }
 0xa96   : > { %v3277_v36 = vpop.permute.xlu0 %3276 }
 0xa97   : > { %v3407_v39 = vsel %vm1187_vm12, %v3399_v0, %v3277_v36  ;;  %v3327_v41 = vpop.permute.xlu1 %3326  ;;  %v3392_v36 = vsel %vm1169_vm10, %v3385_v31, %v3232_v52 }
 0xa98   : > { %v3415_v53 = vsel %vm1196_vm13, %v3407_v39, %v3301_v34 }
 0xa99   : > { %v3423_v23 = vsel %vm1205_vm14, %v3415_v53, %v3325_v28 }
 0xa9a   : > { %v3365_v24 = vpop.permute.xlu0 %3364  ;;  %v3431_v27 = vsel %vm1214_vm15, %v3423_v23, %v3346_v35  ;;  %v3393_v23 = vsel %vm1169_vm10, %v3386_v46, %v3234_v17 }
 0xa9b   : > { %v3438_v11 = vsel %vm1223_vm1, %v3430_v7, %v3365_v24  ;;  %v3439_v30 = vsel %vm1223_vm1, %v3431_v27, %v3367_v26  ;;  %v3217_v0 = vpop.permute.xlu1 %3216  ;;  %v3400_v26 = vsel %vm1178_vm11, %v3392_v36, %v3255_v21 }
 0xa9c   : > { %6606 = vmatmul.mubr.msk.f32.vlgmr.msra.gmra.mrb[32].mxu0 %vm1238_vm7, %v3438_v11  ;;  %v3408_v7 = vsel %vm1187_vm12, %v3400_v26, %v3279_v37 }
 0xa9d   : > { %6608 = vmatprep.mubr.msk.f32.mxu0 %vm1238_vm7, %v3439_v30  ;;  %v3416_v58 = vsel %vm1196_vm13, %v3408_v7, %v3303_v50 }
 0xa9e   : > { %v3329_v62 = vpop.permute.xlu0 %3328  ;;  %v3424_v21 = vsel %vm1205_vm14, %v3416_v58, %v3327_v41 }
 0xa9f   : > { %v3307_v34 = vpop.permute.xlu1 %3306 }
 0xaa2   : > { %v3257_v10 = vpop.permute.xlu0 %3256 }
 0xaa3   : > { %v3215_v5 = vpop.permute.xlu1 %3214  ;;  %v3401_v24 = vsel %vm1178_vm11, %v3393_v23, %v3257_v10 }
 0xaa6   : > { %v3283_v28 = vpop.permute.xlu0 %3282 }
 0xaa7   : > { %v3236_v57 = vpop.permute.xlu1 %3235 }
 0xaaa   : > { %v3238_v14 = vpop.permute.xlu0 %3237 }
 0xaab   : > { %v3348_v35 = vpop.permute.xlu1 %3347 }
 0xaac   : > { %v3432_v6 = vsel %vm1214_vm15, %v3424_v21, %v3348_v35 }
 0xaae   : > { %v3350_v16 = vpop.permute.xlu0 %3349 }
 0xaaf   : > { %v3305_v39 = vpop.permute.xlu1 %3304 }
 0xab2   : > { %v3371_v53 = vpop.permute.xlu0 %3370 }
 0xab3   : > { %v3263_v27 = vpop.permute.xlu1 %3262 }
 0xab6   : > { %v3281_v11 = vpop.permute.xlu0 %3280 }
 0xab7   : > { %v3409_v15 = vsel %vm1187_vm12, %v3401_v24, %v3281_v11  ;;  %v3333_v56 = vpop.permute.xlu1 %3332 }
 0xab8   : > { %v3417_v52 = vsel %vm1196_vm13, %v3409_v15, %v3305_v39 }
 0xab9   : > { %v3425_v30 = vsel %vm1205_vm14, %v3417_v52, %v3329_v62  ;;  %v3387_v62 = vsel %vm1160_vm9, %v8471_v9, %v3215_v5  ;;  %v3388_v9 = vsel %vm1160_vm9, %v8463_v12, %v3217_v0 }
 0xaba   : > { %v3369_v17 = vpop.permute.xlu0 %3368  ;;  %v3433_v37 = vsel %vm1214_vm15, %v3425_v30, %v3350_v16  ;;  %v3394_v39 = vsel %vm1169_vm10, %v3387_v62, %v3236_v57  ;;  %v3395_v57 = vsel %vm1169_vm10, %v3388_v9, %v3238_v14 }
 0xabb   : > { %v3440_v10 = vsel %vm1223_vm1, %v3432_v6, %v3369_v17  ;;  %v3441_v31 = vsel %vm1223_vm1, %v3433_v37, %v3371_v53  ;;  %v3331_v50 = vpop.permute.xlu1 %3330  ;;  %v3402_v16 = vsel %vm1178_vm11, %v3394_v39, %v3259_v49 }
 0xabc   : > { %6609 = vmatmul.mubr.msk.f32.gmra.mrb[34].mxu0 %vm1238_vm7, %v3440_v10  ;;  %v3410_v11 = vsel %vm1187_vm12, %v3402_v16, %v3283_v28 }
 0xabd   : > { %6611 = vmatprep.mubr.msk.f32.mxu0 %vm1238_vm7, %v3441_v31 }
 0xabe   : > { %v3261_v36 = vpop.permute.xlu0 %3260 }
 0xabf   : > { %v3287_v26 = vpop.permute.xlu1 %3286  ;;  %v3403_v52 = vsel %vm1178_vm11, %v3395_v57, %v3261_v36  ;;  %v8615_v36 = vld [vmem:[%s9565_s6 + $0x2] ss:$0 sm:$0xff] }
 0xac2   : > { %v3311_v41 = vpop.permute.xlu0 %3310 }
 0xac3   : > { %v3219_v35 = vpop.permute.xlu1 %3218 }
 0xac4   : > { %v3389_v53 = vsel %vm1160_vm9, %v8508_v51, %v3219_v35  ;;  %v3418_v51 = vsel %vm1196_vm13, %v3410_v11, %v3307_v34 }
 0xac5   : > { %v3426_v21 = vsel %vm1205_vm14, %v3418_v51, %v3331_v50 }
 0xac6   : > { %v3285_v46 = vpop.permute.xlu0 %3284 }
 0xac7   : > { %v3240_v23 = vpop.permute.xlu1 %3239 }
 0xac8   : > { %v3396_v7 = vsel %vm1169_vm10, %v3389_v53, %v3240_v23 }
 0xac9   : > { %v3404_v24 = vsel %vm1178_vm11, %v3396_v7, %v3263_v27  ;;  %v3411_v27 = vsel %vm1187_vm12, %v3403_v52, %v3285_v46 }
 0xaca   : > { %v3412_v15 = vsel %vm1187_vm12, %v3404_v24, %v3287_v26  ;;  %v3309_v58 = vpop.permute.xlu0 %3308 }
 0xacb   : > { %v3352_v5 = vpop.permute.xlu1 %3351  ;;  %v3420_v49 = vsel %vm1196_vm13, %v3412_v15, %v3311_v41  ;;  %v3419_v28 = vsel %vm1196_vm13, %v3411_v27, %v3309_v58 }
 0xacc   : > { %v3434_v30 = vsel %vm1214_vm15, %v3426_v21, %v3352_v5  ;;  %v3428_v12 = vsel %vm1205_vm14, %v3420_v49, %v7593_v25  ;;  %v3427_v34 = vsel %vm1205_vm14, %v3419_v28, %v3333_v56 }
 0xacd   : > { %v3436_v17 = vsel %vm1214_vm15, %v3428_v12, %v7600_v32 }
 0xace   : > { %v3354_v0 = vpop.permute.xlu0 %3353  ;;  %v3444_v50 = vsel %vm1223_vm1, %v3436_v17, %v7704_v8 }
 0xacf   : > { %v3373_v6 = vpop.permute.xlu1 %3372  ;;  %v3435_v37 = vsel %vm1214_vm15, %v3427_v34, %v3354_v0 }
 0xad0   : > { %v3442_v14 = vsel %vm1223_vm1, %v3434_v30, %v3373_v6 }
 0xad1   : > { %6612 = vmatmul.mubr.msk.f32.gmra.mrb[36].mxu0 %vm1238_vm7, %v3442_v14 }
 0xad3   : > { %v3375_v10 = vpop.permute.xlu1 %3374 }
 0xad4   : > { %v3443_v31 = vsel %vm1223_vm1, %v3435_v37, %v3375_v10 }
 0xad5   : > { %6614 = vmatprep.mubr.msk.f32.mxu0 %vm1238_vm7, %v3443_v31 }
 0xad6   : > { %6615 = vmatmul.mubr.msk.f32.gmra.mrb[38].mxu0 %vm1238_vm7, %v3444_v50 }
 0xb6f   : > { %v6607_v56 = vpop.f32.mrb[32].mxu0 }
 0xb70   : > { %v3550_v26 = vadd.f32 %v6607_v56, %v8615_v36  ;;  %v3544_v41 = vpop.f32.mrb[33].mxu0 }
 0xb71   : > { %v3545_v62 = vadd.f32 %v8615_v36, %v3544_v41  ;;  %v6133_v41 = vld [vmem:[%s9566_s7 + $0x60] sm:$0xff] }
 0xb72   : > { %v3584_v35 = vmax.f32 %v3550_v26, 0.0 }
 0xb73   : > { %v3583_v39 = vmax.f32 %v3545_v62, 0.0  ;;  %v6134_v62 = vld [vmem:[%s9566_s7 + $0x68] sm:$0xff] }
 0xb74   : > { %v3600_v46 = vrot.slane %v3584_v35, 7  ;;  %v6793_v35 = vpack.c.bf16 %v6134_v62, %v6133_v41 }
 0xb75   : > { %v3599_v16 = vrot.slane %v3583_v39, 7 }
 0xb76   : > { %v8620_v53 = vsel %vm875_vm2, 0.0, %v3600_v46  ;;  %v3624_v23 = vsel %vm875_vm2, %v3600_v46, 0.0  ;;  %6794 = vmatprep.subr.bf16.mxu0 %v6793_v35 }
 0xb77   : > { %v3649_v7 = vrot.slane %v3624_v23, 1  ;;  %3739 = vrot.lane.b32.xlu1 %v8620_v53, %s9645_s22  ;;  %v8626_v24 = vsel %vm875_vm2, 0.0, %v3599_v16  ;;  %v3648_v11 = vrot.slane %v8620_v53, 1  ;;  %v3670_v15 = vrot.slane %v3624_v23, 2  ;;  %6796 = vmatpush3.bf16.msra.mxu0 %v6793_v35 }
 0xb78   : > { %3737 = vrot.lane.b32.xlu0 %v8626_v24, %s9645_s22  ;;  %v3669_v9 = vrot.slane %v8620_v53, 2  ;;  %v3623_v5 = vsel %vm875_vm2, %v3599_v16, 0.0  ;;  %v3645_v49 = vrot.slane %v8626_v24, 1  ;;  %v3666_v27 = vrot.slane %v8626_v24, 2 }
 0xb79   : > { %v3650_v58 = vsel %vm910_vm3, %v3648_v11, %v3649_v7  ;;  %v3646_v57 = vrot.slane %v3623_v5, 1  ;;  %v3667_v21 = vrot.slane %v3623_v5, 2  ;;  %v6135_v7 = vld [vmem:[%s9566_s7 + $0x70] sm:$0xff]  ;;  %v6136_v11 = vld [vmem:[%s9566_s7 + $0x78] sm:$0xff] }
 0xb7a   : > { %v3671_v51 = vsel %vm935_vm4, %v3669_v9, %v3670_v15  ;;  %v6797_v15 = vpack.c.bf16 %v6136_v11, %v6135_v7 }
 0xb7b   : > { %3809 = vrot.lane.b32.xlu1 %v8620_v53, %s9639_s19  ;;  %v3647_v52 = vsel %vm910_vm3, %v3645_v49, %v3646_v57  ;;  %v3668_v28 = vsel %vm935_vm4, %v3666_v27, %v3667_v21  ;;  %v6137_v57 = vld [vmem:[%s9566_s7 + $0x80] sm:$0xff]  ;;  %v6138_v49 = vld [vmem:[%s9566_s7 + $0x88] sm:$0x1f] }
 0xb7c   : > { %3763 = vrot.lane.b32.xlu0 %v3650_v58, %s9643_s24  ;;  %6798 = vmatprep.subr.bf16.mxu0 %v6797_v15 }
 0xb7d   : > { %6800 = vmatpush3.bf16.msra.mxu0 %v6797_v15 }
 0xb7f   : > { %3697 = vrot.lane.b32.xlu1 %v3650_v58, %s9641_s1 }
 0xb80   : > { %3787 = vrot.lane.b32.xlu0 %v3671_v51, %s9636_s29 }
 0xb83   : > { %3718 = vrot.lane.b32.xlu1 %v3671_v51, %s9644_s23 }
 0xb84   : > { %3695 = vrot.lane.b32.xlu0 %v3647_v52, %s9641_s1 }
 0xb87   : > { %3830 = vrot.lane.b32.xlu1 %v3650_v58, %s9642_s3 }
 0xb88   : > { %3761 = vrot.lane.b32.xlu0 %v3647_v52, %s9643_s24 }
 0xb8b   : > { %3851 = vrot.lane.b32.xlu1 %v3671_v51, %s9640_s21  ;;  %v6801_v51 = vpack.c.bf16 %v6138_v49, %v6137_v57 }
 0xb8d   : > { %6803 = vmatprep.subr.msk.bf16.mxu0 %vm7522_vm8, %v6801_v51 }
 0xb8e   : > { %6806 = vmatpush3.bf16.msk.msra.mxu0 %vm7522_vm8, %v6801_v51  ;;  %vm5429_vm8 = vcmask 1044484  }
 0xb8f   : > { %v6610_v30 = vpop.f32.mrb[34].mxu0  ;;  %3716 = vrot.lane.b32.xlu1 %v3668_v28, %s9644_s23 }
 0xb90   : > { %v3560_v6 = vadd.f32 %v6610_v30, %v8615_v36  ;;  %v3554_v12 = vpop.f32.mrb[35].mxu0 }
 0xb91   : > { %v3555_v0 = vadd.f32 %v8615_v36, %v3554_v12 }
 0xb92   : > { %v3586_v14 = vmax.f32 %v3560_v6, 0.0 }
 0xb93   : > { %v3585_v34 = vmax.f32 %v3555_v0, 0.0  ;;  %3785 = vrot.lane.b32.xlu1 %v3668_v28, %s9636_s29 }
 0xb94   : > { %v3602_v17 = vrot.slane %v3586_v14, 7 }
 0xb95   : > { %v3601_v10 = vrot.slane %v3585_v34, 7 }
 0xb96   : > { %v8654_v37 = vsel %vm875_vm2, 0.0, %v3602_v17  ;;  %v3626_v31 = vsel %vm875_vm2, %v3602_v17, 0.0 }
 0xb97   : > { %3743 = vrot.lane.b32.xlu0 %v8654_v37, %s9645_s22  ;;  %3813 = vrot.lane.b32.xlu1 %v8654_v37, %s9639_s19  ;;  %v3655_v50 = vrot.slane %v3626_v31, 1  ;;  %v8662_v56 = vsel %vm875_vm2, 0.0, %v3601_v10  ;;  %v3654_v26 = vrot.slane %v8654_v37, 1  ;;  %v3676_v39 = vrot.slane %v3626_v31, 2 }
 0xb98   : > { %v3675_v16 = vrot.slane %v8654_v37, 2  ;;  %v3625_v23 = vsel %vm875_vm2, %v3601_v10, 0.0  ;;  %v3651_v5 = vrot.slane %v8662_v56, 1  ;;  %v3672_v27 = vrot.slane %v8662_v56, 2 }
 0xb99   : > { %v3656_v46 = vsel %vm910_vm3, %v3654_v26, %v3655_v50  ;;  %v3652_v58 = vrot.slane %v3625_v23, 1  ;;  %v3673_v52 = vrot.slane %v3625_v23, 2 }
 0xb9a   : > { %v3677_v9 = vsel %vm935_vm4, %v3675_v16, %v3676_v39 }
 0xb9b   : > { %3811 = vrot.lane.b32.xlu0 %v8662_v56, %s9639_s19  ;;  %3741 = vrot.lane.b32.xlu1 %v8662_v56, %s9645_s22  ;;  %v3653_v21 = vsel %vm910_vm3, %v3651_v5, %v3652_v58  ;;  %v3674_v0 = vsel %vm935_vm4, %v3672_v27, %v3673_v52 }
 0xb9f   : > { %3701 = vrot.lane.b32.xlu0 %v3656_v46, %s9641_s1  ;;  %3767 = vrot.lane.b32.xlu1 %v3656_v46, %s9643_s24 }
 0xba3   : > { %3791 = vrot.lane.b32.xlu0 %v3677_v9, %s9636_s29  ;;  %3722 = vrot.lane.b32.xlu1 %v3677_v9, %s9644_s23 }
 0xba4   : > { %v6613_v28 = vpop.f32.mrb[36].mxu0 }
 0xba5   : > { %v3570_v30 = vadd.f32 %v6613_v28, %v8615_v36  ;;  %v3564_v6 = vpop.f32.mrb[37].mxu0 }
 0xba6   : > { %v3565_v12 = vadd.f32 %v8615_v36, %v3564_v6 }
 0xba7   : > { %3699 = vrot.lane.b32.xlu0 %v3653_v21, %s9641_s1  ;;  %3834 = vrot.lane.b32.xlu1 %v3656_v46, %s9642_s3  ;;  %v3588_v10 = vmax.f32 %v3570_v30, 0.0 }
 0xba8   : > { %v3587_v50 = vmax.f32 %v3565_v12, 0.0 }
 0xba9   : > { %v6616_v14 = vpop.f32.mrb[38].mxu0  ;;  %v3604_v48 = vrot.slane %v3588_v10, 7 }
 0xbaa   : > { %v3580_v34 = vadd.f32 %v6616_v14, %v8615_v36  ;;  %v3574_v17 = vpop.f32.mrb[39].mxu0  ;;  %v3603_v41 = vrot.slane %v3587_v50, 7 }
 0xbab   : > { %3720 = vrot.lane.b32.xlu0 %v3674_v0, %s9644_s23  ;;  %3855 = vrot.lane.b32.xlu1 %v3677_v9, %s9640_s21  ;;  %v3575_v31 = vadd.f32 %v8615_v36, %v3574_v17  ;;  %v8716_v26 = vsel %vm875_vm2, 0.0, %v3604_v48  ;;  %v3628_v62 = vsel %vm875_vm2, %v3604_v48, 0.0 }
 0xbac   : > { %v3661_v36 = vrot.slane %v3628_v62, 1  ;;  %v8724_v35 = vsel %vm875_vm2, 0.0, %v3603_v41  ;;  %v3660_v39 = vrot.slane %v8716_v26, 1  ;;  %v3682_v46 = vrot.slane %v3628_v62, 2 }
 0xbad   : > { %v3681_v23 = vrot.slane %v8716_v26, 2  ;;  %v3627_v7 = vsel %vm875_vm2, %v3603_v41, 0.0  ;;  %v3657_v58 = vrot.slane %v8724_v35, 1  ;;  %v3678_v57 = vrot.slane %v8724_v35, 2 }
 0xbae   : > { %v3662_v16 = vsel %vm910_vm3, %v3660_v39, %v3661_v36  ;;  %v3658_v11 = vrot.slane %v3627_v7, 1  ;;  %v3679_v9 = vrot.slane %v3627_v7, 2  ;;  %v3590_v51 = vmax.f32 %v3580_v34, 0.0 }
 0xbaf   : > { %3832 = vrot.lane.b32.xlu0 %v3653_v21, %s9642_s3  ;;  %3765 = vrot.lane.b32.xlu1 %v3653_v21, %s9643_s24  ;;  %v3683_v15 = vsel %vm935_vm4, %v3681_v23, %v3682_v46  ;;  %v3589_v52 = vmax.f32 %v3575_v31, 0.0 }
 0xbb0   : > { %v3659_v5 = vsel %vm910_vm3, %v3657_v58, %v3658_v11  ;;  %v3680_v49 = vsel %vm935_vm4, %v3678_v57, %v3679_v9  ;;  %v3606_v21 = vrot.slane %v3590_v51, 7 }
 0xbb1   : > { %v3605_v27 = vrot.slane %v3589_v52, 7 }
 0xbb2   : > { %v3630_v28 = vsel %vm875_vm2, %v3606_v21, 0.0  ;;  %v3622_v30 = vsel %vm875_vm2, 0.0, %v3606_v21 }
 0xbb3   : > { %3789 = vrot.lane.b32.xlu0 %v3674_v0, %s9636_s29  ;;  %3853 = vrot.lane.b32.xlu1 %v3674_v0, %s9640_s21  ;;  %v3693_v6 = vrot.slane %v3630_v28, 2  ;;  %v8754_v12 = vsel %vm875_vm2, 0.0, %v3605_v27  ;;  %v3692_v0 = vrot.slane %v3622_v30, 2  ;;  %v3629_v14 = vsel %vm875_vm2, %v3605_v27, 0.0 }
 0xbb4   : > { %v3664_v34 = vrot.slane %v3629_v14, 1  ;;  %v3663_v10 = vrot.slane %v8754_v12, 1  ;;  %v3690_v31 = vrot.slane %v3630_v28, 1  ;;  %v3685_v48 = vrot.slane %v3629_v14, 2 }
 0xbb5   : > { %v3694_v17 = vsel %vm935_vm4, %v3692_v0, %v3693_v6  ;;  %v3689_v50 = vrot.slane %v3622_v30, 1  ;;  %v3684_v62 = vrot.slane %v8754_v12, 2  ;;  %vm7170_vm2 = vmmov 0  }
 0xbb6   : > { %v3665_v41 = vsel %vm910_vm3, %v3663_v10, %v3664_v34 }
 0xbb7   : > { %3817 = vrot.lane.b32.xlu1 %v8716_v26, %s9639_s19  ;;  %3747 = vrot.lane.b32.xlu0 %v8716_v26, %s9645_s22  ;;  %v3691_v36 = vsel %vm910_vm3, %v3689_v50, %v3690_v31  ;;  %v3686_v39 = vsel %vm935_vm4, %v3684_v62, %v3685_v48  ;;  %vm5425_vm3 = vcmask 1042434   ;;  %vm5423_vm4 = vcmask 1041409  }
 0xbbb   : > { %3815 = vrot.lane.b32.xlu0 %v8724_v35, %s9639_s19  ;;  %3745 = vrot.lane.b32.xlu1 %v8724_v35, %s9645_s22 }
 0xbbf   : > { %3705 = vrot.lane.b32.xlu0 %v3662_v16, %s9641_s1  ;;  %3771 = vrot.lane.b32.xlu1 %v3662_v16, %s9643_s24 }
 0xbc3   : > { %3795 = vrot.lane.b32.xlu0 %v3683_v15, %s9636_s29  ;;  %3726 = vrot.lane.b32.xlu1 %v3683_v15, %s9644_s23 }
 0xbc7   : > { %3838 = vrot.lane.b32.xlu1 %v3662_v16, %s9642_s3  ;;  %3703 = vrot.lane.b32.xlu0 %v3659_v5, %s9641_s1 }
 0xbcb   : > { %3859 = vrot.lane.b32.xlu1 %v3683_v15, %s9640_s21  ;;  %3724 = vrot.lane.b32.xlu0 %v3680_v49, %s9644_s23 }
 0xbcf   : > { %3769 = vrot.lane.b32.xlu1 %v3659_v5, %s9643_s24  ;;  %3836 = vrot.lane.b32.xlu0 %v3659_v5, %s9642_s3 }
 0xbd3   : > { %3857 = vrot.lane.b32.xlu1 %v3680_v49, %s9640_s21  ;;  %3793 = vrot.lane.b32.xlu0 %v3680_v49, %s9636_s29 }
 0xbd7   : > { %3751 = vrot.lane.b32.xlu0 %v3622_v30, %s9645_s22  ;;  %3749 = vrot.lane.b32.xlu1 %v8754_v12, %s9645_s22 }
 0xbdb   : > { %3821 = vrot.lane.b32.xlu0 %v3622_v30, %s9639_s19  ;;  %3799 = vrot.lane.b32.xlu1 %v3694_v17, %s9636_s29 }
 0xbdf   : > { %3819 = vrot.lane.b32.xlu0 %v8754_v12, %s9639_s19  ;;  %3773 = vrot.lane.b32.xlu1 %v3665_v41, %s9643_s24  ;;  %s9649_s19 = sld [smem:[#allocation18_spill]] }
 0xbe3   : > { %3775 = vrot.lane.b32.xlu0 %v3691_v36, %s9643_s24  ;;  %3797 = vrot.lane.b32.xlu1 %v3686_v39, %s9636_s29  ;;  %s9656_s29 = sld [smem:[#allocation22_spill]] }
 0xbe7   : > { %3842 = vrot.lane.b32.xlu1 %v3691_v36, %s9642_s3  ;;  %3707 = vrot.lane.b32.xlu0 %v3665_v41, %s9641_s1 }
 0xbe9   : > { %v3740_v46 = vpop.permute.xlu1 %3739  ;;  %s9657_s24 = smov %s9656_s29 }
 0xbea   : > { %v3738_v16 = vpop.permute.xlu0 %3737 }
 0xbeb   : > { %3728 = vrot.lane.b32.xlu0 %v3686_v39, %s9644_s23  ;;  %v3886_v52 = vsel %vm1178_vm11, %v7615_v55, %v3738_v16  ;;  %s6257_s23 = sshll.u32 %s7327_s26, 4  ;;  %s9263_s26 = sand.u32 1, %s7148_s28  }
 0xbec   : > { %s615_s25 = scalar_lea.vmem [#allocation6], %s9263_s26 }
 0xbed   : > { %v3810_v23 = vpop.permute.xlu1 %3809 }
 0xbee   : > { %v3764_v7 = vpop.permute.xlu0 %3763 }
 0xbef   : > { %3840 = vrot.lane.b32.xlu0 %v3665_v41, %s9642_s3 }
 0xbf1   : > { %v3698_v11 = vpop.permute.xlu1 %3697 }
 0xbf2   : > { %v3788_v58 = vpop.permute.xlu0 %3787 }
 0xbf3   : > { %3861 = vrot.lane.b32.xlu0 %v3686_v39, %s9640_s21 }
 0xbf5   : > { %v3719_v15 = vpop.permute.xlu1 %3718 }
 0xbf6   : > { %v3696_v5 = vpop.permute.xlu0 %3695 }
 0xbf7   : > { %3863 = vrot.lane.b32.xlu0 %v3694_v17, %s9640_s21  ;;  %v3872_v41 = vsel %vm1160_vm9, %v8626_v24, %v3696_v5  ;;  %s9214_s21 = scalar_lea.vmem %s9649_s19, %s6257_s23 }
 0xbf9   : > { %v3831_v9 = vpop.permute.xlu1 %3830 }
 0xbfa   : > { %v3762_v51 = vpop.permute.xlu0 %3761 }
 0xbfb   : > { %v3894_v21 = vsel %vm1187_vm12, %v3886_v52, %v3762_v51 }
 0xbfd   : > { %v3852_v57 = vpop.permute.xlu1 %3851 }
 0xc01   : > { %v3717_v49 = vpop.permute.xlu1 %3716 }
 0xc02   : > { %v3879_v39 = vsel %vm1169_vm10, %v3872_v41, %v3717_v49 }
 0xc03   : > { %v3887_v16 = vsel %vm1178_vm11, %v3879_v39, %v3740_v46 }
 0xc05   : > { %v3786_v27 = vpop.permute.xlu1 %3785 }
 0xc06   : > { %v3902_v28 = vsel %vm1196_vm13, %v3894_v21, %v3786_v27  ;;  %v3873_v21 = vsel %vm1160_vm9, %v8620_v53, %v3698_v11 }
 0xc07   : > { %v3910_v30 = vsel %vm1205_vm14, %v3902_v28, %v3810_v23  ;;  %v3880_v27 = vsel %vm1169_vm10, %v3873_v21, %v3719_v15 }
 0xc08   : > { %v3918_v6 = vsel %vm1214_vm15, %v3910_v30, %v3831_v9 }
 0xc09   : > { %v3744_v0 = vpop.permute.xlu0 %3743  ;;  %v3814_v14 = vpop.permute.xlu1 %3813  ;;  %v3926_v34 = vsel %vm1223_vm1, %v3918_v6, %v3852_v57  ;;  %v3895_v57 = vsel %vm1187_vm12, %v3887_v16, %v3764_v7 }
 0xc0a   : > { %6629 = vmatprep.mubr.msk.f32.mxu0 %vm1238_vm7, %v3926_v34  ;;  %v3903_v28 = vsel %vm1196_vm13, %v3895_v57, %v3788_v58 }
 0xc0d   : > { %v3812_v17 = vpop.permute.xlu0 %3811  ;;  %v3742_v10 = vpop.permute.xlu1 %3741 }
 0xc0e   : > { %v3911_v24 = vsel %vm1205_vm14, %v3903_v28, %v3812_v17  ;;  %v3888_v5 = vsel %vm1178_vm11, %v3880_v27, %v3742_v10 }
 0xc11   : > { %v3702_v31 = vpop.permute.xlu0 %3701  ;;  %v3768_v48 = vpop.permute.xlu1 %3767 }
 0xc15   : > { %v3792_v55 = vpop.permute.xlu0 %3791  ;;  %v3723_v50 = vpop.permute.xlu1 %3722 }
 0xc19   : > { %v3700_v62 = vpop.permute.xlu0 %3699  ;;  %v3835_v36 = vpop.permute.xlu1 %3834 }
 0xc1d   : > { %v3721_v23 = vpop.permute.xlu0 %3720  ;;  %v3856_v9 = vpop.permute.xlu1 %3855 }
 0xc21   : > { %v3833_v51 = vpop.permute.xlu0 %3832  ;;  %v3766_v52 = vpop.permute.xlu1 %3765 }
 0xc22   : > { %v3919_v49 = vsel %vm1214_vm15, %v3911_v24, %v3833_v51  ;;  %v3896_v46 = vsel %vm1187_vm12, %v3888_v5, %v3766_v52  ;;  %v3874_v52 = vsel %vm1160_vm9, %v8662_v56, %v3700_v62 }
 0xc23   : > { %v3881_v27 = vsel %vm1169_vm10, %v3874_v52, %v3721_v23 }
 0xc25   : > { %v3790_v30 = vpop.permute.xlu0 %3789  ;;  %v3854_v6 = vpop.permute.xlu1 %3853 }
 0xc26   : > { %v3904_v7 = vsel %vm1196_vm13, %v3896_v46, %v3790_v30  ;;  %v3927_v34 = vsel %vm1223_vm1, %v3919_v49, %v3854_v6  ;;  %v3875_v46 = vsel %vm1160_vm9, %v8654_v37, %v3702_v31 }
 0xc27   : > { %v3912_v53 = vsel %vm1205_vm14, %v3904_v7, %v3814_v14  ;;  %6630 = vmatmul.mubr.msk.f32.vlgmr.msra.gmra.mrb[40].mxu0 %vm1238_vm7, %v3927_v34  ;;  %v3882_v30 = vsel %vm1169_vm10, %v3875_v46, %v3723_v50 }
 0xc28   : > { %v3920_v11 = vsel %vm1214_vm15, %v3912_v53, %v3835_v36  ;;  %v3889_v36 = vsel %vm1178_vm11, %v3881_v27, %v3744_v0 }
 0xc29   : > { %v3748_v15 = vpop.permute.xlu0 %3747  ;;  %v3818_v58 = vpop.permute.xlu1 %3817  ;;  %v3928_v17 = vsel %vm1223_vm1, %v3920_v11, %v3856_v9  ;;  %v3897_v9 = vsel %vm1187_vm12, %v3889_v36, %v3768_v48 }
 0xc2a   : > { %6632 = vmatprep.mubr.msk.f32.mxu0 %vm1238_vm7, %v3928_v17  ;;  %v3905_v6 = vsel %vm1196_vm13, %v3897_v9, %v3792_v55 }
 0xc2d   : > { %v3816_v10 = vpop.permute.xlu0 %3815  ;;  %v3746_v41 = vpop.permute.xlu1 %3745 }
 0xc2e   : > { %v3913_v56 = vsel %vm1205_vm14, %v3905_v6, %v3816_v10  ;;  %v3890_v62 = vsel %vm1178_vm11, %v3882_v30, %v3746_v41 }
 0xc31   : > { %v3706_v39 = vpop.permute.xlu0 %3705  ;;  %v3772_v16 = vpop.permute.xlu1 %3771 }
 0xc35   : > { %v3796_v57 = vpop.permute.xlu0 %3795  ;;  %v3727_v51 = vpop.permute.xlu1 %3726 }
 0xc39   : > { %v3704_v14 = vpop.permute.xlu0 %3703  ;;  %v3839_v21 = vpop.permute.xlu1 %3838 }
 0xc3a   : > { %v3876_v27 = vsel %vm1160_vm9, %v8724_v35, %v3704_v14  ;;  %v3877_v35 = vsel %vm1160_vm9, %v8716_v26, %v3706_v39 }
 0xc3d   : > { %v3725_v28 = vpop.permute.xlu0 %3724  ;;  %v3860_v24 = vpop.permute.xlu1 %3859 }
 0xc41   : > { %v3837_v5 = vpop.permute.xlu0 %3836  ;;  %v3770_v49 = vpop.permute.xlu1 %3769 }
 0xc42   : > { %v3921_v23 = vsel %vm1214_vm15, %v3913_v56, %v3837_v5  ;;  %v3898_v0 = vsel %vm1187_vm12, %v3890_v62, %v3770_v49 }
 0xc45   : > { %v3794_v7 = vpop.permute.xlu0 %3793  ;;  %v3858_v34 = vpop.permute.xlu1 %3857 }
 0xc46   : > { %v3906_v48 = vsel %vm1196_vm13, %v3898_v0, %v3794_v7  ;;  %v3929_v53 = vsel %vm1223_vm1, %v3921_v23, %v3858_v34 }
 0xc47   : > { %v3914_v37 = vsel %vm1205_vm14, %v3906_v48, %v3818_v58  ;;  %6633 = vmatmul.mubr.msk.f32.gmra.mrb[42].mxu0 %vm1238_vm7, %v3929_v53  ;;  %v3883_v58 = vsel %vm1169_vm10, %v3876_v27, %v3725_v28  ;;  %v3884_v28 = vsel %vm1169_vm10, %v3877_v35, %v3727_v51 }
 0xc48   : > { %v3922_v31 = vsel %vm1214_vm15, %v3914_v37, %v3839_v21  ;;  %v3891_v5 = vsel %vm1178_vm11, %v3883_v58, %v3748_v15 }
 0xc49   : > { %v3752_v55 = vpop.permute.xlu0 %3751  ;;  %v3930_v50 = vsel %vm1223_vm1, %v3922_v31, %v3860_v24  ;;  %v3750_v17 = vpop.permute.xlu1 %3749  ;;  %v3899_v30 = vsel %vm1187_vm12, %v3891_v5, %v3772_v16 }
 0xc4a   : > { %6635 = vmatprep.mubr.msk.f32.mxu0 %vm1238_vm7, %v3930_v50  ;;  %v3907_v62 = vsel %vm1196_vm13, %v3899_v30, %v3796_v57 }
 0xc4d   : > { %v3822_v11 = vpop.permute.xlu0 %3821  ;;  %v3800_v41 = vpop.permute.xlu1 %3799 }
 0xc51   : > { %v3820_v10 = vpop.permute.xlu0 %3819  ;;  %v3774_v9 = vpop.permute.xlu1 %3773 }
 0xc52   : > { %v3915_v23 = vsel %vm1205_vm14, %v3907_v62, %v3820_v10 }
 0xc55   : > { %v3776_v52 = vpop.permute.xlu0 %3775  ;;  %v3798_v6 = vpop.permute.xlu1 %3797 }
 0xc59   : > { %v3708_v36 = vpop.permute.xlu0 %3707  ;;  %v3843_v39 = vpop.permute.xlu1 %3842 }
 0xc5a   : > { %v3878_v21 = vsel %vm1160_vm9, %v8754_v12, %v3708_v36  ;;  %v3892_v12 = vsel %vm1178_vm11, %v3884_v28, %v3750_v17 }
 0xc5b   : > { %v3900_v0 = vsel %vm1187_vm12, %v3892_v12, %v3774_v9 }
 0xc5c   : > { %v3908_v16 = vsel %vm1196_vm13, %v3900_v0, %v3798_v6 }
 0xc5d   : > { %v3729_v24 = vpop.permute.xlu0 %3728  ;;  %v3916_v48 = vsel %vm1205_vm14, %v3908_v16, %v3822_v11 }
 0xc5e   : > { %v3885_v49 = vsel %vm1169_vm10, %v3878_v21, %v3729_v24  ;;  %v3924_v53 = vsel %vm1214_vm15, %v3916_v48, %v3843_v39 }
 0xc5f   : > { %v3893_v46 = vsel %vm1178_vm11, %v3885_v49, %v3752_v55  ;;  %v6154_v55 = vld [vmem:[%s9567_s8 + $0x2] ss:$0 sm:$0xff]  ;;  %vm5435_vm11 = vcmask 1047559  }
 0xc60   : > { %v3901_v56 = vsel %vm1187_vm12, %v3893_v46, %v3776_v52  ;;  %vm9651_vm12 = vcmask 64512  }
 0xc61   : > { %v3841_v14 = vpop.permute.xlu0 %3840  ;;  %v3909_v15 = vsel %vm1196_vm13, %v3901_v56, %v3800_v41  ;;  %vm5537_vm13 = vcmask 31744  }
 0xc62   : > { %v3923_v7 = vsel %vm1214_vm15, %v3915_v23, %v3841_v14  ;;  %v3917_v26 = vsel %vm1205_vm14, %v3909_v15, %v7593_v25  ;;  %vm5295_vm14 = vcmask 0  }
 0xc63   : > { %v3925_v57 = vsel %vm1214_vm15, %v3917_v26, %v7600_v32 }
 0xc64   : > { %v3933_v25 = vsel %vm1223_vm1, %v3925_v57, %v7704_v8 }
 0xc65   : > { %v3862_v34 = vpop.permute.xlu0 %3861 }
 0xc66   : > { %v3931_v51 = vsel %vm1223_vm1, %v3923_v7, %v3862_v34 }
 0xc67   : > { %6636 = vmatmul.mubr.msk.f32.gmra.mrb[44].mxu0 %vm1238_vm7, %v3931_v51 }
 0xc69   : > { %v3864_v37 = vpop.permute.xlu0 %3863 }
 0xc6a   : > { %v3932_v31 = vsel %vm1223_vm1, %v3924_v53, %v3864_v37 }
 0xc6b   : > { %6638 = vmatprep.mubr.msk.f32.mxu0 %vm1238_vm7, %v3932_v31 }
 0xc6c   : > { %6639 = vmatmul.mubr.msk.f32.gmra.mrb[46].mxu0 %vm1238_vm7, %v3933_v25 }
 0xcfa   : > { %v6631_v50 = vpop.f32.mrb[40].mxu0 }
 0xcfb   : > { %v4039_v11 = vadd.f32 %v6631_v50, %v6154_v55  ;;  %v4033_v17 = vpop.f32.mrb[41].mxu0 }
 0xcfc   : > { %v4034_v32 = vadd.f32 %v6154_v55, %v4033_v17 }
 0xcfd   : > { %v8863_v10 = vmul.f32 0.1, %v4039_v11 }
 0xcfe   : > { %v8865_v41 = vmul.f32 0.1, %v4034_v32 }
 0xcff   : > { %6970 = vtanh.f32 %v8863_v10 }
 0xd00   : > { %6972 = vtanh.f32 %v8865_v41 }
 0xd09   : > { %v6971_v52 = vpop.eup %6970 }
 0xd0a   : > { %v6973_v8 = vpop.eup %6972  ;;  %v8869_v27 = vmul.f32 2.0, %v6971_v52 }
 0xd0b   : > { %v8871_v36 = vmul.f32 2.0, %v6973_v8 }
 0xd0c   : > { %v4098_v58 = vmul.f32 1.442695, %v8869_v27 }
 0xd0d   : > { %v4096_v9 = vmul.f32 1.442695, %v8871_v36 }
 0xd0e   : > { %6974 = vpow2.f32 %v4098_v58 }
 0xd0f   : > { %6976 = vpow2.f32 %v4096_v9 }
 0xd18   : > { %v6975_v5 = vpop.eup %6974 }
 0xd19   : > { %v6977_v21 = vpop.eup %6976  ;;  %4122 = vrot.lane.b32.xlu0 %v6975_v5, %s9641_s1 }
 0xd1a   : > { %4120 = vrot.lane.b32.xlu1 %v6977_v21, %s9641_s1  ;;  %v6634_v24 = vpop.f32.mrb[42].mxu0 }
 0xd1b   : > { %v4049_v49 = vadd.f32 %v6634_v24, %v6154_v55  ;;  %v4043_v46 = vpop.f32.mrb[43].mxu0 }
 0xd1c   : > { %v4044_v30 = vadd.f32 %v6154_v55, %v4043_v46 }
 0xd1d   : > { %v8877_v6 = vmul.f32 0.1, %v4049_v49 }
 0xd1e   : > { %v8879_v56 = vmul.f32 0.1, %v4044_v30 }
 0xd1f   : > { %6978 = vtanh.f32 %v8877_v6 }
 0xd20   : > { %6980 = vtanh.f32 %v8879_v56 }
 0xd29   : > { %v6979_v35 = vpop.eup %6978 }
 0xd2a   : > { %v6981_v14 = vpop.eup %6980  ;;  %v8883_v28 = vmul.f32 2.0, %v6979_v35 }
 0xd2b   : > { %v8885_v15 = vmul.f32 2.0, %v6981_v14  ;;  %v8922_v14 = vld [vmem:[%s9570_s11 + $0x20] sm:$0xff] }
 0xd2c   : > { %v4102_v12 = vmul.f32 1.442695, %v8883_v28 }
 0xd2d   : > { %v4100_v62 = vmul.f32 1.442695, %v8885_v15 }
 0xd2e   : > { %6982 = vpow2.f32 %v4102_v12  ;;  %v6143_v12 = vld [vmem:[%s9570_s11 + $0x28] sm:$0x3] }
 0xd2f   : > { %6984 = vpow2.f32 %v4100_v62  ;;  %v4267_v62 = vrot.slane %v8922_v14, 5 }
 0xd38   : > { %v6983_v23 = vpop.eup %6982 }
 0xd39   : > { %v6985_v0 = vpop.eup %6984  ;;  %4126 = vrot.lane.b32.xlu0 %v6983_v23, %s9641_s1  ;;  %v4268_v23 = vrot.slane %v6143_v12, 5 }
 0xd3a   : > { %v6637_v16 = vpop.f32.mrb[44].mxu0  ;;  %4124 = vrot.lane.b32.xlu1 %v6985_v0, %s9641_s1 }
 0xd3b   : > { %v4059_v7 = vadd.f32 %v6637_v16, %v6154_v55  ;;  %v4053_v34 = vpop.f32.mrb[45].mxu0  ;;  %v4269_v0 = vsel %vm672_vm0, %v4267_v62, %v4268_v23 }
 0xd3c   : > { %v4054_v26 = vadd.f32 %v6154_v55, %v4053_v34  ;;  %6641 = vmatprep.subr.msk.mxu1 %vm1263_vm6, %v4269_v0 }
 0xd3d   : > { %v8891_v39 = vmul.f32 0.1, %v4059_v7  ;;  %6642 = vmatpush3.msk.msra.mxu1 %vm1263_vm6, %v4269_v0 }
 0xd3e   : > { %v8893_v51 = vmul.f32 0.1, %v4054_v26  ;;  %6655 = vmatprep.subr.msk.mxu1 %vm1263_vm6, %v8922_v14 }
 0xd3f   : > { %6986 = vtanh.f32 %v8891_v39  ;;  %v6640_v48 = vpop.f32.mrb[46].mxu0 }
 0xd40   : > { %6988 = vtanh.f32 %v8893_v51  ;;  %v4069_v57 = vadd.f32 %v6640_v48, %v6154_v55  ;;  %v4063_v53 = vpop.f32.mrb[47].mxu0 }
 0xd41   : > { %v4064_v37 = vadd.f32 %v6154_v55, %v4063_v53 }
 0xd42   : > { %v8897_v31 = vmul.f32 0.1, %v4069_v57  ;;  %v8939_v57 = vld [vmem:[%s9568_s9 + $0x2] ss:$0 sm:$0xff] }
 0xd43   : > { %v8899_v25 = vmul.f32 0.1, %v4064_v37 }
 0xd44   : > { %6990 = vtanh.f32 %v8897_v31 }
 0xd45   : > { %6992 = vtanh.f32 %v8899_v25 }
 0xd49   : > { %v6987_v50 = vpop.eup %6986 }
 0xd4a   : > { %v6989_v11 = vpop.eup %6988  ;;  %v8903_v17 = vmul.f32 2.0, %v6987_v50  ;;  %v8946_v50 = vld [vmem:[%s9569_s10 + $0x2] ss:$0 sm:$0xff] }
 0xd4b   : > { %v8905_v32 = vmul.f32 2.0, %v6989_v11 }
 0xd4c   : > { %v4106_v52 = vmul.f32 1.442695, %v8903_v17 }
 0xd4d   : > { %v4104_v8 = vmul.f32 1.442695, %v8905_v32 }
 0xd4e   : > { %v6991_v58 = vpop.eup %6990  ;;  %6994 = vpow2.f32 %v4106_v52 }
 0xd4f   : > { %v6993_v55 = vpop.eup %6992  ;;  %6996 = vpow2.f32 %v4104_v8  ;;  %v8909_v9 = vmul.f32 2.0, %v6991_v58 }
 0xd50   : > { %v8911_v5 = vmul.f32 2.0, %v6993_v55 }
 0xd51   : > { %v4110_v21 = vmul.f32 1.442695, %v8909_v9 }
 0xd52   : > { %v4108_v24 = vmul.f32 1.442695, %v8911_v5 }
 0xd53   : > { %6998 = vpow2.f32 %v4110_v21 }
 0xd54   : > { %7000 = vpow2.f32 %v4108_v24 }
 0xd58   : > { %v6995_v49 = vpop.eup %6994 }
 0xd59   : > { %v6997_v46 = vpop.eup %6996  ;;  %4130 = vrot.lane.b32.xlu0 %v6995_v49, %s9641_s1 }
 0xd5a   : > { %4128 = vrot.lane.b32.xlu1 %v6997_v46, %s9641_s1 }
 0xd5d   : > { %v6999_v30 = vpop.eup %6998 }
 0xd5e   : > { %v7001_v35 = vpop.eup %7000  ;;  %4134 = vrot.lane.b32.xlu0 %v6999_v30, %s9641_s1 }
 0xd5f   : > { %4132 = vrot.lane.b32.xlu1 %v7001_v35, %s9641_s1 }
 0xd8b   : > { %v4123_v16 = vpop.permute.xlu0 %4122 }
 0xd8c   : > { %v4145_v7 = vmul.f32 %v8353_v4, %v4123_v16  ;;  %v4121_v34 = vpop.permute.xlu1 %4120 }
 0xd8d   : > { %v4144_v26 = vmul.f32 %v4121_v34, %v8356_v38 }
 0xd8e   : > { %v4153_v48 = vadd.f32 %v4145_v7, %v8863_v10 }
 0xd8f   : > { %v4152_v53 = vadd.f32 %v4144_v26, %v8865_v41 }
 0xd90   : > { %v4226_v37 = vmul.f32 %v8939_v57, %v4153_v48 }
 0xd91   : > { %v4225_v11 = vmul.f32 %v8939_v57, %v4152_v53 }
 0xd92   : > { %v4234_v52 = vadd.f32 %v8946_v50, %v4226_v37 }
 0xd93   : > { %v4233_v10 = vadd.f32 %v8946_v50, %v4225_v11 }
 0xd94   : > { %4251 = vrot.lane.b32.xlu0 %v4234_v52, %s9647_s30 }
 0xd95   : > { %4249 = vrot.lane.b32.xlu1 %v4233_v10, %s9647_s30 }
 0xdab   : > { %v4127_v8 = vpop.permute.xlu0 %4126 }
 0xdac   : > { %v4147_v41 = vmul.f32 %v8365_v42, %v4127_v8  ;;  %v4125_v58 = vpop.permute.xlu1 %4124 }
 0xdad   : > { %v4146_v55 = vmul.f32 %v4125_v58, %v8367_v61 }
 0xdae   : > { %v4155_v21 = vadd.f32 %v4147_v41, %v8877_v6 }
 0xdaf   : > { %v4154_v24 = vadd.f32 %v4146_v55, %v8879_v56 }
 0xdb0   : > { %v4228_v49 = vmul.f32 %v8939_v57, %v4155_v21 }
 0xdb1   : > { %v4227_v46 = vmul.f32 %v8939_v57, %v4154_v24 }
 0xdb2   : > { %v4236_v30 = vadd.f32 %v8946_v50, %v4228_v49 }
 0xdb3   : > { %v4235_v35 = vadd.f32 %v8946_v50, %v4227_v46 }
 0xdb4   : > { %4255 = vrot.lane.b32.xlu0 %v4236_v30, %s9647_s30 }
 0xdb5   : > { %4253 = vrot.lane.b32.xlu1 %v4235_v35, %s9647_s30 }
 0xdcb   : > { %v4131_v12 = vpop.permute.xlu0 %4130 }
 0xdcc   : > { %v4149_v62 = vmul.f32 %v8377_v1, %v4131_v12  ;;  %v4129_v23 = vpop.permute.xlu1 %4128 }
 0xdcd   : > { %v4148_v6 = vmul.f32 %v4129_v23, %v8379_v54  ;;  %v4204_v23 = vmul.f32 %v8353_v4, %v8939_v57 }
 0xdce   : > { %v4157_v56 = vadd.f32 %v4149_v62, %v8891_v39  ;;  %v4203_v62 = vmul.f32 %v8939_v57, %v8356_v38 }
 0xdcf   : > { %v4156_v0 = vadd.f32 %v4148_v6, %v8893_v51  ;;  %v4218_v38 = vadd.f32 %v8946_v50, %v4204_v23 }
 0xdd0   : > { %v4230_v16 = vmul.f32 %v8939_v57, %v4157_v56  ;;  %v4135_v7 = vpop.permute.xlu0 %4134  ;;  %v4205_v56 = vmul.f32 %v8939_v57, %v8367_v61 }
 0xdd1   : > { %v4229_v34 = vmul.f32 %v8939_v57, %v4156_v0  ;;  %v4151_v26 = vmul.f32 %v8384_v19, %v4135_v7  ;;  %v4133_v48 = vpop.permute.xlu1 %4132  ;;  %v4207_v7 = vmul.f32 %v8939_v57, %v8379_v54  ;;  %v4210_v54 = vmul.f32 %v8384_v19, %v8939_v57 }
 0xdd2   : > { %v4238_v53 = vadd.f32 %v8946_v50, %v4230_v16  ;;  %v4150_v37 = vmul.f32 %v4133_v48, %v8387_v40  ;;  %v4206_v16 = vmul.f32 %v8365_v42, %v8939_v57  ;;  %v4219_v4 = vadd.f32 %v8946_v50, %v4205_v56 }
 0xdd3   : > { %v4237_v11 = vadd.f32 %v8946_v50, %v4229_v34  ;;  %v4159_v52 = vadd.f32 %v4151_v26, %v8897_v31  ;;  %v6184_v31 = vld [vmem:[%s9635_s5 + $0xa0] sm:$0xff]  ;;  %v4208_v34 = vmul.f32 %v8377_v1, %v8939_v57  ;;  %v4221_v26 = vadd.f32 %v8946_v50, %v4207_v7 }
 0xdd4   : > { %v4158_v39 = vadd.f32 %v4150_v37, %v8899_v25  ;;  %4259 = vrot.lane.b32.xlu0 %v4238_v53, %s9647_s30  ;;  %v6185_v25 = vld [vmem:[%s9635_s5 + $0xa8] sm:$0xff]  ;;  %v4550_v58 = vrot.slane %v6184_v31, 4  ;;  %v4220_v61 = vadd.f32 %v8946_v50, %v4206_v16  ;;  %v4209_v48 = vmul.f32 %v8939_v57, %v8387_v40  ;;  %v6187_v40 = vld [vmem:[%s9566_s7 + $0xa0] sm:$0xff] }
 0xdd5   : > { %v4232_v51 = vmul.f32 %v8939_v57, %v4159_v52  ;;  %4257 = vrot.lane.b32.xlu1 %v4237_v11, %s9647_s30  ;;  %v4551_v55 = vrot.slane %v6185_v25, 4  ;;  %v4222_v42 = vadd.f32 %v8946_v50, %v4208_v34  ;;  %v4224_v1 = vadd.f32 %v8946_v50, %v4210_v54  ;;  %v6188_v37 = vld [vmem:[%s9566_s7 + $0xa8] sm:$0xff] }
 0xdd6   : > { %v4231_v10 = vmul.f32 %v8939_v57, %v4158_v39  ;;  %v4223_v53 = vadd.f32 %v8946_v50, %v4209_v48  ;;  %v4700_v11 = vrot.slane %v6187_v40, 4  ;;  %v4701_v19 = vrot.slane %v6188_v37, 4 }
 0xdd7   : > { %v4240_v8 = vadd.f32 %v8946_v50, %v4232_v51  ;;  %v4552_v21 = vsel %vm2339_vm5, %v4550_v58, %v4551_v55  ;;  %v6194_v58 = vld [vmem:[%s9565_s6 + $0x3] ss:$0 sm:$0xff] }
 0xdd8   : > { %v4239_v41 = vadd.f32 %v8946_v50, %v4231_v10  ;;  %6669 = vmatprep.subr.msk.mxu0 %vm1263_vm6, %v4552_v21  ;;  %v4702_v57 = vsel %vm2339_vm5, %v4700_v11, %v4701_v19  ;;  %v9648_v10 = vmov 0.0  }
 0xdd9   : > { %4263 = vrot.lane.b32.xlu0 %v4240_v8, %s9647_s30  ;;  %6670 = vmatpush3.msk.msra.mxu0 %vm1263_vm6, %v4552_v21 }
 0xdda   : > { %4261 = vrot.lane.b32.xlu1 %v4239_v41, %s9647_s30  ;;  %6683 = vmatprep.subr.msk.mxu0 %vm1263_vm6, %v4702_v57 }
 0xe06   : > { %v4252_v49 = vpop.permute.xlu0 %4251 }
 0xe07   : > { %v4250_v24 = vpop.permute.xlu1 %4249 }
 0xe08   : > { %6643 = vmatprep.mubr.msk.f32.mxu1 %vm1160_vm9, %v4250_v24 }
 0xe09   : > { %6644 = vmatmul.mubr.msk.f32.vlgmr.msra.gmra.mrb[24].mxu1 %vm1160_vm9, %v4252_v49 }
 0xe0a   : > { %6656 = vmatpush3.msk.msra.mxu1 %vm1263_vm6, %v8922_v14  ;;  %v4217_v14 = vadd.f32 %v8946_v50, %v4203_v62 }
 0xe26   : > { %v4256_v30 = vpop.permute.xlu0 %4255 }
 0xe27   : > { %v4254_v46 = vpop.permute.xlu1 %4253 }
 0xe28   : > { %6646 = vmatprep.mubr.msk.f32.mxu1 %vm1160_vm9, %v4254_v46 }
 0xe29   : > { %6647 = vmatmul.mubr.msk.f32.gmra.mrb[26].mxu1 %vm1160_vm9, %v4256_v30 }
 0xe46   : > { %v4260_v35 = vpop.permute.xlu0 %4259 }
 0xe47   : > { %v4258_v12 = vpop.permute.xlu1 %4257 }
 0xe48   : > { %6649 = vmatprep.mubr.msk.f32.mxu1 %vm1160_vm9, %v4258_v12 }
 0xe49   : > { %6650 = vmatmul.mubr.msk.f32.gmra.mrb[28].mxu1 %vm1160_vm9, %v4260_v35 }
 0xe4b   : > { %v4264_v0 = vpop.permute.xlu0 %4263 }
 0xe4c   : > { %v4262_v6 = vpop.permute.xlu1 %4261 }
 0xe4d   : > { %6652 = vmatprep.mubr.msk.f32.mxu1 %vm1160_vm9, %v4262_v6 }
 0xe4e   : > { %6653 = vmatmul.mubr.msk.f32.gmra.mrb[30].mxu1 %vm1160_vm9, %v4264_v0 }
 0xe4f   : > { %6657 = vmatprep.mubr.msk.f32.mxu1 %vm1160_vm9, %v4217_v14 }
 0xe52   : > { %6658 = vmatmul.mubr.msk.f32.vlgmr.msra.gmra.mrb[24].mxu1 %vm1160_vm9, %v4218_v38 }
 0xe53   : > { %6660 = vmatprep.mubr.msk.f32.mxu1 %vm1160_vm9, %v4219_v4 }
 0xe56   : > { %6661 = vmatmul.mubr.msk.f32.gmra.mrb[26].mxu1 %vm1160_vm9, %v4220_v61 }
 0xe57   : > { %6663 = vmatprep.mubr.msk.f32.mxu1 %vm1160_vm9, %v4221_v26 }
 0xe5a   : > { %6664 = vmatmul.mubr.msk.f32.gmra.mrb[28].mxu1 %vm1160_vm9, %v4222_v42 }
 0xe5b   : > { %6666 = vmatprep.mubr.msk.f32.mxu1 %vm1160_vm9, %v4223_v53  ;;  %v6204_v53 = vld [vmem:[%s9567_s8 + $0x3] ss:$0 sm:$0xff] }
 0xe5e   : > { %6667 = vmatmul.mubr.msk.f32.gmra.mrb[30].mxu1 %vm1160_vm9, %v4224_v1 }
 0xf25   : > { %v9042_v52 = vpop.f32.mrb[24].mxu1 }
 0xf26   : > { %v9044_v39 = vpop.f32.mrb[25].mxu1 }
 0xf27   : > { %6671 = vmatprep.mubr.msk.f32.mxu0 %vm1160_vm9, %v9044_v39 }
 0xf28   : > { %6672 = vmatmul.mubr.msk.f32.vlgmr.msra.gmra.mrb[48].mxu0 %vm1160_vm9, %v9042_v52 }
 0xf29   : > { %v9050_v50 = vpop.f32.mrb[26].mxu1  ;;  %6684 = vmatpush3.msk.msra.mxu0 %vm1263_vm6, %v4702_v57 }
 0xf2a   : > { %v9053_v51 = vpop.f32.mrb[27].mxu1  ;;  %6725 = vmatprep.subr.mxu0 %v9648_v10 }
 0xf2b   : > { %6674 = vmatprep.mubr.msk.f32.mxu0 %vm1160_vm9, %v9053_v51 }
 0xf2c   : > { %6675 = vmatmul.mubr.msk.f32.gmra.mrb[50].mxu0 %vm1160_vm9, %v9050_v50 }
 0xf2d   : > { %v9060_v8 = vpop.f32.mrb[28].mxu1 }
 0xf2e   : > { %v9062_v41 = vpop.f32.mrb[29].mxu1 }
 0xf2f   : > { %6677 = vmatprep.mubr.msk.f32.mxu0 %vm1160_vm9, %v9062_v41 }
 0xf30   : > { %6678 = vmatmul.mubr.msk.f32.gmra.mrb[52].mxu0 %vm1160_vm9, %v9060_v8 }
 0xf31   : > { %v9068_v31 = vpop.f32.mrb[30].mxu1 }
 0xf32   : > { %v9070_v25 = vpop.f32.mrb[31].mxu1 }
 0xf33   : > { %6680 = vmatprep.mubr.msk.f32.mxu0 %vm1160_vm9, %v9070_v25 }
 0xf34   : > { %6681 = vmatmul.mubr.msk.f32.gmra.mrb[54].mxu0 %vm1160_vm9, %v9068_v31 }
 0xffb   : > { %v6673_v55 = vpop.f32.mrb[48].mxu0 }
 0xffc   : > { %v4651_v21 = vadd.f32 %v6673_v55, %v6194_v58  ;;  %v4645_v24 = vpop.f32.mrb[49].mxu0 }
 0xffd   : > { %v4646_v49 = vadd.f32 %v6194_v58, %v4645_v24 }
 0xffe   : > { %v4685_v35 = vmax.f32 %v4651_v21, 0.0 }
 0xfff   : > { %v4684_v46 = vmax.f32 %v4646_v49, 0.0  ;;  %v6676_v30 = vpop.f32.mrb[50].mxu0 }
0x1000   : > { %v4661_v12 = vadd.f32 %v6676_v30, %v6194_v58  ;;  %v4655_v62 = vpop.f32.mrb[51].mxu0 }
0x1001   : > { %v4656_v23 = vadd.f32 %v6194_v58, %v4655_v62  ;;  %6685 = vmatprep.mubr.msk.f32.mxu0 %vm1160_vm9, %v4684_v46 }
0x1002   : > { %6686 = vmatmul.mubr.msk.f32.vlgmr.msra.gmra.mrb[56].mxu0 %vm1160_vm9, %v4685_v35  ;;  %v4687_v56 = vmax.f32 %v4661_v12, 0.0 }
0x1003   : > { %v4686_v6 = vmax.f32 %v4656_v23, 0.0  ;;  %v6679_v14 = vpop.f32.mrb[52].mxu0 }
0x1004   : > { %v4671_v0 = vadd.f32 %v6679_v14, %v6194_v58  ;;  %v4665_v38 = vpop.f32.mrb[53].mxu0 }
0x1005   : > { %v4666_v16 = vadd.f32 %v6194_v58, %v4665_v38  ;;  %6688 = vmatprep.mubr.msk.f32.mxu0 %vm1160_vm9, %v4686_v6 }
0x1006   : > { %6689 = vmatmul.mubr.msk.f32.gmra.mrb[58].mxu0 %vm1160_vm9, %v4687_v56  ;;  %v4689_v61 = vmax.f32 %v4671_v0, 0.0 }
0x1007   : > { %v4688_v4 = vmax.f32 %v4666_v16, 0.0  ;;  %v6682_v7 = vpop.f32.mrb[54].mxu0 }
0x1008   : > { %v4681_v34 = vadd.f32 %v6682_v7, %v6194_v58  ;;  %v4675_v26 = vpop.f32.mrb[55].mxu0 }
0x1009   : > { %v4676_v48 = vadd.f32 %v6194_v58, %v4675_v26  ;;  %6691 = vmatprep.mubr.msk.f32.mxu0 %vm1160_vm9, %v4688_v4 }
0x100a   : > { %6692 = vmatmul.mubr.msk.f32.gmra.mrb[60].mxu0 %vm1160_vm9, %v4689_v61  ;;  %v4691_v54 = vmax.f32 %v4681_v34, 0.0 }
0x100b   : > { %v4690_v42 = vmax.f32 %v4676_v48, 0.0 }
0x100d   : > { %6694 = vmatprep.mubr.msk.f32.mxu0 %vm1160_vm9, %v4690_v42 }
0x100e   : > { %6695 = vmatmul.mubr.msk.f32.gmra.mrb[62].mxu0 %vm1160_vm9, %v4691_v54 }
0x100f   : > { %6727 = vmatprep.mubr.msk.f32.mxu0 %vm7170_vm2, %v9648_v10 }
0x10d5   : > { %v6687_v1 = vpop.f32.mrb[56].mxu0 }
0x10d6   : > { %v4801_v40 = vadd.f32 %v6687_v1, %v6204_v53  ;;  %v4795_v37 = vpop.f32.mrb[57].mxu0 }
0x10d7   : > { %v4796_v11 = vadd.f32 %v6204_v53, %v4795_v37 }
0x10d8   : > { %v9090_v19 = vmul.f32 0.1, %v4801_v40 }
0x10d9   : > { %v9092_v57 = vmul.f32 0.1, %v4796_v11  ;;  %v6690_v58 = vpop.f32.mrb[58].mxu0 }
0x10da   : > { %7002 = vtanh.f32 %v9090_v19  ;;  %v4811_v55 = vadd.f32 %v6690_v58, %v6204_v53  ;;  %v4805_v21 = vpop.f32.mrb[59].mxu0 }
0x10db   : > { %7004 = vtanh.f32 %v9092_v57  ;;  %v4806_v24 = vadd.f32 %v6204_v53, %v4805_v21 }
0x10dc   : > { %v9096_v49 = vmul.f32 0.1, %v4811_v55 }
0x10dd   : > { %v9098_v46 = vmul.f32 0.1, %v4806_v24  ;;  %v6693_v30 = vpop.f32.mrb[60].mxu0 }
0x10de   : > { %7006 = vtanh.f32 %v9096_v49  ;;  %v4821_v35 = vadd.f32 %v6693_v30, %v6204_v53  ;;  %v4815_v12 = vpop.f32.mrb[61].mxu0 }
0x10df   : > { %7008 = vtanh.f32 %v9098_v46  ;;  %v4816_v62 = vadd.f32 %v6204_v53, %v4815_v12 }
0x10e0   : > { %v9102_v23 = vmul.f32 0.1, %v4821_v35 }
0x10e1   : > { %v9104_v6 = vmul.f32 0.1, %v4816_v62  ;;  %v6696_v14 = vpop.f32.mrb[62].mxu0 }
0x10e2   : > { %7010 = vtanh.f32 %v9102_v23  ;;  %v4831_v56 = vadd.f32 %v6696_v14, %v6204_v53  ;;  %v4825_v0 = vpop.f32.mrb[63].mxu0 }
0x10e3   : > { %7012 = vtanh.f32 %v9104_v6  ;;  %v4826_v38 = vadd.f32 %v6204_v53, %v4825_v0 }
0x10e4   : > { %v7003_v16 = vpop.eup %7002  ;;  %v9108_v4 = vmul.f32 0.1, %v4831_v56 }
0x10e5   : > { %v7005_v7 = vpop.eup %7004  ;;  %v9110_v61 = vmul.f32 2.0, %v7003_v16  ;;  %v9112_v34 = vmul.f32 0.1, %v4826_v38 }
0x10e6   : > { %v9114_v26 = vmul.f32 2.0, %v7005_v7  ;;  %7014 = vtanh.f32 %v9108_v4 }
0x10e7   : > { %v4860_v48 = vmul.f32 1.442695, %v9110_v61  ;;  %7016 = vtanh.f32 %v9112_v34 }
0x10e8   : > { %v7007_v42 = vpop.eup %7006  ;;  %v4858_v54 = vmul.f32 1.442695, %v9114_v26 }
0x10e9   : > { %v7009_v53 = vpop.eup %7008  ;;  %7018 = vpow2.f32 %v4860_v48  ;;  %v9120_v1 = vmul.f32 2.0, %v7007_v42 }
0x10ea   : > { %7020 = vpow2.f32 %v4858_v54  ;;  %v9122_v40 = vmul.f32 2.0, %v7009_v53 }
0x10eb   : > { %v4864_v37 = vmul.f32 1.442695, %v9120_v1 }
0x10ec   : > { %v7011_v11 = vpop.eup %7010  ;;  %v4862_v58 = vmul.f32 1.442695, %v9122_v40 }
0x10ed   : > { %v7013_v55 = vpop.eup %7012  ;;  %7022 = vpow2.f32 %v4864_v37  ;;  %v9126_v21 = vmul.f32 2.0, %v7011_v11  ;;  %v9146_v37 = vld [vmem:[%s9570_s11 + $0x30] sm:$0xff]  ;;  %v6193_v11 = vld [vmem:[%s9570_s11 + $0x38] sm:$0x3] }
0x10ee   : > { %7024 = vpow2.f32 %v4862_v58  ;;  %v9128_v24 = vmul.f32 2.0, %v7013_v55  ;;  %v5029_v58 = vrot.slane %v9146_v37, 5  ;;  %v5030_v55 = vrot.slane %v6193_v11, 5 }
0x10ef   : > { %v4868_v30 = vmul.f32 1.442695, %v9126_v21 }
0x10f0   : > { %v7015_v35 = vpop.eup %7014  ;;  %v4866_v12 = vmul.f32 1.442695, %v9128_v24 }
0x10f1   : > { %v7017_v62 = vpop.eup %7016  ;;  %7026 = vpow2.f32 %v4868_v30  ;;  %v9132_v14 = vmul.f32 2.0, %v7015_v35  ;;  %v5031_v35 = vsel %vm672_vm0, %v5029_v58, %v5030_v55  ;;  %v9174_v55 = vld [vmem:[%s9569_s10 + $0x3] ss:$0 sm:$0xff]  ;;  %vm5354_vm0 = vcmask 60416  }
0x10f2   : > { %7028 = vpow2.f32 %v4866_v12  ;;  %v9134_v56 = vmul.f32 2.0, %v7017_v62  ;;  %6697 = vmatprep.subr.msk.mxu1 %vm1263_vm6, %v5031_v35 }
0x10f3   : > { %v7019_v0 = vpop.eup %7018  ;;  %v4872_v38 = vmul.f32 1.442695, %v9132_v14  ;;  %6698 = vmatpush3.msk.msra.mxu1 %vm1263_vm6, %v5031_v35 }
0x10f4   : > { %v7021_v16 = vpop.eup %7020  ;;  %v4870_v7 = vmul.f32 1.442695, %v9134_v56  ;;  %4884 = vrot.lane.b32.xlu0 %v7019_v0, %s9641_s1  ;;  %6711 = vmatprep.subr.msk.mxu1 %vm1263_vm6, %v9146_v37 }
0x10f5   : > { %7030 = vpow2.f32 %v4872_v38  ;;  %4882 = vrot.lane.b32.xlu1 %v7021_v16, %s9641_s1 }
0x10f6   : > { %7032 = vpow2.f32 %v4870_v7 }
0x10f7   : > { %v7023_v48 = vpop.eup %7022 }
0x10f8   : > { %v7025_v42 = vpop.eup %7024  ;;  %4888 = vrot.lane.b32.xlu0 %v7023_v48, %s9641_s1  ;;  %v9166_v48 = vld [vmem:[%s9568_s9 + $0x3] ss:$0 sm:$0xff] }
0x10f9   : > { %4886 = vrot.lane.b32.xlu1 %v7025_v42, %s9641_s1 }
0x10fb   : > { %v7027_v54 = vpop.eup %7026 }
0x10fc   : > { %v7029_v53 = vpop.eup %7028  ;;  %4892 = vrot.lane.b32.xlu0 %v7027_v54, %s9641_s1 }
0x10fd   : > { %4890 = vrot.lane.b32.xlu1 %v7029_v53, %s9641_s1 }
0x10ff   : > { %v7031_v30 = vpop.eup %7030 }
0x1100   : > { %v7033_v12 = vpop.eup %7032  ;;  %4896 = vrot.lane.b32.xlu0 %v7031_v30, %s9641_s1 }
0x1101   : > { %4894 = vrot.lane.b32.xlu1 %v7033_v12, %s9641_s1  ;;  %s6258_s1 = sshll.u32 %s7291_s0, 10 }
0x1102   : > { %s9435_s19 = scalar_lea.hbm %s9656_s29, %s6258_s1 }
0x1166   : > { %v4885_v62 = vpop.permute.xlu0 %4884 }
0x1167   : > { %v4907_v0 = vmul.f32 %v9042_v52, %v4885_v62  ;;  %v4883_v38 = vpop.permute.xlu1 %4882 }
0x1168   : > { %v4906_v16 = vmul.f32 %v4883_v38, %v9044_v39 }
0x1169   : > { %v4915_v7 = vadd.f32 %v4907_v0, %v9090_v19 }
0x116a   : > { %v4914_v42 = vadd.f32 %v4906_v16, %v9092_v57  ;;  %v4889_v54 = vpop.permute.xlu0 %4888 }
0x116b   : > { %v4988_v53 = vmul.f32 %v9166_v48, %v4915_v7  ;;  %v4909_v11 = vmul.f32 %v9050_v50, %v4889_v54  ;;  %v4887_v58 = vpop.permute.xlu1 %4886 }
0x116c   : > { %v4987_v19 = vmul.f32 %v9166_v48, %v4914_v42  ;;  %v4908_v30 = vmul.f32 %v4887_v58, %v9053_v51 }
0x116d   : > { %v4996_v35 = vadd.f32 %v9174_v55, %v4988_v53  ;;  %v4917_v12 = vadd.f32 %v4909_v11, %v9096_v49 }
0x116e   : > { %v4995_v57 = vadd.f32 %v9174_v55, %v4987_v19  ;;  %v4916_v62 = vadd.f32 %v4908_v30, %v9098_v46  ;;  %v4893_v0 = vpop.permute.xlu0 %4892 }
0x116f   : > { %v4990_v38 = vmul.f32 %v9166_v48, %v4917_v12  ;;  %v4911_v16 = vmul.f32 %v9060_v8, %v4893_v0  ;;  %v4891_v7 = vpop.permute.xlu1 %4890  ;;  %5013 = vrot.lane.b32.xlu0 %v4996_v35, %s9647_s30 }
0x1170   : > { %v4989_v42 = vmul.f32 %v9166_v48, %v4916_v62  ;;  %v4910_v54 = vmul.f32 %v4891_v7, %v9062_v41  ;;  %5011 = vrot.lane.b32.xlu1 %v4995_v57, %s9647_s30 }
0x1171   : > { %v4998_v49 = vadd.f32 %v9174_v55, %v4990_v38  ;;  %v4919_v53 = vadd.f32 %v4911_v16, %v9102_v23 }
0x1172   : > { %v4997_v46 = vadd.f32 %v9174_v55, %v4989_v42  ;;  %v4918_v11 = vadd.f32 %v4910_v54, %v9104_v6  ;;  %v4897_v58 = vpop.permute.xlu0 %4896 }
0x1173   : > { %v4992_v19 = vmul.f32 %v9166_v48, %v4919_v53  ;;  %v4913_v30 = vmul.f32 %v9068_v31, %v4897_v58  ;;  %5017 = vrot.lane.b32.xlu0 %v4998_v49, %s9647_s30  ;;  %v4895_v35 = vpop.permute.xlu1 %4894 }
0x1174   : > { %v4991_v12 = vmul.f32 %v9166_v48, %v4918_v11  ;;  %v4912_v57 = vmul.f32 %v4895_v35, %v9070_v25  ;;  %5015 = vrot.lane.b32.xlu1 %v4997_v46, %s9647_s30  ;;  %v4966_v35 = vmul.f32 %v9042_v52, %v9166_v48 }
0x1175   : > { %v5000_v23 = vadd.f32 %v9174_v55, %v4992_v19  ;;  %v4921_v62 = vadd.f32 %v4913_v30, %v9108_v4  ;;  %v5297_v4 = vld [vmem:[%s9214_s21] sm:$0xf]  ;;  %v4965_v30 = vmul.f32 %v9166_v48, %v9044_v39 }
0x1176   : > { %v4999_v6 = vadd.f32 %v9174_v55, %v4991_v12  ;;  %v4920_v0 = vadd.f32 %v4912_v57, %v9112_v34  ;;  %v5350_v34 = vmul.f32 %v5297_v4, %v5297_v4  ;;  %v4967_v57 = vmul.f32 %v9166_v48, %v9053_v51 }
0x1177   : > { %v4994_v38 = vmul.f32 %v9166_v48, %v4921_v62  ;;  %5021 = vrot.lane.b32.xlu0 %v5000_v23, %s9647_s30  ;;  %v4980_v39 = vadd.f32 %v9174_v55, %v4966_v35  ;;  %v4968_v62 = vmul.f32 %v9050_v50, %v9166_v48  ;;  %v4971_v50 = vmul.f32 %v9166_v48, %v9070_v25  ;;  %v5298_v25 = vld [vmem:[%s9214_s21 + $0x4] sm:$0xf] }
0x1178   : > { %v4993_v16 = vmul.f32 %v9166_v48, %v4920_v0  ;;  %5019 = vrot.lane.b32.xlu1 %v4999_v6, %s9647_s30  ;;  %v5355_v54 = vsel %vm5354_vm0, %v5350_v34, 0.0  ;;  %v4981_v52 = vadd.f32 %v9174_v55, %v4967_v57  ;;  %v4969_v6 = vmul.f32 %v9166_v48, %v9062_v41 }
0x1179   : > { %v5002_v7 = vadd.f32 %v9174_v55, %v4994_v38  ;;  %v4982_v51 = vadd.f32 %v9174_v55, %v4968_v62  ;;  %v4970_v0 = vmul.f32 %v9060_v8, %v9166_v48  ;;  %v5299_v62 = vld [vmem:[%s9214_s21 + $0x8] sm:$0xf] }
0x117a   : > { %v5001_v42 = vadd.f32 %v9174_v55, %v4993_v16  ;;  %v4983_v38 = vadd.f32 %v9174_v55, %v4969_v6  ;;  %v4972_v16 = vmul.f32 %v9068_v31, %v9166_v48 }
0x117b   : > { %5025 = vrot.lane.b32.xlu0 %v5002_v7, %s9647_s30  ;;  %v4984_v41 = vadd.f32 %v9174_v55, %v4970_v0  ;;  %v4985_v7 = vadd.f32 %v9174_v55, %v4971_v50 }
0x117c   : > { %5023 = vrot.lane.b32.xlu1 %v5001_v42, %s9647_s30  ;;  %v4986_v8 = vadd.f32 %v9174_v55, %v4972_v16  ;;  %v5351_v42 = vmul.f32 %v5298_v25, %v5298_v25  ;;  %s6018_s30 = sshll.u32 %s9263_s26, 6 }
0x117d   : > { %s9266_s3 = scalar_lea.vmem [#allocation2], %s6018_s30  ;;  %s5820_s30 = scalar_lea.sflag [#allocation3], %s9263_s26 }
0x117e   : > { %v5358_v4 = vsel %vm5354_vm0, %v5351_v42, 0.0  ;;  %v1952_v42 = vsel %vm1160_vm9, %v7971_v13, 0.0  ;;  %v1964_v13 = vsel %vm1160_vm9, %v8005_v45, 0.0  ;;  %v2712_v45 = vsel %vm1160_vm9, %v8215_v33, 0.0 }
0x117f   : > { %v2733_v33 = vsel %vm1160_vm9, %v8233_v47, 0.0  ;;  %v4175_v47 = vsel %vm1160_vm9, %v8903_v17, 0.0  ;;  %v4931_v17 = vsel %vm1160_vm9, %v9120_v1, 0.0 }
0x119a   : > { %5356 = vadd.xlane.f32.xlu0 %v5355_v54 }
0x11a0   : > { %5359 = vadd.xlane.f32.xlu1 %v5358_v4  ;;  %v1949_v4 = vsel %vm1160_vm9, %v7973_v2, 0.0  ;;  %v1961_v2 = vsel %vm1160_vm9, %v8007_v63, 0.0  ;;  %v2721_v63 = vsel %vm1160_vm9, %v8221_v22, 0.0  ;;  %v4163_v22 = vsel %vm1160_vm9, %v8869_v27, 0.0 }
0x11a1   : > { %v4181_v27 = vsel %vm1160_vm9, %v8909_v9, 0.0  ;;  %v4937_v9 = vsel %vm1160_vm9, %v9126_v21, 0.0 }
0x11e1   : > { %v5014_v49 = vpop.permute.xlu0 %5013 }
0x11e2   : > { %v5012_v53 = vpop.permute.xlu1 %5011 }
0x11e3   : > { %6699 = vmatprep.mubr.msk.f32.mxu1 %vm1160_vm9, %v5012_v53 }
0x11e4   : > { %6700 = vmatmul.mubr.msk.f32.vlgmr.msra.gmra.mrb[32].mxu1 %vm1160_vm9, %v5014_v49 }
0x11e5   : > { %v5018_v46 = vpop.permute.xlu0 %5017  ;;  %6712 = vmatpush3.msk.msra.mxu1 %vm1263_vm6, %v9146_v37  ;;  %v4979_v37 = vadd.f32 %v9174_v55, %v4965_v30  ;;  %vm5427_vm6 = vcmask 1043459  }
0x11e6   : > { %v5016_v11 = vpop.permute.xlu1 %5015 }
0x11e7   : > { %6702 = vmatprep.mubr.msk.f32.mxu1 %vm1160_vm9, %v5016_v11 }
0x11e8   : > { %6703 = vmatmul.mubr.msk.f32.gmra.mrb[34].mxu1 %vm1160_vm9, %v5018_v46 }
0x11e9   : > { %v5022_v58 = vpop.permute.xlu0 %5021 }
0x11ea   : > { %v5020_v19 = vpop.permute.xlu1 %5019 }
0x11eb   : > { %6705 = vmatprep.mubr.msk.f32.mxu1 %vm1160_vm9, %v5020_v19 }
0x11ec   : > { %6706 = vmatmul.mubr.msk.f32.gmra.mrb[36].mxu1 %vm1160_vm9, %v5022_v58 }
0x11ed   : > { %v5026_v23 = vpop.permute.xlu0 %5025 }
0x11ee   : > { %v5024_v12 = vpop.permute.xlu1 %5023 }
0x11ef   : > { %6708 = vmatprep.mubr.msk.f32.mxu1 %vm1160_vm9, %v5024_v12 }
0x11f0   : > { %6709 = vmatmul.mubr.msk.f32.gmra.mrb[38].mxu1 %vm1160_vm9, %v5026_v23 }
0x11f1   : > { %6713 = vmatprep.mubr.msk.f32.mxu1 %vm1160_vm9, %v4979_v37 }
0x11f4   : > { %6714 = vmatmul.mubr.msk.f32.vlgmr.msra.gmra.mrb[32].mxu1 %vm1160_vm9, %v4980_v39  ;;  %v5300_v39 = vld [vmem:[%s9214_s21 + $0xc] sm:$0xf]  ;;  %s5842_s21 = sshll.u32 %s9266_s3, 4  ;;  %s9438_s21 = int_to_ptr.vmem [resolvable:$true] %s5842_s21 }
0x11f5   : > { %6716 = vmatprep.mubr.msk.f32.mxu1 %vm1160_vm9, %v4981_v52  ;;  %v5353_v50 = vmul.f32 %v5300_v39, %v5300_v39  ;;  %s7034_s22 = scalar_lea.vmem %s9438_s21, 1024  ;;  %p7041_p0 = scmp.lt.s32.totalorder %s9438_s21, %s7039_s17 }
0x11f6   : > { %p7035_p11 = scmp.ne.s32.totalorder %s9438_s21, %s7034_s22  ;;  %p7042_p1 = scmp.lt.s32.totalorder %s7040_s27, %s7034_s22 }
0x11f8   : > { %6717 = vmatmul.mubr.msk.f32.gmra.mrb[34].mxu1 %vm1160_vm9, %v4982_v51  ;;  %p7036_p12 = pnand %p7035_p11, %p7310_p5  ;;  %p7043_p2 = por %p7042_p1, %p7041_p0 }
0x11f9   : > { %6719 = vmatprep.mubr.msk.f32.mxu1 %vm1160_vm9, %v4983_v38 }
0x11fa   : > { %p7037_p13 = pneg %p7036_p12 }
0x11fc   : > { %6720 = vmatmul.mubr.msk.f32.gmra.mrb[36].mxu1 %vm1160_vm9, %v4984_v41  ;;  %v5352_v41 = vmul.f32 %v5299_v62, %v5299_v62  ;;  %p7044_p3 = pnand %p7043_p2, %p7037_p13 }
0x11fd   : > { %6722 = vmatprep.mubr.msk.f32.mxu1 %vm1160_vm9, %v4985_v7 }
0x11fe   : > { %v5361_v25 = vsel %vm5354_vm0, %v5352_v41, 0.0 }
0x1200   : > { %6723 = vmatmul.mubr.msk.f32.gmra.mrb[38].mxu1 %vm1160_vm9, %v4986_v8  ;;  %v5364_v8 = vsel %vm5354_vm0, %v5353_v50, 0.0 }
0x1227   : > { %v5357_v1 = vpop.xlane.xlu0 %5356 }
0x12c7   : > { %v6715_v31 = vpop.f32.mrb[32].mxu1 }
0x12c8   : > { %5288 = vst.msk [vmem:[%s9266_s3 + $0x8] sm:$0xff] %vm1169_vm10, %v6715_v31  ;;  %v5302_v48 = vmul.f32 %v6715_v31, %v6715_v31  ;;  %v5247_v55 = vpop.f32.mrb[33].mxu1  ;;  %v1958_v31 = vsel %vm1160_vm9, %v7985_v43, 0.0  ;;  %v1970_v43 = vsel %vm1160_vm9, %v8011_v18, 0.0  ;;  %v2718_v18 = vsel %vm1160_vm9, %v8223_v44, 0.0 }
0x12c9   : > { %5287 = vst.msk [vmem:[%s9266_s3] sm:$0xff] %vm1169_vm10, %v5247_v55  ;;  %v5301_v34 = vmul.f32 %v5247_v55, %v5247_v55  ;;  %v5380_v55 = vld [vmem:[%s9572_s13] sm:$0xff]  ;;  %v4160_v44 = vsel %vm1160_vm9, %v8871_v36, 0.0  ;;  %v4178_v36 = vsel %vm1160_vm9, %v8911_v5, 0.0  ;;  %v4934_v5 = vsel %vm1160_vm9, %v9128_v24, 0.0 }
0x12ca   : > { %v5312_v54 = vsel %vm1169_vm10, %v5302_v48, 0.0  ;;  %v1955_v48 = vsel %vm1160_vm9, %v7987_v3, 0.0  ;;  %6726 = vmatpush3.msra.mxu0 %v5380_v55  ;;  %v1967_v3 = vsel %vm1160_vm9, %v8013_v20, 0.0  ;;  %v2727_v20 = vsel %vm1160_vm9, %v8227_v29, 0.0 }
0x12cb   : > { %5313 = vadd.xlane.f32.xlu0 %v5312_v54  ;;  %v6718_v49 = vpop.f32.mrb[34].mxu1  ;;  %v5309_v53 = vsel %vm1169_vm10, %v5301_v34, 0.0  ;;  %6730 = vmatprep.subr.mxu0 %v9648_v10  ;;  %v2715_v34 = vsel %vm1160_vm9, %v8211_v60, 0.0  ;;  %v2724_v60 = vsel %vm1160_vm9, %v8229_v59, 0.0  ;;  %v9650_v54 = vld [vmem:[#allocation15_spill] sm:$0xff]  ;;  %v4169_v29 = vsel %vm1160_vm9, %v8883_v28, 0.0 }
0x12cc   : > { %5290 = vst.msk [vmem:[%s9266_s3 + $0x18] sm:$0xff] %vm1169_vm10, %v6718_v49  ;;  %v5304_v46 = vmul.f32 %v6718_v49, %v6718_v49  ;;  %5310 = vadd.xlane.f32.xlu1 %v5309_v53  ;;  %v5257_v11 = vpop.f32.mrb[35].mxu1  ;;  %v2730_v49 = vsel %vm1160_vm9, %v9650_v54, 0.0  ;;  %v4166_v59 = vsel %vm1160_vm9, %v8885_v15, 0.0  ;;  %v4172_v53 = vsel %vm1160_vm9, %v8905_v32, 0.0 }
0x12cd   : > { %5289 = vst.msk [vmem:[%s9266_s3 + $0x10] sm:$0xff] %vm1169_vm10, %v5257_v11  ;;  %v5303_v58 = vmul.f32 %v5257_v11, %v5257_v11  ;;  %v4925_v28 = vsel %vm1160_vm9, %v9110_v61, 0.0  ;;  %v4922_v15 = vsel %vm1160_vm9, %v9114_v26, 0.0  ;;  %v4928_v32 = vsel %vm1160_vm9, %v9122_v40, 0.0  ;;  %v5360_v40 = vpop.xlane.xlu1 %5359 }
0x12ce   : > { %v5318_v19 = vsel %vm1169_vm10, %v5304_v46, 0.0  ;;  %v4943_v61 = vsel %vm1160_vm9, %v9132_v14, 0.0  ;;  %v4940_v26 = vsel %vm1160_vm9, %v9134_v56, 0.0  ;;  %v5389_v46 = vlaneseq }
0x12cf   : > { %v6721_v30 = vpop.f32.mrb[36].mxu1  ;;  %v5315_v35 = vsel %vm1169_vm10, %v5303_v58, 0.0  ;;  %vm5431_vm9 = vcmask 1045509  }
0x12d0   : > { %5292 = vst.msk [vmem:[%s9266_s3 + $0x28] sm:$0xff] %vm1169_vm10, %v6721_v30  ;;  %v5306_v12 = vmul.f32 %v6721_v30, %v6721_v30  ;;  %5319 = vadd.xlane.f32.xlu1 %v5318_v19  ;;  %5316 = vadd.xlane.f32.xlu0 %v5315_v35  ;;  %v5267_v37 = vpop.f32.mrb[37].mxu1  ;;  %v5390_v58 = vand.u32 127, %v5389_v46  ;;  %v5392_v19 = vshrl.u32 %v5389_v46, 7 }
0x12d1   : > { %5291 = vst.msk [vmem:[%s9266_s3 + $0x20] sm:$0xff] %vm1169_vm10, %v5267_v37  ;;  %v5305_v57 = vmul.f32 %v5267_v37, %v5267_v37 }
0x12d2   : > { %v5324_v23 = vsel %vm1169_vm10, %v5306_v12, 0.0  ;;  %v9366_v37 = vsub.s32 %v5390_v58, %v5392_v19 }
0x12d3   : > { %v6724_v52 = vpop.f32.mrb[38].mxu1  ;;  %v5321_v6 = vsel %vm1169_vm10, %v5305_v57, 0.0 }
0x12d4   : > { %5294 = vst.msk [vmem:[%s9266_s3 + $0x38] sm:$0xff] %vm1169_vm10, %v6724_v52  ;;  %v5308_v51 = vmul.f32 %v6724_v52, %v6724_v52  ;;  %5325 = vadd.xlane.f32.xlu1 %v5324_v23  ;;  %5322 = vadd.xlane.f32.xlu0 %v5321_v6  ;;  %v5277_v0 = vpop.f32.mrb[39].mxu1 }
0x12d5   : > { %5293 = vst.msk [vmem:[%s9266_s3 + $0x30] sm:$0xff] %vm1169_vm10, %v5277_v0  ;;  %v5307_v38 = vmul.f32 %v5277_v0, %v5277_v0 }
0x12d6   : > { %v5330_v16 = vsel %vm1169_vm10, %v5308_v51, 0.0 }
0x12d7   : > { %v5327_v7 = vsel %vm1169_vm10, %v5307_v38, 0.0  ;;  %vm5433_vm10 = vcmask 1046534  }
0x12d8   : > { %5331 = vadd.xlane.f32.xlu1 %v5330_v16  ;;  %5328 = vadd.xlane.f32.xlu0 %v5327_v7  ;;  %v5368_v16 = vmul.f32 0.125, %v5357_v1  ;;  %v5369_v7 = vmul.f32 0.125, %v5360_v40 }
0x12dc   : > { %5365 = vadd.xlane.f32.xlu1 %v5364_v8  ;;  %5362 = vadd.xlane.f32.xlu0 %v5361_v25 }
0x12e0   : > { %1953 = vadd.xlane.f32.xlu1 %v1952_v42  ;;  %1950 = vadd.xlane.f32.xlu0 %v1949_v4 }
0x12e4   : > { %1959 = vadd.xlane.f32.xlu1 %v1958_v31  ;;  %1956 = vadd.xlane.f32.xlu0 %v1955_v48 }
0x12e8   : > { %1965 = vadd.xlane.f32.xlu1 %v1964_v13  ;;  %1962 = vadd.xlane.f32.xlu0 %v1961_v2 }
0x12ec   : > { %1971 = vadd.xlane.f32.xlu1 %v1970_v43  ;;  %1968 = vadd.xlane.f32.xlu0 %v1967_v3  ;;  %v5372_v3 = vmul.f32 0.5, %v5368_v16 }
0x12f0   : > { %2716 = vadd.xlane.f32.xlu1 %v2715_v34  ;;  %2713 = vadd.xlane.f32.xlu0 %v2712_v45  ;;  %v5373_v34 = vmul.f32 0.5, %v5369_v7 }
0x12f4   : > { %2722 = vadd.xlane.f32.xlu1 %v2721_v63  ;;  %2719 = vadd.xlane.f32.xlu0 %v2718_v18 }
0x12f8   : > { %2728 = vadd.xlane.f32.xlu1 %v2727_v20  ;;  %2725 = vadd.xlane.f32.xlu0 %v2724_v60 }
0x12fc   : > { %2734 = vadd.xlane.f32.xlu1 %v2733_v33  ;;  %2731 = vadd.xlane.f32.xlu0 %v2730_v49 }
0x1300   : > { %4164 = vadd.xlane.f32.xlu1 %v4163_v22  ;;  %4161 = vadd.xlane.f32.xlu0 %v4160_v44 }
0x1304   : > { %4170 = vadd.xlane.f32.xlu1 %v4169_v29  ;;  %4167 = vadd.xlane.f32.xlu0 %v4166_v59  ;;  %v5521_v59 = vrot.slane %v5372_v3, %v9366_v37 }
0x1308   : > { %4176 = vadd.xlane.f32.xlu1 %v4175_v47  ;;  %4173 = vadd.xlane.f32.xlu0 %v4172_v53  ;;  %v5525_v47 = vrot.slane %v5373_v34, %v9366_v37 }
0x130c   : > { %4182 = vadd.xlane.f32.xlu1 %v4181_v27  ;;  %4179 = vadd.xlane.f32.xlu0 %v4178_v36 }
0x1310   : > { %4926 = vadd.xlane.f32.xlu1 %v4925_v28  ;;  %4923 = vadd.xlane.f32.xlu0 %v4922_v15  ;;  %v5513_v15 = vld [vmem:[%s9574_s15] sm:$0xf] }
0x1314   : > { %4932 = vadd.xlane.f32.xlu1 %v4931_v17  ;;  %4929 = vadd.xlane.f32.xlu0 %v4928_v32 }
0x1318   : > { %4938 = vadd.xlane.f32.xlu1 %v4937_v9  ;;  %4935 = vadd.xlane.f32.xlu0 %v4934_v5 }
0x131c   : > { %4944 = vadd.xlane.f32.xlu1 %v4943_v61  ;;  %4941 = vadd.xlane.f32.xlu0 %v4940_v26  ;;  %v5534_v26 = vsel %vm5423_vm4, %v5525_v47, %v5521_v59 }
0x1358   : > { %v5314_v11 = vpop.xlane.xlu0 %5313 }
0x1359   : > { %v5335_v21 = vmul.f32 0.1, %v5314_v11  ;;  %v5311_v30 = vpop.xlane.xlu1 %5310 }
0x135a   : > { %v5334_v35 = vmul.f32 0.1, %v5311_v30 }
0x135b   : > { %v5343_v24 = vmul.f32 0.5, %v5335_v21 }
0x135c   : > { %v5342_v12 = vmul.f32 0.5, %v5334_v35 }
0x135d   : > { %v5317_v57 = vpop.xlane.xlu0 %5316  ;;  %v5320_v14 = vpop.xlane.xlu1 %5319  ;;  %v5398_v56 = vrot.slane %v5343_v24, %v9366_v37 }
0x135e   : > { %v5336_v23 = vmul.f32 0.1, %v5317_v57  ;;  %v5337_v39 = vmul.f32 0.1, %v5320_v14  ;;  %v5394_v62 = vrot.slane %v5342_v12, %v9366_v37 }
0x1360   : > { %v5344_v52 = vmul.f32 0.5, %v5336_v23  ;;  %v5345_v6 = vmul.f32 0.5, %v5337_v39  ;;  %v5424_v8 = vsel %vm5423_vm4, %v5398_v56, %v5394_v62 }
0x1361   : > { %v5323_v51 = vpop.xlane.xlu0 %5322  ;;  %v5326_v0 = vpop.xlane.xlu1 %5325 }
0x1362   : > { %v5402_v38 = vrot.slane %v5344_v52, %v9366_v37  ;;  %v5338_v50 = vmul.f32 0.1, %v5323_v51  ;;  %v5339_v41 = vmul.f32 0.1, %v5326_v0  ;;  %v5406_v25 = vrot.slane %v5345_v6, %v9366_v37 }
0x1364   : > { %v5426_v42 = vsel %vm5425_vm3, %v5402_v38, %v5424_v8  ;;  %v5346_v4 = vmul.f32 0.5, %v5338_v50  ;;  %v5347_v31 = vmul.f32 0.5, %v5339_v41 }
0x1365   : > { %v5329_v48 = vpop.xlane.xlu0 %5328  ;;  %v5332_v55 = vpop.xlane.xlu1 %5331  ;;  %v5428_v45 = vsel %vm5427_vm6, %v5406_v25, %v5426_v42 }
0x1366   : > { %v5410_v13 = vrot.slane %v5346_v4, %v9366_v37  ;;  %v5340_v2 = vmul.f32 0.1, %v5329_v48  ;;  %v5341_v43 = vmul.f32 0.1, %v5332_v55  ;;  %v5414_v63 = vrot.slane %v5347_v31, %v9366_v37 }
0x1368   : > { %v5430_v18 = vsel %vm5429_vm8, %v5410_v13, %v5428_v45  ;;  %v5348_v20 = vmul.f32 0.5, %v5340_v2  ;;  %v5349_v60 = vmul.f32 0.5, %v5341_v43 }
0x1369   : > { %v5363_v33 = vpop.xlane.xlu0 %5362  ;;  %v5366_v54 = vpop.xlane.xlu1 %5365  ;;  %v5432_v53 = vsel %vm5431_vm9, %v5414_v63, %v5430_v18 }
0x136a   : > { %v5418_v49 = vrot.slane %v5348_v20, %v9366_v37  ;;  %v5422_v22 = vrot.slane %v5349_v60, %v9366_v37  ;;  %v5370_v44 = vmul.f32 0.125, %v5363_v33  ;;  %v5371_v29 = vmul.f32 0.125, %v5366_v54 }
0x136c   : > { %v5434_v27 = vsel %vm5433_vm10, %v5418_v49, %v5432_v53  ;;  %v5374_v36 = vmul.f32 0.5, %v5370_v44  ;;  %v5375_v28 = vmul.f32 0.5, %v5371_v29 }
0x136d   : > { %v5436_v17 = vsel %vm5435_vm11, %v5422_v22, %v5434_v27  ;;  %v1951_v32 = vpop.xlane.xlu0 %1950  ;;  %v1954_v9 = vpop.xlane.xlu1 %1953 }
0x136e   : > { %v5529_v5 = vrot.slane %v5374_v36, %v9366_v37  ;;  %v5533_v61 = vrot.slane %v5375_v28, %v9366_v37  ;;  %6728 = vmatmul.mubr.msk.f32.vlgmr.msra.gmra.mrb[64].mxu0 %vm9651_vm12, %v5436_v17  ;;  %v1973_v23 = vadd.f32 %v1954_v9, %v1951_v32 }
0x136f   : > { %6731 = vmatpush3.msk.msra.mxu0 %vm2339_vm5, %v5513_v15  ;;  %6732 = vmatprep.mubr.msk.f32.mxu0 %vm7170_vm2, %v9648_v10 }
0x1370   : > { %v5535_v1 = vsel %vm5425_vm3, %v5529_v5, %v5534_v26 }
0x1371   : > { %v1957_v40 = vpop.xlane.xlu0 %1956  ;;  %v1960_v46 = vpop.xlane.xlu1 %1959  ;;  %v5536_v11 = vsel %vm5427_vm6, %v5533_v61, %v5535_v1 }
0x1372   : > { %6733 = vmatmul.mubr.msk.f32.vlgmr.msra.gmra.mrb[66].mxu0 %vm5537_vm13, %v5536_v11  ;;  %v1974_v56 = vadd.f32 %v1973_v23, %v1957_v40 }
0x1374   : > { %v1975_v51 = vadd.f32 %v1974_v56, %v1960_v46 }
0x1375   : > { %v1963_v58 = vpop.xlane.xlu0 %1962  ;;  %v1966_v19 = vpop.xlane.xlu1 %1965 }
0x1376   : > { %v1976_v41 = vadd.f32 %v1975_v51, %v1963_v58 }
0x1378   : > { %v1977_v4 = vadd.f32 %v1976_v41, %v1966_v19 }
0x1379   : > { %v1969_v21 = vpop.xlane.xlu0 %1968  ;;  %v1972_v30 = vpop.xlane.xlu1 %1971 }
0x137a   : > { %v1978_v43 = vadd.f32 %v1977_v4, %v1969_v21  ;;  %v5376_v4 = vld [vmem:[%s9571_s12] sm:$0xff] }
0x137c   : > { %v1979_v20 = vadd.f32 %v1978_v43, %v1972_v30 }
0x137d   : > { %v2714_v35 = vpop.xlane.xlu0 %2713  ;;  %v2717_v24 = vpop.xlane.xlu1 %2716 }
0x137e   : > { %v2736_v57 = vadd.f32 %v2717_v24, %v2714_v35  ;;  %v1980_v22 = vrot.slane %v1979_v20, 4 }
0x1380   : > { %v1981_v36 = vadd.f32 %v1980_v22, %v1979_v20 }
0x1381   : > { %v2720_v12 = vpop.xlane.xlu0 %2719  ;;  %v2723_v37 = vpop.xlane.xlu1 %2722 }
0x1382   : > { %v2737_v39 = vadd.f32 %v2736_v57, %v2720_v12  ;;  %v1982_v61 = vrot.slane %v1981_v36, 2 }
0x1384   : > { %v2738_v6 = vadd.f32 %v2737_v39, %v2723_v37  ;;  %v1983_v19 = vadd.f32 %v1982_v61, %v1981_v36 }
0x1385   : > { %v2726_v14 = vpop.xlane.xlu0 %2725  ;;  %v2729_v10 = vpop.xlane.xlu1 %2728 }
0x1386   : > { %v2739_v50 = vadd.f32 %v2738_v6, %v2726_v14  ;;  %v1984_v12 = vrot.slane %v1983_v19, 1 }
0x1388   : > { %v2740_v25 = vadd.f32 %v2739_v50, %v2729_v10  ;;  %v1985_v23 = vadd.f32 %v1984_v12, %v1983_v19 }
0x1389   : > { %v2732_v62 = vpop.xlane.xlu0 %2731  ;;  %v2735_v52 = vpop.xlane.xlu1 %2734 }
0x138a   : > { %v2741_v13 = vadd.f32 %v2740_v25, %v2732_v62  ;;  %v5511_v25 = vld [vmem:[%s9573_s14 + $0x10] sm:$0xff] }
0x138c   : > { %v2742_v63 = vadd.f32 %v2741_v13, %v2735_v52 }
0x138d   : > { %v4162_v0 = vpop.xlane.xlu0 %4161  ;;  %v4165_v38 = vpop.xlane.xlu1 %4164 }
0x138e   : > { %v4184_v16 = vadd.f32 %v4165_v38, %v4162_v0  ;;  %v2743_v49 = vrot.slane %v2742_v63, 4  ;;  %v5509_v38 = vld [vmem:[%s9573_s14] sm:$0xff] }
0x138f   : > { %6737 = vmatprep.mubr.msk.f32.mxu0 %vm5537_vm13, %v5509_v38 }
0x1390   : > { %v2744_v53 = vadd.f32 %v2743_v49, %v2742_v63 }
0x1391   : > { %v4168_v7 = vpop.xlane.xlu0 %4167  ;;  %v4171_v8 = vpop.xlane.xlu1 %4170 }
0x1392   : > { %v4185_v42 = vadd.f32 %v4184_v16, %v4168_v7  ;;  %v2745_v9 = vrot.slane %v2744_v53, 2  ;;  %v5510_v7 = vld [vmem:[%s9573_s14 + $0x8] sm:$0xff] }
0x1394   : > { %v4186_v31 = vadd.f32 %v4185_v42, %v4171_v8  ;;  %v2746_v46 = vadd.f32 %v2745_v9, %v2744_v53  ;;  %v5512_v42 = vld [vmem:[%s9573_s14 + $0x18] sm:$0xff] }
0x1395   : > { %v4174_v48 = vpop.xlane.xlu0 %4173  ;;  %v4177_v55 = vpop.xlane.xlu1 %4176 }
0x1396   : > { %v4187_v2 = vadd.f32 %v4186_v31, %v4174_v48  ;;  %v2747_v35 = vrot.slane %v2746_v46, 1  ;;  %v5377_v31 = vld [vmem:[%s9571_s12 + $0x8] sm:$0xff]  ;;  %v5378_v48 = vld [vmem:[%s9571_s12 + $0x10] sm:$0xff] }
0x1398   : > { %v4188_v3 = vadd.f32 %v4187_v2, %v4177_v55  ;;  %v2748_v14 = vadd.f32 %v2747_v35, %v2746_v46  ;;  %v5379_v55 = vld [vmem:[%s9571_s12 + $0x18] sm:$0xff] }
0x1399   : > { %v4180_v34 = vpop.xlane.xlu0 %4179  ;;  %v4183_v45 = vpop.xlane.xlu1 %4182 }
0x139a   : > { %v4189_v18 = vadd.f32 %v4188_v3, %v4180_v34  ;;  %v3076_v62 = vadd.f32 %v2748_v14, %v1985_v23 }
0x139c   : > { %v4190_v60 = vadd.f32 %v4189_v18, %v4183_v45 }
0x139d   : > { %v4924_v33 = vpop.xlane.xlu0 %4923  ;;  %v4927_v54 = vpop.xlane.xlu1 %4926 }
0x139e   : > { %v4191_v44 = vrot.slane %v4190_v60, 4  ;;  %v4946_v29 = vadd.f32 %v4927_v54, %v4924_v33 }
0x13a0   : > { %v4192_v28 = vadd.f32 %v4191_v44, %v4190_v60 }
0x13a1   : > { %v4930_v59 = vpop.xlane.xlu0 %4929  ;;  %v4933_v47 = vpop.xlane.xlu1 %4932 }
0x13a2   : > { %v4947_v27 = vadd.f32 %v4946_v29, %v4930_v59  ;;  %v4193_v26 = vrot.slane %v4192_v28, 2 }
0x13a4   : > { %v4948_v15 = vadd.f32 %v4947_v27, %v4933_v47  ;;  %v4194_v21 = vadd.f32 %v4193_v26, %v4192_v28 }
0x13a5   : > { %v4936_v17 = vpop.xlane.xlu0 %4935  ;;  %v4939_v32 = vpop.xlane.xlu1 %4938 }
0x13a6   : > { %v4949_v5 = vadd.f32 %v4948_v15, %v4936_v17  ;;  %v4195_v37 = vrot.slane %v4194_v21, 1 }
0x13a8   : > { %v4950_v1 = vadd.f32 %v4949_v5, %v4939_v32  ;;  %v4196_v39 = vadd.f32 %v4195_v37, %v4194_v21 }
0x13a9   : > { %v4942_v40 = vpop.xlane.xlu0 %4941  ;;  %v4945_v58 = vpop.xlane.xlu1 %4944 }
0x13aa   : > { %v4951_v11 = vadd.f32 %v4950_v1, %v4942_v40  ;;  %v4524_v6 = vadd.f32 %v4196_v39, %v3076_v62 }
0x13ac   : > { %v4952_v30 = vadd.f32 %v4951_v11, %v4945_v58 }
0x13ae   : > { %v4953_v24 = vrot.slane %v4952_v30, 4 }
0x13b0   : > { %v4954_v57 = vadd.f32 %v4953_v24, %v4952_v30 }
0x13b2   : > { %v4955_v10 = vrot.slane %v4954_v57, 2 }
0x13b4   : > { %v4956_v56 = vadd.f32 %v4955_v10, %v4954_v57 }
0x13b6   : > { %v4957_v52 = vrot.slane %v4956_v56, 1 }
0x13b8   : > { %v4958_v51 = vadd.f32 %v4957_v52, %v4956_v56 }
0x13ba   : > { %v5286_v0 = vadd.f32 %v4958_v51, %v4524_v6 }
0x13bc   : > { %5296 = vst.msk [vmem:[%s615_s25] sm:$0x1] %vm5295_vm14, %v5286_v0 }
0x1441   : > { %v5505_v50 = vpop.f32.mrb[64].mxu0 }
0x1442   : > { %v6729_v41 = vpop.f32.mrb[65].mxu0 }
0x1445   : > { %v5609_v16 = vpop.f32.mrb[66].mxu0 }
0x1446   : > { %v6734_v8 = vpop.f32.mrb[67].mxu0  ;;  %6735 = vmatprep.subr.msk.mxu0 %vm2339_vm5, %v5609_v16 }
0x1447   : > { %6736 = vmatpush3.msk.msra.mxu0 %vm2339_vm5, %v5609_v16  ;;  %vm9652_vm5 = vmmov %vm9651_vm12 }
0x1448   : > { %6738 = vmatmul.mubr.msk.f32.vlgmr.msra.gmra.mrb[68].mxu0 %vm5537_vm13, %v5510_v7  ;;  %6743 = vmatprep.subr.mxu0 %v5505_v50  ;;  %vm9653_vm15 = vmmov %vm9652_vm5 }
0x1449   : > { %6744 = vmatpush3.msra.mxu0 %v5505_v50  ;;  %6740 = vmatprep.mubr.msk.f32.mxu0 %vm5537_vm13, %v5511_v25  ;;  %vm9654_vm1 = vmmov %vm9652_vm5 }
0x144a   : > { %vm9655_vm7 = vmmov %vm9654_vm1 }
0x144c   : > { %6741 = vmatmul.mubr.msk.f32.gmra.mrb[70].mxu0 %vm5537_vm13, %v5512_v42 }
0x144d   : > { %6745 = vmatprep.mubr.msk.f32.mxu0 %vm9652_vm5, %v5376_v4 }
0x1450   : > { %6746 = vmatmul.mubr.msk.f32.vlgmr.msra.gmra.mrb[68].mxu0 %vm9653_vm15, %v5377_v31 }
0x1451   : > { %6748 = vmatprep.mubr.msk.f32.mxu0 %vm9654_vm1, %v5378_v48 }
0x1454   : > { %6749 = vmatmul.mubr.msk.f32.gmra.mrb[70].mxu0 %vm9655_vm7, %v5379_v55 }
0x1455   : > { %7047 = shalt.err (!%p7044_p3)
}
0x1456   : > { %s7048_s3 = scalar_lea.hbm %s9435_s19, 1024  ;;  %s7052_s1 = scalar_lea.hbm %s9657_s24, 2048 }
0x1457   : > { %p7049_p4 = scmp.ne.s32.totalorder %s9435_s19, %s7048_s3  ;;  %p7053_p9 = scmp.lt.u32.totalorder %s9435_s19, %s9657_s24 }
0x1458   : > { %p7054_p10 = scmp.lt.u32.totalorder %s7052_s1, %s7048_s3  ;;  %p7056_p12 = scmp.lt.u32.totalorder %s7048_s3, %s9435_s19 }
0x1459   : > { %p7050_p7 = pnand %p7049_p4, %p7310_p5 }
0x145a   : > { %p7055_p11 = por %p7054_p10, %p7053_p9 }
0x145b   : > { %p7051_p8 = pneg %p7050_p7 }
0x145c   : > { %p7057_p13 = por %p7056_p12, %p7055_p11 }
0x145e   : > { %p7058_p0 = pnand %p7057_p13, %p7051_p8 }
0x1460   : > { %7061 = shalt.err (!%p7058_p0)
}
0x1461   : > { %s9613_s29 = smov 128   ;;  %s9658_s22 = smov 8   ;;  %vm5814_vm0 = vcmask 261120  }
0x1462   : > { %6843 = dma.vmem_to_hbm [thread:$0]  (%p7310_p5), %s9438_s21, 1024, %s9435_s19, %s5820_s30, %s9613_s29, %s9613_s29, %s9658_s22  }
0x1463   : > { %s6019_s18 = sshll.u32 %s9263_s26, 5  ;;  %s5824_s3 = sand.u32 1, %s7291_s0  }
0x1464   : > { %s609_s17 = scalar_lea.vmem [#allocation4], %s6019_s18  ;;  %s6259_s20 = sshll.u32 %s7291_s0, 9 }
0x1465   : > { %s5858_s27 = sshll.u32 %s609_s17, 4  ;;  %s6252_s4 = sshll.u32 %s7291_s0, 4  ;;  %s9475_s27 = int_to_ptr.vmem [resolvable:$true] %s5858_s27 }
0x1466   : > { %s5874_s1 = sshll.u32 %s615_s25, 4  ;;  %s9659_s30 = sld [smem:[#allocation23_spill]]  ;;  %s9488_s1 = int_to_ptr.vmem [resolvable:$true] %s5874_s1 }
0x1467   : > { %s9661_s0 = sld [smem:[#allocation24_spill]]  ;;  %s9491_s25 = scalar_lea.sflag [#allocation5], %s5824_s3 }
0x1468   : > { %s7062_s5 = scalar_lea.vmem %s9475_s27, 512 }
0x1469   : > { %p7063_p1 = scmp.ne.s32.totalorder %s9475_s27, %s7062_s5 }
0x146b   : > { %p7064_p2 = pnand %p7063_p1, %p7310_p5 }
0x146c   : > { %s9660_s16 = smov %s9659_s30  ;;  %s9480_s23 = scalar_lea.hbm %s9659_s30, %s6259_s20 }
0x146d   : > { %s9486_s26 = scalar_lea.hbm %s9661_s0, %s6252_s4  ;;  %p7065_p3 = pneg %p7064_p2 }
0x146e   : > { %s7173_s20 = smov [#allocation4]  }
0x146f   : > { %s7066_s19 = sshll.u32 %s7173_s20, 4  ;;  %s7067_s19 = int_to_ptr.vmem [resolvable:$false] %s7066_s19 }
0x1470   : > { %s7068_s21 = scalar_lea.vmem %s7067_s19, 1024  ;;  %p7069_p4 = scmp.lt.s32.totalorder %s9475_s27, %s7067_s19 }
0x1471   : > { %p7070_p7 = scmp.lt.s32.totalorder %s7068_s21, %s7062_s5 }
0x1473   : > { %p7071_p8 = por %p7070_p7, %p7069_p4 }
0x1475   : > { %p7072_p9 = pnand %p7071_p8, %p7065_p3 }
0x1523   : > { %v6747_v13 = vpop.f32.mrb[68].mxu0 }
0x1524   : > { %v5811_v2 = vmul.f32 0.5, %v6747_v13  ;;  %v5791_v43 = vpop.f32.mrb[69].mxu0 }
0x1525   : > { %v5810_v3 = vmul.f32 0.5, %v5791_v43 }
0x1526   : > { %5816 = vst.msk [vmem:[%s609_s17 + $0x8] sm:$0xff] %vm5814_vm0, %v5811_v2 }
0x1527   : > { %5815 = vst.msk [vmem:[%s609_s17] sm:$0xff] %vm5814_vm0, %v5810_v3  ;;  %v6750_v34 = vpop.f32.mrb[70].mxu0 }
0x1528   : > { %v5813_v45 = vmul.f32 0.5, %v6750_v34  ;;  %v5801_v63 = vpop.f32.mrb[71].mxu0 }
0x1529   : > { %v5812_v18 = vmul.f32 0.5, %v5801_v63 }
0x152a   : > { %5818 = vst.msk [vmem:[%s609_s17 + $0x18] sm:$0xff] %vm5814_vm0, %v5813_v45 }
0x152b   : > { %5817 = vst.msk [vmem:[%s609_s17 + $0x10] sm:$0xff] %vm5814_vm0, %v5812_v18 }
0x152c   : > { %7075 = shalt.err (!%p7072_p9)
}
0x152d   : > { %s7076_s29 = scalar_lea.hbm %s9480_s23, 512  ;;  %s7080_s4 = scalar_lea.hbm %s9660_s16, 1024 }
0x152e   : > { %p7077_p10 = scmp.ne.s32.totalorder %s9480_s23, %s7076_s29  ;;  %p7081_p13 = scmp.lt.u32.totalorder %s9480_s23, %s9660_s16 }
0x152f   : > { %p7082_p0 = scmp.lt.u32.totalorder %s7080_s4, %s7076_s29  ;;  %p7084_p2 = scmp.lt.u32.totalorder %s7076_s29, %s9480_s23 }
0x1530   : > { %p7078_p11 = pnand %p7077_p10, %p7310_p5 }
0x1531   : > { %p7083_p1 = por %p7082_p0, %p7081_p13 }
0x1532   : > { %p7079_p12 = pneg %p7078_p11 }
0x1533   : > { %p7085_p3 = por %p7084_p2, %p7083_p1 }
0x1535   : > { %p7086_p4 = pnand %p7085_p3, %p7079_p12 }
0x1537   : > { %7089 = shalt.err (!%p7086_p4)
}
0x1538   : > { %s9662_s5 = smov 128   ;;  %s7090_s20 = scalar_lea.vmem %s9488_s1, 16 }
0x1539   : > { %6844 = dma.vmem_to_hbm [thread:$0]  (%p7310_p5), %s9475_s27, 512, %s9480_s23, %s9491_s25, %s9662_s5, %s9662_s5, %s9658_s22  }
0x153a   : > { %p7091_p7 = scmp.ne.s32.totalorder %s9488_s1, %s7090_s20  ;;  %s7174_s19 = smov [#allocation6]  }
0x153b   : > { %s7094_s21 = sshll.u32 %s7174_s19, 4  ;;  %s7095_s21 = int_to_ptr.vmem [resolvable:$false] %s7094_s21 }
0x153c   : > { %p7092_p8 = pnand %p7091_p7, %p7310_p5  ;;  %s7096_s29 = scalar_lea.vmem %s7095_s21, 32 }
0x153d   : > { %p7097_p10 = scmp.lt.s32.totalorder %s9488_s1, %s7095_s21  ;;  %p7098_p11 = scmp.lt.s32.totalorder %s7096_s29, %s7090_s20 }
0x153e   : > { %p7093_p9 = pneg %p7092_p8 }
0x153f   : > { %p7099_p12 = por %p7098_p11, %p7097_p10 }
0x1541   : > { %p7100_p13 = pnand %p7099_p12, %p7093_p9 }
0x1543   : > { %7103 = shalt.err (!%p7100_p13)
}
0x1544   : > { %s7104_s22 = scalar_lea.hbm %s9486_s26, 16  ;;  %s7108_s17 = scalar_lea.hbm %s9661_s0, 32 }
0x1545   : > { %p7105_p0 = scmp.ne.s32.totalorder %s9486_s26, %s7104_s22  ;;  %p7109_p3 = scmp.lt.u32.totalorder %s9486_s26, %s9661_s0 }
0x1546   : > { %p7110_p4 = scmp.lt.u32.totalorder %s7108_s17, %s7104_s22  ;;  %p7112_p8 = scmp.lt.u32.totalorder %s7104_s22, %s9486_s26 }
0x1547   : > { %p7106_p1 = pnand %p7105_p0, %p7310_p5 }
0x1548   : > { %p7111_p7 = por %p7110_p4, %p7109_p3 }
0x1549   : > { %p7107_p2 = pneg %p7106_p1 }
0x154a   : > { %p7113_p9 = por %p7112_p8, %p7111_p7 }
0x154c   : > { %p7114_p10 = pnand %p7113_p9, %p7107_p2 }
0x154e   : > { %7117 = shalt.err (!%p7114_p10)
}
0x154f   : > { %6845 = dma.vmem_to_hbm [thread:$0]  (%p7310_p5), %s9488_s1, 16, %s9486_s26, %s9491_s25  }
0x1550 PF: > { %s9663_s30 = sld [smem:[#allocation11_spill]]  ;;  %s9664_s18 = sld [smem:[#allocation9_spill]] }
0x1556   : > { %p6859_p11 = scmp.ge.s32.totalorder %s9663_s30, 2  ;;  %s5886_s20 = sand.u32 1, %s9664_s18  }
0x1557   : > { %s5887_s19 = scalar_lea.sflag [#allocation3], %s5886_s20 }
0x1558   : > { %p6850_p12 = pnand %p6859_p11, %p7314_p6 }
0x155a   : > { %7135 = dma.done.wait (!%p6850_p12), %s5887_s19, 1024  }
0x155b   : > { %7137 = vsyncadd (!%p6850_p12), %s5887_s19, 4294966272  ;;  %s9666_s21 = sadd.s32 4294967294, %s9663_s30  }
0x155c   : > { %s5895_s29 = sand.u32 1, %s9666_s21  }
0x155d   : > { %s5896_s22 = scalar_lea.sflag [#allocation5], %s5895_s29 }
0x155e   : > { %7139 = dma.done.wait (!%p6850_p12), %s5896_s22, 528  }
0x155f   : > { %7141 = vsyncadd (!%p6850_p12), %s5896_s22, 4294966768  ;;  %s9667_s30 = sld [smem:[#allocation12_spill]]  ;;  %s9668_s2 = sld [smem:[#allocation10_spill]] }
0x1560   : > { %s9669_s29 = sld [smem:[#allocation13_spill]]  ;;  %s9670_s27 = smov %s7148_s28 }
0x1565   : > { %p32_p5 = scmp.ge.s32.totalorder %s9667_s30, 4   ;;  %s9671_s28 = smov %s9668_s2 }
0x1567   :  { %34 = sbr.rel (!%p32_p5) target bundleno = 15 (0xf), region = 178 }
0x156e   :  { %5909 = vsyncpa [#allocation3], 1 }
0x156f   :  { %5911 = vsyncpa [#allocation3 + $0x1], 1 }
0x1570   :  { %5912 = vsyncpa [#allocation5], 1 }
0x1571   :  { %5914 = vsyncpa [#allocation5 + $0x1], 1 }

</bundles_post_ra>
